<compile_context>
chip_gen: v6e
topology: v6e:2x2x1
jax: 0.10.0
libtpu: 0.0.40
codegen_flags: <defaults>
</compile_context>

<pallas_src>
import functools

import numpy as np
import jax
import jax.numpy as jnp
from jax.experimental import pallas as pl
from jax.experimental.pallas import tpu as pltpu

# ----------------------------- config (glv.network_config) ------------------
IN_CHANNELS = 1
LATENT_DIM = 32
N_STEPS = 3
K_SAMPLES = 4
HIDDEN = [32, 64, 128, 256]

VTH = 0.2       # spike threshold (SpikeAct uses strict `>`)
TAU = 0.25      # LIF leak
BN_EPS = 1e-5


def _round_up(x, m):
    return ((x + m - 1) // m) * m


def _pick_tm(M):
    """Row-tile size: small layers = one block; larger layers >=2 blocks
    (keeps both v7x TensorCores busy), capped at 512 rows per block."""
    Mr = _round_up(max(M, 8), 8)
    if Mr <= 256:
        return Mr
    half = _round_up((Mr + 1) // 2, 8)
    return min(512, half)


# ----------------------------- Pallas kernels -------------------------------
def _matmul_lif_kernel(a_ref, w_ref, b_ref, o_ref):
    """a:(T,TM,Kp) bf16, w:(Kp,Np) bf16, b:(1,Np) f32 -> spikes o:(T,TM,Np) bf16.

    One batched MXU matmul over all T timesteps, then the sequential LIF
    membrane update (f32) over TM-row slices of the accumulator.
    """
    T, TM, Kp = a_ref.shape
    a = a_ref[...].reshape(T * TM, Kp)
    y_all = jnp.dot(a, w_ref[...], preferred_element_type=jnp.float32) + b_ref[...]
    u = y_all[0:TM]
    s = u > VTH
    o_ref[0] = s.astype(o_ref.dtype)
    for t in range(1, T):                                    # static unroll (T<=n_steps)
        u = jnp.where(s, 0.0, TAU * u) + y_all[t * TM:(t + 1) * TM]
        s = u > VTH
        o_ref[t] = s.astype(o_ref.dtype)


def _conv_membrane_tanh_kernel(a_ref, w_ref, b_ref, o_ref, *, coef):
    """Final conv (no BN/spike) fused with MembraneOutputLayer + tanh."""
    T, TM, Kp = a_ref.shape
    a = a_ref[...].reshape(T * TM, Kp)
    y_all = jnp.dot(a, w_ref[...], preferred_element_type=jnp.float32) + b_ref[...]
    acc = coef[0] * y_all[0:TM]
    for t in range(1, T):
        acc = acc + coef[t] * y_all[t * TM:(t + 1) * TM]
    o_ref[...] = jnp.tanh(acc)


def _latent_kernel(h_ref, wbl_ref, bbl_ref,
                   w1x_ref, w1z_ref, b1_ref, w2_ref, b2_ref,
                   wp1_ref, bp1_ref, wp2_ref, bp2_ref,
                   mask_ref, r_ref,
                   q_ref, p_ref, z_ref):
    """Fused latent path: before_latent Linear+LIF, posterior 2-layer MLP with
    the z_{t-1} recurrence + categorical sampling, and prior 2-layer MLP.

    h:(T,Nb,Kbl) encoder features; outputs q_z/p_z:(T,Nb,C*k), z:(T,Nb,Cp)."""
    T, rows, Kbl = h_ref.shape
    Cp = z_ref.shape[2]

    # before_latent: one batched matmul over all T timesteps.
    h = h_ref[...].reshape(T * rows, Kbl)
    ybl_all = jnp.dot(h, wbl_ref[...], preferred_element_type=jnp.float32) + bbl_ref[...]

    w1x, w1z, b1 = w1x_ref[...], w1z_ref[...], b1_ref[...]
    w2, b2 = w2_ref[...], b2_ref[...]
    wp1, bp1 = wp1_ref[...], bp1_ref[...]
    wp2, bp2 = wp2_ref[...], bp2_ref[...]
    rmat = r_ref[...]

    def lif(y, state):
        if state is None:
            u = y
        else:
            u_prev, s_prev = state
            u = jnp.where(s_prev, 0.0, TAU * u_prev) + y
        s = u > VTH
        return s, (u, s)

    st_bl = st1 = st2 = stp1 = stp2 = None
    z_prev = jnp.zeros((rows, Cp), jnp.bfloat16)
    for t in range(T):                                       # static unroll
        # before_latent LIF -> latent spikes x_t
        s_bl, st_bl = lif(ybl_all[t * rows:(t + 1) * rows], st_bl)
        x_t = s_bl.astype(jnp.bfloat16)
        # prior MLP on z_{t-1}
        sp1, stp1 = lif(jnp.dot(z_prev, wp1, preferred_element_type=jnp.float32) + bp1, stp1)
        sp2, stp2 = lif(jnp.dot(sp1.astype(jnp.bfloat16), wp2,
                                preferred_element_type=jnp.float32) + bp2, stp2)
        p_ref[t] = sp2.astype(p_ref.dtype)
        # posterior MLP on concat(x_t, z_{t-1})  (concat folded into split W1)
        y1 = (jnp.dot(x_t, w1x, preferred_element_type=jnp.float32)
              + jnp.dot(z_prev, w1z, preferred_element_type=jnp.float32) + b1)
        s1, st1 = lif(y1, st1)
        s2, st2 = lif(jnp.dot(s1.astype(jnp.bfloat16), w2,
                              preferred_element_type=jnp.float32) + b2, st2)
        q_ref[t] = s2.astype(q_ref.dtype)
        # categorical sampling: keep exactly one of the k columns per (n,c)
        # (one-hot mask multiply + 0/1 reduction matmul; values stay exact).
        qsel = s2.astype(jnp.bfloat16) * mask_ref[t]
        z_t = jnp.dot(qsel, rmat, preferred_element_type=jnp.float32)
        z_prev = z_t.astype(jnp.bfloat16)
        z_ref[t] = z_prev


# ----------------------------- kernel wrappers --------------------------------
def matmul_lif(a, w_p, b_p, out_cols):
    """a:(T,M,K) -> spikes (T,M,out_cols) bf16.  w_p/b_p pre-padded (Kp,Np)."""
    T, M, K = a.shape
    Kp, Np = w_p.shape
    TM = _pick_tm(M)
    Mp = _round_up(M, TM)
    a_p = a.astype(jnp.bfloat16)
    if Mp != M or Kp != K:
        a_p = jnp.pad(a_p, ((0, 0), (0, Mp - M), (0, Kp - K)))
    out = pl.pallas_call(
        _matmul_lif_kernel,
        out_shape=jax.ShapeDtypeStruct((T, Mp, Np), jnp.bfloat16),
        grid=(Mp // TM,),
        in_specs=[pl.BlockSpec((T, TM, Kp), lambda i: (0, i, 0)),
                  pl.BlockSpec((Kp, Np), lambda i: (0, 0)),
                  pl.BlockSpec((1, Np), lambda i: (0, 0))],
        out_specs=pl.BlockSpec((T, TM, Np), lambda i: (0, i, 0)),
        compiler_params=pltpu.CompilerParams(dimension_semantics=("parallel",)),
    )(a_p, w_p, b_p)
    if Mp != M or Np != out_cols:
        out = out[:, :M, :out_cols]
    return out


def conv_lif(x, p, cout, stride=2):
    """tdConv (k=3, pad=1) + folded BN + LIF.  x:(T,N,H,W,Cin) channels-last."""
    T, N, H, W, C = x.shape
    k, pad = 3, 1
    Ho = (H + 2 * pad - k) // stride + 1
    Wo = (W + 2 * pad - k) // stride + 1
    xp = jnp.pad(x, ((0, 0), (0, 0), (pad, pad), (pad, pad), (0, 0)))
    cols = [xp[:, :, ki:ki + stride * Ho:stride, kj:kj + stride * Wo:stride, :]
            for ki in range(k) for kj in range(k)]
    a = jnp.stack(cols, axis=-2).reshape(T, N * Ho * Wo, k * k * C)
    out = matmul_lif(a, p["w"], p["b"], cout)
    return out.reshape(T, N, Ho, Wo, cout)


def convT_s2_lif(x, p, cout):
    """tdConvTranspose (k=3, s=2, p=1, op=1) + folded BN + LIF via sub-pixel
    (4-parity) decomposition: 2x2 im2col, one matmul, pixel-shuffle."""
    T, N, H, W, C = x.shape
    xp = jnp.pad(x, ((0, 0), (0, 0), (0, 1), (0, 1), (0, 0)))
    cols = [xp[:, :, dy:dy + H, dx:dx + W, :] for dy in (0, 1) for dx in (0, 1)]
    a = jnp.stack(cols, axis=-2).reshape(T, N * H * W, 4 * C)
    y = matmul_lif(a, p["w"], p["b"], 4 * cout)              # (T, N*H*W, 4*Cout)
    y = y.reshape(T, N, H, W, 2, 2, cout)
    y = y.transpose(0, 1, 2, 4, 3, 5, 6).reshape(T, N, 2 * H, 2 * W, cout)
    return y


def final_conv_membrane_tanh(x, p, cout, coef):
    """Final stride-1 tdConvTranspose (== conv with flipped weights) fused with
    MembraneOutputLayer + tanh.  Returns (N, cout, H, W) float32."""
    T, N, H, W, C = x.shape
    xp = jnp.pad(x, ((0, 0), (0, 0), (1, 1), (1, 1), (0, 0)))
    cols = [xp[:, :, ki:ki + H, kj:kj + W, :] for ki in range(3) for kj in range(3)]
    a = jnp.stack(cols, axis=-2).reshape(T, N * H * W, 9 * C)
    M = N * H * W
    Kp, Np = p["w"].shape
    TM = _pick_tm(M)
    Mp = _round_up(M, TM)
    a_p = a.astype(jnp.bfloat16)
    if Mp != M or Kp != 9 * C:
        a_p = jnp.pad(a_p, ((0, 0), (0, Mp - M), (0, Kp - 9 * C)))
    out = pl.pallas_call(
        functools.partial(_conv_membrane_tanh_kernel, coef=coef),
        out_shape=jax.ShapeDtypeStruct((Mp, Np), jnp.float32),
        grid=(Mp // TM,),
        in_specs=[pl.BlockSpec((T, TM, Kp), lambda i: (0, i, 0)),
                  pl.BlockSpec((Kp, Np), lambda i: (0, 0)),
                  pl.BlockSpec((1, Np), lambda i: (0, 0))],
        out_specs=pl.BlockSpec((TM, Np), lambda i: (i, 0)),
        compiler_params=pltpu.CompilerParams(dimension_semantics=("parallel",)),
    )(a_p, p["w"], p["b"])
    out = out[:M, :cout].reshape(N, H, W, cout).transpose(0, 3, 1, 2)
    return out


def latent_forward(lp, h, key):
    """h: (T, N, hidden[-1]*4) encoder spikes (bf16).
    Returns sampled_z:(T,N,Cp) bf16 (latent in cols :LATENT_DIM),
    q_z/p_z:(T,N,LATENT_DIM,K_SAMPLES) bf16."""
    T, N, K = h.shape
    Nb = _round_up(N, 8)
    Kblp, Cp = lp["wbl"].shape
    N2p = lp["w2"].shape[1]
    h_p = jnp.pad(h.astype(jnp.bfloat16), ((0, 0), (0, Nb - N), (0, Kblp - K)))
    # per-(t, n, c) categorical index -> one-hot selection mask over k columns
    ridx = jax.random.randint(key, (T, N, LATENT_DIM), 0, K_SAMPLES)
    mask = jax.nn.one_hot(ridx, K_SAMPLES, dtype=jnp.bfloat16)
    mask = mask.reshape(T, N, LATENT_DIM * K_SAMPLES)
    mask = jnp.pad(mask, ((0, 0), (0, Nb - N), (0, N2p - LATENT_DIM * K_SAMPLES)))
    q, p, z = pl.pallas_call(
        _latent_kernel,
        out_shape=(jax.ShapeDtypeStruct((T, Nb, N2p), jnp.bfloat16),
                   jax.ShapeDtypeStruct((T, Nb, N2p), jnp.bfloat16),
                   jax.ShapeDtypeStruct((T, Nb, Cp), jnp.bfloat16)),
    )(h_p, lp["wbl"], lp["bbl"],
      lp["w1x"], lp["w1z"], lp["b1"], lp["w2"], lp["b2"],
      lp["wp1"], lp["bp1"], lp["wp2"], lp["bp2"], mask, lp["R"])
    q_z = q[:, :N, :LATENT_DIM * K_SAMPLES].reshape(T, N, LATENT_DIM, K_SAMPLES)
    p_z = p[:, :N, :LATENT_DIM * K_SAMPLES].reshape(T, N, LATENT_DIM, K_SAMPLES)
    return z[:, :N, :], q_z, p_z


# ----------------------------- model ------------------------------------------
def encode(params, x_tm, key):
    h = x_tm.astype(jnp.bfloat16)                            # (T,N,H,W,C)
    for p, cout in zip(params["encoder"], HIDDEN):
        h = conv_lif(h, p, cout, stride=2)
    T, N, H, W, C = h.shape
    h = h.reshape(T, N, H * W * C)                           # flatten (h,w,c)
    key, sub = jax.random.split(key)
    sampled_z, q_z, p_z = latent_forward(params["latent"], h, sub)
    return sampled_z, q_z, p_z, key


def decode(params, z):
    T, N, _ = z.shape
    di = params["decoder_input"]
    r = matmul_lif(z, di["w"], di["b"], HIDDEN[-1] * 4)      # (T,N,1024) (h,w,c)
    r = r.reshape(T, N, 2, 2, HIDDEN[-1])
    for p, cout in zip(params["decoder"], HIDDEN[::-1][1:]):
        r = convT_s2_lif(r, p, cout)
    r = convT_s2_lif(r, params["final1"], HIDDEN[0])         # (T,N,32,32,32)
    coef = tuple(float(0.8 ** (T - 1 - t)) for t in range(T))
    return final_conv_membrane_tanh(r, params["final2"], IN_CHANNELS, coef)


@jax.jit
def _ee_step(params, x_t, key):
    # x_t: (N, C, H, W, T_cur) -> time-major channels-last
    x_tm = jnp.transpose(x_t, (4, 0, 2, 3, 1))
    sampled_z, q_z, p_z, key = encode(params, x_tm, key)
    x_recon = decode(params, sampled_z)
    return x_recon, q_z, p_z, sampled_z, key


def compare_images(img1, img2):
    return jnp.sum(jnp.abs(img1 - img2)) / 100.0


_compare = jax.jit(compare_images)


def forward_ee(params, x, key, scheduled=False):
    """Pruning_FSVAE_large_EE.forward — early-exit over the time axis."""
    timesteps = x.shape[4]
    N, C, H, W = x.shape[0], x.shape[1], x.shape[2], x.shape[3]
    # zero "image" placeholder (same numerics as the reference's zeros(1) broadcast)
    recon_list = [jnp.zeros((N, C, H, W), jnp.float32)]
    eet = 0
    m_norm_2 = jnp.zeros((), jnp.float32)
    x_recon = q_z = p_z = sampled_z = None
    for t in range(timesteps):
        x_recon, q_z, p_z, sampled_z, key = _ee_step(params, x[..., :t + 1], key)
        recon_list.append(x_recon)
        eet = t + 1
        if t > 1:
            m0 = _compare(recon_list[t - 2], recon_list[t - 1])
            m1 = _compare(recon_list[t - 1], recon_list[t])
            m2 = _compare(recon_list[t], recon_list[t + 1])
            m_norm_2 = m2
            # single host readback per EE check
            if bool(jax.device_get((m2 < m1) & (m1 < m0) & (m2 < 1.0))):
                break
    q_z = jnp.transpose(q_z, (1, 2, 3, 0)).astype(jnp.float32)          # (N,C,k,T)
    p_z = jnp.transpose(p_z, (1, 2, 3, 0)).astype(jnp.float32)
    sampled_z = jnp.transpose(sampled_z[:, :, :LATENT_DIM], (1, 2, 0)).astype(jnp.float32)
    return x_recon, q_z, p_z, sampled_z, eet, m_norm_2


# ----------------------------- parameter preparation --------------------------
def bn_identity(c, alpha=1.0):
    gamma, beta = jnp.ones((c,), jnp.float32), jnp.zeros((c,), jnp.float32)
    mean, var = jnp.zeros((c,), jnp.float32), jnp.ones((c,), jnp.float32)
    scale = alpha * VTH * gamma / jnp.sqrt(var + BN_EPS)
    shift = beta - scale * mean
    return scale, shift


def _pad_matmul(wmat, bias):
    K, Nc = wmat.shape
    Kp, Np = _round_up(K, 128), _round_up(Nc, 128)           # 128-aligned K (lane dim)
    w_p = jnp.pad(wmat, ((0, Kp - K), (0, Np - Nc))).astype(jnp.bfloat16)
    b_p = jnp.pad(bias, (0, Np - Nc)).reshape(1, Np).astype(jnp.float32)
    return {"w": w_p, "b": b_p}


def _fold_linear(raw, in_perm=None, out_perm=None):
    wmat = raw["w"].T.astype(jnp.float32)                    # (Cin, Cout)
    bias = raw["b"].astype(jnp.float32)
    if "bn_scale" in raw:
        wmat = wmat * raw["bn_scale"][None, :]
        bias = bias * raw["bn_scale"] + raw["bn_shift"]
    if in_perm is not None:
        wmat = wmat[in_perm, :]
    if out_perm is not None:
        wmat = wmat[:, out_perm]
        bias = bias[out_perm]
    return wmat, bias


def prep_conv(raw):
    w = raw["w"].astype(jnp.float32)                         # (Cout,Cin,3,3)
    cout = w.shape[0]
    wmat = jnp.transpose(w, (2, 3, 1, 0)).reshape(-1, cout)  # rows (ky,kx,ci)
    bias = raw["b"].astype(jnp.float32)
    wmat = wmat * raw["bn_scale"][None, :]
    bias = bias * raw["bn_scale"] + raw["bn_shift"]
    return _pad_matmul(wmat, bias)


def prep_convT_s2(raw):
    """Sub-pixel weight matrix for ConvTranspose2d(k=3, s=2, p=1, op=1) + BN fold."""
    w = raw["w"].astype(jnp.float32)                         # (Cin,Cout,3,3) torch layout
    cin, cout = w.shape[0], w.shape[1]
    wf = jnp.transpose(w[:, :, ::-1, ::-1], (1, 0, 2, 3))    # (Cout,Cin,3,3) flipped
    wbig = jnp.zeros((4, cin, 4, cout), jnp.float32)         # (tap, ci, parity, co)
    for dy in (0, 1):
        for dx in (0, 1):
            par = dy * 2 + dx
            for ty in (0, 1):
                ky = 2 * ty + 1 - dy
                if ky > 2:
                    continue
                for tx in (0, 1):
                    kx = 2 * tx + 1 - dx
                    if kx > 2:
                        continue
                    tap = ty * 2 + tx
                    wbig = wbig.at[tap, :, par, :].set(wf[:, :, ky, kx].T)
    wbig = wbig.reshape(4 * cin, 4 * cout)
    bias = jnp.tile(raw["b"].astype(jnp.float32), 4)
    scale = jnp.tile(raw["bn_scale"], 4)
    shift = jnp.tile(raw["bn_shift"], 4)
    wbig = wbig * scale[None, :]
    bias = bias * scale + shift
    return _pad_matmul(wbig, bias)


def prep_convT_s1(raw):
    """ConvTranspose2d(k=3, s=1, p=1) == conv with flipped weights (no BN here)."""
    w = raw["w"].astype(jnp.float32)                         # (Cin,Cout,3,3)
    cout = w.shape[1]
    wf = jnp.transpose(w[:, :, ::-1, ::-1], (1, 0, 2, 3))    # (Cout,Cin,3,3)
    wmat = jnp.transpose(wf, (2, 3, 1, 0)).reshape(-1, cout)
    return _pad_matmul(wmat, raw["b"].astype(jnp.float32))


def prep_latent(raw_bl, raw_post, raw_prior, in_perm):
    """before_latent + posterior + prior weights, BN-folded, split & padded for
    the fused latent kernel."""
    C = LATENT_DIM
    Cp = _round_up(C, 128)
    wbl, bbl = _fold_linear(raw_bl, in_perm=in_perm)         # (1024, 32)
    Kblp = _round_up(wbl.shape[0], 128)
    w1, b1 = _fold_linear(raw_post["l1"])                    # (2C, 2C) in x out
    w1x, w1z = w1[:C], w1[C:]
    N1p = _round_up(w1.shape[1], 128)
    w2, b2 = _fold_linear(raw_post["l2"])                    # (2C, C*k)
    N2p = _round_up(w2.shape[1], 128)
    wp1, bp1 = _fold_linear(raw_prior["l1"])                 # (C, 2C)
    NP1p = _round_up(wp1.shape[1], 128)
    wp2, bp2 = _fold_linear(raw_prior["l2"])                 # (2C, C*k)
    # 0/1 reduction matrix: sums each group of k columns into one latent dim
    R = np.zeros((N2p, Cp), np.float32)
    for c in range(C):
        for j in range(K_SAMPLES):
            R[c * K_SAMPLES + j, c] = 1.0

    def pad2(m, rp, cp_):
        return jnp.pad(m, ((0, rp - m.shape[0]), (0, cp_ - m.shape[1]))).astype(jnp.bfloat16)

    def pad1(v, cp_):
        return jnp.pad(v, (0, cp_ - v.shape[0])).reshape(1, cp_).astype(jnp.float32)

    return {
        "wbl": pad2(wbl, Kblp, Cp), "bbl": pad1(bbl, Cp),
        "w1x": pad2(w1x, Cp, N1p), "w1z": pad2(w1z, Cp, N1p), "b1": pad1(b1, N1p),
        "w2": pad2(w2, N1p, N2p), "b2": pad1(b2, N2p),
        "wp1": pad2(wp1, Cp, NP1p), "bp1": pad1(bp1, NP1p),
        "wp2": pad2(wp2, NP1p, N2p), "bp2": pad1(bp2, N2p),
        "R": jnp.asarray(R, jnp.bfloat16),
    }


def init_raw_params(key):
    keys = iter(jax.random.split(key, 16))

    def conv_p(cout, cin):
        w = jax.random.normal(next(keys), (cout, cin, 3, 3), jnp.float32) * (2.0 / np.sqrt(cin * 9))
        d = {"w": w, "b": jnp.zeros((cout,), jnp.float32)}
        d["bn_scale"], d["bn_shift"] = bn_identity(cout, 1.0)
        return d

    def convT_p(cin, cout, bn=True):
        w = jax.random.normal(next(keys), (cin, cout, 3, 3), jnp.float32) * (2.0 / np.sqrt(cin * 9))
        d = {"w": w, "b": jnp.zeros((cout,), jnp.float32)}
        if bn:
            d["bn_scale"], d["bn_shift"] = bn_identity(cout, 1.0)
        return d

    def lin_p(cout, cin, alpha=1.0):
        w = jax.random.normal(next(keys), (cout, cin), jnp.float32) * (2.0 / np.sqrt(cin))
        d = {"w": w, "b": jnp.zeros((cout,), jnp.float32)}
        d["bn_scale"], d["bn_shift"] = bn_identity(cout, alpha)
        return d

    enc, cin = [], IN_CHANNELS
    for h in HIDDEN:
        enc.append(conv_p(h, cin))
        cin = h
    return {
        "encoder": enc,
        "before_latent": lin_p(LATENT_DIM, HIDDEN[-1] * 4),
        "posterior": {"l1": lin_p(2 * LATENT_DIM, 2 * LATENT_DIM, alpha=2.0),
                      "l2": lin_p(LATENT_DIM * K_SAMPLES, 2 * LATENT_DIM, alpha=2.0)},
        "prior": {"l1": lin_p(2 * LATENT_DIM, LATENT_DIM, alpha=2.0),
                  "l2": lin_p(LATENT_DIM * K_SAMPLES, 2 * LATENT_DIM, alpha=2.0)},
        "decoder_input": lin_p(HIDDEN[-1] * 4, LATENT_DIM),
        "decoder": [convT_p(256, 128), convT_p(128, 64), convT_p(64, 32)],
        "final1": convT_p(32, 32),
        "final2": convT_p(32, IN_CHANNELS, bn=False),
    }


def prepare_params(raw):
    """Fold BN, reorder for (h,w,c) channels-last flatten, pre-pad, cast to bf16."""
    Hh = Ww = 2
    Cc = HIDDEN[-1]
    perm = np.empty((Hh * Ww * Cc,), np.int32)
    for h in range(Hh):
        for w_ in range(Ww):
            for c in range(Cc):
                # ours (h, w, c)  <-  torch (c, h, w)
                perm[(h * Ww + w_) * Cc + c] = c * Hh * Ww + h * Ww + w_
    perm = jnp.asarray(perm)
    return {
        "encoder": [prep_conv(p) for p in raw["encoder"]],
        "latent": prep_latent(raw["before_latent"], raw["posterior"], raw["prior"], perm),
        "decoder_input": _pad_matmul(*_fold_linear(raw["decoder_input"], out_perm=perm)),
        "decoder": [prep_convT_s2(p) for p in raw["decoder"]],
        "final1": prep_convT_s2(raw["final1"]),
        "final2": prep_convT_s1(raw["final2"]),
    }


# ----------------------------- main -------------------------------------------
if __name__ == "__main__":
    root = jax.random.PRNGKey(0)
    pkey, xkey, skey = jax.random.split(root, 3)

    params = prepare_params(init_raw_params(pkey))
    # spike-train-like input: (N, C, H, W, T) = (2, 1, 32, 32, 3)
    x = (jax.random.uniform(xkey, (2, IN_CHANNELS, 32, 32, N_STEPS)) < 0.5).astype(jnp.float32)

    x_recon, q_z, p_z, sampled_z, eet, m_norm_2 = forward_ee(params, x, skey)
    jax.block_until_ready((x_recon, q_z, p_z, sampled_z, m_norm_2))

    assert x_recon.shape == (2, IN_CHANNELS, 32, 32)
    assert q_z.shape[0] == 2 and q_z.shape[1] == LATENT_DIM and q_z.shape[2] == K_SAMPLES
    assert p_z.shape == q_z.shape
    assert sampled_z.shape[:2] == (2, LATENT_DIM)
    assert 1 <= eet <= N_STEPS
    print("KERNEL_OK")
</pallas_src>

<mosaic_0001>
module attributes {stable_mosaic.version = 11 : i64} {
  func.func @_matmul_lif_kernel(%arg0: i32, %arg1: memref<1x256x128xbf16, #tpu.memory_space<vmem>>, %arg2: memref<128x128xbf16, #tpu.memory_space<vmem>>, %arg3: memref<1x128xf32, #tpu.memory_space<vmem>>, %arg4: memref<1x256x128xbf16, #tpu.memory_space<vmem>>) attributes {dimension_semantics = [#tpu.dimension_semantics<parallel>], iteration_bounds = array<i64: 2>, scalar_prefetch = 0 : i64, scratch_operands = 0 : i64, tpu.core_type = #tpu.core_type<tc>, window_params = [{transform_indices = @transform_0, window_bounds = array<i64: 1, 256, 128>}, {pipeline_mode = #tpu.pipeline_mode<synchronous>, transform_indices = @transform_1, window_bounds = array<i64: 128, 128>}, {pipeline_mode = #tpu.pipeline_mode<synchronous>, transform_indices = @transform_2, window_bounds = array<i64: 1, 128>}, {transform_indices = @transform_3, window_bounds = array<i64: 1, 256, 128>}]} {
    %c0 = arith.constant 0 : index
    %c0_0 = arith.constant 0 : index
    %c0_1 = arith.constant 0 : index
    %0 = vector.load %arg1[%c0, %c0_0, %c0_1] : memref<1x256x128xbf16, #tpu.memory_space<vmem>>, vector<1x256x128xbf16>
    %1 = vector.shape_cast %0 : vector<1x256x128xbf16> to vector<256x128xbf16>
    %c0_2 = arith.constant 0 : index
    %c0_3 = arith.constant 0 : index
    %2 = vector.load %arg2[%c0_2, %c0_3] : memref<128x128xbf16, #tpu.memory_space<vmem>>, vector<128x128xbf16>
    %cst = arith.constant dense<0.000000e+00> : vector<256x128xf32>
    %3 = tpu.matmul %1, %2, %cst {dimension_numbers = #tpu.dot_dimension_numbers<[1], [0], [0], [1], [0, 0, 1, 1], [], []>} : vector<256x128xbf16>, vector<128x128xbf16>, vector<256x128xf32> -> vector<256x128xf32>
    %c0_4 = arith.constant 0 : index
    %c0_5 = arith.constant 0 : index
    %4 = vector.load %arg3[%c0_4, %c0_5] : memref<1x128xf32, #tpu.memory_space<vmem>>, vector<1x128xf32>
    %5 = vector.broadcast %4 : vector<1x128xf32> to vector<256x128xf32>
    %6 = arith.addf %3, %5 : vector<256x128xf32>
    %cst_6 = arith.constant 2.000000e-01 : f32
    %7 = vector.broadcast %cst_6 : f32 to vector<256x128xf32>
    %8 = arith.cmpf ogt, %6, %7 : vector<256x128xf32>
    %9 = arith.extui %8 : vector<256x128xi1> to vector<256x128xi32>
    %10 = arith.sitofp %9 : vector<256x128xi32> to vector<256x128xf32>
    %11 = arith.truncf %10 : vector<256x128xf32> to vector<256x128xbf16>
    %c0_7 = arith.constant 0 : index
    %c0_8 = arith.constant 0 : index
    %c0_9 = arith.constant 0 : index
    %12 = vector.load %arg4[%c0_7, %c0_8, %c0_9] : memref<1x256x128xbf16, #tpu.memory_space<vmem>>, vector<1x256x128xbf16>
    %13 = vector.shape_cast %12 : vector<1x256x128xbf16> to vector<256x128xbf16>
    %14 = vector.shape_cast %11 : vector<256x128xbf16> to vector<1x256x128xbf16>
    tpu.vector_store %arg4[%c0_7, %c0_8, %c0_9], %14 {strides = array<i32>} : memref<1x256x128xbf16, #tpu.memory_space<vmem>>, vector<1x256x128xbf16>,
    return
  }
  func.func @transform_0(%arg0: i32) -> (i32, i32, i32) {
    %c0_i32 = arith.constant 0 : i32
    %c0_i32_0 = arith.constant 0 : i32
    %c0_i32_1 = arith.constant 0 : i32
    return %c0_i32, %arg0, %c0_i32_0 : i32, i32, i32
  }
  func.func @transform_1(%arg0: i32) -> (i32, i32) {
    %c0_i32 = arith.constant 0 : i32
    %c0_i32_0 = arith.constant 0 : i32
    %c0_i32_1 = arith.constant 0 : i32
    return %c0_i32, %c0_i32_0 : i32, i32
  }
  func.func @transform_2(%arg0: i32) -> (i32, i32) {
    %c0_i32 = arith.constant 0 : i32
    %c0_i32_0 = arith.constant 0 : i32
    %c0_i32_1 = arith.constant 0 : i32
    return %c0_i32, %c0_i32_0 : i32, i32
  }
  func.func @transform_3(%arg0: i32) -> (i32, i32, i32) {
    %c0_i32 = arith.constant 0 : i32
    %c0_i32_0 = arith.constant 0 : i32
    %c0_i32_1 = arith.constant 0 : i32
    return %c0_i32, %arg0, %c0_i32_0 : i32, i32, i32
  }
}

module attributes {stable_mosaic.version = 11 : i64} {
  func.func @_matmul_lif_kernel(%arg0: i32, %arg1: memref<1x128x384xbf16, #tpu.memory_space<vmem>>, %arg2: memref<384x128xbf16, #tpu.memory_space<vmem>>, %arg3: memref<1x128xf32, #tpu.memory_space<vmem>>, %arg4: memref<1x128x128xbf16, #tpu.memory_space<vmem>>) attributes {dimension_semantics = [#tpu.dimension_semantics<parallel>], iteration_bounds = array<i64: 1>, scalar_prefetch = 0 : i64, scratch_operands = 0 : i64, tpu.core_type = #tpu.core_type<tc>, window_params = [{transform_indices = @transform_0, window_bounds = array<i64: 1, 128, 384>}, {pipeline_mode = #tpu.pipeline_mode<synchronous>, transform_indices = @transform_1, window_bounds = array<i64: 384, 128>}, {pipeline_mode = #tpu.pipeline_mode<synchronous>, transform_indices = @transform_2, window_bounds = array<i64: 1, 128>}, {transform_indices = @transform_3, window_bounds = array<i64: 1, 128, 128>}]} {
    %c0 = arith.constant 0 : index
    %c0_0 = arith.constant 0 : index
    %c0_1 = arith.constant 0 : index
    %0 = vector.load %arg1[%c0, %c0_0, %c0_1] : memref<1x128x384xbf16, #tpu.memory_space<vmem>>, vector<1x128x384xbf16>
    %1 = vector.shape_cast %0 : vector<1x128x384xbf16> to vector<128x384xbf16>
    %c0_2 = arith.constant 0 : index
    %c0_3 = arith.constant 0 : index
    %2 = vector.load %arg2[%c0_2, %c0_3] : memref<384x128xbf16, #tpu.memory_space<vmem>>, vector<384x128xbf16>
    %cst = arith.constant dense<0.000000e+00> : vector<128x128xf32>
    %3 = tpu.matmul %1, %2, %cst {dimension_numbers = #tpu.dot_dimension_numbers<[1], [0], [0], [1], [0, 0, 1, 1], [], []>} : vector<128x384xbf16>, vector<384x128xbf16>, vector<128x128xf32> -> vector<128x128xf32>
    %c0_4 = arith.constant 0 : index
    %c0_5 = arith.constant 0 : index
    %4 = vector.load %arg3[%c0_4, %c0_5] : memref<1x128xf32, #tpu.memory_space<vmem>>, vector<1x128xf32>
    %5 = vector.broadcast %4 : vector<1x128xf32> to vector<128x128xf32>
    %6 = arith.addf %3, %5 : vector<128x128xf32>
    %cst_6 = arith.constant 2.000000e-01 : f32
    %7 = vector.broadcast %cst_6 : f32 to vector<128x128xf32>
    %8 = arith.cmpf ogt, %6, %7 : vector<128x128xf32>
    %9 = arith.extui %8 : vector<128x128xi1> to vector<128x128xi32>
    %10 = arith.sitofp %9 : vector<128x128xi32> to vector<128x128xf32>
    %11 = arith.truncf %10 : vector<128x128xf32> to vector<128x128xbf16>
    %c0_7 = arith.constant 0 : index
    %c0_8 = arith.constant 0 : index
    %c0_9 = arith.constant 0 : index
    %12 = vector.load %arg4[%c0_7, %c0_8, %c0_9] : memref<1x128x128xbf16, #tpu.memory_space<vmem>>, vector<1x128x128xbf16>
    %13 = vector.shape_cast %12 : vector<1x128x128xbf16> to vector<128x128xbf16>
    %14 = vector.shape_cast %11 : vector<128x128xbf16> to vector<1x128x128xbf16>
    tpu.vector_store %arg4[%c0_7, %c0_8, %c0_9], %14 {strides = array<i32>} : memref<1x128x128xbf16, #tpu.memory_space<vmem>>, vector<1x128x128xbf16>,
    return
  }
  func.func @transform_0(%arg0: i32) -> (i32, i32, i32) {
    %c0_i32 = arith.constant 0 : i32
    %c0_i32_0 = arith.constant 0 : i32
    %c0_i32_1 = arith.constant 0 : i32
    return %c0_i32, %arg0, %c0_i32_0 : i32, i32, i32
  }
  func.func @transform_1(%arg0: i32) -> (i32, i32) {
    %c0_i32 = arith.constant 0 : i32
    %c0_i32_0 = arith.constant 0 : i32
    %c0_i32_1 = arith.constant 0 : i32
    return %c0_i32, %c0_i32_0 : i32, i32
  }
  func.func @transform_2(%arg0: i32) -> (i32, i32) {
    %c0_i32 = arith.constant 0 : i32
    %c0_i32_0 = arith.constant 0 : i32
    %c0_i32_1 = arith.constant 0 : i32
    return %c0_i32, %c0_i32_0 : i32, i32
  }
  func.func @transform_3(%arg0: i32) -> (i32, i32, i32) {
    %c0_i32 = arith.constant 0 : i32
    %c0_i32_0 = arith.constant 0 : i32
    %c0_i32_1 = arith.constant 0 : i32
    return %c0_i32, %arg0, %c0_i32_0 : i32, i32, i32
  }
}

module attributes {stable_mosaic.version = 11 : i64} {
  func.func @_matmul_lif_kernel(%arg0: i32, %arg1: memref<1x32x640xbf16, #tpu.memory_space<vmem>>, %arg2: memref<640x128xbf16, #tpu.memory_space<vmem>>, %arg3: memref<1x128xf32, #tpu.memory_space<vmem>>, %arg4: memref<1x32x128xbf16, #tpu.memory_space<vmem>>) attributes {dimension_semantics = [#tpu.dimension_semantics<parallel>], iteration_bounds = array<i64: 1>, scalar_prefetch = 0 : i64, scratch_operands = 0 : i64, tpu.core_type = #tpu.core_type<tc>, window_params = [{transform_indices = @transform_0, window_bounds = array<i64: 1, 32, 640>}, {pipeline_mode = #tpu.pipeline_mode<synchronous>, transform_indices = @transform_1, window_bounds = array<i64: 640, 128>}, {pipeline_mode = #tpu.pipeline_mode<synchronous>, transform_indices = @transform_2, window_bounds = array<i64: 1, 128>}, {transform_indices = @transform_3, window_bounds = array<i64: 1, 32, 128>}]} {
    %c0 = arith.constant 0 : index
    %c0_0 = arith.constant 0 : index
    %c0_1 = arith.constant 0 : index
    %0 = vector.load %arg1[%c0, %c0_0, %c0_1] : memref<1x32x640xbf16, #tpu.memory_space<vmem>>, vector<1x32x640xbf16>
    %1 = vector.shape_cast %0 : vector<1x32x640xbf16> to vector<32x640xbf16>
    %c0_2 = arith.constant 0 : index
    %c0_3 = arith.constant 0 : index
    %2 = vector.load %arg2[%c0_2, %c0_3] : memref<640x128xbf16, #tpu.memory_space<vmem>>, vector<640x128xbf16>
    %cst = arith.constant dense<0.000000e+00> : vector<32x128xf32>
    %3 = tpu.matmul %1, %2, %cst {dimension_numbers = #tpu.dot_dimension_numbers<[1], [0], [0], [1], [0, 0, 1, 1], [], []>} : vector<32x640xbf16>, vector<640x128xbf16>, vector<32x128xf32> -> vector<32x128xf32>
    %c0_4 = arith.constant 0 : index
    %c0_5 = arith.constant 0 : index
    %4 = vector.load %arg3[%c0_4, %c0_5] : memref<1x128xf32, #tpu.memory_space<vmem>>, vector<1x128xf32>
    %5 = vector.broadcast %4 : vector<1x128xf32> to vector<32x128xf32>
    %6 = arith.addf %3, %5 : vector<32x128xf32>
    %cst_6 = arith.constant 2.000000e-01 : f32
    %7 = vector.broadcast %cst_6 : f32 to vector<32x128xf32>
    %8 = arith.cmpf ogt, %6, %7 : vector<32x128xf32>
    %9 = arith.extui %8 : vector<32x128xi1> to vector<32x128xi32>
    %10 = arith.sitofp %9 : vector<32x128xi32> to vector<32x128xf32>
    %11 = arith.truncf %10 : vector<32x128xf32> to vector<32x128xbf16>
    %c0_7 = arith.constant 0 : index
    %c0_8 = arith.constant 0 : index
    %c0_9 = arith.constant 0 : index
    %12 = vector.load %arg4[%c0_7, %c0_8, %c0_9] : memref<1x32x128xbf16, #tpu.memory_space<vmem>>, vector<1x32x128xbf16>
    %13 = vector.shape_cast %12 : vector<1x32x128xbf16> to vector<32x128xbf16>
    %14 = vector.shape_cast %11 : vector<32x128xbf16> to vector<1x32x128xbf16>
    tpu.vector_store %arg4[%c0_7, %c0_8, %c0_9], %14 {strides = array<i32>} : memref<1x32x128xbf16, #tpu.memory_space<vmem>>, vector<1x32x128xbf16>,
    return
  }
  func.func @transform_0(%arg0: i32) -> (i32, i32, i32) {
    %c0_i32 = arith.constant 0 : i32
    %c0_i32_0 = arith.constant 0 : i32
    %c0_i32_1 = arith.constant 0 : i32
    return %c0_i32, %arg0, %c0_i32_0 : i32, i32, i32
  }
  func.func @transform_1(%arg0: i32) -> (i32, i32) {
    %c0_i32 = arith.constant 0 : i32
    %c0_i32_0 = arith.constant 0 : i32
    %c0_i32_1 = arith.constant 0 : i32
    return %c0_i32, %c0_i32_0 : i32, i32
  }
  func.func @transform_2(%arg0: i32) -> (i32, i32) {
    %c0_i32 = arith.constant 0 : i32
    %c0_i32_0 = arith.constant 0 : i32
    %c0_i32_1 = arith.constant 0 : i32
    return %c0_i32, %c0_i32_0 : i32, i32
  }
  func.func @transform_3(%arg0: i32) -> (i32, i32, i32) {
    %c0_i32 = arith.constant 0 : i32
    %c0_i32_0 = arith.constant 0 : i32
    %c0_i32_1 = arith.constant 0 : i32
    return %c0_i32, %arg0, %c0_i32_0 : i32, i32, i32
  }
}

module attributes {stable_mosaic.version = 11 : i64} {
  func.func @_matmul_lif_kernel(%arg0: i32, %arg1: memref<1x8x1152xbf16, #tpu.memory_space<vmem>>, %arg2: memref<1152x256xbf16, #tpu.memory_space<vmem>>, %arg3: memref<1x256xf32, #tpu.memory_space<vmem>>, %arg4: memref<1x8x256xbf16, #tpu.memory_space<vmem>>) attributes {dimension_semantics = [#tpu.dimension_semantics<parallel>], iteration_bounds = array<i64: 1>, scalar_prefetch = 0 : i64, scratch_operands = 0 : i64, tpu.core_type = #tpu.core_type<tc>, window_params = [{transform_indices = @transform_0, window_bounds = array<i64: 1, 8, 1152>}, {pipeline_mode = #tpu.pipeline_mode<synchronous>, transform_indices = @transform_1, window_bounds = array<i64: 1152, 256>}, {pipeline_mode = #tpu.pipeline_mode<synchronous>, transform_indices = @transform_2, window_bounds = array<i64: 1, 256>}, {transform_indices = @transform_3, window_bounds = array<i64: 1, 8, 256>}]} {
    %c0 = arith.constant 0 : index
    %c0_0 = arith.constant 0 : index
    %c0_1 = arith.constant 0 : index
    %0 = vector.load %arg1[%c0, %c0_0, %c0_1] : memref<1x8x1152xbf16, #tpu.memory_space<vmem>>, vector<1x8x1152xbf16>
    %1 = vector.shape_cast %0 : vector<1x8x1152xbf16> to vector<8x1152xbf16>
    %c0_2 = arith.constant 0 : index
    %c0_3 = arith.constant 0 : index
    %2 = vector.load %arg2[%c0_2, %c0_3] : memref<1152x256xbf16, #tpu.memory_space<vmem>>, vector<1152x256xbf16>
    %cst = arith.constant dense<0.000000e+00> : vector<8x256xf32>
    %3 = tpu.matmul %1, %2, %cst {dimension_numbers = #tpu.dot_dimension_numbers<[1], [0], [0], [1], [0, 0, 1, 1], [], []>} : vector<8x1152xbf16>, vector<1152x256xbf16>, vector<8x256xf32> -> vector<8x256xf32>
    %c0_4 = arith.constant 0 : index
    %c0_5 = arith.constant 0 : index
    %4 = vector.load %arg3[%c0_4, %c0_5] : memref<1x256xf32, #tpu.memory_space<vmem>>, vector<1x256xf32>
    %5 = vector.broadcast %4 : vector<1x256xf32> to vector<8x256xf32>
    %6 = arith.addf %3, %5 : vector<8x256xf32>
    %cst_6 = arith.constant 2.000000e-01 : f32
    %7 = vector.broadcast %cst_6 : f32 to vector<8x256xf32>
    %8 = arith.cmpf ogt, %6, %7 : vector<8x256xf32>
    %9 = arith.extui %8 : vector<8x256xi1> to vector<8x256xi32>
    %10 = arith.sitofp %9 : vector<8x256xi32> to vector<8x256xf32>
    %11 = arith.truncf %10 : vector<8x256xf32> to vector<8x256xbf16>
    %c0_7 = arith.constant 0 : index
    %c0_8 = arith.constant 0 : index
    %c0_9 = arith.constant 0 : index
    %12 = vector.load %arg4[%c0_7, %c0_8, %c0_9] : memref<1x8x256xbf16, #tpu.memory_space<vmem>>, vector<1x8x256xbf16>
    %13 = vector.shape_cast %12 : vector<1x8x256xbf16> to vector<8x256xbf16>
    %14 = vector.shape_cast %11 : vector<8x256xbf16> to vector<1x8x256xbf16>
    tpu.vector_store %arg4[%c0_7, %c0_8, %c0_9], %14 {strides = array<i32>} : memref<1x8x256xbf16, #tpu.memory_space<vmem>>, vector<1x8x256xbf16>,
    return
  }
  func.func @transform_0(%arg0: i32) -> (i32, i32, i32) {
    %c0_i32 = arith.constant 0 : i32
    %c0_i32_0 = arith.constant 0 : i32
    %c0_i32_1 = arith.constant 0 : i32
    return %c0_i32, %arg0, %c0_i32_0 : i32, i32, i32
  }
  func.func @transform_1(%arg0: i32) -> (i32, i32) {
    %c0_i32 = arith.constant 0 : i32
    %c0_i32_0 = arith.constant 0 : i32
    %c0_i32_1 = arith.constant 0 : i32
    return %c0_i32, %c0_i32_0 : i32, i32
  }
  func.func @transform_2(%arg0: i32) -> (i32, i32) {
    %c0_i32 = arith.constant 0 : i32
    %c0_i32_0 = arith.constant 0 : i32
    %c0_i32_1 = arith.constant 0 : i32
    return %c0_i32, %c0_i32_0 : i32, i32
  }
  func.func @transform_3(%arg0: i32) -> (i32, i32, i32) {
    %c0_i32 = arith.constant 0 : i32
    %c0_i32_0 = arith.constant 0 : i32
    %c0_i32_1 = arith.constant 0 : i32
    return %c0_i32, %arg0, %c0_i32_0 : i32, i32, i32
  }
}

module attributes {stable_mosaic.version = 11 : i64} {
  func.func @_matmul_lif_kernel(%arg0: i32, %arg1: memref<1x8x128xbf16, #tpu.memory_space<vmem>>, %arg2: memref<128x1024xbf16, #tpu.memory_space<vmem>>, %arg3: memref<1x1024xf32, #tpu.memory_space<vmem>>, %arg4: memref<1x8x1024xbf16, #tpu.memory_space<vmem>>) attributes {dimension_semantics = [#tpu.dimension_semantics<parallel>], iteration_bounds = array<i64: 1>, scalar_prefetch = 0 : i64, scratch_operands = 0 : i64, tpu.core_type = #tpu.core_type<tc>, window_params = [{transform_indices = @transform_0, window_bounds = array<i64: 1, 8, 128>}, {pipeline_mode = #tpu.pipeline_mode<synchronous>, transform_indices = @transform_1, window_bounds = array<i64: 128, 1024>}, {pipeline_mode = #tpu.pipeline_mode<synchronous>, transform_indices = @transform_2, window_bounds = array<i64: 1, 1024>}, {transform_indices = @transform_3, window_bounds = array<i64: 1, 8, 1024>}]} {
    %c0 = arith.constant 0 : index
    %c0_0 = arith.constant 0 : index
    %c0_1 = arith.constant 0 : index
    %0 = vector.load %arg1[%c0, %c0_0, %c0_1] : memref<1x8x128xbf16, #tpu.memory_space<vmem>>, vector<1x8x128xbf16>
    %1 = vector.shape_cast %0 : vector<1x8x128xbf16> to vector<8x128xbf16>
    %c0_2 = arith.constant 0 : index
    %c0_3 = arith.constant 0 : index
    %2 = vector.load %arg2[%c0_2, %c0_3] : memref<128x1024xbf16, #tpu.memory_space<vmem>>, vector<128x1024xbf16>
    %cst = arith.constant dense<0.000000e+00> : vector<8x1024xf32>
    %3 = tpu.matmul %1, %2, %cst {dimension_numbers = #tpu.dot_dimension_numbers<[1], [0], [0], [1], [0, 0, 1, 1], [], []>} : vector<8x128xbf16>, vector<128x1024xbf16>, vector<8x1024xf32> -> vector<8x1024xf32>
    %c0_4 = arith.constant 0 : index
    %c0_5 = arith.constant 0 : index
    %4 = vector.load %arg3[%c0_4, %c0_5] : memref<1x1024xf32, #tpu.memory_space<vmem>>, vector<1x1024xf32>
    %5 = vector.broadcast %4 : vector<1x1024xf32> to vector<8x1024xf32>
    %6 = arith.addf %3, %5 : vector<8x1024xf32>
    %cst_6 = arith.constant 2.000000e-01 : f32
    %7 = vector.broadcast %cst_6 : f32 to vector<8x1024xf32>
    %8 = arith.cmpf ogt, %6, %7 : vector<8x1024xf32>
    %9 = arith.extui %8 : vector<8x1024xi1> to vector<8x1024xi32>
    %10 = arith.sitofp %9 : vector<8x1024xi32> to vector<8x1024xf32>
    %11 = arith.truncf %10 : vector<8x1024xf32> to vector<8x1024xbf16>
    %c0_7 = arith.constant 0 : index
    %c0_8 = arith.constant 0 : index
    %c0_9 = arith.constant 0 : index
    %12 = vector.load %arg4[%c0_7, %c0_8, %c0_9] : memref<1x8x1024xbf16, #tpu.memory_space<vmem>>, vector<1x8x1024xbf16>
    %13 = vector.shape_cast %12 : vector<1x8x1024xbf16> to vector<8x1024xbf16>
    %14 = vector.shape_cast %11 : vector<8x1024xbf16> to vector<1x8x1024xbf16>
    tpu.vector_store %arg4[%c0_7, %c0_8, %c0_9], %14 {strides = array<i32>} : memref<1x8x1024xbf16, #tpu.memory_space<vmem>>, vector<1x8x1024xbf16>,
    return
  }
  func.func @transform_0(%arg0: i32) -> (i32, i32, i32) {
    %c0_i32 = arith.constant 0 : i32
    %c0_i32_0 = arith.constant 0 : i32
    %c0_i32_1 = arith.constant 0 : i32
    return %c0_i32, %arg0, %c0_i32_0 : i32, i32, i32
  }
  func.func @transform_1(%arg0: i32) -> (i32, i32) {
    %c0_i32 = arith.constant 0 : i32
    %c0_i32_0 = arith.constant 0 : i32
    %c0_i32_1 = arith.constant 0 : i32
    return %c0_i32, %c0_i32_0 : i32, i32
  }
  func.func @transform_2(%arg0: i32) -> (i32, i32) {
    %c0_i32 = arith.constant 0 : i32
    %c0_i32_0 = arith.constant 0 : i32
    %c0_i32_1 = arith.constant 0 : i32
    return %c0_i32, %c0_i32_0 : i32, i32
  }
  func.func @transform_3(%arg0: i32) -> (i32, i32, i32) {
    %c0_i32 = arith.constant 0 : i32
    %c0_i32_0 = arith.constant 0 : i32
    %c0_i32_1 = arith.constant 0 : i32
    return %c0_i32, %arg0, %c0_i32_0 : i32, i32, i32
  }
}

module attributes {stable_mosaic.version = 11 : i64} {
  func.func @_latent_kernel(%arg0: memref<1x8x1024xbf16, #tpu.memory_space<vmem>>, %arg1: memref<1024x128xbf16, #tpu.memory_space<vmem>>, %arg2: memref<1x128xf32, #tpu.memory_space<vmem>>, %arg3: memref<128x128xbf16, #tpu.memory_space<vmem>>, %arg4: memref<128x128xbf16, #tpu.memory_space<vmem>>, %arg5: memref<1x128xf32, #tpu.memory_space<vmem>>, %arg6: memref<128x128xbf16, #tpu.memory_space<vmem>>, %arg7: memref<1x128xf32, #tpu.memory_space<vmem>>, %arg8: memref<128x128xbf16, #tpu.memory_space<vmem>>, %arg9: memref<1x128xf32, #tpu.memory_space<vmem>>, %arg10: memref<128x128xbf16, #tpu.memory_space<vmem>>, %arg11: memref<1x128xf32, #tpu.memory_space<vmem>>, %arg12: memref<1x8x128xbf16, #tpu.memory_space<vmem>>, %arg13: memref<128x128xbf16, #tpu.memory_space<vmem>>, %arg14: memref<1x8x128xbf16, #tpu.memory_space<vmem>>, %arg15: memref<1x8x128xbf16, #tpu.memory_space<vmem>>, %arg16: memref<1x8x128xbf16, #tpu.memory_space<vmem>>) attributes {dimension_semantics = [], scalar_prefetch = 0 : i64, scratch_operands = 0 : i64, tpu.core_type = #tpu.core_type<tc>} {
    %c0 = arith.constant 0 : index
    %c0_0 = arith.constant 0 : index
    %c0_1 = arith.constant 0 : index
    %0 = vector.load %arg0[%c0, %c0_0, %c0_1] : memref<1x8x1024xbf16, #tpu.memory_space<vmem>>, vector<1x8x1024xbf16>
    %1 = vector.shape_cast %0 : vector<1x8x1024xbf16> to vector<8x1024xbf16>
    %c0_2 = arith.constant 0 : index
    %c0_3 = arith.constant 0 : index
    %2 = vector.load %arg1[%c0_2, %c0_3] : memref<1024x128xbf16, #tpu.memory_space<vmem>>, vector<1024x128xbf16>
    %cst = arith.constant dense<0.000000e+00> : vector<8x128xf32>
    %3 = tpu.matmul %1, %2, %cst {dimension_numbers = #tpu.dot_dimension_numbers<[1], [0], [0], [1], [0, 0, 1, 1], [], []>} : vector<8x1024xbf16>, vector<1024x128xbf16>, vector<8x128xf32> -> vector<8x128xf32>
    %c0_4 = arith.constant 0 : index
    %c0_5 = arith.constant 0 : index
    %4 = vector.load %arg2[%c0_4, %c0_5] : memref<1x128xf32, #tpu.memory_space<vmem>>, vector<1x128xf32>
    %5 = vector.broadcast %4 : vector<1x128xf32> to vector<8x128xf32>
    %6 = arith.addf %3, %5 : vector<8x128xf32>
    %c0_6 = arith.constant 0 : index
    %c0_7 = arith.constant 0 : index
    %7 = vector.load %arg3[%c0_6, %c0_7] : memref<128x128xbf16, #tpu.memory_space<vmem>>, vector<128x128xbf16>
    %c0_8 = arith.constant 0 : index
    %c0_9 = arith.constant 0 : index
    %8 = vector.load %arg4[%c0_8, %c0_9] : memref<128x128xbf16, #tpu.memory_space<vmem>>, vector<128x128xbf16>
    %c0_10 = arith.constant 0 : index
    %c0_11 = arith.constant 0 : index
    %9 = vector.load %arg5[%c0_10, %c0_11] : memref<1x128xf32, #tpu.memory_space<vmem>>, vector<1x128xf32>
    %c0_12 = arith.constant 0 : index
    %c0_13 = arith.constant 0 : index
    %10 = vector.load %arg6[%c0_12, %c0_13] : memref<128x128xbf16, #tpu.memory_space<vmem>>, vector<128x128xbf16>
    %c0_14 = arith.constant 0 : index
    %c0_15 = arith.constant 0 : index
    %11 = vector.load %arg7[%c0_14, %c0_15] : memref<1x128xf32, #tpu.memory_space<vmem>>, vector<1x128xf32>
    %c0_16 = arith.constant 0 : index
    %c0_17 = arith.constant 0 : index
    %12 = vector.load %arg8[%c0_16, %c0_17] : memref<128x128xbf16, #tpu.memory_space<vmem>>, vector<128x128xbf16>
    %c0_18 = arith.constant 0 : index
    %c0_19 = arith.constant 0 : index
    %13 = vector.load %arg9[%c0_18, %c0_19] : memref<1x128xf32, #tpu.memory_space<vmem>>, vector<1x128xf32>
    %c0_20 = arith.constant 0 : index
    %c0_21 = arith.constant 0 : index
    %14 = vector.load %arg10[%c0_20, %c0_21] : memref<128x128xbf16, #tpu.memory_space<vmem>>, vector<128x128xbf16>
    %c0_22 = arith.constant 0 : index
    %c0_23 = arith.constant 0 : index
    %15 = vector.load %arg11[%c0_22, %c0_23] : memref<1x128xf32, #tpu.memory_space<vmem>>, vector<1x128xf32>
    %c0_24 = arith.constant 0 : index
    %c0_25 = arith.constant 0 : index
    %16 = vector.load %arg13[%c0_24, %c0_25] : memref<128x128xbf16, #tpu.memory_space<vmem>>, vector<128x128xbf16>
    %cst_26 = arith.constant 0.000000e+00 : bf16
    %17 = vector.broadcast %cst_26 : bf16 to vector<8x128xbf16>
    %cst_27 = arith.constant 2.000000e-01 : f32
    %18 = vector.broadcast %cst_27 : f32 to vector<8x128xf32>
    %19 = arith.cmpf ogt, %6, %18 : vector<8x128xf32>
    %20 = arith.extui %19 : vector<8x128xi1> to vector<8x128xi32>
    %21 = arith.sitofp %20 : vector<8x128xi32> to vector<8x128xf32>
    %22 = arith.truncf %21 : vector<8x128xf32> to vector<8x128xbf16>
    %cst_28 = arith.constant dense<0.000000e+00> : vector<8x128xf32>
    %23 = tpu.matmul %17, %12, %cst_28 {dimension_numbers = #tpu.dot_dimension_numbers<[1], [0], [0], [1], [0, 0, 1, 1], [], []>} : vector<8x128xbf16>, vector<128x128xbf16>, vector<8x128xf32> -> vector<8x128xf32>
    %24 = vector.broadcast %13 : vector<1x128xf32> to vector<8x128xf32>
    %25 = arith.addf %23, %24 : vector<8x128xf32>
    %cst_29 = arith.constant 2.000000e-01 : f32
    %26 = vector.broadcast %cst_29 : f32 to vector<8x128xf32>
    %27 = arith.cmpf ogt, %25, %26 : vector<8x128xf32>
    %28 = arith.extui %27 : vector<8x128xi1> to vector<8x128xi32>
    %29 = arith.sitofp %28 : vector<8x128xi32> to vector<8x128xf32>
    %30 = arith.truncf %29 : vector<8x128xf32> to vector<8x128xbf16>
    %cst_30 = arith.constant dense<0.000000e+00> : vector<8x128xf32>
    %31 = tpu.matmul %30, %14, %cst_30 {dimension_numbers = #tpu.dot_dimension_numbers<[1], [0], [0], [1], [0, 0, 1, 1], [], []>} : vector<8x128xbf16>, vector<128x128xbf16>, vector<8x128xf32> -> vector<8x128xf32>
    %32 = vector.broadcast %15 : vector<1x128xf32> to vector<8x128xf32>
    %33 = arith.addf %31, %32 : vector<8x128xf32>
    %cst_31 = arith.constant 2.000000e-01 : f32
    %34 = vector.broadcast %cst_31 : f32 to vector<8x128xf32>
    %35 = arith.cmpf ogt, %33, %34 : vector<8x128xf32>
    %36 = arith.extui %35 : vector<8x128xi1> to vector<8x128xi32>
    %37 = arith.sitofp %36 : vector<8x128xi32> to vector<8x128xf32>
    %38 = arith.truncf %37 : vector<8x128xf32> to vector<8x128xbf16>
    %c0_32 = arith.constant 0 : index
    %c0_33 = arith.constant 0 : index
    %c0_34 = arith.constant 0 : index
    %39 = vector.load %arg15[%c0_32, %c0_33, %c0_34] : memref<1x8x128xbf16, #tpu.memory_space<vmem>>, vector<1x8x128xbf16>
    %40 = vector.shape_cast %39 : vector<1x8x128xbf16> to vector<8x128xbf16>
    %41 = vector.shape_cast %38 : vector<8x128xbf16> to vector<1x8x128xbf16>
    tpu.vector_store %arg15[%c0_32, %c0_33, %c0_34], %41 {strides = array<i32>} : memref<1x8x128xbf16, #tpu.memory_space<vmem>>, vector<1x8x128xbf16>,
    %cst_35 = arith.constant dense<0.000000e+00> : vector<8x128xf32>
    %42 = tpu.matmul %22, %7, %cst_35 {dimension_numbers = #tpu.dot_dimension_numbers<[1], [0], [0], [1], [0, 0, 1, 1], [], []>} : vector<8x128xbf16>, vector<128x128xbf16>, vector<8x128xf32> -> vector<8x128xf32>
    %cst_36 = arith.constant dense<0.000000e+00> : vector<8x128xf32>
    %43 = tpu.matmul %17, %8, %cst_36 {dimension_numbers = #tpu.dot_dimension_numbers<[1], [0], [0], [1], [0, 0, 1, 1], [], []>} : vector<8x128xbf16>, vector<128x128xbf16>, vector<8x128xf32> -> vector<8x128xf32>
    %44 = arith.addf %42, %43 : vector<8x128xf32>
    %45 = vector.broadcast %9 : vector<1x128xf32> to vector<8x128xf32>
    %46 = arith.addf %44, %45 : vector<8x128xf32>
    %cst_37 = arith.constant 2.000000e-01 : f32
    %47 = vector.broadcast %cst_37 : f32 to vector<8x128xf32>
    %48 = arith.cmpf ogt, %46, %47 : vector<8x128xf32>
    %49 = arith.extui %48 : vector<8x128xi1> to vector<8x128xi32>
    %50 = arith.sitofp %49 : vector<8x128xi32> to vector<8x128xf32>
    %51 = arith.truncf %50 : vector<8x128xf32> to vector<8x128xbf16>
    %cst_38 = arith.constant dense<0.000000e+00> : vector<8x128xf32>
    %52 = tpu.matmul %51, %10, %cst_38 {dimension_numbers = #tpu.dot_dimension_numbers<[1], [0], [0], [1], [0, 0, 1, 1], [], []>} : vector<8x128xbf16>, vector<128x128xbf16>, vector<8x128xf32> -> vector<8x128xf32>
    %53 = vector.broadcast %11 : vector<1x128xf32> to vector<8x128xf32>
    %54 = arith.addf %52, %53 : vector<8x128xf32>
    %cst_39 = arith.constant 2.000000e-01 : f32
    %55 = vector.broadcast %cst_39 : f32 to vector<8x128xf32>
    %56 = arith.cmpf ogt, %54, %55 : vector<8x128xf32>
    %57 = arith.extui %56 : vector<8x128xi1> to vector<8x128xi32>
    %58 = arith.sitofp %57 : vector<8x128xi32> to vector<8x128xf32>
    %59 = arith.truncf %58 : vector<8x128xf32> to vector<8x128xbf16>
    %c0_40 = arith.constant 0 : index
    %c0_41 = arith.constant 0 : index
    %c0_42 = arith.constant 0 : index
    %60 = vector.load %arg14[%c0_40, %c0_41, %c0_42] : memref<1x8x128xbf16, #tpu.memory_space<vmem>>, vector<1x8x128xbf16>
    %61 = vector.shape_cast %60 : vector<1x8x128xbf16> to vector<8x128xbf16>
    %62 = vector.shape_cast %59 : vector<8x128xbf16> to vector<1x8x128xbf16>
    tpu.vector_store %arg14[%c0_40, %c0_41, %c0_42], %62 {strides = array<i32>} : memref<1x8x128xbf16, #tpu.memory_space<vmem>>, vector<1x8x128xbf16>,
    %63 = arith.extui %56 : vector<8x128xi1> to vector<8x128xi32>
    %64 = arith.sitofp %63 : vector<8x128xi32> to vector<8x128xf32>
    %65 = arith.truncf %64 : vector<8x128xf32> to vector<8x128xbf16>
    %c0_43 = arith.constant 0 : index
    %c0_44 = arith.constant 0 : index
    %c0_45 = arith.constant 0 : index
    %66 = vector.load %arg12[%c0_43, %c0_44, %c0_45] : memref<1x8x128xbf16, #tpu.memory_space<vmem>>, vector<1x8x128xbf16>
    %67 = vector.shape_cast %66 : vector<1x8x128xbf16> to vector<8x128xbf16>
    %68 = arith.mulf %65, %67 : vector<8x128xbf16>
    %cst_46 = arith.constant dense<0.000000e+00> : vector<8x128xf32>
    %69 = tpu.matmul %68, %16, %cst_46 {dimension_numbers = #tpu.dot_dimension_numbers<[1], [0], [0], [1], [0, 0, 1, 1], [], []>} : vector<8x128xbf16>, vector<128x128xbf16>, vector<8x128xf32> -> vector<8x128xf32>
    %70 = arith.truncf %69 : vector<8x128xf32> to vector<8x128xbf16>
    %c0_47 = arith.constant 0 : index
    %c0_48 = arith.constant 0 : index
    %c0_49 = arith.constant 0 : index
    %71 = vector.load %arg16[%c0_47, %c0_48, %c0_49] : memref<1x8x128xbf16, #tpu.memory_space<vmem>>, vector<1x8x128xbf16>
    %72 = vector.shape_cast %71 : vector<1x8x128xbf16> to vector<8x128xbf16>
    %73 = vector.shape_cast %70 : vector<8x128xbf16> to vector<1x8x128xbf16>
    tpu.vector_store %arg16[%c0_47, %c0_48, %c0_49], %73 {strides = array<i32>} : memref<1x8x128xbf16, #tpu.memory_space<vmem>>, vector<1x8x128xbf16>,
    return
  }
}

module attributes {stable_mosaic.version = 11 : i64} {
  func.func @_matmul_lif_kernel(%arg0: i32, %arg1: memref<1x8x1024xbf16, #tpu.memory_space<vmem>>, %arg2: memref<1024x512xbf16, #tpu.memory_space<vmem>>, %arg3: memref<1x512xf32, #tpu.memory_space<vmem>>, %arg4: memref<1x8x512xbf16, #tpu.memory_space<vmem>>) attributes {dimension_semantics = [#tpu.dimension_semantics<parallel>], iteration_bounds = array<i64: 1>, scalar_prefetch = 0 : i64, scratch_operands = 0 : i64, tpu.core_type = #tpu.core_type<tc>, window_params = [{transform_indices = @transform_0, window_bounds = array<i64: 1, 8, 1024>}, {pipeline_mode = #tpu.pipeline_mode<synchronous>, transform_indices = @transform_1, window_bounds = array<i64: 1024, 512>}, {pipeline_mode = #tpu.pipeline_mode<synchronous>, transform_indices = @transform_2, window_bounds = array<i64: 1, 512>}, {transform_indices = @transform_3, window_bounds = array<i64: 1, 8, 512>}]} {
    %c0 = arith.constant 0 : index
    %c0_0 = arith.constant 0 : index
    %c0_1 = arith.constant 0 : index
    %0 = vector.load %arg1[%c0, %c0_0, %c0_1] : memref<1x8x1024xbf16, #tpu.memory_space<vmem>>, vector<1x8x1024xbf16>
    %1 = vector.shape_cast %0 : vector<1x8x1024xbf16> to vector<8x1024xbf16>
    %c0_2 = arith.constant 0 : index
    %c0_3 = arith.constant 0 : index
    %2 = vector.load %arg2[%c0_2, %c0_3] : memref<1024x512xbf16, #tpu.memory_space<vmem>>, vector<1024x512xbf16>
    %cst = arith.constant dense<0.000000e+00> : vector<8x512xf32>
    %3 = tpu.matmul %1, %2, %cst {dimension_numbers = #tpu.dot_dimension_numbers<[1], [0], [0], [1], [0, 0, 1, 1], [], []>} : vector<8x1024xbf16>, vector<1024x512xbf16>, vector<8x512xf32> -> vector<8x512xf32>
    %c0_4 = arith.constant 0 : index
    %c0_5 = arith.constant 0 : index
    %4 = vector.load %arg3[%c0_4, %c0_5] : memref<1x512xf32, #tpu.memory_space<vmem>>, vector<1x512xf32>
    %5 = vector.broadcast %4 : vector<1x512xf32> to vector<8x512xf32>
    %6 = arith.addf %3, %5 : vector<8x512xf32>
    %cst_6 = arith.constant 2.000000e-01 : f32
    %7 = vector.broadcast %cst_6 : f32 to vector<8x512xf32>
    %8 = arith.cmpf ogt, %6, %7 : vector<8x512xf32>
    %9 = arith.extui %8 : vector<8x512xi1> to vector<8x512xi32>
    %10 = arith.sitofp %9 : vector<8x512xi32> to vector<8x512xf32>
    %11 = arith.truncf %10 : vector<8x512xf32> to vector<8x512xbf16>
    %c0_7 = arith.constant 0 : index
    %c0_8 = arith.constant 0 : index
    %c0_9 = arith.constant 0 : index
    %12 = vector.load %arg4[%c0_7, %c0_8, %c0_9] : memref<1x8x512xbf16, #tpu.memory_space<vmem>>, vector<1x8x512xbf16>
    %13 = vector.shape_cast %12 : vector<1x8x512xbf16> to vector<8x512xbf16>
    %14 = vector.shape_cast %11 : vector<8x512xbf16> to vector<1x8x512xbf16>
    tpu.vector_store %arg4[%c0_7, %c0_8, %c0_9], %14 {strides = array<i32>} : memref<1x8x512xbf16, #tpu.memory_space<vmem>>, vector<1x8x512xbf16>,
    return
  }
  func.func @transform_0(%arg0: i32) -> (i32, i32, i32) {
    %c0_i32 = arith.constant 0 : i32
    %c0_i32_0 = arith.constant 0 : i32
    %c0_i32_1 = arith.constant 0 : i32
    return %c0_i32, %arg0, %c0_i32_0 : i32, i32, i32
  }
  func.func @transform_1(%arg0: i32) -> (i32, i32) {
    %c0_i32 = arith.constant 0 : i32
    %c0_i32_0 = arith.constant 0 : i32
    %c0_i32_1 = arith.constant 0 : i32
    return %c0_i32, %c0_i32_0 : i32, i32
  }
  func.func @transform_2(%arg0: i32) -> (i32, i32) {
    %c0_i32 = arith.constant 0 : i32
    %c0_i32_0 = arith.constant 0 : i32
    %c0_i32_1 = arith.constant 0 : i32
    return %c0_i32, %c0_i32_0 : i32, i32
  }
  func.func @transform_3(%arg0: i32) -> (i32, i32, i32) {
    %c0_i32 = arith.constant 0 : i32
    %c0_i32_0 = arith.constant 0 : i32
    %c0_i32_1 = arith.constant 0 : i32
    return %c0_i32, %arg0, %c0_i32_0 : i32, i32, i32
  }
}

module attributes {stable_mosaic.version = 11 : i64} {
  func.func @_matmul_lif_kernel(%arg0: i32, %arg1: memref<1x32x512xbf16, #tpu.memory_space<vmem>>, %arg2: memref<512x256xbf16, #tpu.memory_space<vmem>>, %arg3: memref<1x256xf32, #tpu.memory_space<vmem>>, %arg4: memref<1x32x256xbf16, #tpu.memory_space<vmem>>) attributes {dimension_semantics = [#tpu.dimension_semantics<parallel>], iteration_bounds = array<i64: 1>, scalar_prefetch = 0 : i64, scratch_operands = 0 : i64, tpu.core_type = #tpu.core_type<tc>, window_params = [{transform_indices = @transform_0, window_bounds = array<i64: 1, 32, 512>}, {pipeline_mode = #tpu.pipeline_mode<synchronous>, transform_indices = @transform_1, window_bounds = array<i64: 512, 256>}, {pipeline_mode = #tpu.pipeline_mode<synchronous>, transform_indices = @transform_2, window_bounds = array<i64: 1, 256>}, {transform_indices = @transform_3, window_bounds = array<i64: 1, 32, 256>}]} {
    %c0 = arith.constant 0 : index
    %c0_0 = arith.constant 0 : index
    %c0_1 = arith.constant 0 : index
    %0 = vector.load %arg1[%c0, %c0_0, %c0_1] : memref<1x32x512xbf16, #tpu.memory_space<vmem>>, vector<1x32x512xbf16>
    %1 = vector.shape_cast %0 : vector<1x32x512xbf16> to vector<32x512xbf16>
    %c0_2 = arith.constant 0 : index
    %c0_3 = arith.constant 0 : index
    %2 = vector.load %arg2[%c0_2, %c0_3] : memref<512x256xbf16, #tpu.memory_space<vmem>>, vector<512x256xbf16>
    %cst = arith.constant dense<0.000000e+00> : vector<32x256xf32>
    %3 = tpu.matmul %1, %2, %cst {dimension_numbers = #tpu.dot_dimension_numbers<[1], [0], [0], [1], [0, 0, 1, 1], [], []>} : vector<32x512xbf16>, vector<512x256xbf16>, vector<32x256xf32> -> vector<32x256xf32>
    %c0_4 = arith.constant 0 : index
    %c0_5 = arith.constant 0 : index
    %4 = vector.load %arg3[%c0_4, %c0_5] : memref<1x256xf32, #tpu.memory_space<vmem>>, vector<1x256xf32>
    %5 = vector.broadcast %4 : vector<1x256xf32> to vector<32x256xf32>
    %6 = arith.addf %3, %5 : vector<32x256xf32>
    %cst_6 = arith.constant 2.000000e-01 : f32
    %7 = vector.broadcast %cst_6 : f32 to vector<32x256xf32>
    %8 = arith.cmpf ogt, %6, %7 : vector<32x256xf32>
    %9 = arith.extui %8 : vector<32x256xi1> to vector<32x256xi32>
    %10 = arith.sitofp %9 : vector<32x256xi32> to vector<32x256xf32>
    %11 = arith.truncf %10 : vector<32x256xf32> to vector<32x256xbf16>
    %c0_7 = arith.constant 0 : index
    %c0_8 = arith.constant 0 : index
    %c0_9 = arith.constant 0 : index
    %12 = vector.load %arg4[%c0_7, %c0_8, %c0_9] : memref<1x32x256xbf16, #tpu.memory_space<vmem>>, vector<1x32x256xbf16>
    %13 = vector.shape_cast %12 : vector<1x32x256xbf16> to vector<32x256xbf16>
    %14 = vector.shape_cast %11 : vector<32x256xbf16> to vector<1x32x256xbf16>
    tpu.vector_store %arg4[%c0_7, %c0_8, %c0_9], %14 {strides = array<i32>} : memref<1x32x256xbf16, #tpu.memory_space<vmem>>, vector<1x32x256xbf16>,
    return
  }
  func.func @transform_0(%arg0: i32) -> (i32, i32, i32) {
    %c0_i32 = arith.constant 0 : i32
    %c0_i32_0 = arith.constant 0 : i32
    %c0_i32_1 = arith.constant 0 : i32
    return %c0_i32, %arg0, %c0_i32_0 : i32, i32, i32
  }
  func.func @transform_1(%arg0: i32) -> (i32, i32) {
    %c0_i32 = arith.constant 0 : i32
    %c0_i32_0 = arith.constant 0 : i32
    %c0_i32_1 = arith.constant 0 : i32
    return %c0_i32, %c0_i32_0 : i32, i32
  }
  func.func @transform_2(%arg0: i32) -> (i32, i32) {
    %c0_i32 = arith.constant 0 : i32
    %c0_i32_0 = arith.constant 0 : i32
    %c0_i32_1 = arith.constant 0 : i32
    return %c0_i32, %c0_i32_0 : i32, i32
  }
  func.func @transform_3(%arg0: i32) -> (i32, i32, i32) {
    %c0_i32 = arith.constant 0 : i32
    %c0_i32_0 = arith.constant 0 : i32
    %c0_i32_1 = arith.constant 0 : i32
    return %c0_i32, %arg0, %c0_i32_0 : i32, i32, i32
  }
}

module attributes {stable_mosaic.version = 11 : i64} {
  func.func @_matmul_lif_kernel(%arg0: i32, %arg1: memref<1x128x256xbf16, #tpu.memory_space<vmem>>, %arg2: memref<256x128xbf16, #tpu.memory_space<vmem>>, %arg3: memref<1x128xf32, #tpu.memory_space<vmem>>, %arg4: memref<1x128x128xbf16, #tpu.memory_space<vmem>>) attributes {dimension_semantics = [#tpu.dimension_semantics<parallel>], iteration_bounds = array<i64: 1>, scalar_prefetch = 0 : i64, scratch_operands = 0 : i64, tpu.core_type = #tpu.core_type<tc>, window_params = [{transform_indices = @transform_0, window_bounds = array<i64: 1, 128, 256>}, {pipeline_mode = #tpu.pipeline_mode<synchronous>, transform_indices = @transform_1, window_bounds = array<i64: 256, 128>}, {pipeline_mode = #tpu.pipeline_mode<synchronous>, transform_indices = @transform_2, window_bounds = array<i64: 1, 128>}, {transform_indices = @transform_3, window_bounds = array<i64: 1, 128, 128>}]} {
    %c0 = arith.constant 0 : index
    %c0_0 = arith.constant 0 : index
    %c0_1 = arith.constant 0 : index
    %0 = vector.load %arg1[%c0, %c0_0, %c0_1] : memref<1x128x256xbf16, #tpu.memory_space<vmem>>, vector<1x128x256xbf16>
    %1 = vector.shape_cast %0 : vector<1x128x256xbf16> to vector<128x256xbf16>
    %c0_2 = arith.constant 0 : index
    %c0_3 = arith.constant 0 : index
    %2 = vector.load %arg2[%c0_2, %c0_3] : memref<256x128xbf16, #tpu.memory_space<vmem>>, vector<256x128xbf16>
    %cst = arith.constant dense<0.000000e+00> : vector<128x128xf32>
    %3 = tpu.matmul %1, %2, %cst {dimension_numbers = #tpu.dot_dimension_numbers<[1], [0], [0], [1], [0, 0, 1, 1], [], []>} : vector<128x256xbf16>, vector<256x128xbf16>, vector<128x128xf32> -> vector<128x128xf32>
    %c0_4 = arith.constant 0 : index
    %c0_5 = arith.constant 0 : index
    %4 = vector.load %arg3[%c0_4, %c0_5] : memref<1x128xf32, #tpu.memory_space<vmem>>, vector<1x128xf32>
    %5 = vector.broadcast %4 : vector<1x128xf32> to vector<128x128xf32>
    %6 = arith.addf %3, %5 : vector<128x128xf32>
    %cst_6 = arith.constant 2.000000e-01 : f32
    %7 = vector.broadcast %cst_6 : f32 to vector<128x128xf32>
    %8 = arith.cmpf ogt, %6, %7 : vector<128x128xf32>
    %9 = arith.extui %8 : vector<128x128xi1> to vector<128x128xi32>
    %10 = arith.sitofp %9 : vector<128x128xi32> to vector<128x128xf32>
    %11 = arith.truncf %10 : vector<128x128xf32> to vector<128x128xbf16>
    %c0_7 = arith.constant 0 : index
    %c0_8 = arith.constant 0 : index
    %c0_9 = arith.constant 0 : index
    %12 = vector.load %arg4[%c0_7, %c0_8, %c0_9] : memref<1x128x128xbf16, #tpu.memory_space<vmem>>, vector<1x128x128xbf16>
    %13 = vector.shape_cast %12 : vector<1x128x128xbf16> to vector<128x128xbf16>
    %14 = vector.shape_cast %11 : vector<128x128xbf16> to vector<1x128x128xbf16>
    tpu.vector_store %arg4[%c0_7, %c0_8, %c0_9], %14 {strides = array<i32>} : memref<1x128x128xbf16, #tpu.memory_space<vmem>>, vector<1x128x128xbf16>,
    return
  }
  func.func @transform_0(%arg0: i32) -> (i32, i32, i32) {
    %c0_i32 = arith.constant 0 : i32
    %c0_i32_0 = arith.constant 0 : i32
    %c0_i32_1 = arith.constant 0 : i32
    return %c0_i32, %arg0, %c0_i32_0 : i32, i32, i32
  }
  func.func @transform_1(%arg0: i32) -> (i32, i32) {
    %c0_i32 = arith.constant 0 : i32
    %c0_i32_0 = arith.constant 0 : i32
    %c0_i32_1 = arith.constant 0 : i32
    return %c0_i32, %c0_i32_0 : i32, i32
  }
  func.func @transform_2(%arg0: i32) -> (i32, i32) {
    %c0_i32 = arith.constant 0 : i32
    %c0_i32_0 = arith.constant 0 : i32
    %c0_i32_1 = arith.constant 0 : i32
    return %c0_i32, %c0_i32_0 : i32, i32
  }
  func.func @transform_3(%arg0: i32) -> (i32, i32, i32) {
    %c0_i32 = arith.constant 0 : i32
    %c0_i32_0 = arith.constant 0 : i32
    %c0_i32_1 = arith.constant 0 : i32
    return %c0_i32, %arg0, %c0_i32_0 : i32, i32, i32
  }
}

module attributes {stable_mosaic.version = 11 : i64} {
  func.func @_matmul_lif_kernel(%arg0: i32, %arg1: memref<1x256x128xbf16, #tpu.memory_space<vmem>>, %arg2: memref<128x128xbf16, #tpu.memory_space<vmem>>, %arg3: memref<1x128xf32, #tpu.memory_space<vmem>>, %arg4: memref<1x256x128xbf16, #tpu.memory_space<vmem>>) attributes {dimension_semantics = [#tpu.dimension_semantics<parallel>], iteration_bounds = array<i64: 2>, scalar_prefetch = 0 : i64, scratch_operands = 0 : i64, tpu.core_type = #tpu.core_type<tc>, window_params = [{transform_indices = @transform_0, window_bounds = array<i64: 1, 256, 128>}, {pipeline_mode = #tpu.pipeline_mode<synchronous>, transform_indices = @transform_1, window_bounds = array<i64: 128, 128>}, {pipeline_mode = #tpu.pipeline_mode<synchronous>, transform_indices = @transform_2, window_bounds = array<i64: 1, 128>}, {transform_indices = @transform_3, window_bounds = array<i64: 1, 256, 128>}]} {
    %c0 = arith.constant 0 : index
    %c0_0 = arith.constant 0 : index
    %c0_1 = arith.constant 0 : index
    %0 = vector.load %arg1[%c0, %c0_0, %c0_1] : memref<1x256x128xbf16, #tpu.memory_space<vmem>>, vector<1x256x128xbf16>
    %1 = vector.shape_cast %0 : vector<1x256x128xbf16> to vector<256x128xbf16>
    %c0_2 = arith.constant 0 : index
    %c0_3 = arith.constant 0 : index
    %2 = vector.load %arg2[%c0_2, %c0_3] : memref<128x128xbf16, #tpu.memory_space<vmem>>, vector<128x128xbf16>
    %cst = arith.constant dense<0.000000e+00> : vector<256x128xf32>
    %3 = tpu.matmul %1, %2, %cst {dimension_numbers = #tpu.dot_dimension_numbers<[1], [0], [0], [1], [0, 0, 1, 1], [], []>} : vector<256x128xbf16>, vector<128x128xbf16>, vector<256x128xf32> -> vector<256x128xf32>
    %c0_4 = arith.constant 0 : index
    %c0_5 = arith.constant 0 : index
    %4 = vector.load %arg3[%c0_4, %c0_5] : memref<1x128xf32, #tpu.memory_space<vmem>>, vector<1x128xf32>
    %5 = vector.broadcast %4 : vector<1x128xf32> to vector<256x128xf32>
    %6 = arith.addf %3, %5 : vector<256x128xf32>
    %cst_6 = arith.constant 2.000000e-01 : f32
    %7 = vector.broadcast %cst_6 : f32 to vector<256x128xf32>
    %8 = arith.cmpf ogt, %6, %7 : vector<256x128xf32>
    %9 = arith.extui %8 : vector<256x128xi1> to vector<256x128xi32>
    %10 = arith.sitofp %9 : vector<256x128xi32> to vector<256x128xf32>
    %11 = arith.truncf %10 : vector<256x128xf32> to vector<256x128xbf16>
    %c0_7 = arith.constant 0 : index
    %c0_8 = arith.constant 0 : index
    %c0_9 = arith.constant 0 : index
    %12 = vector.load %arg4[%c0_7, %c0_8, %c0_9] : memref<1x256x128xbf16, #tpu.memory_space<vmem>>, vector<1x256x128xbf16>
    %13 = vector.shape_cast %12 : vector<1x256x128xbf16> to vector<256x128xbf16>
    %14 = vector.shape_cast %11 : vector<256x128xbf16> to vector<1x256x128xbf16>
    tpu.vector_store %arg4[%c0_7, %c0_8, %c0_9], %14 {strides = array<i32>} : memref<1x256x128xbf16, #tpu.memory_space<vmem>>, vector<1x256x128xbf16>,
    return
  }
  func.func @transform_0(%arg0: i32) -> (i32, i32, i32) {
    %c0_i32 = arith.constant 0 : i32
    %c0_i32_0 = arith.constant 0 : i32
    %c0_i32_1 = arith.constant 0 : i32
    return %c0_i32, %arg0, %c0_i32_0 : i32, i32, i32
  }
  func.func @transform_1(%arg0: i32) -> (i32, i32) {
    %c0_i32 = arith.constant 0 : i32
    %c0_i32_0 = arith.constant 0 : i32
    %c0_i32_1 = arith.constant 0 : i32
    return %c0_i32, %c0_i32_0 : i32, i32
  }
  func.func @transform_2(%arg0: i32) -> (i32, i32) {
    %c0_i32 = arith.constant 0 : i32
    %c0_i32_0 = arith.constant 0 : i32
    %c0_i32_1 = arith.constant 0 : i32
    return %c0_i32, %c0_i32_0 : i32, i32
  }
  func.func @transform_3(%arg0: i32) -> (i32, i32, i32) {
    %c0_i32 = arith.constant 0 : i32
    %c0_i32_0 = arith.constant 0 : i32
    %c0_i32_1 = arith.constant 0 : i32
    return %c0_i32, %arg0, %c0_i32_0 : i32, i32, i32
  }
}

module attributes {stable_mosaic.version = 11 : i64} {
  func.func @_conv_membrane_tanh_kernel(%arg0: i32, %arg1: memref<1x512x384xbf16, #tpu.memory_space<vmem>>, %arg2: memref<384x128xbf16, #tpu.memory_space<vmem>>, %arg3: memref<1x128xf32, #tpu.memory_space<vmem>>, %arg4: memref<512x128xf32, #tpu.memory_space<vmem>>) attributes {dimension_semantics = [#tpu.dimension_semantics<parallel>], iteration_bounds = array<i64: 4>, scalar_prefetch = 0 : i64, scratch_operands = 0 : i64, tpu.core_type = #tpu.core_type<tc>, window_params = [{transform_indices = @transform_0, window_bounds = array<i64: 1, 512, 384>}, {pipeline_mode = #tpu.pipeline_mode<synchronous>, transform_indices = @transform_1, window_bounds = array<i64: 384, 128>}, {pipeline_mode = #tpu.pipeline_mode<synchronous>, transform_indices = @transform_2, window_bounds = array<i64: 1, 128>}, {transform_indices = @transform_3, window_bounds = array<i64: 512, 128>}]} {
    %c0 = arith.constant 0 : index
    %c0_0 = arith.constant 0 : index
    %c0_1 = arith.constant 0 : index
    %0 = vector.load %arg1[%c0, %c0_0, %c0_1] : memref<1x512x384xbf16, #tpu.memory_space<vmem>>, vector<1x512x384xbf16>
    %1 = vector.shape_cast %0 : vector<1x512x384xbf16> to vector<512x384xbf16>
    %c0_2 = arith.constant 0 : index
    %c0_3 = arith.constant 0 : index
    %2 = vector.load %arg2[%c0_2, %c0_3] : memref<384x128xbf16, #tpu.memory_space<vmem>>, vector<384x128xbf16>
    %cst = arith.constant dense<0.000000e+00> : vector<512x128xf32>
    %3 = tpu.matmul %1, %2, %cst {dimension_numbers = #tpu.dot_dimension_numbers<[1], [0], [0], [1], [0, 0, 1, 1], [], []>} : vector<512x384xbf16>, vector<384x128xbf16>, vector<512x128xf32> -> vector<512x128xf32>
    %c0_4 = arith.constant 0 : index
    %c0_5 = arith.constant 0 : index
    %4 = vector.load %arg3[%c0_4, %c0_5] : memref<1x128xf32, #tpu.memory_space<vmem>>, vector<1x128xf32>
    %5 = vector.broadcast %4 : vector<1x128xf32> to vector<512x128xf32>
    %6 = arith.addf %3, %5 : vector<512x128xf32>
    %cst_6 = arith.constant 1.000000e+00 : f32
    %7 = vector.broadcast %cst_6 : f32 to vector<512x128xf32>
    %8 = arith.mulf %7, %6 : vector<512x128xf32>
    %9 = math.tanh %8 : vector<512x128xf32>
    %c0_7 = arith.constant 0 : index
    %c0_8 = arith.constant 0 : index
    %10 = vector.load %arg4[%c0_7, %c0_8] : memref<512x128xf32, #tpu.memory_space<vmem>>, vector<512x128xf32>
    tpu.vector_store %arg4[%c0_7, %c0_8], %9 {strides = array<i32>} : memref<512x128xf32, #tpu.memory_space<vmem>>, vector<512x128xf32>,
    return
  }
  func.func @transform_0(%arg0: i32) -> (i32, i32, i32) {
    %c0_i32 = arith.constant 0 : i32
    %c0_i32_0 = arith.constant 0 : i32
    %c0_i32_1 = arith.constant 0 : i32
    return %c0_i32, %arg0, %c0_i32_0 : i32, i32, i32
  }
  func.func @transform_1(%arg0: i32) -> (i32, i32) {
    %c0_i32 = arith.constant 0 : i32
    %c0_i32_0 = arith.constant 0 : i32
    %c0_i32_1 = arith.constant 0 : i32
    return %c0_i32, %c0_i32_0 : i32, i32
  }
  func.func @transform_2(%arg0: i32) -> (i32, i32) {
    %c0_i32 = arith.constant 0 : i32
    %c0_i32_0 = arith.constant 0 : i32
    %c0_i32_1 = arith.constant 0 : i32
    return %c0_i32, %c0_i32_0 : i32, i32
  }
  func.func @transform_3(%arg0: i32) -> (i32, i32) {
    %c0_i32 = arith.constant 0 : i32
    %c0_i32_0 = arith.constant 0 : i32
    return %arg0, %c0_i32 : i32, i32
  }
}

</mosaic_0001>

<bundles_post_ra>
// kernel: _ee_step.11
= control target key start
LH: loop header
LB: loop body
LE: loop exit
PB: predicated region body
PF: predicated region fallthrough
CT: control target
= control target key end

     0   :  { %8 = vsyncpa [#allocation3], 0  ;;  %s1509_s0 = inlined_call_operand.vmem [shape: bf16[1,512,128], index: 0, kind: input, shape index: {}]   ;;  %s1510_s1 = inlined_call_operand.hbm [shape: bf16[128,128], index: 1, kind: input, shape index: {}]   ;;  %s1511_s2 = inlined_call_operand.hbm [shape: f32[1,128], index: 2, kind: input, shape index: {}]   ;;  %s1512_s3 = inlined_call_operand.vmem [shape: bf16[1,512,128], index: 3, kind: output, shape index: {}]  }
   0x1   :  { %9 = vsyncpa [#allocation5], 0  ;;  %s1333_s12 = smov 0  }
   0x2 LB: > { %s897_s13 = sadd.s32 4294967295, %s1306_s12   ;;  %p899_p0 = scmp.ge.s32.totalorder %s1306_s12, 1  ;;  %s1306_s12 = sphi %s1333_s12, %s15_s12  }
   0x3   : > { %p114_p1 = scmp.lt.s32.totalorder %s1306_s12, 3  ;;  %s1308_s14 = smov [#allocation2]  }
   0x4   : > { %s126_s15 = sshll.u32 %s1308_s14, 4  ;;  %p1347_p3 = scmp.eq.s32.totalorder %s897_s13, 0  ;;  %s127_s15 = int_to_ptr.vmem [resolvable:$true] %s126_s15 }
   0x5   : > { %p1341_p2 = pnand %p899_p0, %p114_p1  ;;  %s1309_s18 = smov [#allocation4]  }
   0x6   : > { %s140_s19 = sshll.u32 %s1309_s18, 4  ;;  %s1251_s21 = scalar_lea.vmem %s127_s15, 1024  ;;  %s141_s19 = int_to_ptr.vmem [resolvable:$true] %s140_s19 }
   0x7   : > { %p1192_p4 = pneg %p1341_p2  ;;  %p1252_p7 = scmp.ne.s32.totalorder %s127_s15, %s1251_s21 }
   0x8   : > { %p1259_p10 = scmp.lt.s32.totalorder %s127_s15, %s127_s15  ;;  %p1260_p11 = scmp.lt.s32.totalorder %s1251_s21, %s1251_s21 }
   0x9   : > { %p1355_p5 = pnand %p1347_p3, %p1192_p4 }
   0xa   : > { %p1261_p12 = por %p1260_p11, %p1259_p10 }
   0xb   : > { %p1242_p6 = pneg %p1355_p5 }
   0xd   : > { %p1254_p8 = pnand %p1252_p7, %p1242_p6 }
   0xf   : > { %p1255_p9 = pneg %p1254_p8 }
  0x11   : > { %p1262_p13 = pnand %p1261_p12, %p1255_p9 }
  0x13   : > { %1265 = shalt.err (!%p1262_p13)
}
  0x14   : > { %s1310_s22 = smov 64   ;;  %s1311_s23 = smov 4  }
  0x15   : > { %1195 = dma.hbm_to_vmem [thread:$0]  (!%p1355_p5), %s1510_s1, 1024, %s127_s15, [#allocation3], %s1310_s22, %s1310_s22, %s1311_s23  }
  0x16   : > { %s1277_s26 = scalar_lea.vmem %s141_s19, 16  ;;  %s1284_s27 = scalar_lea.vmem %s141_s19, 32 }
  0x17   : > { %p1278_p0 = scmp.ne.s32.totalorder %s141_s19, %s1277_s26  ;;  %p1285_p7 = scmp.lt.s32.totalorder %s141_s19, %s141_s19 }
  0x18   : > { %p1286_p8 = scmp.lt.s32.totalorder %s1284_s27, %s1277_s26 }
  0x19   : > { %p1280_p1 = pnand %p1278_p0, %p1242_p6 }
  0x1a   : > { %p1287_p9 = por %p1286_p8, %p1285_p7 }
  0x1b   : > { %p1281_p4 = pneg %p1280_p1 }
  0x1d   : > { %p1288_p10 = pnand %p1287_p9, %p1281_p4 }
  0x1f   : > { %1291 = shalt.err (!%p1288_p10)
}
  0x20   : > { %1198 = dma.hbm_to_vmem [thread:$0]  (!%p1355_p5), %s1511_s2, 16, %s141_s19, [#allocation5]  }
  0x21   : > { %162 = sbr.rel (%p1341_p2) target bundleno = 304 (0x130), region = 32 }
  0x26   : > { %1297 = dma.done.wait (%p1347_p3), [#allocation3], 1024  }
  0x27   : > { %1299 = vsyncadd (%p1347_p3), [#allocation3], 4294966272 }
  0x28   : > { %1301 = dma.done.wait (%p1347_p3), [#allocation5], 16  }
  0x29   : > { %1303 = vsyncadd (%p1347_p3), [#allocation5], 4294967280  ;;  %s906_s30 = sshll.u32 %s897_s13, 5  ;;  %v1216_v0 = vld [vmem:[#allocation2 + $0x38] sm:$0xff]   ;;  %v1217_v1 = vld [vmem:[#allocation2 + $0x30] sm:$0xff]   ;;  %v1312_v37 = vmov 0.0  }
  0x2a   : > { %p191_p6 = scmp.lt.s32.totalorder %s906_s30, 63  ;;  %1120 = vmatprep.subr.bf16.mxu0 %v1216_v0  ;;  %1168 = vmatprep.subr.bf16.mxu1 %v1216_v0  ;;  %v1218_v2 = vld [vmem:[#allocation2 + $0x28] sm:$0xff]   ;;  %v1219_v3 = vld [vmem:[#allocation2 + $0x20] sm:$0xff]   ;;  %v1220_v6 = vld [vmem:[#allocation2 + $0x18] sm:$0xff]  }
  0x2b   : > { %1121 = vmatpush3.bf16.msra.mxu0 %v1216_v0  ;;  %1176 = vmatpush3.bf16.msra.mxu1 %v1216_v0  ;;  %v1221_v7 = vld [vmem:[#allocation2 + $0x10] sm:$0xff]   ;;  %v1222_v8 = vld [vmem:[#allocation2 + $0x8] sm:$0xff]   ;;  %v1223_v9 = vld [vmem:[#allocation2] sm:$0xff]  }
  0x2c   : > { %s1517_s30 = smov (!%p191_p6, %s906_s30), 63  ;;  %1122 = vmatprep.subr.bf16.mxu0 %v1217_v1  ;;  %1169 = vmatprep.subr.bf16.mxu1 %v1217_v1  ;;  %v1415_v24 = vld [vmem:[#allocation4] ss:$0 sm:$0xff] }
  0x2d   : > { %s907_s4 = sshll.u32 %s1517_s30, 2 }
  0x2e   : > { %s1397_s7 = scalar_lea.vmem %s1509_s0, %s907_s4  ;;  %s1434_s10 = scalar_lea.vmem %s1512_s3, %s907_s4 }
  0x2f   : > { %1123 = vmatpush3.bf16.msra.mxu0 %v1217_v1  ;;  %1177 = vmatpush3.bf16.msra.mxu1 %v1217_v1  ;;  %v1224_v4 = vld [vmem:[%s1397_s7] sm:$0xff]   ;;  %v1226_v10 = vld [vmem:[%s1397_s7 + $0x8] sm:$0xff]   ;;  %v1228_v12 = vld [vmem:[%s1397_s7 + $0x10] sm:$0xff]  }
  0x30   : > { %1124 = vmatprep.subr.bf16.mxu0 %v1218_v2  ;;  %1170 = vmatprep.subr.bf16.mxu1 %v1218_v2  ;;  %v1225_v5 = vld [vmem:[%s1397_s7 + $0x40] sm:$0xff]   ;;  %v1227_v11 = vld [vmem:[%s1397_s7 + $0x48] sm:$0xff]   ;;  %v1229_v13 = vld [vmem:[%s1397_s7 + $0x50] sm:$0xff]  }
  0x31   : > { %1136 = vmatprep.mubr.bf16.mxu0 %v1224_v4  ;;  %1152 = vmatprep.mubr.bf16.mxu1 %v1225_v5  ;;  %v1230_v14 = vld [vmem:[%s1397_s7 + $0x18] sm:$0xff]   ;;  %v1232_v16 = vld [vmem:[%s1397_s7 + $0x20] sm:$0xff]   ;;  %v1234_v18 = vld [vmem:[%s1397_s7 + $0x28] sm:$0xff]  }
  0x32   : > { %v1231_v15 = vld [vmem:[%s1397_s7 + $0x58] sm:$0xff]   ;;  %v1233_v17 = vld [vmem:[%s1397_s7 + $0x60] sm:$0xff]   ;;  %v1235_v19 = vld [vmem:[%s1397_s7 + $0x68] sm:$0xff]  }
  0x33   : > { %1125 = vmatpush3.bf16.msra.mxu0 %v1218_v2  ;;  %1178 = vmatpush3.bf16.msra.mxu1 %v1218_v2  ;;  %v1236_v20 = vld [vmem:[%s1397_s7 + $0x30] sm:$0xff]   ;;  %v1238_v22 = vld [vmem:[%s1397_s7 + $0x38] sm:$0xff]  }
  0x34   : > { %1126 = vmatprep.subr.bf16.mxu0 %v1219_v3  ;;  %1171 = vmatprep.subr.bf16.mxu1 %v1219_v3  ;;  %v1237_v21 = vld [vmem:[%s1397_s7 + $0x70] sm:$0xff]   ;;  %v1239_v23 = vld [vmem:[%s1397_s7 + $0x78] sm:$0xff]  }
  0x37   : > { %1127 = vmatpush3.bf16.msra.mxu0 %v1219_v3  ;;  %1179 = vmatpush3.bf16.msra.mxu1 %v1219_v3 }
  0x38   : > { %1128 = vmatprep.subr.bf16.mxu0 %v1220_v6  ;;  %1172 = vmatprep.subr.bf16.mxu1 %v1220_v6 }
  0x3b   : > { %1129 = vmatpush3.bf16.msra.mxu0 %v1220_v6  ;;  %1180 = vmatpush3.bf16.msra.mxu1 %v1220_v6 }
  0x3c   : > { %1130 = vmatprep.subr.bf16.mxu0 %v1221_v7  ;;  %1173 = vmatprep.subr.bf16.mxu1 %v1221_v7 }
  0x3f   : > { %1131 = vmatpush3.bf16.msra.mxu0 %v1221_v7  ;;  %1181 = vmatpush3.bf16.msra.mxu1 %v1221_v7 }
  0x40   : > { %1132 = vmatprep.subr.bf16.mxu0 %v1222_v8  ;;  %1174 = vmatprep.subr.bf16.mxu1 %v1222_v8 }
  0x43   : > { %1133 = vmatpush3.bf16.msra.mxu0 %v1222_v8  ;;  %1182 = vmatpush3.bf16.msra.mxu1 %v1222_v8 }
  0x44   : > { %1134 = vmatprep.subr.bf16.mxu0 %v1223_v9  ;;  %1175 = vmatprep.subr.bf16.mxu1 %v1223_v9 }
  0x47   : > { %1135 = vmatpush3.bf16.msra.mxu0 %v1223_v9  ;;  %1183 = vmatpush3.bf16.msra.mxu1 %v1223_v9 }
  0x4a   : > { %1137 = vmatmul.mubr.bf16.vlgmr.msra.gmra.mxu0 %v1226_v10  ;;  %1153 = vmatmul.mubr.bf16.vlgmr.msra.gmra.mxu1 %v1227_v11 }
  0x4b   : > { %1140 = vmatprep.mubr.bf16.mxu0 %v1228_v12  ;;  %1156 = vmatprep.mubr.bf16.mxu1 %v1229_v13 }
  0x52   : > { %1141 = vmatmul.mubr.bf16.gmra.mxu0 %v1230_v14  ;;  %1157 = vmatmul.mubr.bf16.gmra.mxu1 %v1231_v15 }
  0x53   : > { %1144 = vmatprep.mubr.bf16.mxu0 %v1232_v16  ;;  %1160 = vmatprep.mubr.bf16.mxu1 %v1233_v17 }
  0x5a   : > { %1145 = vmatmul.mubr.bf16.gmra.mxu0 %v1234_v18  ;;  %1161 = vmatmul.mubr.bf16.gmra.mxu1 %v1235_v19 }
  0x5b   : > { %1148 = vmatprep.mubr.bf16.mxu0 %v1236_v20  ;;  %1164 = vmatprep.mubr.bf16.mxu1 %v1237_v21 }
  0x62   : > { %1149 = vmatmul.mubr.bf16.gmra.mxu0 %v1238_v22  ;;  %1165 = vmatmul.mubr.bf16.gmra.mxu1 %v1239_v23 }
 0x10a   : > { %v1138_v25 = vpop.f32.mrf.mxu0  ;;  %v1154_v26 = vpop.f32.mrf.mxu1 }
 0x10b   : > { %v445_v27 = vadd.f32 %v1138_v25, %v1415_v24  ;;  %v509_v28 = vadd.f32 %v1154_v26, %v1415_v24 }
 0x10c   : > { %v436_v29 = vpop.f32.mrf.mxu0  ;;  %v500_v30 = vpop.f32.mrf.mxu1 }
 0x10d   : > { %vm565_vm0 = vcmp.gt.f32.partialorder %v445_v27, 0.2  ;;  %vm581_vm1 = vcmp.gt.f32.partialorder %v509_v28, 0.2  ;;  %v437_v31 = vadd.f32 %v1415_v24, %v436_v29  ;;  %v501_v32 = vadd.f32 %v1415_v24, %v500_v30 }
 0x10e   : > { %v1139_v33 = vpop.f32.mrf.mxu0  ;;  %v1155_v34 = vpop.f32.mrf.mxu1  ;;  %v937_v38 = vsel %vm565_vm0, 1.0, %v1312_v37  ;;  %v953_v39 = vsel %vm581_vm1, 1.0, %v1312_v37 }
 0x10f   : > { %vm563_vm2 = vcmp.gt.f32.partialorder %v437_v31, 0.2  ;;  %vm579_vm3 = vcmp.gt.f32.partialorder %v501_v32, 0.2  ;;  %v448_v35 = vadd.f32 %v1139_v33, %v1415_v24  ;;  %v512_v36 = vadd.f32 %v1155_v34, %v1415_v24 }
 0x110   : > { %v439_v40 = vpop.f32.mrf.mxu0  ;;  %v503_v41 = vpop.f32.mrf.mxu1  ;;  %v935_v44 = vsel %vm563_vm2, 1.0, %v1312_v37  ;;  %v951_v45 = vsel %vm579_vm3, 1.0, %v1312_v37 }
 0x111   : > { %vm566_vm4 = vcmp.gt.f32.partialorder %v448_v35, 0.2  ;;  %vm582_vm5 = vcmp.gt.f32.partialorder %v512_v36, 0.2  ;;  %v440_v42 = vadd.f32 %v1415_v24, %v439_v40  ;;  %v504_v43 = vadd.f32 %v1415_v24, %v503_v41 }
 0x112   : > { %v938_v46 = vsel %vm566_vm4, 1.0, %v1312_v37  ;;  %v954_v47 = vsel %vm582_vm5, 1.0, %v1312_v37  ;;  %v1142_v48 = vpop.f32.mrf.mxu0  ;;  %v1158_v49 = vpop.f32.mrf.mxu1 }
 0x113   : > { %v1037_v50 = vpack.c.bf16 %v938_v46, %v937_v38  ;;  %v1061_v51 = vpack.c.bf16 %v954_v47, %v953_v39  ;;  %vm564_vm6 = vcmp.gt.f32.partialorder %v440_v42, 0.2  ;;  %vm580_vm7 = vcmp.gt.f32.partialorder %v504_v43, 0.2 }
 0x114   : > { %v936_v52 = vsel %vm564_vm6, 1.0, %v1312_v37  ;;  %v952_v53 = vsel %vm580_vm7, 1.0, %v1312_v37  ;;  %v461_v54 = vadd.f32 %v1142_v48, %v1415_v24  ;;  %v525_v55 = vadd.f32 %v1158_v49, %v1415_v24  ;;  %v452_v56 = vpop.f32.mrf.mxu0  ;;  %v516_v57 = vpop.f32.mrf.mxu1 }
 0x115   : > { %1081 = vst [vmem:[%s1434_s10 + $0x8] sm:$0xff] %v1037_v50   ;;  %1089 = vst [vmem:[%s1434_s10 + $0x48] sm:$0xff] %v1061_v51   ;;  %v1034_v58 = vpack.c.bf16 %v936_v52, %v935_v44  ;;  %v1058_v59 = vpack.c.bf16 %v952_v53, %v951_v45  ;;  %v453_v60 = vadd.f32 %v1415_v24, %v452_v56 }
 0x116   : > { %v517_v61 = vadd.f32 %v1415_v24, %v516_v57  ;;  %vm569_vm8 = vcmp.gt.f32.partialorder %v461_v54, 0.2  ;;  %vm585_vm9 = vcmp.gt.f32.partialorder %v525_v55, 0.2  ;;  %v1143_v62 = vpop.f32.mrf.mxu0  ;;  %v1159_v63 = vpop.f32.mrf.mxu1 }
 0x117   : > { %1035 = vst [vmem:[%s1434_s10] sm:$0xff] %v1034_v58   ;;  %1088 = vst [vmem:[%s1434_s10 + $0x40] sm:$0xff] %v1058_v59   ;;  %vm567_vm10 = vcmp.gt.f32.partialorder %v453_v60, 0.2  ;;  %v464_v0 = vadd.f32 %v1143_v62, %v1415_v24  ;;  %v528_v1 = vadd.f32 %v1159_v63, %v1415_v24  ;;  %v941_v4 = vsel %vm569_vm8, 1.0, %v1312_v37 }
 0x118   : > { %vm583_vm11 = vcmp.gt.f32.partialorder %v517_v61, 0.2  ;;  %v455_v2 = vpop.f32.mrf.mxu0  ;;  %v519_v3 = vpop.f32.mrf.mxu1  ;;  %v957_v5 = vsel %vm585_vm9, 1.0, %v1312_v37  ;;  %v939_v8 = vsel %vm567_vm10, 1.0, %v1312_v37 }
 0x119   : > { %v456_v6 = vadd.f32 %v1415_v24, %v455_v2  ;;  %v520_v7 = vadd.f32 %v1415_v24, %v519_v3  ;;  %v955_v9 = vsel %vm583_vm11, 1.0, %v1312_v37  ;;  %vm570_vm12 = vcmp.gt.f32.partialorder %v464_v0, 0.2 }
 0x11a   : > { %vm586_vm13 = vcmp.gt.f32.partialorder %v528_v1, 0.2  ;;  %v1146_v10 = vpop.f32.mrf.mxu0  ;;  %v1162_v11 = vpop.f32.mrf.mxu1  ;;  %v942_v12 = vsel %vm570_vm12, 1.0, %v1312_v37 }
 0x11b   : > { %v958_v13 = vsel %vm586_vm13, 1.0, %v1312_v37  ;;  %vm568_vm14 = vcmp.gt.f32.partialorder %v456_v6, 0.2  ;;  %vm584_vm15 = vcmp.gt.f32.partialorder %v520_v7, 0.2  ;;  %v1043_v14 = vpack.c.bf16 %v942_v12, %v941_v4 }
 0x11c   : > { %v1067_v15 = vpack.c.bf16 %v958_v13, %v957_v5  ;;  %v940_v16 = vsel %vm568_vm14, 1.0, %v1312_v37  ;;  %v956_v17 = vsel %vm584_vm15, 1.0, %v1312_v37  ;;  %v468_v18 = vpop.f32.mrf.mxu0  ;;  %v532_v19 = vpop.f32.mrf.mxu1  ;;  %v477_v22 = vadd.f32 %v1146_v10, %v1415_v24 }
 0x11d   : > { %v1040_v20 = vpack.c.bf16 %v940_v16, %v939_v8  ;;  %v1064_v21 = vpack.c.bf16 %v956_v17, %v955_v9  ;;  %v541_v23 = vadd.f32 %v1162_v11, %v1415_v24  ;;  %1083 = vst [vmem:[%s1434_s10 + $0x18] sm:$0xff] %v1043_v14   ;;  %v469_v25 = vadd.f32 %v1415_v24, %v468_v18 }
 0x11e   : > { %1091 = vst [vmem:[%s1434_s10 + $0x58] sm:$0xff] %v1067_v15   ;;  %v533_v26 = vadd.f32 %v1415_v24, %v532_v19  ;;  %v1147_v27 = vpop.f32.mrf.mxu0  ;;  %v1163_v28 = vpop.f32.mrf.mxu1  ;;  %vm573_vm0 = vcmp.gt.f32.partialorder %v477_v22, 0.2 }
 0x11f   : > { %1082 = vst [vmem:[%s1434_s10 + $0x10] sm:$0xff] %v1040_v20   ;;  %1090 = vst [vmem:[%s1434_s10 + $0x50] sm:$0xff] %v1064_v21   ;;  %vm589_vm1 = vcmp.gt.f32.partialorder %v541_v23, 0.2  ;;  %v480_v29 = vadd.f32 %v1147_v27, %v1415_v24  ;;  %v544_v30 = vadd.f32 %v1163_v28, %v1415_v24  ;;  %v945_v31 = vsel %vm573_vm0, 1.0, %v1312_v37 }
 0x120   : > { %v961_v32 = vsel %vm589_vm1, 1.0, %v1312_v37  ;;  %vm571_vm2 = vcmp.gt.f32.partialorder %v469_v25, 0.2  ;;  %v471_v33 = vpop.f32.mrf.mxu0  ;;  %v535_v34 = vpop.f32.mrf.mxu1  ;;  %vm587_vm3 = vcmp.gt.f32.partialorder %v533_v26, 0.2 }
 0x121   : > { %vm574_vm4 = vcmp.gt.f32.partialorder %v480_v29, 0.2  ;;  %vm590_vm5 = vcmp.gt.f32.partialorder %v544_v30, 0.2  ;;  %v472_v38 = vadd.f32 %v1415_v24, %v471_v33  ;;  %v536_v39 = vadd.f32 %v1415_v24, %v535_v34 }
 0x122   : > { %v946_v35 = vsel %vm574_vm4, 1.0, %v1312_v37  ;;  %v962_v36 = vsel %vm590_vm5, 1.0, %v1312_v37  ;;  %v1150_v40 = vpop.f32.mrf.mxu0  ;;  %v1166_v41 = vpop.f32.mrf.mxu1  ;;  %v943_v48 = vsel %vm571_vm2, 1.0, %v1312_v37  ;;  %v959_v49 = vsel %vm587_vm3, 1.0, %v1312_v37 }
 0x123   : > { %v1049_v42 = vpack.c.bf16 %v946_v35, %v945_v31  ;;  %v1073_v43 = vpack.c.bf16 %v962_v36, %v961_v32  ;;  %v493_v44 = vadd.f32 %v1150_v40, %v1415_v24  ;;  %v557_v45 = vadd.f32 %v1166_v41, %v1415_v24 }
 0x124   : > { %vm572_vm6 = vcmp.gt.f32.partialorder %v472_v38, 0.2  ;;  %vm588_vm7 = vcmp.gt.f32.partialorder %v536_v39, 0.2  ;;  %v484_v46 = vpop.f32.mrf.mxu0  ;;  %v548_v47 = vpop.f32.mrf.mxu1 }
 0x125   : > { %1085 = vst [vmem:[%s1434_s10 + $0x28] sm:$0xff] %v1049_v42   ;;  %1093 = vst [vmem:[%s1434_s10 + $0x68] sm:$0xff] %v1073_v43   ;;  %v944_v50 = vsel %vm572_vm6, 1.0, %v1312_v37  ;;  %v960_v51 = vsel %vm588_vm7, 1.0, %v1312_v37  ;;  %vm577_vm8 = vcmp.gt.f32.partialorder %v493_v44, 0.2  ;;  %v485_v56 = vadd.f32 %v1415_v24, %v484_v46 }
 0x126   : > { %v1046_v52 = vpack.c.bf16 %v944_v50, %v943_v48  ;;  %v1070_v53 = vpack.c.bf16 %v960_v51, %v959_v49  ;;  %vm593_vm9 = vcmp.gt.f32.partialorder %v557_v45, 0.2  ;;  %v1151_v54 = vpop.f32.mrf.mxu0  ;;  %v1167_v55 = vpop.f32.mrf.mxu1  ;;  %v549_v57 = vadd.f32 %v1415_v24, %v548_v47 }
 0x127   : > { %v496_v58 = vadd.f32 %v1151_v54, %v1415_v24  ;;  %v560_v59 = vadd.f32 %v1167_v55, %v1415_v24  ;;  %v949_v62 = vsel %vm577_vm8, 1.0, %v1312_v37  ;;  %vm575_vm10 = vcmp.gt.f32.partialorder %v485_v56, 0.2 }
 0x128   : > { %1084 = vst [vmem:[%s1434_s10 + $0x20] sm:$0xff] %v1046_v52   ;;  %1092 = vst [vmem:[%s1434_s10 + $0x60] sm:$0xff] %v1070_v53   ;;  %v487_v60 = vpop.f32.mrf.mxu0  ;;  %v551_v61 = vpop.f32.mrf.mxu1  ;;  %v965_v0 = vsel %vm593_vm9, 1.0, %v1312_v37  ;;  %vm591_vm12 = vcmp.gt.f32.partialorder %v549_v57, 0.2  ;;  %v947_v5 = vsel %vm575_vm10, 1.0, %v1312_v37 }
 0x129   : > { %vm578_vm11 = vcmp.gt.f32.partialorder %v496_v58, 0.2  ;;  %v488_v63 = vadd.f32 %v1415_v24, %v487_v60  ;;  %vm594_vm13 = vcmp.gt.f32.partialorder %v560_v59, 0.2  ;;  %v552_v4 = vadd.f32 %v1415_v24, %v551_v61 }
 0x12a   : > { %v950_v1 = vsel %vm578_vm11, 1.0, %v1312_v37  ;;  %v966_v3 = vsel %vm594_vm13, 1.0, %v1312_v37  ;;  %v963_v9 = vsel %vm591_vm12, 1.0, %v1312_v37 }
 0x12b   : > { %v1055_v2 = vpack.c.bf16 %v950_v1, %v949_v62  ;;  %vm576_vm14 = vcmp.gt.f32.partialorder %v488_v63, 0.2  ;;  %v1079_v6 = vpack.c.bf16 %v966_v3, %v965_v0  ;;  %vm592_vm15 = vcmp.gt.f32.partialorder %v552_v4, 0.2 }
 0x12c   : > { %v948_v7 = vsel %vm576_vm14, 1.0, %v1312_v37  ;;  %v964_v10 = vsel %vm592_vm15, 1.0, %v1312_v37 }
 0x12d   : > { %1087 = vst [vmem:[%s1434_s10 + $0x38] sm:$0xff] %v1055_v2   ;;  %v1052_v8 = vpack.c.bf16 %v948_v7, %v947_v5  ;;  %1095 = vst [vmem:[%s1434_s10 + $0x78] sm:$0xff] %v1079_v6   ;;  %v1076_v11 = vpack.c.bf16 %v964_v10, %v963_v9 }
 0x12f   : > { %1086 = vst [vmem:[%s1434_s10 + $0x30] sm:$0xff] %v1052_v8   ;;  %1094 = vst [vmem:[%s1434_s10 + $0x70] sm:$0xff] %v1076_v11  }
 0x130 PF: > { %s15_s12 = sadd.s32 1, %s1306_s12  }
 0x131   : > { %p12_p2 = scmp.ge.s32.totalorder %s15_s12, 4  }
 0x133   :  { %14 = sbr.rel (!%p12_p2) target bundleno = 2 (0x2), region = 71 }
 0x138   :  { %841 = vsyncpa [#allocation3], 1 }
 0x139   :  { %843 = vsyncpa [#allocation3 + $0x1], 1 }
 0x13a   :  { %844 = vsyncpa [#allocation5], 1 }

// kernel: _ee_step.12
= control target key start
LH: loop header
LB: loop body
LE: loop exit
PB: predicated region body
PF: predicated region fallthrough
CT: control target
= control target key end

     0   :  { %8 = vsyncpa [#allocation3], 0  ;;  %s1234_s0 = inlined_call_operand.vmem [shape: bf16[1,128,384], index: 0, kind: input, shape index: {}]   ;;  %s1235_s1 = inlined_call_operand.hbm [shape: bf16[384,128], index: 1, kind: input, shape index: {}]   ;;  %s1236_s2 = inlined_call_operand.hbm [shape: f32[1,128], index: 2, kind: input, shape index: {}]   ;;  %s1237_s3 = inlined_call_operand.vmem [shape: bf16[1,128,128], index: 3, kind: output, shape index: {}]  }
   0x1   :  { %9 = vsyncpa [#allocation5], 0  ;;  %s1073_s12 = smov [#allocation2]  }
   0x2   :  { %s17_s13 = sshll.u32 %s1073_s12, 4  ;;  %s18_s13 = int_to_ptr.vmem [resolvable:$true] %s17_s13 }
   0x3   :  { %s1037_s14 = scalar_lea.vmem %s18_s13, 3072  ;;  %p1042_p1 = scmp.lt.s32.totalorder %s18_s13, %s18_s13 }
   0x4   :  { %p1038_p0 = scmp.ne.s32.totalorder %s18_s13, %s1037_s14  ;;  %p1043_p2 = scmp.lt.s32.totalorder %s1037_s14, %s1037_s14 }
   0x6   :  { %p1044_p3 = por %p1043_p2, %p1042_p1 }
   0x8   :  { %p1045_p4 = pnand %p1044_p3, %p1038_p0 }
   0xa   :  { %1048 = shalt.err (!%p1045_p4)
}
   0xb   :  { %s1074_s15 = smov 64   ;;  %s1075_s16 = smov 4  }
   0xc   :  { %23 = dma.hbm_to_vmem [thread:$0]  %s1235_s1, 3072, %s18_s13, [#allocation3], %s1074_s15, %s1074_s15, %s1075_s16  }
   0xd   :  { %s1076_s19 = smov [#allocation4]  }
   0xe   :  { %s30_s20 = sshll.u32 %s1076_s19, 4  ;;  %s31_s20 = int_to_ptr.vmem [resolvable:$true] %s30_s20 }
   0xf   :  { %s1057_s21 = scalar_lea.vmem %s31_s20, 16  ;;  %s1061_s22 = scalar_lea.vmem %s31_s20, 32 }
  0x10   :  { %p1058_p5 = scmp.ne.s32.totalorder %s31_s20, %s1057_s21  ;;  %p1062_p6 = scmp.lt.s32.totalorder %s31_s20, %s31_s20 }
  0x11   :  { %p1063_p7 = scmp.lt.s32.totalorder %s1061_s22, %s1057_s21 }
  0x13   :  { %p1064_p8 = por %p1063_p7, %p1062_p6 }
  0x15   :  { %p1065_p9 = pnand %p1064_p8, %p1058_p5 }
  0x17   :  { %1068 = shalt.err (!%p1065_p9)
}
  0x18   :  { %33 = dma.hbm_to_vmem [thread:$0]  %s1236_s2, 16, %s31_s20, [#allocation5]  }
  0x19   :  { %1069 = dma.done.wait [#allocation3], 3072  }
  0x1a   :  { %1070 = vsyncadd [#allocation3], 4294964224 }
  0x1b   :  { %1071 = dma.done.wait [#allocation5], 16  }
  0x1c   :  { %1072 = vsyncadd [#allocation5], 4294967280  ;;  %v973_v0 = vld [vmem:[#allocation2 + $0x78] sm:$0xff]   ;;  %v975_v2 = vld [vmem:[#allocation2 + $0x70] sm:$0xff]  }
  0x1d   :  { %v974_v1 = vld [vmem:[#allocation2 + $0x38] sm:$0xff]   ;;  %856 = vmatprep.subr.bf16.mxu0 %v973_v0  ;;  %v977_v4 = vld [vmem:[#allocation2 + $0x30] sm:$0xff]   ;;  %v978_v5 = vld [vmem:[#allocation2 + $0x68] sm:$0xff]  }
  0x1e   :  { %857 = vmatpush3.bf16.msra.mxu0 %v974_v1  ;;  %v976_v3 = vld [vmem:[#allocation2 + $0xb8] sm:$0xff]   ;;  %v979_v6 = vld [vmem:[#allocation2 + $0xb0] sm:$0xff]   ;;  %v980_v7 = vld [vmem:[#allocation2 + $0x28] sm:$0xff]  }
  0x1f   :  { %858 = vmatprep.subr.bf16.mxu0 %v975_v2  ;;  %936 = vmatprep.subr.bf16.mxu1 %v976_v3  ;;  %v981_v8 = vld [vmem:[#allocation2 + $0x60] sm:$0xff]   ;;  %v982_v9 = vld [vmem:[#allocation2 + $0xa8] sm:$0xff]   ;;  %v984_v11 = vld [vmem:[#allocation2 + $0x58] sm:$0xff]  }
  0x20   :  { %937 = vmatpush3.bf16.msra.mxu1 %v976_v3  ;;  %v983_v10 = vld [vmem:[#allocation2 + $0x20] sm:$0xff]   ;;  %v986_v13 = vld [vmem:[#allocation2 + $0x18] sm:$0xff]   ;;  %v987_v15 = vld [vmem:[#allocation2 + $0x50] sm:$0xff]  }
  0x21   :  { %938 = vmatprep.subr.bf16.mxu1 %v979_v6  ;;  %v985_v12 = vld [vmem:[#allocation2 + $0xa0] sm:$0xff]   ;;  %v988_v14 = vld [vmem:[#allocation2 + $0x98] sm:$0xff]   ;;  %v989_v16 = vld [vmem:[#allocation2 + $0x10] sm:$0xff]  }
  0x22   :  { %859 = vmatpush3.bf16.msra.mxu0 %v977_v4  ;;  %v991_v17 = vld [vmem:[#allocation2 + $0x90] sm:$0xff]   ;;  %v990_v18 = vld [vmem:[#allocation2 + $0x48] sm:$0xff]   ;;  %v993_v20 = vld [vmem:[#allocation2 + $0x40] sm:$0xff]  }
  0x23   :  { %860 = vmatprep.subr.bf16.mxu0 %v978_v5  ;;  %v992_v19 = vld [vmem:[#allocation2 + $0x8] sm:$0xff]   ;;  %v998_v22 = vld [vmem:[%s1234_s0 + $0x4] ss:$12 sps:$4 sm:$0xff]   ;;  %v1005_v31 = vld [vmem:[%s1234_s0 + $0x34] ss:$12 sps:$4 sm:$0xff]   ;;  %v1077_v5 = vmov 0.0  }
  0x24   :  { %939 = vmatpush3.bf16.msra.mxu1 %v979_v6  ;;  %v994_v21 = vld [vmem:[#allocation2 + $0x88] sm:$0xff]   ;;  %v995_v23 = vld [vmem:[#allocation2] sm:$0xff]   ;;  %432 = vmatprep.mubr.bf16.mxu0 %v998_v22  ;;  %v1009_v32 = vld [vmem:[%s1234_s0 + $0x50] ss:$12 sps:$4 sm:$0xff]  }
  0x25   :  { %940 = vmatprep.subr.bf16.mxu1 %v982_v9  ;;  %v1000_v24 = vld [vmem:[%s1234_s0 + $0x8] ss:$12 sps:$4 sm:$0xff]   ;;  %v999_v25 = vld [vmem:[#allocation2 + $0x80] sm:$0xff]   ;;  %v1007_v34 = vld [vmem:[%s1234_s0 + $0x30] ss:$12 sps:$4 sm:$0xff]  }
  0x26   :  { %861 = vmatpush3.bf16.msra.mxu0 %v980_v7  ;;  %952 = vmatprep.mubr.bf16.mxu1 %v1000_v24  ;;  %v996_v26 = vld [vmem:[%s1234_s0] ss:$12 sps:$4 sm:$0xff]   ;;  %v1002_v27 = vld [vmem:[%s1234_s0 + $0x1c] ss:$12 sps:$4 sm:$0xff]   ;;  %v1008_v29 = vld [vmem:[%s1234_s0 + $0x38] ss:$12 sps:$4 sm:$0xff]  }
  0x27   :  { %862 = vmatprep.subr.bf16.mxu0 %v981_v8  ;;  %v1001_v28 = vld [vmem:[%s1234_s0 + $0x20] ss:$12 sps:$4 sm:$0xff]   ;;  %v1004_v30 = vld [vmem:[%s1234_s0 + $0x18] ss:$12 sps:$4 sm:$0xff]   ;;  %v1016_v33 = vld [vmem:[%s1234_s0 + $0x68] ss:$12 sps:$4 sm:$0xff]  }
  0x28   :  { %941 = vmatpush3.bf16.msra.mxu1 %v982_v9  ;;  %v1010_v35 = vld [vmem:[%s1234_s0 + $0x4c] ss:$12 sps:$4 sm:$0xff]   ;;  %v1012_v38 = vld [vmem:[%s1234_s0 + $0x48] ss:$12 sps:$4 sm:$0xff]   ;;  %v1013_v39 = vld [vmem:[%s1234_s0 + $0x64] ss:$12 sps:$4 sm:$0xff]  }
  0x29   :  { %942 = vmatprep.subr.bf16.mxu1 %v985_v12  ;;  %v1017_v36 = vld [vmem:[%s1234_s0 + $0x80] ss:$12 sps:$4 sm:$0xff]   ;;  %v1024_v37 = vld [vmem:[%s1234_s0 + $0x98] ss:$12 sps:$4 sm:$0xff]   ;;  %v1025_v40 = vld [vmem:[%s1234_s0 + $0xb0] ss:$12 sps:$4 sm:$0xff]  }
  0x2a   :  { %863 = vmatpush3.bf16.msra.mxu0 %v983_v10  ;;  %v1015_v41 = vld [vmem:[%s1234_s0 + $0x60] ss:$12 sps:$4 sm:$0xff]   ;;  %v1018_v42 = vld [vmem:[%s1234_s0 + $0x7c] ss:$12 sps:$4 sm:$0xff]   ;;  %v1020_v43 = vld [vmem:[%s1234_s0 + $0x78] ss:$12 sps:$4 sm:$0xff]  }
  0x2b   :  { %864 = vmatprep.subr.bf16.mxu0 %v984_v11  ;;  %v1021_v44 = vld [vmem:[%s1234_s0 + $0x94] ss:$12 sps:$4 sm:$0xff]   ;;  %v1023_v45 = vld [vmem:[%s1234_s0 + $0x90] ss:$12 sps:$4 sm:$0xff]   ;;  %v1026_v46 = vld [vmem:[%s1234_s0 + $0xac] ss:$12 sps:$4 sm:$0xff]  }
  0x2c   :  { %943 = vmatpush3.bf16.msra.mxu1 %v985_v12  ;;  %v1028_v47 = vld [vmem:[%s1234_s0 + $0xa8] ss:$12 sps:$4 sm:$0xff]   ;;  %v1176_v50 = vld [vmem:[#allocation4] ss:$0 sm:$0xff] }
  0x2d   :  { %944 = vmatprep.subr.bf16.mxu1 %v988_v14 }
  0x2e   :  { %865 = vmatpush3.bf16.msra.mxu0 %v986_v13 }
  0x2f   :  { %866 = vmatprep.subr.bf16.mxu0 %v987_v15 }
  0x30   :  { %945 = vmatpush3.bf16.msra.mxu1 %v988_v14 }
  0x31   :  { %946 = vmatprep.subr.bf16.mxu1 %v991_v17 }
  0x32   :  { %867 = vmatpush3.bf16.msra.mxu0 %v989_v16 }
  0x33   :  { %868 = vmatprep.subr.bf16.mxu0 %v990_v18 }
  0x34   :  { %947 = vmatpush3.bf16.msra.mxu1 %v991_v17 }
  0x35   :  { %948 = vmatprep.subr.bf16.mxu1 %v994_v21 }
  0x36   :  { %869 = vmatpush3.bf16.msra.mxu0 %v992_v19 }
  0x37   :  { %870 = vmatprep.subr.bf16.mxu0 %v993_v20 }
  0x38   :  { %949 = vmatpush3.bf16.msra.mxu1 %v994_v21 }
  0x39   :  { %950 = vmatprep.subr.bf16.mxu1 %v999_v25 }
  0x3a   :  { %871 = vmatpush3.bf16.msra.mxu0 %v995_v23 }
  0x3c   :  { %951 = vmatpush3.bf16.msra.mxu1 %v999_v25 }
  0x3d   :  { %433 = vmatmul.mubr.bf16.vlgmr.msra.gmra.mxu0 %v996_v26 }
  0x3e   :  { %440 = vmatprep.mubr.bf16.mxu0 %v1002_v27 }
  0x3f   :  { %953 = vmatmul.mubr.bf16.vlgmr.msra.gmra.mxu1 %v1001_v28 }
  0x40   :  { %956 = vmatprep.mubr.bf16.mxu1 %v1008_v29 }
  0x45   :  { %441 = vmatmul.mubr.bf16.gmra.mxu0 %v1004_v30 }
  0x46   :  { %448 = vmatprep.mubr.bf16.mxu0 %v1005_v31 }
  0x47   :  { %957 = vmatmul.mubr.bf16.gmra.mxu1 %v1009_v32 }
  0x48   :  { %960 = vmatprep.mubr.bf16.mxu1 %v1016_v33 }
  0x4d   :  { %449 = vmatmul.mubr.bf16.gmra.mxu0 %v1007_v34 }
  0x4e   :  { %456 = vmatprep.mubr.bf16.mxu0 %v1010_v35 }
  0x4f   :  { %961 = vmatmul.mubr.bf16.gmra.mxu1 %v1017_v36 }
  0x50   :  { %964 = vmatprep.mubr.bf16.mxu1 %v1024_v37 }
  0x55   :  { %457 = vmatmul.mubr.bf16.gmra.mxu0 %v1012_v38 }
  0x56   :  { %464 = vmatprep.mubr.bf16.mxu0 %v1013_v39 }
  0x57   :  { %965 = vmatmul.mubr.bf16.gmra.mxu1 %v1025_v40 }
  0x5d   :  { %465 = vmatmul.mubr.bf16.gmra.mxu0 %v1015_v41 }
  0x5e   :  { %472 = vmatprep.mubr.bf16.mxu0 %v1018_v42 }
  0x65   :  { %473 = vmatmul.mubr.bf16.gmra.mxu0 %v1020_v43 }
  0x66   :  { %480 = vmatprep.mubr.bf16.mxu0 %v1021_v44 }
  0x6d   :  { %481 = vmatmul.mubr.bf16.gmra.mxu0 %v1023_v45 }
  0x6e   :  { %488 = vmatprep.mubr.bf16.mxu0 %v1026_v46 }
  0x75   :  { %489 = vmatmul.mubr.bf16.gmra.mxu0 %v1028_v47 }
  0xfd   :  { %v872_v48 = vpop.f32.mrf.mxu0 }
  0xff   :  { %v873_v49 = vpop.f32.mrf.mxu0  ;;  %v954_v52 = vpop.f32.mrf.mxu1 }
 0x100   :  { %v874_v51 = vadd.f32 %v873_v49, %v872_v48 }
 0x101   :  { %v875_v53 = vpop.f32.mrf.mxu0  ;;  %v531_v55 = vpop.f32.mrf.mxu1 }
 0x102   :  { %v435_v54 = vadd.f32 %v874_v51, %v1176_v50 }
 0x103   :  { %v876_v56 = vpop.f32.mrf.mxu0  ;;  %v955_v59 = vpop.f32.mrf.mxu1 }
 0x104   :  { %v877_v57 = vadd.f32 %v876_v56, %v875_v53  ;;  %v532_v58 = vadd.f32 %v531_v55, %v435_v54 }
 0x105   :  { %v878_v60 = vpop.f32.mrf.mxu0  ;;  %v534_v62 = vpop.f32.mrf.mxu1 }
 0x106   :  { %v438_v61 = vadd.f32 %v877_v57, %v1176_v50  ;;  %vm594_vm0 = vcmp.gt.f32.partialorder %v532_v58, 0.2 }
 0x107   :  { %v879_v63 = vpop.f32.mrf.mxu0  ;;  %v958_v3 = vpop.f32.mrf.mxu1  ;;  %v777_v6 = vsel %vm594_vm0, 1.0, %v1077_v5 }
 0x108   :  { %v880_v0 = vadd.f32 %v879_v63, %v878_v60  ;;  %v535_v1 = vadd.f32 %v534_v62, %v438_v61 }
 0x109   :  { %v881_v2 = vpop.f32.mrf.mxu0  ;;  %v547_v13 = vpop.f32.mrf.mxu1 }
 0x10a   :  { %v443_v4 = vadd.f32 %v880_v0, %v1176_v50  ;;  %vm595_vm1 = vcmp.gt.f32.partialorder %v535_v1, 0.2 }
 0x10b   :  { %v778_v7 = vsel %vm595_vm1, 1.0, %v1077_v5  ;;  %v882_v8 = vpop.f32.mrf.mxu0  ;;  %v959_v19 = vpop.f32.mrf.mxu1 }
 0x10c   :  { %v540_v9 = vadd.f32 %v954_v52, %v443_v4  ;;  %v826_v10 = vpack.c.bf16 %v778_v7, %v777_v6  ;;  %v883_v11 = vadd.f32 %v882_v8, %v881_v2 }
 0x10d   :  { %v884_v12 = vpop.f32.mrf.mxu0  ;;  %v550_v28 = vpop.f32.mrf.mxu1 }
 0x10e   :  { %827 = vst [vmem:[%s1237_s3] sm:$0xff] %v826_v10   ;;  %v446_v14 = vadd.f32 %v883_v11, %v1176_v50  ;;  %vm596_vm2 = vcmp.gt.f32.partialorder %v540_v9, 0.2 }
 0x10f   :  { %v885_v15 = vpop.f32.mrf.mxu0  ;;  %v779_v21 = vsel %vm596_vm2, 1.0, %v1077_v5  ;;  %v962_v34 = vpop.f32.mrf.mxu1 }
 0x110   :  { %v543_v16 = vadd.f32 %v955_v59, %v446_v14  ;;  %v886_v17 = vadd.f32 %v885_v15, %v884_v12 }
 0x111   :  { %v887_v18 = vpop.f32.mrf.mxu0  ;;  %v563_v43 = vpop.f32.mrf.mxu1 }
 0x112   :  { %vm597_vm3 = vcmp.gt.f32.partialorder %v543_v16, 0.2  ;;  %v451_v20 = vadd.f32 %v886_v17, %v1176_v50 }
 0x113   :  { %v780_v22 = vsel %vm597_vm3, 1.0, %v1077_v5  ;;  %v888_v23 = vpop.f32.mrf.mxu0  ;;  %v963_v49 = vpop.f32.mrf.mxu1 }
 0x114   :  { %v829_v24 = vpack.c.bf16 %v780_v22, %v779_v21  ;;  %v889_v25 = vadd.f32 %v888_v23, %v887_v18  ;;  %v548_v26 = vadd.f32 %v547_v13, %v451_v20 }
 0x115   :  { %v890_v27 = vpop.f32.mrf.mxu0  ;;  %v566_v59 = vpop.f32.mrf.mxu1 }
 0x116   :  { %849 = vst [vmem:[%s1237_s3 + $0x8] sm:$0xff] %v829_v24   ;;  %v454_v29 = vadd.f32 %v889_v25, %v1176_v50  ;;  %vm598_vm4 = vcmp.gt.f32.partialorder %v548_v26, 0.2 }
 0x117   :  { %v891_v30 = vpop.f32.mrf.mxu0  ;;  %v781_v36 = vsel %vm598_vm4, 1.0, %v1077_v5  ;;  %v966_v1 = vpop.f32.mrf.mxu1 }
 0x118   :  { %v892_v31 = vadd.f32 %v891_v30, %v890_v27  ;;  %v551_v32 = vadd.f32 %v550_v28, %v454_v29 }
 0x119   :  { %v893_v33 = vpop.f32.mrf.mxu0  ;;  %v579_v11 = vpop.f32.mrf.mxu1 }
 0x11a   :  { %v459_v35 = vadd.f32 %v892_v31, %v1176_v50  ;;  %vm599_vm5 = vcmp.gt.f32.partialorder %v551_v32, 0.2 }
 0x11b   :  { %v782_v37 = vsel %vm599_vm5, 1.0, %v1077_v5  ;;  %v894_v38 = vpop.f32.mrf.mxu0  ;;  %v967_v17 = vpop.f32.mrf.mxu1 }
 0x11c   :  { %v556_v39 = vadd.f32 %v958_v3, %v459_v35  ;;  %v832_v40 = vpack.c.bf16 %v782_v37, %v781_v36  ;;  %v895_v41 = vadd.f32 %v894_v38, %v893_v33 }
 0x11d   :  { %v896_v42 = vpop.f32.mrf.mxu0  ;;  %v582_v26 = vpop.f32.mrf.mxu1 }
 0x11e   :  { %850 = vst [vmem:[%s1237_s3 + $0x10] sm:$0xff] %v832_v40   ;;  %v462_v44 = vadd.f32 %v895_v41, %v1176_v50  ;;  %vm600_vm6 = vcmp.gt.f32.partialorder %v556_v39, 0.2 }
 0x11f   :  { %v897_v45 = vpop.f32.mrf.mxu0  ;;  %v783_v52 = vsel %vm600_vm6, 1.0, %v1077_v5 }
 0x120   :  { %v559_v46 = vadd.f32 %v959_v19, %v462_v44  ;;  %v898_v47 = vadd.f32 %v897_v45, %v896_v42 }
 0x121   :  { %v899_v48 = vpop.f32.mrf.mxu0 }
 0x122   :  { %vm601_vm7 = vcmp.gt.f32.partialorder %v559_v46, 0.2  ;;  %v467_v51 = vadd.f32 %v898_v47, %v1176_v50 }
 0x123   :  { %v784_v53 = vsel %vm601_vm7, 1.0, %v1077_v5  ;;  %v900_v54 = vpop.f32.mrf.mxu0 }
 0x124   :  { %v835_v55 = vpack.c.bf16 %v784_v53, %v783_v52  ;;  %v901_v56 = vadd.f32 %v900_v54, %v899_v48  ;;  %v564_v57 = vadd.f32 %v563_v43, %v467_v51 }
 0x125   :  { %v902_v58 = vpop.f32.mrf.mxu0 }
 0x126   :  { %851 = vst [vmem:[%s1237_s3 + $0x18] sm:$0xff] %v835_v55   ;;  %v470_v60 = vadd.f32 %v901_v56, %v1176_v50  ;;  %vm602_vm8 = vcmp.gt.f32.partialorder %v564_v57, 0.2 }
 0x127   :  { %v903_v61 = vpop.f32.mrf.mxu0  ;;  %v785_v3 = vsel %vm602_vm8, 1.0, %v1077_v5 }
 0x128   :  { %v904_v62 = vadd.f32 %v903_v61, %v902_v58  ;;  %v567_v63 = vadd.f32 %v566_v59, %v470_v60 }
 0x129   :  { %v905_v0 = vpop.f32.mrf.mxu0 }
 0x12a   :  { %v475_v2 = vadd.f32 %v904_v62, %v1176_v50  ;;  %vm603_vm9 = vcmp.gt.f32.partialorder %v567_v63, 0.2 }
 0x12b   :  { %v786_v4 = vsel %vm603_vm9, 1.0, %v1077_v5  ;;  %v906_v6 = vpop.f32.mrf.mxu0 }
 0x12c   :  { %v572_v7 = vadd.f32 %v962_v34, %v475_v2  ;;  %v838_v8 = vpack.c.bf16 %v786_v4, %v785_v3  ;;  %v907_v9 = vadd.f32 %v906_v6, %v905_v0 }
 0x12d   :  { %v908_v10 = vpop.f32.mrf.mxu0 }
 0x12e   :  { %852 = vst [vmem:[%s1237_s3 + $0x20] sm:$0xff] %v838_v8   ;;  %v478_v12 = vadd.f32 %v907_v9, %v1176_v50  ;;  %vm604_vm10 = vcmp.gt.f32.partialorder %v572_v7, 0.2 }
 0x12f   :  { %v909_v13 = vpop.f32.mrf.mxu0  ;;  %v787_v19 = vsel %vm604_vm10, 1.0, %v1077_v5 }
 0x130   :  { %v575_v14 = vadd.f32 %v963_v49, %v478_v12  ;;  %v910_v15 = vadd.f32 %v909_v13, %v908_v10 }
 0x131   :  { %v911_v16 = vpop.f32.mrf.mxu0 }
 0x132   :  { %vm605_vm11 = vcmp.gt.f32.partialorder %v575_v14, 0.2  ;;  %v483_v18 = vadd.f32 %v910_v15, %v1176_v50 }
 0x133   :  { %v788_v20 = vsel %vm605_vm11, 1.0, %v1077_v5  ;;  %v912_v21 = vpop.f32.mrf.mxu0 }
 0x134   :  { %v841_v22 = vpack.c.bf16 %v788_v20, %v787_v19  ;;  %v913_v23 = vadd.f32 %v912_v21, %v911_v16  ;;  %v580_v24 = vadd.f32 %v579_v11, %v483_v18 }
 0x135   :  { %v914_v25 = vpop.f32.mrf.mxu0 }
 0x136   :  { %853 = vst [vmem:[%s1237_s3 + $0x28] sm:$0xff] %v841_v22   ;;  %v486_v27 = vadd.f32 %v913_v23, %v1176_v50  ;;  %vm606_vm12 = vcmp.gt.f32.partialorder %v580_v24, 0.2 }
 0x137   :  { %v915_v28 = vpop.f32.mrf.mxu0  ;;  %v789_v33 = vsel %vm606_vm12, 1.0, %v1077_v5 }
 0x138   :  { %v916_v29 = vadd.f32 %v915_v28, %v914_v25  ;;  %v583_v30 = vadd.f32 %v582_v26, %v486_v27 }
 0x139   :  { %v917_v31 = vpop.f32.mrf.mxu0 }
 0x13a   :  { %v491_v32 = vadd.f32 %v916_v29, %v1176_v50  ;;  %vm607_vm13 = vcmp.gt.f32.partialorder %v583_v30, 0.2 }
 0x13b   :  { %v790_v34 = vsel %vm607_vm13, 1.0, %v1077_v5  ;;  %v918_v35 = vpop.f32.mrf.mxu0 }
 0x13c   :  { %v588_v36 = vadd.f32 %v966_v1, %v491_v32  ;;  %v844_v37 = vpack.c.bf16 %v790_v34, %v789_v33  ;;  %v919_v38 = vadd.f32 %v918_v35, %v917_v31 }
 0x13e   :  { %854 = vst [vmem:[%s1237_s3 + $0x30] sm:$0xff] %v844_v37   ;;  %v494_v39 = vadd.f32 %v919_v38, %v1176_v50  ;;  %vm608_vm14 = vcmp.gt.f32.partialorder %v588_v36, 0.2 }
 0x13f   :  { %v791_v41 = vsel %vm608_vm14, 1.0, %v1077_v5 }
 0x140   :  { %v591_v40 = vadd.f32 %v967_v17, %v494_v39 }
 0x142   :  { %vm609_vm15 = vcmp.gt.f32.partialorder %v591_v40, 0.2 }
 0x143   :  { %v792_v42 = vsel %vm609_vm15, 1.0, %v1077_v5 }
 0x144   :  { %v847_v43 = vpack.c.bf16 %v792_v42, %v791_v41 }
 0x146   :  { %855 = vst [vmem:[%s1237_s3 + $0x38] sm:$0xff] %v847_v43  }
 0x147   :  { %726 = vsyncpa [#allocation3], 1 }
 0x148   :  { %727 = vsyncpa [#allocation5], 1 }

// kernel: _ee_step.13
= control target key start
LH: loop header
LB: loop body
LE: loop exit
PB: predicated region body
PF: predicated region fallthrough
CT: control target
= control target key end

     0   :  { %s980_s1 = inlined_call_operand.vmem [shape: bf16[640,128], index: 1, kind: input, shape index: {}]   ;;  %s981_s0 = inlined_call_operand.vmem [shape: bf16[1,32,640], index: 0, kind: input, shape index: {}]   ;;  %s982_s2 = inlined_call_operand.vmem [shape: f32[1,128], index: 2, kind: input, shape index: {}]   ;;  %s983_s3 = inlined_call_operand.vmem [shape: bf16[1,32,128], index: 3, kind: output, shape index: {}]  }
   0x1   :  { %v746_v0 = vld [vmem:[%s980_s1 + $0x78] sm:$0xff]   ;;  %v750_v4 = vld [vmem:[%s980_s1 + $0x70] sm:$0xff]   ;;  %v754_v8 = vld [vmem:[%s980_s1 + $0x68] sm:$0xff]  }
   0x2   :  { %v747_v1 = vld [vmem:[%s980_s1 + $0x38] sm:$0xff]   ;;  %659 = vmatprep.subr.bf16.mxu0 %v746_v0  ;;  %v751_v5 = vld [vmem:[%s980_s1 + $0x30] sm:$0xff]   ;;  %v755_v9 = vld [vmem:[%s980_s1 + $0x28] sm:$0xff]  }
   0x3   :  { %v748_v2 = vld [vmem:[%s980_s1 + $0xf8] sm:$0xff]   ;;  %660 = vmatpush3.bf16.msra.mxu0 %v747_v1  ;;  %v752_v6 = vld [vmem:[%s980_s1 + $0xf0] sm:$0xff]   ;;  %v756_v10 = vld [vmem:[%s980_s1 + $0xe8] sm:$0xff]  }
   0x4   :  { %v749_v3 = vld [vmem:[%s980_s1 + $0xb8] sm:$0xff]   ;;  %687 = vmatprep.subr.bf16.mxu1 %v748_v2  ;;  %661 = vmatprep.subr.bf16.mxu0 %v750_v4  ;;  %v753_v7 = vld [vmem:[%s980_s1 + $0xb0] sm:$0xff]   ;;  %v757_v11 = vld [vmem:[%s980_s1 + $0xa8] sm:$0xff]  }
   0x5   :  { %688 = vmatpush3.bf16.msra.mxu1 %v749_v3  ;;  %v758_v12 = vld [vmem:[%s980_s1 + $0x60] sm:$0xff]   ;;  %v762_v16 = vld [vmem:[%s980_s1 + $0x58] sm:$0xff]   ;;  %v766_v20 = vld [vmem:[%s980_s1 + $0x50] sm:$0xff]  }
   0x6   :  { %689 = vmatprep.subr.bf16.mxu1 %v752_v6  ;;  %v759_v13 = vld [vmem:[%s980_s1 + $0x20] sm:$0xff]   ;;  %v763_v17 = vld [vmem:[%s980_s1 + $0x18] sm:$0xff]   ;;  %v767_v21 = vld [vmem:[%s980_s1 + $0x10] sm:$0xff]  }
   0x7   :  { %662 = vmatpush3.bf16.msra.mxu0 %v751_v5  ;;  %v760_v14 = vld [vmem:[%s980_s1 + $0xe0] sm:$0xff]   ;;  %v764_v18 = vld [vmem:[%s980_s1 + $0xd8] sm:$0xff]   ;;  %v768_v22 = vld [vmem:[%s980_s1 + $0xd0] sm:$0xff]  }
   0x8   :  { %663 = vmatprep.subr.bf16.mxu0 %v754_v8  ;;  %v761_v15 = vld [vmem:[%s980_s1 + $0xa0] sm:$0xff]   ;;  %v765_v19 = vld [vmem:[%s980_s1 + $0x98] sm:$0xff]   ;;  %v769_v23 = vld [vmem:[%s980_s1 + $0x90] sm:$0xff]  }
   0x9   :  { %690 = vmatpush3.bf16.msra.mxu1 %v753_v7  ;;  %v770_v24 = vld [vmem:[%s980_s1 + $0x48] sm:$0xff]   ;;  %v774_v28 = vld [vmem:[%s980_s1 + $0x40] sm:$0xff]   ;;  %v781_v34 = vld [vmem:[%s980_s1 + $0x138] sm:$0xff]  }
   0xa   :  { %691 = vmatprep.subr.bf16.mxu1 %v756_v10  ;;  %v771_v25 = vld [vmem:[%s980_s1 + $0x8] sm:$0xff]   ;;  %v775_v29 = vld [vmem:[%s980_s1] sm:$0xff]   ;;  %v785_v37 = vld [vmem:[%s980_s1 + $0x130] sm:$0xff]  }
   0xb   :  { %664 = vmatpush3.bf16.msra.mxu0 %v755_v9  ;;  %v772_v26 = vld [vmem:[%s980_s1 + $0xc8] sm:$0xff]   ;;  %v776_v30 = vld [vmem:[%s980_s1 + $0xc0] sm:$0xff]   ;;  %v788_v44 = vld [vmem:[%s980_s1 + $0x118] sm:$0xff]  }
   0xc   :  { %665 = vmatprep.subr.bf16.mxu0 %v758_v12  ;;  %v773_v27 = vld [vmem:[%s980_s1 + $0x88] sm:$0xff]   ;;  %v777_v31 = vld [vmem:[%s981_s0] ss:$20 sps:$4 sm:$0xff]   ;;  %v779_v32 = vld [vmem:[%s981_s0 + $0x4] ss:$20 sps:$4 sm:$0xff]  }
   0xd   :  { %692 = vmatpush3.bf16.msra.mxu1 %v757_v11  ;;  %v780_v33 = vld [vmem:[%s980_s1 + $0x80] sm:$0xff]   ;;  %438 = vmatprep.mubr.bf16.mxu0 %v779_v32  ;;  %v782_v35 = vld [vmem:[%s981_s0 + $0x8] ss:$20 sps:$4 sm:$0xff]   ;;  %v795_v46 = vld [vmem:[%s980_s1 + $0x110] sm:$0xff]  }
   0xe   :  { %693 = vmatprep.subr.bf16.mxu1 %v760_v14  ;;  %v784_v36 = vld [vmem:[%s981_s0 + $0xc] ss:$20 sps:$4 sm:$0xff]   ;;  %v791_v41 = vld [vmem:[%s981_s0 + $0x28] ss:$20 sps:$4 sm:$0xff]   ;;  %v794_v43 = vld [vmem:[%s981_s0 + $0x30] ss:$20 sps:$4 sm:$0xff]  }
   0xf   :  { %666 = vmatpush3.bf16.msra.mxu0 %v759_v13  ;;  %487 = vmatprep.mubr.bf16.mxu1 %v784_v36  ;;  %v786_v38 = vld [vmem:[%s980_s1 + $0x128] sm:$0xff]   ;;  %v787_v39 = vld [vmem:[%s980_s1 + $0x120] sm:$0xff]  }
  0x10   :  { %667 = vmatprep.subr.bf16.mxu0 %v762_v16  ;;  %v789_v40 = vld [vmem:[%s981_s0 + $0x2c] ss:$20 sps:$4 sm:$0xff]   ;;  %v792_v42 = vld [vmem:[%s981_s0 + $0x34] ss:$20 sps:$4 sm:$0xff]   ;;  %v798_v45 = vld [vmem:[%s981_s0 + $0x10] ss:$20 sps:$4 sm:$0xff]  }
  0x11   :  { %694 = vmatpush3.bf16.msra.mxu1 %v761_v15  ;;  %v796_v47 = vld [vmem:[%s980_s1 + $0x108] sm:$0xff]   ;;  %v797_v48 = vld [vmem:[%s980_s1 + $0x100] sm:$0xff]  }
  0x12   :  { %695 = vmatprep.subr.bf16.mxu1 %v764_v18  ;;  %v799_v49 = vld [vmem:[%s981_s0 + $0x38] ss:$20 sps:$4 sm:$0xff]   ;;  %v589_v3 = vld [vmem:[%s982_s2] ss:$0 sm:$0xff] }
  0x13   :  { %668 = vmatpush3.bf16.msra.mxu0 %v763_v17 }
  0x14   :  { %669 = vmatprep.subr.bf16.mxu0 %v766_v20 }
  0x15   :  { %696 = vmatpush3.bf16.msra.mxu1 %v765_v19 }
  0x16   :  { %697 = vmatprep.subr.bf16.mxu1 %v768_v22 }
  0x17   :  { %670 = vmatpush3.bf16.msra.mxu0 %v767_v21 }
  0x18   :  { %671 = vmatprep.subr.bf16.mxu0 %v770_v24 }
  0x19   :  { %698 = vmatpush3.bf16.msra.mxu1 %v769_v23 }
  0x1a   :  { %699 = vmatprep.subr.bf16.mxu1 %v772_v26 }
  0x1b   :  { %672 = vmatpush3.bf16.msra.mxu0 %v771_v25 }
  0x1c   :  { %673 = vmatprep.subr.bf16.mxu0 %v774_v28 }
  0x1d   :  { %700 = vmatpush3.bf16.msra.mxu1 %v773_v27  ;;  %v800_v27 = vmov 0.0  }
  0x1e   :  { %701 = vmatprep.subr.bf16.mxu1 %v776_v30 }
  0x1f   :  { %674 = vmatpush3.bf16.msra.mxu0 %v775_v29 }
  0x20   :  { %725 = vmatprep.subr.bf16.mxu0 %v781_v34 }
  0x21   :  { %702 = vmatpush3.bf16.msra.mxu1 %v780_v33 }
  0x22   :  { %439 = vmatmul.mubr.bf16.vlgmr.msra.gmra.mxu0 %v777_v31 }
  0x23   :  { %726 = vmatpush3.bf16.msra.mxu0 %v781_v34  ;;  %446 = vmatprep.mubr.bf16.mxu0 %v789_v40 }
  0x24   :  { %488 = vmatmul.mubr.bf16.vlgmr.msra.gmra.mxu1 %v782_v35  ;;  %727 = vmatprep.subr.bf16.mxu0 %v785_v37 }
  0x25   :  { %495 = vmatprep.mubr.bf16.mxu1 %v792_v42 }
  0x27   :  { %728 = vmatpush3.bf16.msra.mxu0 %v785_v37 }
  0x28   :  { %729 = vmatprep.subr.bf16.mxu0 %v786_v38 }
  0x2a   :  { %447 = vmatmul.mubr.bf16.gmra.mxu0 %v791_v41 }
  0x2b   :  { %730 = vmatpush3.bf16.msra.mxu0 %v786_v38  ;;  %741 = vmatprep.mubr.bf16.mxu0 %v798_v45 }
  0x2c   :  { %731 = vmatprep.subr.bf16.mxu0 %v787_v39  ;;  %496 = vmatmul.mubr.bf16.gmra.mxu1 %v794_v43 }
  0x2f   :  { %732 = vmatpush3.bf16.msra.mxu0 %v787_v39 }
  0x30   :  { %733 = vmatprep.subr.bf16.mxu0 %v788_v44 }
  0x33   :  { %734 = vmatpush3.bf16.msra.mxu0 %v788_v44 }
  0x34   :  { %735 = vmatprep.subr.bf16.mxu0 %v795_v46 }
  0x37   :  { %736 = vmatpush3.bf16.msra.mxu0 %v795_v46 }
  0x38   :  { %737 = vmatprep.subr.bf16.mxu0 %v796_v47 }
  0x3b   :  { %738 = vmatpush3.bf16.msra.mxu0 %v796_v47 }
  0x3c   :  { %739 = vmatprep.subr.bf16.mxu0 %v797_v48 }
  0x3f   :  { %740 = vmatpush3.bf16.msra.mxu0 %v797_v48 }
  0x42   :  { %742 = vmatmul.mubr.bf16.vlgmr.msra.gmra.mxu0 %v799_v49 }
  0xe2   :  { %v675_v50 = vpop.f32.mrf.mxu0 }
  0xe4   :  { %v676_v51 = vpop.f32.mrf.mxu0  ;;  %v703_v52 = vpop.f32.mrf.mxu1 }
  0xe5   :  { %v677_v2 = vadd.f32 %v676_v51, %v675_v50 }
  0xe6   :  { %v678_v53 = vpop.f32.mrf.mxu0  ;;  %v704_v54 = vpop.f32.mrf.mxu1 }
  0xe7   :  { %v441_v8 = vadd.f32 %v677_v2, %v589_v3  ;;  %v705_v9 = vadd.f32 %v704_v54, %v703_v52 }
  0xe8   :  { %v679_v55 = vpop.f32.mrf.mxu0  ;;  %v706_v56 = vpop.f32.mrf.mxu1 }
  0xe9   :  { %v680_v10 = vadd.f32 %v679_v55, %v678_v53  ;;  %v490_v18 = vadd.f32 %v705_v9, %v441_v8 }
  0xea   :  { %v681_v57 = vpop.f32.mrf.mxu0  ;;  %v707_v58 = vpop.f32.mrf.mxu1 }
  0xeb   :  { %v444_v15 = vadd.f32 %v680_v10, %v589_v3  ;;  %v708_v16 = vadd.f32 %v707_v58, %v706_v56 }
  0xec   :  { %v682_v59 = vpop.f32.mrf.mxu0  ;;  %v709_v60 = vpop.f32.mrf.mxu1 }
  0xed   :  { %v683_v63 = vadd.f32 %v682_v59, %v681_v57  ;;  %v493_v24 = vadd.f32 %v708_v16, %v444_v15 }
  0xee   :  { %v684_v61 = vpop.f32.mrf.mxu0  ;;  %v710_v62 = vpop.f32.mrf.mxu1 }
  0xef   :  { %v449_v4 = vadd.f32 %v683_v63, %v589_v3  ;;  %v711_v5 = vadd.f32 %v710_v62, %v709_v60 }
  0xf0   :  { %v685_v0 = vpop.f32.mrf.mxu0  ;;  %v712_v1 = vpop.f32.mrf.mxu1 }
  0xf1   :  { %v686_v6 = vadd.f32 %v685_v0, %v684_v61  ;;  %v498_v13 = vadd.f32 %v711_v5, %v449_v4 }
  0xf2   :  { %v713_v7 = vpop.f32.mrf.mxu1 }
  0xf3   :  { %v452_v11 = vadd.f32 %v686_v6, %v589_v3  ;;  %v714_v12 = vadd.f32 %v713_v7, %v712_v1 }
  0xf5   :  { %v501_v21 = vadd.f32 %v714_v12, %v452_v11 }
 0x102   :  { %v743_v14 = vpop.f32.mrf.mxu0 }
 0x103   :  { %v547_v17 = vadd.f32 %v743_v14, %v498_v13 }
 0x104   :  { %v538_v19 = vpop.f32.mrf.mxu0 }
 0x105   :  { %v539_v20 = vadd.f32 %v538_v19, %v490_v18  ;;  %vm555_vm0 = vcmp.gt.f32.partialorder %v547_v17, 0.2 }
 0x106   :  { %v744_v22 = vpop.f32.mrf.mxu0  ;;  %v642_v28 = vsel %vm555_vm0, 1.0, %v800_v27 }
 0x107   :  { %v550_v23 = vadd.f32 %v744_v22, %v501_v21  ;;  %vm553_vm1 = vcmp.gt.f32.partialorder %v539_v20, 0.2 }
 0x108   :  { %v541_v25 = vpop.f32.mrf.mxu0  ;;  %v640_v31 = vsel %vm553_vm1, 1.0, %v800_v27 }
 0x109   :  { %vm556_vm2 = vcmp.gt.f32.partialorder %v550_v23, 0.2  ;;  %v542_v26 = vadd.f32 %v541_v25, %v493_v24 }
 0x10a   :  { %v643_v29 = vsel %vm556_vm2, 1.0, %v800_v27 }
 0x10b   :  { %v656_v30 = vpack.c.bf16 %v643_v29, %v642_v28  ;;  %vm554_vm3 = vcmp.gt.f32.partialorder %v542_v26, 0.2 }
 0x10c   :  { %v641_v32 = vsel %vm554_vm3, 1.0, %v800_v27 }
 0x10d   :  { %658 = vst [vmem:[%s983_s3 + $0x8] sm:$0xff] %v656_v30   ;;  %v653_v33 = vpack.c.bf16 %v641_v32, %v640_v31 }
 0x10f   :  { %654 = vst [vmem:[%s983_s3] sm:$0xff] %v653_v33  }

// kernel: _ee_step.16
= control target key start
LH: loop header
LB: loop body
LE: loop exit
PB: predicated region body
PF: predicated region fallthrough
CT: control target
= control target key end

     0   :  { %v752_v3 = vmov 0   ;;  %s994_s1 = inlined_call_operand.vmem [shape: bf16[128,1024], index: 1, kind: input, shape index: {}]   ;;  %s995_s0 = inlined_call_operand.vmem [shape: bf16[1,8,128], index: 0, kind: input, shape index: {}]   ;;  %s996_s2 = inlined_call_operand.vmem [shape: f32[1,1024], index: 2, kind: input, shape index: {}]   ;;  %s997_s3 = inlined_call_operand.vmem [shape: bf16[1,8,1024], index: 3, kind: output, shape index: {}]  }
   0x1   :  { %v72_v0 = vld [vmem:[%s994_s1 + $0x1c0] sm:$0xff]  ;;  %v73_v2 = vld [vmem:[%s994_s1 + $0x1c8] sm:$0xff]  ;;  %474 = vmatprep.mubr.bf16.mxu0 %v752_v3  ;;  %515 = vmatprep.mubr.bf16.mxu1 %v752_v3  ;;  %v74_v63 = vld [vmem:[%s994_s1 + $0x1d0] sm:$0xff] }
   0x2   :  { %v76_v1 = vld [vmem:[%s994_s1 + $0x1e0] sm:$0xff]  ;;  %v77_v5 = vld [vmem:[%s994_s1 + $0x1e8] sm:$0xff] }
   0x3   :  { %v727_v4 = vcombine.high %v72_v0, %v76_v1  ;;  %v726_v6 = vcombine.low %v72_v0, %v76_v1  ;;  %v64_v7 = vld [vmem:[%s994_s1 + $0x180] sm:$0xff]  ;;  %v729_v9 = vcombine.high %v73_v2, %v77_v5  ;;  %v728_v10 = vcombine.low %v73_v2, %v77_v5  ;;  %v65_v12 = vld [vmem:[%s994_s1 + $0x188] sm:$0xff]  ;;  %v78_v0 = vld [vmem:[%s994_s1 + $0x1f0] sm:$0xff] }
   0x4   :  { %v68_v8 = vld [vmem:[%s994_s1 + $0x1a0] sm:$0xff]  ;;  %v69_v13 = vld [vmem:[%s994_s1 + $0x1a8] sm:$0xff]  ;;  %v75_v1 = vld [vmem:[%s994_s1 + $0x1d8] sm:$0xff] }
   0x5   :  { %v719_v11 = vcombine.high %v64_v7, %v68_v8  ;;  %v56_v14 = vld [vmem:[%s994_s1 + $0x140] sm:$0xff]  ;;  %442 = vmatprep.subr.bf16.mxu0 %v727_v4  ;;  %v721_v15 = vcombine.high %v65_v12, %v69_v13  ;;  %v57_v17 = vld [vmem:[%s994_s1 + $0x148] sm:$0xff]  ;;  %483 = vmatprep.subr.bf16.mxu1 %v729_v9  ;;  %v718_v19 = vcombine.low %v64_v7, %v68_v8  ;;  %v79_v2 = vld [vmem:[%s994_s1 + $0x1f8] sm:$0xff] }
   0x6   :  { %v60_v16 = vld [vmem:[%s994_s1 + $0x160] sm:$0xff]  ;;  %v61_v18 = vld [vmem:[%s994_s1 + $0x168] sm:$0xff]  ;;  %443 = vmatpush1.bf16.msra.mxu0 %v726_v6  ;;  %484 = vmatpush1.bf16.msra.mxu1 %v728_v10  ;;  %v720_v20 = vcombine.low %v65_v12, %v69_v13  ;;  %v731_v6 = vcombine.high %v74_v63, %v78_v0  ;;  %v733_v7 = vcombine.high %v75_v1, %v79_v2  ;;  %v66_v8 = vld [vmem:[%s994_s1 + $0x190] sm:$0xff] }
   0x7   :  { %444 = vmatprep.subr.bf16.mxu0 %v719_v11  ;;  %v711_v21 = vcombine.high %v56_v14, %v60_v16  ;;  %485 = vmatprep.subr.bf16.mxu1 %v721_v15  ;;  %v713_v22 = vcombine.high %v57_v17, %v61_v18  ;;  %v48_v23 = vld [vmem:[%s994_s1 + $0x100] sm:$0xff]  ;;  %v49_v25 = vld [vmem:[%s994_s1 + $0x108] sm:$0xff]  ;;  %v710_v27 = vcombine.low %v56_v14, %v60_v16  ;;  %v70_v9 = vld [vmem:[%s994_s1 + $0x1b0] sm:$0xff] }
   0x8   :  { %v52_v24 = vld [vmem:[%s994_s1 + $0x120] sm:$0xff]  ;;  %v53_v26 = vld [vmem:[%s994_s1 + $0x128] sm:$0xff]  ;;  %v712_v28 = vcombine.low %v57_v17, %v61_v18  ;;  %v67_v10 = vld [vmem:[%s994_s1 + $0x198] sm:$0xff]  ;;  %v730_v13 = vcombine.low %v74_v63, %v78_v0  ;;  %v732_v14 = vcombine.low %v75_v1, %v79_v2  ;;  %v723_v15 = vcombine.high %v66_v8, %v70_v9 }
   0x9   :  { %v703_v29 = vcombine.high %v48_v23, %v52_v24  ;;  %v705_v30 = vcombine.high %v49_v25, %v53_v26  ;;  %v40_v31 = vld [vmem:[%s994_s1 + $0xc0] sm:$0xff]  ;;  %v41_v33 = vld [vmem:[%s994_s1 + $0xc8] sm:$0xff]  ;;  %v702_v35 = vcombine.low %v48_v23, %v52_v24  ;;  %v704_v36 = vcombine.low %v49_v25, %v53_v26  ;;  %v71_v11 = vld [vmem:[%s994_s1 + $0x1b8] sm:$0xff] }
   0xa   :  { %445 = vmatpush1.bf16.msra.mxu0 %v718_v19  ;;  %486 = vmatpush1.bf16.msra.mxu1 %v720_v20  ;;  %v44_v32 = vld [vmem:[%s994_s1 + $0xe0] sm:$0xff]  ;;  %v45_v34 = vld [vmem:[%s994_s1 + $0xe8] sm:$0xff]  ;;  %v725_v16 = vcombine.high %v67_v10, %v71_v11  ;;  %v58_v17 = vld [vmem:[%s994_s1 + $0x150] sm:$0xff]  ;;  %v82_v2 = vlaneseq }
   0xb   :  { %446 = vmatprep.subr.bf16.mxu0 %v711_v21  ;;  %487 = vmatprep.subr.bf16.mxu1 %v713_v22  ;;  %v695_v37 = vcombine.high %v40_v31, %v44_v32  ;;  %v697_v38 = vcombine.high %v41_v33, %v45_v34  ;;  %v32_v39 = vld [vmem:[%s994_s1 + $0x80] sm:$0xff]  ;;  %v33_v41 = vld [vmem:[%s994_s1 + $0x88] sm:$0xff]  ;;  %v694_v43 = vcombine.low %v40_v31, %v44_v32  ;;  %v62_v18 = vld [vmem:[%s994_s1 + $0x170] sm:$0xff] }
   0xc   :  { %v36_v40 = vld [vmem:[%s994_s1 + $0xa0] sm:$0xff]  ;;  %v37_v42 = vld [vmem:[%s994_s1 + $0xa8] sm:$0xff]  ;;  %v696_v44 = vcombine.low %v41_v33, %v45_v34  ;;  %v59_v19 = vld [vmem:[%s994_s1 + $0x158] sm:$0xff]  ;;  %v722_v21 = vcombine.low %v66_v8, %v70_v9  ;;  %v724_v22 = vcombine.low %v67_v10, %v71_v11  ;;  %v715_v23 = vcombine.high %v58_v17, %v62_v18 }
   0xd   :  { %v687_v45 = vcombine.high %v32_v39, %v36_v40  ;;  %v689_v46 = vcombine.high %v33_v41, %v37_v42  ;;  %v24_v47 = vld [vmem:[%s994_s1 + $0x40] sm:$0xff]  ;;  %v25_v49 = vld [vmem:[%s994_s1 + $0x48] sm:$0xff]  ;;  %v686_v51 = vcombine.low %v32_v39, %v36_v40  ;;  %v688_v52 = vcombine.low %v33_v41, %v37_v42  ;;  %v63_v20 = vld [vmem:[%s994_s1 + $0x178] sm:$0xff] }
   0xe   :  { %447 = vmatpush1.bf16.msra.mxu0 %v710_v27  ;;  %488 = vmatpush1.bf16.msra.mxu1 %v712_v28  ;;  %v28_v48 = vld [vmem:[%s994_s1 + $0x60] sm:$0xff]  ;;  %v29_v50 = vld [vmem:[%s994_s1 + $0x68] sm:$0xff]  ;;  %v717_v24 = vcombine.high %v59_v19, %v63_v20  ;;  %v50_v25 = vld [vmem:[%s994_s1 + $0x110] sm:$0xff] }
   0xf   :  { %448 = vmatprep.subr.bf16.mxu0 %v703_v29  ;;  %489 = vmatprep.subr.bf16.mxu1 %v705_v30  ;;  %v679_v53 = vcombine.high %v24_v47, %v28_v48  ;;  %v681_v54 = vcombine.high %v25_v49, %v29_v50  ;;  %v16_v55 = vld [vmem:[%s994_s1] sm:$0xff]  ;;  %v17_v57 = vld [vmem:[%s994_s1 + $0x8] sm:$0xff]  ;;  %v678_v59 = vcombine.low %v24_v47, %v28_v48  ;;  %v54_v26 = vld [vmem:[%s994_s1 + $0x130] sm:$0xff] }
  0x10   :  { %v20_v56 = vld [vmem:[%s994_s1 + $0x20] sm:$0xff]  ;;  %v21_v58 = vld [vmem:[%s994_s1 + $0x28] sm:$0xff]  ;;  %v680_v60 = vcombine.low %v25_v49, %v29_v50  ;;  %v51_v27 = vld [vmem:[%s994_s1 + $0x118] sm:$0xff]  ;;  %v714_v29 = vcombine.low %v58_v17, %v62_v18  ;;  %v716_v30 = vcombine.low %v59_v19, %v63_v20  ;;  %v707_v31 = vcombine.high %v50_v25, %v54_v26 }
  0x11   :  { %v671_v61 = vcombine.high %v16_v55, %v20_v56  ;;  %v673_v62 = vcombine.high %v17_v57, %v21_v58  ;;  %v670_v4 = vcombine.low %v16_v55, %v20_v56  ;;  %v672_v5 = vcombine.low %v17_v57, %v21_v58  ;;  %v899_v12 = vld [vmem:[%s995_s0] sm:$0xf]  ;;  %v55_v28 = vld [vmem:[%s994_s1 + $0x138] sm:$0xff]  ;;  %v42_v33 = vld [vmem:[%s994_s1 + $0xd0] sm:$0xff] }
  0x12   :  { %449 = vmatpush1.bf16.msra.mxu0 %v702_v35  ;;  %490 = vmatpush1.bf16.msra.mxu1 %v704_v36  ;;  %v709_v32 = vcombine.high %v51_v27, %v55_v28  ;;  %v46_v34 = vld [vmem:[%s994_s1 + $0xf0] sm:$0xff]  ;;  %v47_v35 = vld [vmem:[%s994_s1 + $0xf8] sm:$0xff]  ;;  %v706_v36 = vcombine.low %v50_v25, %v54_v26 }
  0x13   :  { %450 = vmatprep.subr.bf16.mxu0 %v695_v37  ;;  %491 = vmatprep.subr.bf16.mxu1 %v697_v38  ;;  %v708_v37 = vcombine.low %v51_v27, %v55_v28  ;;  %v699_v38 = vcombine.high %v42_v33, %v46_v34  ;;  %v34_v40 = vld [vmem:[%s994_s1 + $0x90] sm:$0xff]  ;;  %v35_v42 = vld [vmem:[%s994_s1 + $0x98] sm:$0xff] }
  0x14   :  { %v38_v41 = vld [vmem:[%s994_s1 + $0xb0] sm:$0xff]  ;;  %v27_v50 = vld [vmem:[%s994_s1 + $0x58] sm:$0xff] }
  0x15   :  { %v26_v48 = vld [vmem:[%s994_s1 + $0x50] sm:$0xff]  ;;  %v19_v58 = vld [vmem:[%s994_s1 + $0x18] sm:$0xff] }
  0x16   :  { %451 = vmatpush1.bf16.msra.mxu0 %v694_v43  ;;  %492 = vmatpush1.bf16.msra.mxu1 %v696_v44  ;;  %v39_v43 = vld [vmem:[%s994_s1 + $0xb8] sm:$0xff]  ;;  %v698_v44 = vcombine.low %v42_v33, %v46_v34  ;;  %v30_v49 = vld [vmem:[%s994_s1 + $0x70] sm:$0xff] }
  0x17   :  { %452 = vmatprep.subr.bf16.mxu0 %v687_v45  ;;  %493 = vmatprep.subr.bf16.mxu1 %v689_v46  ;;  %v691_v46 = vcombine.high %v34_v40, %v38_v41  ;;  %v693_v47 = vcombine.high %v35_v42, %v39_v43  ;;  %v18_v56 = vld [vmem:[%s994_s1 + $0x10] sm:$0xff] }
  0x18   :  { %v22_v57 = vld [vmem:[%s994_s1 + $0x30] sm:$0xff] }
  0x19   :  { %v674_v0 = vcombine.low %v18_v56, %v22_v57 }
  0x1a   :  { %453 = vmatpush1.bf16.msra.mxu0 %v686_v51  ;;  %494 = vmatpush1.bf16.msra.mxu1 %v688_v52  ;;  %v31_v51 = vld [vmem:[%s994_s1 + $0x78] sm:$0xff]  ;;  %v690_v52 = vcombine.low %v34_v40, %v38_v41 }
  0x1b   :  { %454 = vmatprep.subr.bf16.mxu0 %v679_v53  ;;  %495 = vmatprep.subr.bf16.mxu1 %v681_v54  ;;  %v692_v53 = vcombine.low %v35_v42, %v39_v43  ;;  %v683_v54 = vcombine.high %v26_v48, %v30_v49  ;;  %v685_v55 = vcombine.high %v27_v50, %v31_v51 }
  0x1e   :  { %455 = vmatpush1.bf16.msra.mxu0 %v678_v59  ;;  %496 = vmatpush1.bf16.msra.mxu1 %v680_v60  ;;  %v23_v59 = vld [vmem:[%s994_s1 + $0x38] sm:$0xff]  ;;  %v682_v60 = vcombine.low %v26_v48, %v30_v49 }
  0x1f   :  { %456 = vmatprep.subr.bf16.mxu0 %v671_v61  ;;  %497 = vmatprep.subr.bf16.mxu1 %v673_v62  ;;  %v684_v61 = vcombine.low %v27_v50, %v31_v51  ;;  %v675_v62 = vcombine.high %v18_v56, %v22_v57  ;;  %v677_v63 = vcombine.high %v19_v58, %v23_v59 }
  0x20   :  { %v676_v1 = vcombine.low %v19_v58, %v23_v59 }
  0x22   :  { %457 = vmatpush1.bf16.msra.mxu0 %v670_v4  ;;  %498 = vmatpush1.bf16.msra.mxu1 %v672_v5  ;;  %v83_v4 = vshrl.u32 %v82_v2, 7 }
  0x23   :  { %524 = vmatprep.subr.bf16.mxu0 %v731_v6  ;;  %565 = vmatprep.subr.bf16.mxu1 %v733_v7  ;;  %v80_v6 = vld [vmem:[%s996_s2] sm:$0xff] }
  0x24   :  { %v84_v5 = vsub.s32 0, %v83_v4  ;;  %v92_v7 = vsub.s32 2, %v83_v4  ;;  %v88_v8 = vsub.s32 1, %v83_v4  ;;  %v96_v9 = vsub.s32 3, %v83_v4 }
  0x25   :  { %475 = vmatmul.mubr.bf16.vlgmr.msra.gmra.mxu0 %v899_v12  ;;  %516 = vmatmul.mubr.bf16.vlgmr.msra.gmra.mxu1 %v899_v12  ;;  %v100_v33 = vsub.s32 4, %v83_v4  ;;  %v108_v34 = vsub.s32 6, %v83_v4 }
  0x26   :  { %525 = vmatpush1.bf16.msra.mxu0 %v730_v13  ;;  %566 = vmatpush1.bf16.msra.mxu1 %v732_v14  ;;  %v85_v10 = vrot.slane %v80_v6, %v84_v5  ;;  %v93_v11 = vrot.slane %v80_v6, %v92_v7  ;;  %v89_v13 = vrot.slane %v80_v6, %v88_v8 }
  0x27   :  { %526 = vmatprep.subr.bf16.mxu0 %v723_v15  ;;  %567 = vmatprep.subr.bf16.mxu1 %v725_v16  ;;  %v97_v15 = vrot.slane %v80_v6, %v96_v9 }
  0x28   :  { %556 = vmatprep.mubr.bf16.mxu0 %v752_v3  ;;  %597 = vmatprep.mubr.bf16.mxu1 %v752_v3  ;;  %v43_v3 = vld [vmem:[%s994_s1 + $0xd8] sm:$0xff] }
  0x29   :  { %v701_v39 = vcombine.high %v43_v3, %v47_v35  ;;  %v700_v45 = vcombine.low %v43_v3, %v47_v35  ;;  %v104_v3 = vsub.s32 5, %v83_v4  ;;  %v112_v35 = vsub.s32 7, %v83_v4 }
  0x2a   :  { %527 = vmatpush1.bf16.msra.mxu0 %v722_v21  ;;  %568 = vmatpush1.bf16.msra.mxu1 %v724_v22  ;;  %v753_v21 = vmov 0.0  }
  0x2b   :  { %528 = vmatprep.subr.bf16.mxu0 %v715_v23  ;;  %569 = vmatprep.subr.bf16.mxu1 %v717_v24  ;;  %v113_v40 = vrot.slane %v80_v6, %v112_v35 }
  0x2e   :  { %529 = vmatpush1.bf16.msra.mxu0 %v714_v29  ;;  %570 = vmatpush1.bf16.msra.mxu1 %v716_v30 }
  0x2f   :  { %530 = vmatprep.subr.bf16.mxu0 %v707_v31  ;;  %571 = vmatprep.subr.bf16.mxu1 %v709_v32 }
  0x32   :  { %531 = vmatpush1.bf16.msra.mxu0 %v706_v36  ;;  %572 = vmatpush1.bf16.msra.mxu1 %v708_v37  ;;  %v101_v36 = vrot.slane %v80_v6, %v100_v33  ;;  %v109_v37 = vrot.slane %v80_v6, %v108_v34 }
  0x33   :  { %532 = vmatprep.subr.bf16.mxu0 %v699_v38  ;;  %573 = vmatprep.subr.bf16.mxu1 %v701_v39  ;;  %v105_v38 = vrot.slane %v80_v6, %v104_v3 }
  0x36   :  { %533 = vmatpush1.bf16.msra.mxu0 %v698_v44  ;;  %574 = vmatpush1.bf16.msra.mxu1 %v700_v45 }
  0x37   :  { %534 = vmatprep.subr.bf16.mxu0 %v691_v46  ;;  %575 = vmatprep.subr.bf16.mxu1 %v693_v47 }
  0x3a   :  { %535 = vmatpush1.bf16.msra.mxu0 %v690_v52  ;;  %576 = vmatpush1.bf16.msra.mxu1 %v692_v53 }
  0x3b   :  { %536 = vmatprep.subr.bf16.mxu0 %v683_v54  ;;  %577 = vmatprep.subr.bf16.mxu1 %v685_v55 }
  0x3e   :  { %537 = vmatpush1.bf16.msra.mxu0 %v682_v60  ;;  %578 = vmatpush1.bf16.msra.mxu1 %v684_v61 }
  0x3f   :  { %538 = vmatprep.subr.bf16.mxu0 %v675_v62  ;;  %579 = vmatprep.subr.bf16.mxu1 %v677_v63 }
  0x42   :  { %539 = vmatpush1.bf16.msra.mxu0 %v674_v0  ;;  %580 = vmatpush1.bf16.msra.mxu1 %v676_v1 }
  0x45   :  { %557 = vmatmul.mubr.bf16.vlgmr.msra.gmra.mxu0 %v899_v12  ;;  %598 = vmatmul.mubr.bf16.vlgmr.msra.gmra.mxu1 %v899_v12 }
  0xe5   :  { %v476_v14 = vpop.f32.mrf.mxu0  ;;  %v517_v17 = vpop.f32.mrf.mxu1 }
  0xe6   :  { %v477_v16 = vadd.f32 %v476_v14, %v85_v10  ;;  %v518_v18 = vadd.f32 %v517_v17, %v93_v11 }
  0xe7   :  { %v478_v19 = vpop.f32.mrf.mxu0  ;;  %v519_v20 = vpop.f32.mrf.mxu1 }
  0xe8   :  { %vm606_vm0 = vcmp.gt.f32.partialorder %v477_v16, 0.2  ;;  %v479_v12 = vadd.f32 %v478_v19, %v89_v13  ;;  %vm608_vm1 = vcmp.gt.f32.partialorder %v518_v18, 0.2  ;;  %v520_v23 = vadd.f32 %v519_v20, %v97_v15 }
  0xe9   :  { %v734_v22 = vsel %vm606_vm0, 1.0, %v753_v21  ;;  %v480_v24 = vpop.f32.mrf.mxu0  ;;  %v736_v25 = vsel %vm608_vm1, 1.0, %v753_v21  ;;  %v521_v26 = vpop.f32.mrf.mxu1 }
  0xea   :  { %vm607_vm2 = vcmp.gt.f32.partialorder %v479_v12, 0.2  ;;  %vm609_vm3 = vcmp.gt.f32.partialorder %v520_v23, 0.2 }
  0xeb   :  { %v735_v27 = vsel %vm607_vm2, 1.0, %v753_v21  ;;  %v481_v28 = vpop.f32.mrf.mxu0  ;;  %v737_v30 = vsel %vm609_vm3, 1.0, %v753_v21  ;;  %v522_v31 = vpop.f32.mrf.mxu1 }
  0xec   :  { %v746_v29 = vpack.c.bf16 %v735_v27, %v734_v22  ;;  %v747_v32 = vpack.c.bf16 %v737_v30, %v736_v25 }
  0xee   :  { %662 = vst [vmem:[%s997_s3] sm:$0xff] %v746_v29  ;;  %663 = vst [vmem:[%s997_s3 + $0x8] sm:$0xff] %v747_v32 }
 0x105   :  { %v558_v39 = vpop.f32.mrf.mxu0  ;;  %v599_v42 = vpop.f32.mrf.mxu1 }
 0x106   :  { %v559_v41 = vadd.f32 %v558_v39, %v101_v36  ;;  %v600_v43 = vadd.f32 %v599_v42, %v109_v37 }
 0x107   :  { %v560_v44 = vpop.f32.mrf.mxu0  ;;  %v601_v46 = vpop.f32.mrf.mxu1 }
 0x108   :  { %vm610_vm4 = vcmp.gt.f32.partialorder %v559_v41, 0.2  ;;  %v561_v45 = vadd.f32 %v560_v44, %v105_v38  ;;  %vm612_vm5 = vcmp.gt.f32.partialorder %v600_v43, 0.2  ;;  %v602_v47 = vadd.f32 %v601_v46, %v113_v40 }
 0x109   :  { %v562_v48 = vpop.f32.mrf.mxu0  ;;  %v603_v49 = vpop.f32.mrf.mxu1  ;;  %v738_v50 = vsel %vm610_vm4, 1.0, %v753_v21  ;;  %v740_v53 = vsel %vm612_vm5, 1.0, %v753_v21 }
 0x10a   :  { %vm611_vm6 = vcmp.gt.f32.partialorder %v561_v45, 0.2  ;;  %vm613_vm7 = vcmp.gt.f32.partialorder %v602_v47, 0.2 }
 0x10b   :  { %v739_v51 = vsel %vm611_vm6, 1.0, %v753_v21  ;;  %v563_v52 = vpop.f32.mrf.mxu0  ;;  %v741_v55 = vsel %vm613_vm7, 1.0, %v753_v21  ;;  %v604_v56 = vpop.f32.mrf.mxu1 }
 0x10c   :  { %v748_v54 = vpack.c.bf16 %v739_v51, %v738_v50  ;;  %v749_v57 = vpack.c.bf16 %v741_v55, %v740_v53 }
 0x10e   :  { %664 = vst [vmem:[%s997_s3 + $0x10] sm:$0xff] %v748_v54  ;;  %665 = vst [vmem:[%s997_s3 + $0x18] sm:$0xff] %v749_v57 }

// kernel: _ee_step.14
= control target key start
LH: loop header
LB: loop body
LE: loop exit
PB: predicated region body
PF: predicated region fallthrough
CT: control target
= control target key end

     0   :  { %s2023_s1 = inlined_call_operand.vmem [shape: bf16[1152,256], index: 1, kind: input, shape index: {}]   ;;  %s2024_s0 = inlined_call_operand.vmem [shape: bf16[1,8,1152], index: 0, kind: input, shape index: {}]   ;;  %s2025_s2 = inlined_call_operand.vmem [shape: f32[1,256], index: 2, kind: input, shape index: {}]   ;;  %s2026_s3 = inlined_call_operand.vmem [shape: bf16[1,8,256], index: 3, kind: output, shape index: {}]  }
   0x1   :  { %v1311_v0 = vld [vmem:[%s2023_s1 + $0x74] ss:$8 sps:$4 sm:$0xff]   ;;  %v1313_v1 = vld [vmem:[%s2023_s1 + $0x70] ss:$8 sps:$4 sm:$0xff]   ;;  %v1317_v4 = vld [vmem:[%s2023_s1 + $0x64] ss:$8 sps:$4 sm:$0xff]  }
   0x2   :  { %928 = vmatprep.subr.bf16.mxu0 %v1311_v0  ;;  %v1314_v2 = vld [vmem:[%s2023_s1 + $0x174] ss:$8 sps:$4 sm:$0xff]   ;;  %v1316_v3 = vld [vmem:[%s2023_s1 + $0x170] ss:$8 sps:$4 sm:$0xff]   ;;  %v1319_v5 = vld [vmem:[%s2023_s1 + $0x60] ss:$8 sps:$4 sm:$0xff]  }
   0x3   :  { %929 = vmatpush1.bf16.msra.mxu0 %v1313_v1  ;;  %969 = vmatprep.subr.bf16.mxu1 %v1314_v2  ;;  %v1320_v6 = vld [vmem:[%s2023_s1 + $0x164] ss:$8 sps:$4 sm:$0xff]   ;;  %v1322_v7 = vld [vmem:[%s2023_s1 + $0x160] ss:$8 sps:$4 sm:$0xff]   ;;  %v1323_v8 = vld [vmem:[%s2023_s1 + $0x54] ss:$8 sps:$4 sm:$0xff]  }
   0x4   :  { %970 = vmatpush1.bf16.msra.mxu1 %v1316_v3  ;;  %930 = vmatprep.subr.bf16.mxu0 %v1317_v4  ;;  %v1325_v9 = vld [vmem:[%s2023_s1 + $0x50] ss:$8 sps:$4 sm:$0xff]   ;;  %v1326_v10 = vld [vmem:[%s2023_s1 + $0x154] ss:$8 sps:$4 sm:$0xff]   ;;  %v1329_v11 = vld [vmem:[%s2023_s1 + $0x44] ss:$8 sps:$4 sm:$0xff]  }
   0x5   :  { %971 = vmatprep.subr.bf16.mxu1 %v1320_v6  ;;  %v1328_v12 = vld [vmem:[%s2023_s1 + $0x150] ss:$8 sps:$4 sm:$0xff]   ;;  %v1332_v13 = vld [vmem:[%s2023_s1 + $0x144] ss:$8 sps:$4 sm:$0xff]   ;;  %v1331_v14 = vld [vmem:[%s2023_s1 + $0x40] ss:$8 sps:$4 sm:$0xff]  }
   0x6   :  { %v1335_v15 = vld [vmem:[%s2023_s1 + $0x34] ss:$8 sps:$4 sm:$0xff]   ;;  %v1334_v16 = vld [vmem:[%s2023_s1 + $0x140] ss:$8 sps:$4 sm:$0xff]   ;;  %v1337_v18 = vld [vmem:[%s2023_s1 + $0x30] ss:$8 sps:$4 sm:$0xff]  }
   0x7   :  { %931 = vmatpush1.bf16.msra.mxu0 %v1319_v5  ;;  %v1338_v17 = vld [vmem:[%s2023_s1 + $0x134] ss:$8 sps:$4 sm:$0xff]   ;;  %v1341_v19 = vld [vmem:[%s2023_s1 + $0x24] ss:$8 sps:$4 sm:$0xff]   ;;  %v1340_v20 = vld [vmem:[%s2023_s1 + $0x130] ss:$8 sps:$4 sm:$0xff]  }
   0x8   :  { %932 = vmatprep.subr.bf16.mxu0 %v1323_v8  ;;  %972 = vmatpush1.bf16.msra.mxu1 %v1322_v7  ;;  %v1344_v21 = vld [vmem:[%s2023_s1 + $0x124] ss:$8 sps:$4 sm:$0xff]   ;;  %v1343_v22 = vld [vmem:[%s2023_s1 + $0x20] ss:$8 sps:$4 sm:$0xff]   ;;  %v1347_v23 = vld [vmem:[%s2023_s1 + $0x14] ss:$8 sps:$4 sm:$0xff]  }
   0x9   :  { %973 = vmatprep.subr.bf16.mxu1 %v1326_v10  ;;  %v1346_v24 = vld [vmem:[%s2023_s1 + $0x120] ss:$8 sps:$4 sm:$0xff]   ;;  %v1350_v25 = vld [vmem:[%s2023_s1 + $0x114] ss:$8 sps:$4 sm:$0xff]   ;;  %v1349_v26 = vld [vmem:[%s2023_s1 + $0x10] ss:$8 sps:$4 sm:$0xff]  }
   0xa   :  { %v1353_v27 = vld [vmem:[%s2023_s1 + $0x4] ss:$8 sps:$4 sm:$0xff]   ;;  %v1352_v28 = vld [vmem:[%s2023_s1 + $0x110] ss:$8 sps:$4 sm:$0xff]   ;;  %v1355_v30 = vld [vmem:[%s2023_s1] ss:$8 sps:$4 sm:$0xff]  }
   0xb   :  { %933 = vmatpush1.bf16.msra.mxu0 %v1325_v9  ;;  %v1356_v29 = vld [vmem:[%s2023_s1 + $0x104] ss:$8 sps:$4 sm:$0xff]   ;;  %v1359_v31 = vld [vmem:[%s2023_s1 + $0xf4] ss:$8 sps:$4 sm:$0xff]   ;;  %v1358_v32 = vld [vmem:[%s2023_s1 + $0x100] ss:$8 sps:$4 sm:$0xff]  }
   0xc   :  { %934 = vmatprep.subr.bf16.mxu0 %v1329_v11  ;;  %974 = vmatpush1.bf16.msra.mxu1 %v1328_v12  ;;  %v1362_v33 = vld [vmem:[%s2023_s1 + $0x1f4] ss:$8 sps:$4 sm:$0xff]   ;;  %v1361_v34 = vld [vmem:[%s2023_s1 + $0xf0] ss:$8 sps:$4 sm:$0xff]   ;;  %v1365_v35 = vld [vmem:[%s2023_s1 + $0xe4] ss:$8 sps:$4 sm:$0xff]  }
   0xd   :  { %975 = vmatprep.subr.bf16.mxu1 %v1332_v13  ;;  %v1364_v36 = vld [vmem:[%s2023_s1 + $0x1f0] ss:$8 sps:$4 sm:$0xff]   ;;  %v1368_v37 = vld [vmem:[%s2023_s1 + $0x1e4] ss:$8 sps:$4 sm:$0xff]   ;;  %v1367_v38 = vld [vmem:[%s2023_s1 + $0xe0] ss:$8 sps:$4 sm:$0xff]  }
   0xe   :  { %v1371_v39 = vld [vmem:[%s2023_s1 + $0xd4] ss:$8 sps:$4 sm:$0xff]   ;;  %v1370_v40 = vld [vmem:[%s2023_s1 + $0x1e0] ss:$8 sps:$4 sm:$0xff]   ;;  %v1373_v42 = vld [vmem:[%s2023_s1 + $0xd0] ss:$8 sps:$4 sm:$0xff]  }
   0xf   :  { %935 = vmatpush1.bf16.msra.mxu0 %v1331_v14  ;;  %v1374_v41 = vld [vmem:[%s2023_s1 + $0x1d4] ss:$8 sps:$4 sm:$0xff]   ;;  %v1377_v43 = vld [vmem:[%s2023_s1 + $0xc4] ss:$8 sps:$4 sm:$0xff]   ;;  %v1376_v44 = vld [vmem:[%s2023_s1 + $0x1d0] ss:$8 sps:$4 sm:$0xff]  }
  0x10   :  { %936 = vmatprep.subr.bf16.mxu0 %v1335_v15  ;;  %976 = vmatpush1.bf16.msra.mxu1 %v1334_v16  ;;  %v1380_v45 = vld [vmem:[%s2023_s1 + $0x1c4] ss:$8 sps:$4 sm:$0xff]   ;;  %v1379_v47 = vld [vmem:[%s2023_s1 + $0xc0] ss:$8 sps:$4 sm:$0xff]   ;;  %v1383_v49 = vld [vmem:[%s2023_s1 + $0xb4] ss:$8 sps:$4 sm:$0xff]  }
  0x11   :  { %977 = vmatprep.subr.bf16.mxu1 %v1338_v17  ;;  %v15_v46 = vld [vmem:[%s2024_s0] sm:$0xff]  ;;  %v16_v50 = vld [vmem:[%s2024_s0 + $0x8] sm:$0xff]  ;;  %v1386_v53 = vld [vmem:[%s2023_s1 + $0x1b4] ss:$8 sps:$4 sm:$0xff]  }
  0x12   :  { %v1153_v48 = vcombine.high %v15_v46, %v15_v46  ;;  %v1382_v51 = vld [vmem:[%s2023_s1 + $0x1c0] ss:$8 sps:$4 sm:$0xff]   ;;  %v1155_v52 = vcombine.high %v16_v50, %v16_v50  ;;  %v1385_v54 = vld [vmem:[%s2023_s1 + $0xb0] ss:$8 sps:$4 sm:$0xff]   ;;  %v1389_v55 = vld [vmem:[%s2023_s1 + $0xa4] ss:$8 sps:$4 sm:$0xff]   ;;  %v1152_v5 = vcombine.low %v15_v46, %v15_v46  ;;  %v1154_v8 = vcombine.low %v16_v50, %v16_v50 }
  0x13   :  { %937 = vmatpush1.bf16.msra.mxu0 %v1337_v18  ;;  %v1388_v56 = vld [vmem:[%s2023_s1 + $0x1b0] ss:$8 sps:$4 sm:$0xff]   ;;  %v1392_v57 = vld [vmem:[%s2023_s1 + $0x1a4] ss:$8 sps:$4 sm:$0xff]   ;;  %v1391_v58 = vld [vmem:[%s2023_s1 + $0xa0] ss:$8 sps:$4 sm:$0xff]  }
  0x14   :  { %938 = vmatprep.subr.bf16.mxu0 %v1341_v19  ;;  %978 = vmatpush1.bf16.msra.mxu1 %v1340_v20  ;;  %v1395_v59 = vld [vmem:[%s2023_s1 + $0x94] ss:$8 sps:$4 sm:$0xff]   ;;  %v1394_v60 = vld [vmem:[%s2023_s1 + $0x1a0] ss:$8 sps:$4 sm:$0xff]   ;;  %v1397_v62 = vld [vmem:[%s2023_s1 + $0x90] ss:$8 sps:$4 sm:$0xff]  }
  0x15   :  { %979 = vmatprep.subr.bf16.mxu1 %v1344_v21  ;;  %960 = vmatprep.mubr.bf16.mxu0 %v1153_v48  ;;  %v1398_v61 = vld [vmem:[%s2023_s1 + $0x194] ss:$8 sps:$4 sm:$0xff]   ;;  %v1401_v63 = vld [vmem:[%s2023_s1 + $0x84] ss:$8 sps:$4 sm:$0xff]   ;;  %v1400_v0 = vld [vmem:[%s2023_s1 + $0x190] ss:$8 sps:$4 sm:$0xff]  }
  0x16   :  { %1001 = vmatprep.mubr.bf16.mxu1 %v1155_v52  ;;  %v1404_v1 = vld [vmem:[%s2023_s1 + $0x184] ss:$8 sps:$4 sm:$0xff]   ;;  %v1403_v2 = vld [vmem:[%s2023_s1 + $0x80] ss:$8 sps:$4 sm:$0xff]   ;;  %v1411_v3 = vld [vmem:[%s2023_s1 + $0x274] ss:$8 sps:$4 sm:$0xff]  }
  0x17   :  { %939 = vmatpush1.bf16.msra.mxu0 %v1343_v22  ;;  %v1408_v4 = vld [vmem:[%s2023_s1 + $0x180] ss:$8 sps:$4 sm:$0xff]   ;;  %v1416_v6 = vld [vmem:[%s2023_s1 + $0x374] ss:$8 sps:$4 sm:$0xff]   ;;  %v1409_v7 = vld [vmem:[%s2023_s1 + $0x270] ss:$8 sps:$4 sm:$0xff]  }
  0x18   :  { %940 = vmatprep.subr.bf16.mxu0 %v1347_v23  ;;  %980 = vmatpush1.bf16.msra.mxu1 %v1346_v24  ;;  %v1419_v9 = vld [vmem:[%s2023_s1 + $0x264] ss:$8 sps:$4 sm:$0xff]   ;;  %v1414_v10 = vld [vmem:[%s2023_s1 + $0x370] ss:$8 sps:$4 sm:$0xff]   ;;  %v1417_v12 = vld [vmem:[%s2023_s1 + $0x260] ss:$8 sps:$4 sm:$0xff]  }
  0x19   :  { %981 = vmatprep.subr.bf16.mxu1 %v1350_v25  ;;  %v1422_v11 = vld [vmem:[%s2023_s1 + $0x364] ss:$8 sps:$4 sm:$0xff]   ;;  %v1425_v13 = vld [vmem:[%s2023_s1 + $0x254] ss:$8 sps:$4 sm:$0xff]   ;;  %v1420_v14 = vld [vmem:[%s2023_s1 + $0x360] ss:$8 sps:$4 sm:$0xff]  }
  0x1a   :  { %v1428_v15 = vld [vmem:[%s2023_s1 + $0x354] ss:$8 sps:$4 sm:$0xff]   ;;  %v1423_v16 = vld [vmem:[%s2023_s1 + $0x250] ss:$8 sps:$4 sm:$0xff]   ;;  %v1431_v17 = vld [vmem:[%s2023_s1 + $0x244] ss:$8 sps:$4 sm:$0xff]  }
  0x1b   :  { %941 = vmatpush1.bf16.msra.mxu0 %v1349_v26  ;;  %v1426_v18 = vld [vmem:[%s2023_s1 + $0x350] ss:$8 sps:$4 sm:$0xff]   ;;  %v1434_v19 = vld [vmem:[%s2023_s1 + $0x344] ss:$8 sps:$4 sm:$0xff]   ;;  %v1429_v20 = vld [vmem:[%s2023_s1 + $0x240] ss:$8 sps:$4 sm:$0xff]  }
  0x1c   :  { %942 = vmatprep.subr.bf16.mxu0 %v1353_v27  ;;  %982 = vmatpush1.bf16.msra.mxu1 %v1352_v28  ;;  %v1437_v21 = vld [vmem:[%s2023_s1 + $0x234] ss:$8 sps:$4 sm:$0xff]   ;;  %v1432_v22 = vld [vmem:[%s2023_s1 + $0x340] ss:$8 sps:$4 sm:$0xff]   ;;  %v1435_v24 = vld [vmem:[%s2023_s1 + $0x230] ss:$8 sps:$4 sm:$0xff]  }
  0x1d   :  { %983 = vmatprep.subr.bf16.mxu1 %v1356_v29  ;;  %v1440_v23 = vld [vmem:[%s2023_s1 + $0x334] ss:$8 sps:$4 sm:$0xff]   ;;  %v1443_v25 = vld [vmem:[%s2023_s1 + $0x224] ss:$8 sps:$4 sm:$0xff]   ;;  %v1438_v26 = vld [vmem:[%s2023_s1 + $0x330] ss:$8 sps:$4 sm:$0xff]  }
  0x1e   :  { %v1446_v27 = vld [vmem:[%s2023_s1 + $0x324] ss:$8 sps:$4 sm:$0xff]   ;;  %v1441_v28 = vld [vmem:[%s2023_s1 + $0x220] ss:$8 sps:$4 sm:$0xff]   ;;  %v1449_v29 = vld [vmem:[%s2023_s1 + $0x214] ss:$8 sps:$4 sm:$0xff]  }
  0x1f   :  { %943 = vmatpush1.bf16.msra.mxu0 %v1355_v30  ;;  %v1444_v30 = vld [vmem:[%s2023_s1 + $0x320] ss:$8 sps:$4 sm:$0xff]   ;;  %v1462_v46 = vld [vmem:[%s2023_s1 + $0x3f0] ss:$8 sps:$4 sm:$0xff]  }
  0x20   :  { %944 = vmatprep.subr.bf16.mxu0 %v1359_v31  ;;  %984 = vmatpush1.bf16.msra.mxu1 %v1358_v32  ;;  %v1452_v31 = vld [vmem:[%s2023_s1 + $0x314] ss:$8 sps:$4 sm:$0xff]   ;;  %v1465_v48 = vld [vmem:[%s2023_s1 + $0x2e0] ss:$8 sps:$4 sm:$0xff]   ;;  %v1471_v52 = vld [vmem:[%s2023_s1 + $0x2d0] ss:$8 sps:$4 sm:$0xff]  }
  0x21   :  { %985 = vmatprep.subr.bf16.mxu1 %v1362_v33  ;;  %v1837_v32 = vld [vmem:[%s2024_s0 + $0x10] sm:$0xff]  ;;  %v1468_v50 = vld [vmem:[%s2023_s1 + $0x3e0] ss:$8 sps:$4 sm:$0xff]  }
  0x22   :  { %v1447_v33 = vld [vmem:[%s2023_s1 + $0x210] ss:$8 sps:$4 sm:$0xff]  }
  0x23   :  { %945 = vmatpush2.bf16.msra.mxu0 %v1361_v34  ;;  %v1157_v34 = vcombine.high %v1837_v32, %v1837_v32 }
  0x24   :  { %946 = vmatprep.subr.bf16.mxu0 %v1365_v35  ;;  %986 = vmatpush2.bf16.msra.mxu1 %v1364_v36  ;;  %v1847_v35 = vld [vmem:[%s2024_s0 + $0x18] sm:$0xff]  ;;  %v1455_v36 = vld [vmem:[%s2023_s1 + $0x204] ss:$8 sps:$4 sm:$0xff]  }
  0x25   :  { %987 = vmatprep.subr.bf16.mxu1 %v1368_v37  ;;  %v1159_v37 = vcombine.high %v1847_v35, %v1847_v35 }
  0x27   :  { %947 = vmatpush2.bf16.msra.mxu0 %v1367_v38  ;;  %v1450_v38 = vld [vmem:[%s2023_s1 + $0x310] ss:$8 sps:$4 sm:$0xff]  }
  0x28   :  { %948 = vmatprep.subr.bf16.mxu0 %v1371_v39  ;;  %988 = vmatpush2.bf16.msra.mxu1 %v1370_v40  ;;  %v1458_v39 = vld [vmem:[%s2023_s1 + $0x304] ss:$8 sps:$4 sm:$0xff]   ;;  %v1453_v40 = vld [vmem:[%s2023_s1 + $0x200] ss:$8 sps:$4 sm:$0xff]  }
  0x29   :  { %989 = vmatprep.subr.bf16.mxu1 %v1374_v41  ;;  %v1461_v41 = vld [vmem:[%s2023_s1 + $0x2f4] ss:$8 sps:$4 sm:$0xff]  }
  0x2b   :  { %949 = vmatpush2.bf16.msra.mxu0 %v1373_v42  ;;  %v1456_v42 = vld [vmem:[%s2023_s1 + $0x300] ss:$8 sps:$4 sm:$0xff]  }
  0x2c   :  { %950 = vmatprep.subr.bf16.mxu0 %v1377_v43  ;;  %990 = vmatpush2.bf16.msra.mxu1 %v1376_v44  ;;  %v1464_v43 = vld [vmem:[%s2023_s1 + $0x3f4] ss:$8 sps:$4 sm:$0xff]   ;;  %v1459_v44 = vld [vmem:[%s2023_s1 + $0x2f0] ss:$8 sps:$4 sm:$0xff]  }
  0x2d   :  { %991 = vmatprep.subr.bf16.mxu1 %v1380_v45  ;;  %v1467_v45 = vld [vmem:[%s2023_s1 + $0x2e4] ss:$8 sps:$4 sm:$0xff]  }
  0x2f   :  { %951 = vmatpush2.bf16.msra.mxu0 %v1379_v47  ;;  %v1470_v47 = vld [vmem:[%s2023_s1 + $0x3e4] ss:$8 sps:$4 sm:$0xff]  }
  0x30   :  { %952 = vmatprep.subr.bf16.mxu0 %v1383_v49  ;;  %992 = vmatpush2.bf16.msra.mxu1 %v1382_v51  ;;  %v1473_v49 = vld [vmem:[%s2023_s1 + $0x2d4] ss:$8 sps:$4 sm:$0xff]  }
  0x31   :  { %993 = vmatprep.subr.bf16.mxu1 %v1386_v53  ;;  %v1476_v51 = vld [vmem:[%s2023_s1 + $0x3d4] ss:$8 sps:$4 sm:$0xff]   ;;  %v1479_v53 = vld [vmem:[%s2023_s1 + $0x2c4] ss:$8 sps:$4 sm:$0xff]  }
  0x33   :  { %953 = vmatpush2.bf16.msra.mxu0 %v1385_v54  ;;  %v1474_v54 = vld [vmem:[%s2023_s1 + $0x3d0] ss:$8 sps:$4 sm:$0xff]  }
  0x34   :  { %954 = vmatprep.subr.bf16.mxu0 %v1389_v55  ;;  %994 = vmatpush2.bf16.msra.mxu1 %v1388_v56  ;;  %v1482_v55 = vld [vmem:[%s2023_s1 + $0x3c4] ss:$8 sps:$4 sm:$0xff]   ;;  %v1477_v56 = vld [vmem:[%s2023_s1 + $0x2c0] ss:$8 sps:$4 sm:$0xff]  }
  0x35   :  { %995 = vmatprep.subr.bf16.mxu1 %v1392_v57  ;;  %v1485_v57 = vld [vmem:[%s2023_s1 + $0x2b4] ss:$8 sps:$4 sm:$0xff]  }
  0x37   :  { %955 = vmatpush2.bf16.msra.mxu0 %v1391_v58  ;;  %v1480_v58 = vld [vmem:[%s2023_s1 + $0x3c0] ss:$8 sps:$4 sm:$0xff]  }
  0x38   :  { %956 = vmatprep.subr.bf16.mxu0 %v1395_v59  ;;  %996 = vmatpush2.bf16.msra.mxu1 %v1394_v60  ;;  %v1488_v59 = vld [vmem:[%s2023_s1 + $0x3b4] ss:$8 sps:$4 sm:$0xff]   ;;  %v1483_v60 = vld [vmem:[%s2023_s1 + $0x2b0] ss:$8 sps:$4 sm:$0xff]  }
  0x39   :  { %997 = vmatprep.subr.bf16.mxu1 %v1398_v61  ;;  %v1491_v61 = vld [vmem:[%s2023_s1 + $0x2a4] ss:$8 sps:$4 sm:$0xff]  }
  0x3b   :  { %957 = vmatpush2.bf16.msra.mxu0 %v1397_v62  ;;  %v1486_v62 = vld [vmem:[%s2023_s1 + $0x3b0] ss:$8 sps:$4 sm:$0xff]  }
  0x3c   :  { %958 = vmatprep.subr.bf16.mxu0 %v1401_v63  ;;  %998 = vmatpush2.bf16.msra.mxu1 %v1400_v0  ;;  %v1494_v63 = vld [vmem:[%s2023_s1 + $0x3a4] ss:$8 sps:$4 sm:$0xff]   ;;  %v1489_v0 = vld [vmem:[%s2023_s1 + $0x2a0] ss:$8 sps:$4 sm:$0xff]  }
  0x3d   :  { %999 = vmatprep.subr.bf16.mxu1 %v1404_v1  ;;  %v1497_v1 = vld [vmem:[%s2023_s1 + $0x294] ss:$8 sps:$4 sm:$0xff]  }
  0x3f   :  { %959 = vmatpush2.bf16.msra.mxu0 %v1403_v2  ;;  %v1492_v2 = vld [vmem:[%s2023_s1 + $0x3a0] ss:$8 sps:$4 sm:$0xff]  }
  0x40   :  { %1010 = vmatprep.subr.bf16.mxu0 %v1411_v3  ;;  %1000 = vmatpush2.bf16.msra.mxu1 %v1408_v4  ;;  %v1500_v3 = vld [vmem:[%s2023_s1 + $0x394] ss:$8 sps:$4 sm:$0xff]   ;;  %v1495_v4 = vld [vmem:[%s2023_s1 + $0x290] ss:$8 sps:$4 sm:$0xff]  }
  0x41   :  { %1051 = vmatprep.subr.bf16.mxu1 %v1416_v6  ;;  %v1498_v6 = vld [vmem:[%s2023_s1 + $0x390] ss:$8 sps:$4 sm:$0xff]  }
  0x42   :  { %961 = vmatmul.mubr.bf16.vlgmr.msra.gmra.mxu0 %v1152_v5  ;;  %v1503_v5 = vld [vmem:[%s2023_s1 + $0x284] ss:$8 sps:$4 sm:$0xff]  }
  0x43   :  { %1011 = vmatpush1.bf16.msra.mxu0 %v1409_v7  ;;  %1002 = vmatmul.mubr.bf16.vlgmr.msra.gmra.mxu1 %v1154_v8  ;;  %v1506_v7 = vld [vmem:[%s2023_s1 + $0x384] ss:$8 sps:$4 sm:$0xff]   ;;  %v1501_v8 = vld [vmem:[%s2023_s1 + $0x280] ss:$8 sps:$4 sm:$0xff]  }
  0x44   :  { %1012 = vmatprep.subr.bf16.mxu0 %v1419_v9  ;;  %1052 = vmatpush1.bf16.msra.mxu1 %v1414_v10  ;;  %v1511_v9 = vld [vmem:[%s2023_s1 + $0x474] ss:$8 sps:$4 sm:$0xff]   ;;  %v1504_v10 = vld [vmem:[%s2023_s1 + $0x380] ss:$8 sps:$4 sm:$0xff]  }
  0x45   :  { %1053 = vmatprep.subr.bf16.mxu1 %v1422_v11  ;;  %1042 = vmatprep.mubr.bf16.mxu0 %v1157_v34  ;;  %v1156_v11 = vcombine.low %v1837_v32, %v1837_v32 }
  0x46   :  { %1083 = vmatprep.mubr.bf16.mxu1 %v1159_v37 }
  0x47   :  { %1013 = vmatpush1.bf16.msra.mxu0 %v1417_v12  ;;  %v1509_v12 = vld [vmem:[%s2023_s1 + $0x470] ss:$8 sps:$4 sm:$0xff]  }
  0x48   :  { %1014 = vmatprep.subr.bf16.mxu0 %v1425_v13  ;;  %1054 = vmatpush1.bf16.msra.mxu1 %v1420_v14  ;;  %v1158_v13 = vcombine.low %v1847_v35, %v1847_v35  ;;  %v1516_v14 = vld [vmem:[%s2023_s1 + $0x464] ss:$8 sps:$4 sm:$0xff]  }
  0x49   :  { %1055 = vmatprep.subr.bf16.mxu1 %v1428_v15  ;;  %v1514_v15 = vld [vmem:[%s2023_s1 + $0x460] ss:$8 sps:$4 sm:$0xff]  }
  0x4b   :  { %1015 = vmatpush1.bf16.msra.mxu0 %v1423_v16  ;;  %v1536_v16 = vmov 0  }
  0x4c   :  { %1016 = vmatprep.subr.bf16.mxu0 %v1431_v17  ;;  %1056 = vmatpush1.bf16.msra.mxu1 %v1426_v18  ;;  %v1519_v17 = vld [vmem:[%s2023_s1 + $0x454] ss:$8 sps:$4 sm:$0xff]   ;;  %v1517_v18 = vld [vmem:[%s2023_s1 + $0x450] ss:$8 sps:$4 sm:$0xff]  }
  0x4d   :  { %1057 = vmatprep.subr.bf16.mxu1 %v1434_v19  ;;  %v1522_v19 = vld [vmem:[%s2023_s1 + $0x444] ss:$8 sps:$4 sm:$0xff]  }
  0x4f   :  { %1017 = vmatpush1.bf16.msra.mxu0 %v1429_v20  ;;  %v1520_v20 = vld [vmem:[%s2023_s1 + $0x440] ss:$8 sps:$4 sm:$0xff]  }
  0x50   :  { %1018 = vmatprep.subr.bf16.mxu0 %v1437_v21  ;;  %1058 = vmatpush1.bf16.msra.mxu1 %v1432_v22  ;;  %v1525_v21 = vld [vmem:[%s2023_s1 + $0x434] ss:$8 sps:$4 sm:$0xff]   ;;  %v1523_v22 = vld [vmem:[%s2023_s1 + $0x430] ss:$8 sps:$4 sm:$0xff]  }
  0x51   :  { %1059 = vmatprep.subr.bf16.mxu1 %v1440_v23  ;;  %v1528_v23 = vld [vmem:[%s2023_s1 + $0x424] ss:$8 sps:$4 sm:$0xff]  }
  0x53   :  { %1019 = vmatpush1.bf16.msra.mxu0 %v1435_v24  ;;  %v1526_v24 = vld [vmem:[%s2023_s1 + $0x420] ss:$8 sps:$4 sm:$0xff]  }
  0x54   :  { %1020 = vmatprep.subr.bf16.mxu0 %v1443_v25  ;;  %1060 = vmatpush1.bf16.msra.mxu1 %v1438_v26  ;;  %v1531_v25 = vld [vmem:[%s2023_s1 + $0x414] ss:$8 sps:$4 sm:$0xff]   ;;  %v1529_v26 = vld [vmem:[%s2023_s1 + $0x410] ss:$8 sps:$4 sm:$0xff]  }
  0x55   :  { %1061 = vmatprep.subr.bf16.mxu1 %v1446_v27  ;;  %v1534_v27 = vld [vmem:[%s2023_s1 + $0x404] ss:$8 sps:$4 sm:$0xff]  }
  0x57   :  { %1021 = vmatpush1.bf16.msra.mxu0 %v1441_v28  ;;  %v1532_v28 = vld [vmem:[%s2023_s1 + $0x400] ss:$8 sps:$4 sm:$0xff]  }
  0x58   :  { %1022 = vmatprep.subr.bf16.mxu0 %v1449_v29  ;;  %1062 = vmatpush1.bf16.msra.mxu1 %v1444_v30  ;;  %v1535_v29 = vld [vmem:[%s2024_s0 + $0x20] ss:$0 sps:$4 sm:$0xff]   ;;  %v166_v30 = vlaneseq }
  0x59   :  { %1063 = vmatprep.subr.bf16.mxu1 %v1452_v31 }
  0x5a   :  { %v167_v31 = vshrl.u32 %v166_v30, 7 }
  0x5b   :  { %1023 = vmatpush1.bf16.msra.mxu0 %v1447_v33  ;;  %v164_v33 = vld [vmem:[%s2025_s2] sm:$0x3] }
  0x5c   :  { %1024 = vmatprep.subr.bf16.mxu0 %v1455_v36  ;;  %1064 = vmatpush1.bf16.msra.mxu1 %v1450_v38  ;;  %v168_v32 = vsub.s32 0, %v167_v31  ;;  %v172_v34 = vsub.s32 1, %v167_v31 }
  0x5d   :  { %1065 = vmatprep.subr.bf16.mxu1 %v1458_v39 }
  0x5e   :  { %v169_v35 = vrot.slane %v164_v33, %v168_v32  ;;  %v173_v36 = vrot.slane %v164_v33, %v172_v34 }
  0x5f   :  { %1025 = vmatpush1.bf16.msra.mxu0 %v1453_v40 }
  0x60   :  { %1026 = vmatprep.subr.bf16.mxu0 %v1461_v41  ;;  %1066 = vmatpush1.bf16.msra.mxu1 %v1456_v42 }
  0x61   :  { %1067 = vmatprep.subr.bf16.mxu1 %v1464_v43 }
  0x63   :  { %1027 = vmatpush2.bf16.msra.mxu0 %v1459_v44 }
  0x64   :  { %1028 = vmatprep.subr.bf16.mxu0 %v1467_v45  ;;  %1068 = vmatpush2.bf16.msra.mxu1 %v1462_v46 }
  0x65   :  { %1069 = vmatprep.subr.bf16.mxu1 %v1470_v47 }
  0x67   :  { %1029 = vmatpush2.bf16.msra.mxu0 %v1465_v48 }
  0x68   :  { %1030 = vmatprep.subr.bf16.mxu0 %v1473_v49  ;;  %1070 = vmatpush2.bf16.msra.mxu1 %v1468_v50 }
  0x69   :  { %1071 = vmatprep.subr.bf16.mxu1 %v1476_v51 }
  0x6b   :  { %1031 = vmatpush2.bf16.msra.mxu0 %v1471_v52 }
  0x6c   :  { %1032 = vmatprep.subr.bf16.mxu0 %v1479_v53  ;;  %1072 = vmatpush2.bf16.msra.mxu1 %v1474_v54 }
  0x6d   :  { %1073 = vmatprep.subr.bf16.mxu1 %v1482_v55 }
  0x6f   :  { %1033 = vmatpush2.bf16.msra.mxu0 %v1477_v56 }
  0x70   :  { %1034 = vmatprep.subr.bf16.mxu0 %v1485_v57  ;;  %1074 = vmatpush2.bf16.msra.mxu1 %v1480_v58 }
  0x71   :  { %1075 = vmatprep.subr.bf16.mxu1 %v1488_v59 }
  0x73   :  { %1035 = vmatpush2.bf16.msra.mxu0 %v1483_v60 }
  0x74   :  { %1036 = vmatprep.subr.bf16.mxu0 %v1491_v61  ;;  %1076 = vmatpush2.bf16.msra.mxu1 %v1486_v62 }
  0x75   :  { %1077 = vmatprep.subr.bf16.mxu1 %v1494_v63 }
  0x77   :  { %1037 = vmatpush2.bf16.msra.mxu0 %v1489_v0 }
  0x78   :  { %1038 = vmatprep.subr.bf16.mxu0 %v1497_v1  ;;  %1078 = vmatpush2.bf16.msra.mxu1 %v1492_v2  ;;  %v1537_v2 = vmov 0.0  }
  0x79   :  { %1079 = vmatprep.subr.bf16.mxu1 %v1500_v3 }
  0x7b   :  { %1039 = vmatpush2.bf16.msra.mxu0 %v1495_v4 }
  0x7c   :  { %1040 = vmatprep.subr.bf16.mxu0 %v1503_v5  ;;  %1080 = vmatpush2.bf16.msra.mxu1 %v1498_v6 }
  0x7d   :  { %1081 = vmatprep.subr.bf16.mxu1 %v1506_v7 }
  0x7f   :  { %1041 = vmatpush2.bf16.msra.mxu0 %v1501_v8 }
  0x80   :  { %1092 = vmatprep.subr.bf16.mxu0 %v1511_v9  ;;  %1082 = vmatpush2.bf16.msra.mxu1 %v1504_v10 }
  0x82   :  { %1043 = vmatmul.mubr.bf16.vlgmr.msra.gmra.mxu0 %v1156_v11 }
  0x83   :  { %1093 = vmatpush1.bf16.msra.mxu0 %v1509_v12  ;;  %1124 = vmatprep.mubr.bf16.mxu0 %v1536_v16 }
  0x84   :  { %1084 = vmatmul.mubr.bf16.vlgmr.msra.gmra.mxu1 %v1158_v13  ;;  %1094 = vmatprep.subr.bf16.mxu0 %v1516_v14 }
  0x87   :  { %1095 = vmatpush1.bf16.msra.mxu0 %v1514_v15 }
  0x88   :  { %1096 = vmatprep.subr.bf16.mxu0 %v1519_v17 }
  0x8b   :  { %1097 = vmatpush1.bf16.msra.mxu0 %v1517_v18 }
  0x8c   :  { %1098 = vmatprep.subr.bf16.mxu0 %v1522_v19 }
  0x8f   :  { %1099 = vmatpush1.bf16.msra.mxu0 %v1520_v20 }
  0x90   :  { %1100 = vmatprep.subr.bf16.mxu0 %v1525_v21 }
  0x93   :  { %1101 = vmatpush1.bf16.msra.mxu0 %v1523_v22 }
  0x94   :  { %1102 = vmatprep.subr.bf16.mxu0 %v1528_v23 }
  0x97   :  { %1103 = vmatpush1.bf16.msra.mxu0 %v1526_v24 }
  0x98   :  { %1104 = vmatprep.subr.bf16.mxu0 %v1531_v25 }
  0x9b   :  { %1105 = vmatpush1.bf16.msra.mxu0 %v1529_v26 }
  0x9c   :  { %1106 = vmatprep.subr.bf16.mxu0 %v1534_v27 }
  0x9f   :  { %1107 = vmatpush1.bf16.msra.mxu0 %v1532_v28 }
  0xa2   :  { %1125 = vmatmul.mubr.bf16.vlgmr.msra.gmra.mxu0 %v1535_v29 }
 0x102   :  { %v962_v37 = vpop.f32.mrf.mxu0 }
 0x103   :  { %v963_v38 = vadd.f32 %v962_v37, %v169_v35  ;;  %v1003_v40 = vpop.f32.mrf.mxu1 }
 0x104   :  { %v964_v39 = vpop.f32.mrf.mxu0 }
 0x105   :  { %v965_v41 = vadd.f32 %v964_v39, %v173_v36  ;;  %v1004_v42 = vadd.f32 %v1003_v40, %v963_v38  ;;  %v1005_v44 = vpop.f32.mrf.mxu1 }
 0x106   :  { %v966_v43 = vpop.f32.mrf.mxu0 }
 0x107   :  { %v1006_v45 = vadd.f32 %v1005_v44, %v965_v41  ;;  %v1007_v47 = vpop.f32.mrf.mxu1 }
 0x108   :  { %v967_v46 = vpop.f32.mrf.mxu0 }
 0x109   :  { %v1008_v48 = vpop.f32.mrf.mxu1 }
 0x142   :  { %v1044_v49 = vpop.f32.mrf.mxu0 }
 0x143   :  { %v1045_v57 = vadd.f32 %v1044_v49, %v1004_v42 }
 0x144   :  { %v1046_v50 = vpop.f32.mrf.mxu0  ;;  %v1085_v51 = vpop.f32.mrf.mxu1 }
 0x145   :  { %v1047_v58 = vadd.f32 %v1046_v50, %v1006_v45  ;;  %v1086_v59 = vadd.f32 %v1085_v51, %v1045_v57 }
 0x146   :  { %v1048_v52 = vpop.f32.mrf.mxu0  ;;  %v1087_v53 = vpop.f32.mrf.mxu1 }
 0x147   :  { %v1088_v61 = vadd.f32 %v1087_v53, %v1047_v58 }
 0x148   :  { %v1049_v54 = vpop.f32.mrf.mxu0  ;;  %v1089_v55 = vpop.f32.mrf.mxu1 }
 0x14a   :  { %v1090_v56 = vpop.f32.mrf.mxu1 }
 0x162   :  { %v1126_v60 = vpop.f32.mrf.mxu0 }
 0x163   :  { %v1127_v62 = vadd.f32 %v1126_v60, %v1086_v59 }
 0x164   :  { %v1128_v63 = vpop.f32.mrf.mxu0 }
 0x165   :  { %vm1133_vm0 = vcmp.gt.f32.partialorder %v1127_v62, 0.2  ;;  %v1129_v0 = vadd.f32 %v1128_v63, %v1088_v61 }
 0x166   :  { %v1130_v1 = vpop.f32.mrf.mxu0  ;;  %v1305_v3 = vsel %vm1133_vm0, 1.0, %v1537_v2 }
 0x167   :  { %vm1134_vm1 = vcmp.gt.f32.partialorder %v1129_v0, 0.2 }
 0x168   :  { %v1306_v4 = vsel %vm1134_vm1, 1.0, %v1537_v2  ;;  %v1131_v5 = vpop.f32.mrf.mxu0 }
 0x169   :  { %v1308_v6 = vpack.c.bf16 %v1306_v4, %v1305_v3 }
 0x16b   :  { %1147 = vst [vmem:[%s2026_s3] sm:$0xff] %v1308_v6 }

// kernel: _ee_step.15
= control target key start
LH: loop header
LB: loop body
LE: loop exit
PB: predicated region body
PF: predicated region fallthrough
CT: control target
= control target key end

     0   :  { %vm1976_vm0 = vmmov 0   ;;  %s2504_s1 = inlined_call_operand.vmem [shape: bf16[1024,128], index: 1, kind: input, shape index: {}]   ;;  %s2505_s0 = inlined_call_operand.vmem [shape: bf16[1,8,1024], index: 0, kind: input, shape index: {}]   ;;  %s2506_s8 = inlined_call_operand.vmem [shape: bf16[128,128], index: 8, kind: input, shape index: {}]   ;;  %s2507_s10 = inlined_call_operand.vmem [shape: bf16[128,128], index: 10, kind: input, shape index: {}]   ;;  %s2508_s4 = inlined_call_operand.vmem [shape: bf16[128,128], index: 4, kind: input, shape index: {}]   ;;  %s2509_s3 = inlined_call_operand.vmem [shape: bf16[128,128], index: 3, kind: input, shape index: {}]   ;;  %s2510_s2 = inlined_call_operand.vmem [shape: f32[1,128], index: 2, kind: input, shape index: {}]   ;;  %s2511_s9 = inlined_call_operand.vmem [shape: f32[1,128], index: 9, kind: input, shape index: {}]   ;;  %s2512_s6 = inlined_call_operand.vmem [shape: bf16[128,128], index: 6, kind: input, shape index: {}]   ;;  %s2513_s13 = inlined_call_operand.vmem [shape: bf16[128,128], index: 13, kind: input, shape index: {}]   ;;  %s2514_s11 = inlined_call_operand.vmem [shape: f32[1,128], index: 11, kind: input, shape index: {}]   ;;  %s2515_s15 = inlined_call_operand.vmem [shape: bf16[1,8,128], index: 15, kind: output, shape index: {1}]   ;;  %s2516_s5 = inlined_call_operand.vmem [shape: f32[1,128], index: 5, kind: input, shape index: {}]   ;;  %s2517_s7 = inlined_call_operand.vmem [shape: f32[1,128], index: 7, kind: input, shape index: {}]   ;;  %s2518_s12 = inlined_call_operand.vmem [shape: bf16[1,8,128], index: 12, kind: input, shape index: {}]   ;;  %s2519_s14 = inlined_call_operand.vmem [shape: bf16[1,8,128], index: 14, kind: output, shape index: {0}]   ;;  %s2520_s16 = inlined_call_operand.vmem [shape: bf16[1,8,128], index: 16, kind: output, shape index: {2}]  }
   0x1   :  { %2522 = sst [smem:[#allocation2_spill]] %s2504_s1  ;;  %v51_v31 = vld [vmem:[%s2505_s0] sm:$0xff]  ;;  %v52_v36 = vld [vmem:[%s2505_s0 + $0x8] sm:$0xff] }
   0x2   :  { %s2523_s23 = sld [smem:[#allocation2_spill]]  ;;  %v1454_v32 = vcombine.low %v51_v31, %v51_v31  ;;  %v1455_v33 = vcombine.high %v51_v31, %v51_v31  ;;  %v1456_v37 = vcombine.low %v52_v36, %v52_v36  ;;  %v1457_v38 = vcombine.high %v52_v36, %v52_v36  ;;  %v1944_v31 = vld [vmem:[%s2508_s4 + $0x30] sm:$0xff]   ;;  %v1954_v36 = vld [vmem:[%s2508_s4 + $0x8] sm:$0xff]  }
   0x4   :  { %634 = vmatprep.mubr.bf16.mxu0 %v1455_v33  ;;  %674 = vmatprep.mubr.bf16.mxu1 %v1457_v38  ;;  %v1948_v33 = vld [vmem:[%s2508_s4 + $0x20] sm:$0xff]  }
   0x8   :  { %v1855_v0 = vld [vmem:[%s2523_s23 + $0x78] sm:$0xff]   ;;  %v1859_v4 = vld [vmem:[%s2523_s23 + $0x70] sm:$0xff]   ;;  %v1863_v8 = vld [vmem:[%s2523_s23 + $0x68] sm:$0xff]  }
   0x9   :  { %v1856_v1 = vld [vmem:[%s2523_s23 + $0x38] sm:$0xff]   ;;  %1589 = vmatprep.subr.bf16.mxu0 %v1855_v0  ;;  %v1860_v5 = vld [vmem:[%s2523_s23 + $0x30] sm:$0xff]   ;;  %v1864_v9 = vld [vmem:[%s2523_s23 + $0x28] sm:$0xff]  }
   0xa   :  { %v1857_v2 = vld [vmem:[%s2523_s23 + $0xf8] sm:$0xff]   ;;  %1590 = vmatpush3.bf16.msra.mxu0 %v1856_v1  ;;  %v1861_v6 = vld [vmem:[%s2523_s23 + $0xf0] sm:$0xff]   ;;  %v1865_v10 = vld [vmem:[%s2523_s23 + $0xe8] sm:$0xff]  }
   0xb   :  { %v1858_v3 = vld [vmem:[%s2523_s23 + $0xb8] sm:$0xff]   ;;  %1611 = vmatprep.subr.bf16.mxu1 %v1857_v2  ;;  %1591 = vmatprep.subr.bf16.mxu0 %v1859_v4  ;;  %v1862_v7 = vld [vmem:[%s2523_s23 + $0xb0] sm:$0xff]   ;;  %v1866_v11 = vld [vmem:[%s2523_s23 + $0xa8] sm:$0xff]  }
   0xc   :  { %1612 = vmatpush3.bf16.msra.mxu1 %v1858_v3  ;;  %v1867_v12 = vld [vmem:[%s2523_s23 + $0x60] sm:$0xff]   ;;  %v1871_v16 = vld [vmem:[%s2523_s23 + $0x58] sm:$0xff]   ;;  %v1875_v20 = vld [vmem:[%s2523_s23 + $0x50] sm:$0xff]  }
   0xd   :  { %1613 = vmatprep.subr.bf16.mxu1 %v1861_v6  ;;  %v1868_v13 = vld [vmem:[%s2523_s23 + $0x20] sm:$0xff]   ;;  %v1872_v17 = vld [vmem:[%s2523_s23 + $0x18] sm:$0xff]   ;;  %v1876_v21 = vld [vmem:[%s2523_s23 + $0x10] sm:$0xff]  }
   0xe   :  { %1592 = vmatpush3.bf16.msra.mxu0 %v1860_v5  ;;  %v1869_v14 = vld [vmem:[%s2523_s23 + $0xe0] sm:$0xff]   ;;  %v1873_v18 = vld [vmem:[%s2523_s23 + $0xd8] sm:$0xff]   ;;  %v1877_v22 = vld [vmem:[%s2523_s23 + $0xd0] sm:$0xff]  }
   0xf   :  { %1593 = vmatprep.subr.bf16.mxu0 %v1863_v8  ;;  %v1870_v15 = vld [vmem:[%s2523_s23 + $0xa0] sm:$0xff]   ;;  %v1874_v19 = vld [vmem:[%s2523_s23 + $0x98] sm:$0xff]   ;;  %v1878_v23 = vld [vmem:[%s2523_s23 + $0x90] sm:$0xff]  }
  0x10   :  { %1614 = vmatpush3.bf16.msra.mxu1 %v1862_v7  ;;  %v1879_v24 = vld [vmem:[%s2523_s23 + $0x48] sm:$0xff]   ;;  %v1883_v28 = vld [vmem:[%s2523_s23 + $0x40] sm:$0xff]   ;;  %v1889_v35 = vld [vmem:[%s2523_s23 + $0x178] sm:$0xff]  }
  0x11   :  { %1615 = vmatprep.subr.bf16.mxu1 %v1865_v10  ;;  %v1880_v25 = vld [vmem:[%s2523_s23 + $0x8] sm:$0xff]   ;;  %v1884_v29 = vld [vmem:[%s2523_s23] sm:$0xff]   ;;  %v1892_v39 = vld [vmem:[%s2523_s23 + $0x138] sm:$0xff]  }
  0x12   :  { %1594 = vmatpush3.bf16.msra.mxu0 %v1864_v9  ;;  %v1881_v26 = vld [vmem:[%s2523_s23 + $0xc8] sm:$0xff]   ;;  %v1885_v30 = vld [vmem:[%s2523_s23 + $0xc0] sm:$0xff]   ;;  %v1893_v40 = vld [vmem:[%s2523_s23 + $0x1f8] sm:$0xff]   ;;  %v1975_v9 = vmov 0.0  }
  0x13   :  { %1595 = vmatprep.subr.bf16.mxu0 %v1867_v12  ;;  %v1882_v27 = vld [vmem:[%s2523_s23 + $0x88] sm:$0xff]   ;;  %v1888_v34 = vld [vmem:[%s2523_s23 + $0x80] sm:$0xff]   ;;  %v1894_v41 = vld [vmem:[%s2523_s23 + $0x1b8] sm:$0xff]  }
  0x14   :  { %1616 = vmatpush3.bf16.msra.mxu1 %v1866_v11  ;;  %v1895_v42 = vld [vmem:[%s2523_s23 + $0x170] sm:$0xff]   ;;  %v1899_v46 = vld [vmem:[%s2523_s23 + $0x168] sm:$0xff]   ;;  %v1903_v50 = vld [vmem:[%s2523_s23 + $0x160] sm:$0xff]  }
  0x15   :  { %1617 = vmatprep.subr.bf16.mxu1 %v1869_v14  ;;  %v1896_v43 = vld [vmem:[%s2523_s23 + $0x130] sm:$0xff]   ;;  %v1900_v47 = vld [vmem:[%s2523_s23 + $0x128] sm:$0xff]   ;;  %v1904_v51 = vld [vmem:[%s2523_s23 + $0x120] sm:$0xff]  }
  0x16   :  { %1596 = vmatpush3.bf16.msra.mxu0 %v1868_v13  ;;  %v1897_v44 = vld [vmem:[%s2523_s23 + $0x1f0] sm:$0xff]   ;;  %v1901_v48 = vld [vmem:[%s2523_s23 + $0x1e8] sm:$0xff]   ;;  %v1905_v52 = vld [vmem:[%s2523_s23 + $0x1e0] sm:$0xff]  }
  0x17   :  { %1597 = vmatprep.subr.bf16.mxu0 %v1871_v16  ;;  %v1898_v45 = vld [vmem:[%s2523_s23 + $0x1b0] sm:$0xff]   ;;  %v1902_v49 = vld [vmem:[%s2523_s23 + $0x1a8] sm:$0xff]   ;;  %v1906_v53 = vld [vmem:[%s2523_s23 + $0x1a0] sm:$0xff]  }
  0x18   :  { %1618 = vmatpush3.bf16.msra.mxu1 %v1870_v15  ;;  %v1907_v54 = vld [vmem:[%s2523_s23 + $0x158] sm:$0xff]   ;;  %v1911_v58 = vld [vmem:[%s2523_s23 + $0x150] sm:$0xff]   ;;  %v1915_v62 = vld [vmem:[%s2523_s23 + $0x148] sm:$0xff]  }
  0x19   :  { %1619 = vmatprep.subr.bf16.mxu1 %v1873_v18  ;;  %v1908_v55 = vld [vmem:[%s2523_s23 + $0x118] sm:$0xff]   ;;  %v1912_v59 = vld [vmem:[%s2523_s23 + $0x110] sm:$0xff]   ;;  %v1916_v63 = vld [vmem:[%s2523_s23 + $0x108] sm:$0xff]  }
  0x1a   :  { %1598 = vmatpush3.bf16.msra.mxu0 %v1872_v17  ;;  %v1909_v56 = vld [vmem:[%s2523_s23 + $0x1d8] sm:$0xff]   ;;  %v1913_v60 = vld [vmem:[%s2523_s23 + $0x1d0] sm:$0xff]   ;;  %v1917_v0 = vld [vmem:[%s2523_s23 + $0x1c8] sm:$0xff]  }
  0x1b   :  { %1599 = vmatprep.subr.bf16.mxu0 %v1875_v20  ;;  %v1910_v57 = vld [vmem:[%s2523_s23 + $0x198] sm:$0xff]   ;;  %v1914_v61 = vld [vmem:[%s2523_s23 + $0x190] sm:$0xff]   ;;  %v1918_v1 = vld [vmem:[%s2523_s23 + $0x188] sm:$0xff]  }
  0x1c   :  { %1620 = vmatpush3.bf16.msra.mxu1 %v1874_v19  ;;  %v1919_v2 = vld [vmem:[%s2523_s23 + $0x140] sm:$0xff]   ;;  %v53_v5 = vld [vmem:[%s2505_s0 + $0x10] sm:$0xff]  ;;  %v54_v10 = vld [vmem:[%s2505_s0 + $0x18] sm:$0xff] }
  0x1d   :  { %1621 = vmatprep.subr.bf16.mxu1 %v1877_v22  ;;  %v1920_v3 = vld [vmem:[%s2523_s23 + $0x100] sm:$0xff]   ;;  %v1458_v6 = vcombine.low %v53_v5, %v53_v5  ;;  %v1459_v7 = vcombine.high %v53_v5, %v53_v5  ;;  %v1460_v11 = vcombine.low %v54_v10, %v54_v10  ;;  %v1461_v12 = vcombine.high %v54_v10, %v54_v10  ;;  %v1927_v13 = vld [vmem:[%s2506_s8 + $0x38] sm:$0xff]   ;;  %v1928_v14 = vld [vmem:[%s2506_s8 + $0x30] sm:$0xff]  }
  0x1e   :  { %1600 = vmatpush3.bf16.msra.mxu0 %v1876_v21  ;;  %v1921_v4 = vld [vmem:[%s2523_s23 + $0x1c0] sm:$0xff]   ;;  %v1929_v15 = vld [vmem:[%s2506_s8 + $0x28] sm:$0xff]   ;;  %v1931_v17 = vld [vmem:[%s2506_s8 + $0x18] sm:$0xff]   ;;  %v1977_v21 = vmov 0  }
  0x1f   :  { %1601 = vmatprep.subr.bf16.mxu0 %v1879_v24  ;;  %v1924_v8 = vld [vmem:[%s2523_s23 + $0x180] sm:$0xff]   ;;  %v1932_v18 = vld [vmem:[%s2506_s8 + $0x10] sm:$0xff]   ;;  %v1933_v19 = vld [vmem:[%s2506_s8 + $0x8] sm:$0xff]  }
  0x20   :  { %1622 = vmatpush3.bf16.msra.mxu1 %v1878_v23  ;;  %v1930_v16 = vld [vmem:[%s2506_s8 + $0x20] sm:$0xff]   ;;  %v1935_v22 = vld [vmem:[%s2507_s10 + $0x38] sm:$0xff]   ;;  %v1936_v23 = vld [vmem:[%s2507_s10 + $0x30] sm:$0xff]  }
  0x21   :  { %1623 = vmatprep.subr.bf16.mxu1 %v1881_v26  ;;  %v1934_v20 = vld [vmem:[%s2506_s8] sm:$0xff]   ;;  %v1937_v24 = vld [vmem:[%s2507_s10 + $0x28] sm:$0xff]   ;;  %v1942_v26 = vld [vmem:[%s2508_s4 + $0x38] sm:$0xff]  }
  0x22   :  { %1602 = vmatpush3.bf16.msra.mxu0 %v1880_v25  ;;  %v1938_v25 = vld [vmem:[%s2507_s10 + $0x20] sm:$0xff]  }
  0x23   :  { %1603 = vmatprep.subr.bf16.mxu0 %v1883_v28  ;;  %v1940_v28 = vld [vmem:[%s2507_s10 + $0x10] sm:$0xff]   ;;  %v1951_v5 = vld [vmem:[%s2509_s3 + $0x20] sm:$0xff]  }
  0x24   :  { %1624 = vmatpush3.bf16.msra.mxu1 %v1882_v27  ;;  %v1939_v27 = vld [vmem:[%s2507_s10 + $0x18] sm:$0xff]  }
  0x25   :  { %1625 = vmatprep.subr.bf16.mxu1 %v1885_v30  ;;  %v1943_v30 = vld [vmem:[%s2507_s10] sm:$0xff]  }
  0x26   :  { %1604 = vmatpush3.bf16.msra.mxu0 %v1884_v29  ;;  %v1941_v29 = vld [vmem:[%s2507_s10 + $0x8] sm:$0xff]  }
  0x27   :  { %1633 = vmatprep.subr.bf16.mxu0 %v1889_v35  ;;  %v1952_v35 = vld [vmem:[%s2508_s4 + $0x10] sm:$0xff]  }
  0x28   :  { %1626 = vmatpush3.bf16.msra.mxu1 %v1888_v34  ;;  %v1950_v34 = vld [vmem:[%s2508_s4 + $0x18] sm:$0xff]  }
  0x29   :  { %635 = vmatmul.mubr.bf16.vlgmr.msra.gmra.mxu0 %v1454_v32  ;;  %1655 = vmatprep.subr.bf16.mxu1 %v1893_v40  ;;  %v1946_v32 = vld [vmem:[%s2508_s4 + $0x28] sm:$0xff]  }
  0x2a   :  { %1634 = vmatpush3.bf16.msra.mxu0 %v1892_v39  ;;  %714 = vmatprep.mubr.bf16.mxu0 %v1459_v7  ;;  %v1453_v39 = vld [vmem:[%s2510_s2] ss:$0 sm:$0xff] }
  0x2b   :  { %675 = vmatmul.mubr.bf16.vlgmr.msra.gmra.mxu1 %v1456_v37  ;;  %1635 = vmatprep.subr.bf16.mxu0 %v1895_v42  ;;  %v1956_v37 = vld [vmem:[%s2508_s4] sm:$0xff]  }
  0x2c   :  { %1656 = vmatpush3.bf16.msra.mxu1 %v1894_v41  ;;  %754 = vmatprep.mubr.bf16.mxu1 %v1461_v12  ;;  %v1957_v12 = vld [vmem:[%s2509_s3 + $0x8] sm:$0xff]  }
  0x2d   :  { %1657 = vmatprep.subr.bf16.mxu1 %v1897_v44 }
  0x2e   :  { %1636 = vmatpush3.bf16.msra.mxu0 %v1896_v43 }
  0x2f   :  { %1637 = vmatprep.subr.bf16.mxu0 %v1899_v46 }
  0x30   :  { %1658 = vmatpush3.bf16.msra.mxu1 %v1898_v45 }
  0x31   :  { %1659 = vmatprep.subr.bf16.mxu1 %v1901_v48 }
  0x32   :  { %1638 = vmatpush3.bf16.msra.mxu0 %v1900_v47 }
  0x33   :  { %1639 = vmatprep.subr.bf16.mxu0 %v1903_v50 }
  0x34   :  { %1660 = vmatpush3.bf16.msra.mxu1 %v1902_v49 }
  0x35   :  { %1661 = vmatprep.subr.bf16.mxu1 %v1905_v52 }
  0x36   :  { %1640 = vmatpush3.bf16.msra.mxu0 %v1904_v51 }
  0x37   :  { %1641 = vmatprep.subr.bf16.mxu0 %v1907_v54 }
  0x38   :  { %1662 = vmatpush3.bf16.msra.mxu1 %v1906_v53 }
  0x39   :  { %1663 = vmatprep.subr.bf16.mxu1 %v1909_v56 }
  0x3a   :  { %1642 = vmatpush3.bf16.msra.mxu0 %v1908_v55 }
  0x3b   :  { %1643 = vmatprep.subr.bf16.mxu0 %v1911_v58 }
  0x3c   :  { %1664 = vmatpush3.bf16.msra.mxu1 %v1910_v57 }
  0x3d   :  { %1665 = vmatprep.subr.bf16.mxu1 %v1913_v60 }
  0x3e   :  { %1644 = vmatpush3.bf16.msra.mxu0 %v1912_v59  ;;  %v1527_v59 = vld [vmem:[%s2511_s9] ss:$0 sm:$0xff] }
  0x3f   :  { %1645 = vmatprep.subr.bf16.mxu0 %v1915_v62 }
  0x40   :  { %1666 = vmatpush3.bf16.msra.mxu1 %v1914_v61 }
  0x41   :  { %1667 = vmatprep.subr.bf16.mxu1 %v1917_v0 }
  0x42   :  { %1646 = vmatpush3.bf16.msra.mxu0 %v1916_v63  ;;  %v1945_v63 = vld [vmem:[%s2509_s3 + $0x38] sm:$0xff]  }
  0x43   :  { %1647 = vmatprep.subr.bf16.mxu0 %v1919_v2 }
  0x44   :  { %1668 = vmatpush3.bf16.msra.mxu1 %v1918_v1  ;;  %v1978_v1 = vmov 1.0|1.0  }
  0x45   :  { %1669 = vmatprep.subr.bf16.mxu1 %v1921_v4  ;;  %v1949_v4 = vld [vmem:[%s2509_s3 + $0x28] sm:$0xff]  }
  0x46   :  { %1648 = vmatpush3.bf16.msra.mxu0 %v1920_v3  ;;  %v1947_v3 = vld [vmem:[%s2509_s3 + $0x30] sm:$0xff]  }
  0x47   :  { %1731 = vmatprep.subr.bf16.mxu0 %v1975_v9 }
  0x48   :  { %1670 = vmatpush3.bf16.msra.mxu1 %v1924_v8  ;;  %v1955_v8 = vld [vmem:[%s2509_s3 + $0x10] sm:$0xff]  }
  0x49   :  { %715 = vmatmul.mubr.bf16.vlgmr.msra.gmra.mxu0 %v1458_v6  ;;  %1751 = vmatprep.subr.bf16.mxu1 %v1975_v9  ;;  %v1953_v6 = vld [vmem:[%s2509_s3 + $0x18] sm:$0xff]  }
  0x4a   :  { %1732 = vmatpush3.bf16.msra.mxu0 %v1927_v13  ;;  %1747 = vmatprep.mubr.msk.bf16.mxu0 %vm1976_vm0, %v1975_v9 }
  0x4b   :  { %755 = vmatmul.mubr.bf16.vlgmr.msra.gmra.mxu1 %v1460_v11  ;;  %1733 = vmatprep.subr.bf16.mxu0 %v1975_v9 }
  0x4c   :  { %1767 = vmatprep.mubr.msk.bf16.mxu1 %vm1976_vm0, %v1975_v9  ;;  %1752 = vmatpush3.bf16.msra.mxu1 %v1935_v22 }
  0x4d   :  { %1753 = vmatprep.subr.bf16.mxu1 %v1975_v9 }
  0x4e   :  { %1734 = vmatpush3.bf16.msra.mxu0 %v1928_v14  ;;  %v1958_v14 = vld [vmem:[%s2509_s3] sm:$0xff]  }
  0x4f   :  { %1735 = vmatprep.subr.bf16.mxu0 %v1975_v9 }
  0x50   :  { %1754 = vmatpush3.bf16.msra.mxu1 %v1936_v23 }
  0x51   :  { %1755 = vmatprep.subr.bf16.mxu1 %v1975_v9 }
  0x52   :  { %1736 = vmatpush3.bf16.msra.mxu0 %v1929_v15  ;;  %v1959_v15 = vld [vmem:[%s2512_s6 + $0x38] sm:$0xff]  }
  0x53   :  { %1737 = vmatprep.subr.bf16.mxu0 %v1975_v9 }
  0x54   :  { %1756 = vmatpush3.bf16.msra.mxu1 %v1937_v24  ;;  %v1965_v24 = vld [vmem:[%s2512_s6 + $0x8] sm:$0xff]  }
  0x55   :  { %1757 = vmatprep.subr.bf16.mxu1 %v1975_v9 }
  0x56   :  { %1738 = vmatpush3.bf16.msra.mxu0 %v1930_v16  ;;  %v1960_v16 = vld [vmem:[%s2512_s6 + $0x30] sm:$0xff]  }
  0x57   :  { %1739 = vmatprep.subr.bf16.mxu0 %v1975_v9 }
  0x58   :  { %1758 = vmatpush3.bf16.msra.mxu1 %v1938_v25 }
  0x59   :  { %1759 = vmatprep.subr.bf16.mxu1 %v1975_v9 }
  0x5a   :  { %1740 = vmatpush3.bf16.msra.mxu0 %v1931_v17  ;;  %v1961_v17 = vld [vmem:[%s2512_s6 + $0x28] sm:$0xff]  }
  0x5b   :  { %1741 = vmatprep.subr.bf16.mxu0 %v1975_v9 }
  0x5c   :  { %1760 = vmatpush3.bf16.msra.mxu1 %v1939_v27  ;;  %v1967_v27 = vld [vmem:[%s2513_s13 + $0x38] sm:$0xff]  }
  0x5d   :  { %1761 = vmatprep.subr.bf16.mxu1 %v1975_v9 }
  0x5e   :  { %1742 = vmatpush3.bf16.msra.mxu0 %v1932_v18  ;;  %v1962_v18 = vld [vmem:[%s2512_s6 + $0x20] sm:$0xff]  }
  0x5f   :  { %1743 = vmatprep.subr.bf16.mxu0 %v1975_v9 }
  0x60   :  { %1762 = vmatpush3.bf16.msra.mxu1 %v1940_v28  ;;  %v1968_v28 = vld [vmem:[%s2513_s13 + $0x30] sm:$0xff]  }
  0x61   :  { %1763 = vmatprep.subr.bf16.mxu1 %v1975_v9 }
  0x62   :  { %1744 = vmatpush3.bf16.msra.mxu0 %v1933_v19  ;;  %v1963_v19 = vld [vmem:[%s2512_s6 + $0x18] sm:$0xff]  }
  0x63   :  { %1745 = vmatprep.subr.bf16.mxu0 %v1975_v9 }
  0x64   :  { %1764 = vmatpush3.bf16.msra.mxu1 %v1941_v29  ;;  %v1969_v29 = vld [vmem:[%s2513_s13 + $0x28] sm:$0xff]  }
  0x65   :  { %1765 = vmatprep.subr.bf16.mxu1 %v1975_v9 }
  0x66   :  { %1746 = vmatpush3.bf16.msra.mxu0 %v1934_v20  ;;  %v1964_v20 = vld [vmem:[%s2512_s6 + $0x10] sm:$0xff]  }
  0x67   :  { %1771 = vmatprep.subr.bf16.mxu0 %v1975_v9 }
  0x68   :  { %1766 = vmatpush3.bf16.msra.mxu1 %v1943_v30  ;;  %v1970_v30 = vld [vmem:[%s2513_s13 + $0x20] sm:$0xff]  }
  0x69   :  { %1748 = vmatmul.mubr.bf16.vlgmr.msra.gmra.mxu0 %v1977_v21  ;;  %1791 = vmatprep.subr.bf16.mxu1 %v1975_v9 }
  0x6a   :  { %1787 = vmatprep.mubr.msk.bf16.mxu0 %vm1976_vm0, %v1975_v9  ;;  %1772 = vmatpush3.bf16.msra.mxu0 %v1942_v26  ;;  %v1966_v26 = vld [vmem:[%s2512_s6] sm:$0xff]  }
  0x6b   :  { %1773 = vmatprep.subr.bf16.mxu0 %v1975_v9 }
  0x6e   :  { %1774 = vmatpush3.bf16.msra.mxu0 %v1944_v31  ;;  %v1971_v31 = vld [vmem:[%s2513_s13 + $0x18] sm:$0xff]  }
  0x6f   :  { %1775 = vmatprep.subr.bf16.mxu0 %v1975_v9 }
  0x72   :  { %1776 = vmatpush3.bf16.msra.mxu0 %v1946_v32  ;;  %v1972_v32 = vld [vmem:[%s2513_s13 + $0x10] sm:$0xff]  }
  0x73   :  { %1777 = vmatprep.subr.bf16.mxu0 %v1975_v9 }
  0x76   :  { %1778 = vmatpush3.bf16.msra.mxu0 %v1948_v33  ;;  %v1537_v33 = vld [vmem:[%s2514_s11] ss:$0 sm:$0xff] }
  0x77   :  { %1779 = vmatprep.subr.bf16.mxu0 %v1975_v9 }
  0x7a   :  { %1780 = vmatpush3.bf16.msra.mxu0 %v1950_v34 }
  0x7b   :  { %1781 = vmatprep.subr.bf16.mxu0 %v1975_v9 }
  0x7e   :  { %1782 = vmatpush3.bf16.msra.mxu0 %v1952_v35 }
  0x7f   :  { %1783 = vmatprep.subr.bf16.mxu0 %v1975_v9 }
  0x82   :  { %1784 = vmatpush3.bf16.msra.mxu0 %v1954_v36 }
  0x83   :  { %1785 = vmatprep.subr.bf16.mxu0 %v1975_v9 }
  0x86   :  { %1786 = vmatpush3.bf16.msra.mxu0 %v1956_v37 }
  0x87   :  { %1811 = vmatprep.subr.bf16.mxu0 %v1975_v9 }
  0x89   :  { %1788 = vmatmul.mubr.bf16.vlgmr.msra.gmra.mxu0 %v1977_v21 }
  0x8a   :  { %1827 = vmatprep.mubr.msk.bf16.mxu0 %vm1976_vm0, %v1975_v9  ;;  %1812 = vmatpush3.bf16.msra.mxu0 %v1959_v15 }
  0x8b   :  { %1813 = vmatprep.subr.bf16.mxu0 %v1975_v9 }
  0x8e   :  { %1814 = vmatpush3.bf16.msra.mxu0 %v1960_v16 }
  0x8f   :  { %1815 = vmatprep.subr.bf16.mxu0 %v1975_v9 }
  0x92   :  { %1816 = vmatpush3.bf16.msra.mxu0 %v1961_v17 }
  0x93   :  { %1817 = vmatprep.subr.bf16.mxu0 %v1975_v9 }
  0x96   :  { %1818 = vmatpush3.bf16.msra.mxu0 %v1962_v18 }
  0x97   :  { %1819 = vmatprep.subr.bf16.mxu0 %v1975_v9 }
  0x9a   :  { %1820 = vmatpush3.bf16.msra.mxu0 %v1963_v19 }
  0x9b   :  { %1821 = vmatprep.subr.bf16.mxu0 %v1975_v9 }
  0x9e   :  { %1822 = vmatpush3.bf16.msra.mxu0 %v1964_v20 }
  0x9f   :  { %1823 = vmatprep.subr.bf16.mxu0 %v1975_v9 }
  0xa2   :  { %1824 = vmatpush3.bf16.msra.mxu0 %v1965_v24 }
  0xa3   :  { %1825 = vmatprep.subr.bf16.mxu0 %v1975_v9 }
  0xa6   :  { %1826 = vmatpush3.bf16.msra.mxu0 %v1966_v26 }
  0xe9   :  { %v1605_v38 = vpop.f32.mrf.mxu0 }
  0xeb   :  { %v1606_v40 = vpop.f32.mrf.mxu0  ;;  %v1627_v41 = vpop.f32.mrf.mxu1 }
  0xec   :  { %v1607_v42 = vadd.f32 %v1606_v40, %v1605_v38 }
  0xed   :  { %v1608_v43 = vpop.f32.mrf.mxu0  ;;  %v1628_v44 = vpop.f32.mrf.mxu1 }
  0xee   :  { %v637_v45 = vadd.f32 %v1607_v42, %v1453_v39  ;;  %v1629_v46 = vadd.f32 %v1628_v44, %v1627_v41  ;;  %v1567_v41 = vld [vmem:[%s2516_s5] ss:$0 sm:$0xff] }
  0xef   :  { %v1609_v47 = vpop.f32.mrf.mxu0  ;;  %v1630_v48 = vpop.f32.mrf.mxu1 }
  0xf0   :  { %v677_v49 = vadd.f32 %v1629_v46, %v637_v45  ;;  %v1973_v48 = vld [vmem:[%s2513_s13 + $0x8] sm:$0xff]  }
  0xf1   :  { %v1631_v50 = vpop.f32.mrf.mxu1 }
  0xf2   :  { %v1569_v50 = vld [vmem:[%s2517_s7] ss:$0 sm:$0xff] }
 0x109   :  { %v1649_v51 = vpop.f32.mrf.mxu0 }
 0x10b   :  { %v1650_v52 = vpop.f32.mrf.mxu0  ;;  %v1671_v53 = vpop.f32.mrf.mxu1 }
 0x10c   :  { %v1651_v7 = vadd.f32 %v1650_v52, %v1649_v51 }
 0x10d   :  { %v1652_v54 = vpop.f32.mrf.mxu0  ;;  %v1672_v55 = vpop.f32.mrf.mxu1 }
 0x10e   :  { %v717_v10 = vadd.f32 %v1651_v7, %v677_v49  ;;  %v1673_v11 = vadd.f32 %v1672_v55, %v1671_v53  ;;  %v1974_v49 = vld [vmem:[%s2513_s13] sm:$0xff]  }
 0x10f   :  { %v1653_v56 = vpop.f32.mrf.mxu0  ;;  %v1674_v57 = vpop.f32.mrf.mxu1  ;;  %v1349_v55 = vld [vmem:[%s2518_s12] sm:$0xf] }
 0x110   :  { %v757_v13 = vadd.f32 %v1673_v11, %v717_v10 }
 0x111   :  { %v1675_v58 = vpop.f32.mrf.mxu1 }
 0x112   :  { %vm862_vm3 = vcmp.gt.f32.partialorder %v757_v13, 0.2 }
 0x113   :  { %vm1565_vm4 = vmpackc.low %vm862_vm3, %vm862_vm3 }
 0x129   :  { %v954_v60 = vpop.f32.mrf.mxu0 }
 0x12a   :  { %v955_v61 = vadd.f32 %v1527_v59, %v954_v60 }
 0x12b   :  { %v1749_v62 = vpop.f32.mrf.mxu0 }
 0x12c   :  { %vm960_vm1 = vcmp.gt.f32.partialorder %v955_v61, 0.2 }
 0x12d   :  { %vm1546_vm2 = vmpackc.low %vm960_vm1, %vm960_vm1  ;;  %v957_v0 = vpop.f32.mrf.mxu0 }
 0x12e   :  { %1768 = vmatmul.mubr.msk.bf16.vlgmr.msra.gmra.mxu1 %vm1546_vm2, %v1978_v1 }
 0x12f   :  { %1792 = vmatpush3.bf16.msra.mxu1 %v1945_v63  ;;  %v1750_v2 = vpop.f32.mrf.mxu0  ;;  %1807 = vmatprep.mubr.msk.bf16.mxu1 %vm1976_vm0, %v1975_v9 }
 0x130   :  { %1793 = vmatprep.subr.bf16.mxu1 %v1975_v9 }
 0x133   :  { %1794 = vmatpush3.bf16.msra.mxu1 %v1947_v3 }
 0x134   :  { %1795 = vmatprep.subr.bf16.mxu1 %v1975_v9 }
 0x137   :  { %1796 = vmatpush3.bf16.msra.mxu1 %v1949_v4 }
 0x138   :  { %1797 = vmatprep.subr.bf16.mxu1 %v1975_v9 }
 0x13b   :  { %1798 = vmatpush3.bf16.msra.mxu1 %v1951_v5 }
 0x13c   :  { %1799 = vmatprep.subr.bf16.mxu1 %v1975_v9 }
 0x13f   :  { %1800 = vmatpush3.bf16.msra.mxu1 %v1953_v6 }
 0x140   :  { %1801 = vmatprep.subr.bf16.mxu1 %v1975_v9 }
 0x143   :  { %1802 = vmatpush3.bf16.msra.mxu1 %v1955_v8 }
 0x144   :  { %1803 = vmatprep.subr.bf16.mxu1 %v1975_v9 }
 0x147   :  { %1804 = vmatpush3.bf16.msra.mxu1 %v1957_v12 }
 0x148   :  { %1805 = vmatprep.subr.bf16.mxu1 %v1975_v9 }
 0x149   :  { %v1145_v21 = vpop.f32.mrf.mxu0 }
 0x14b   :  { %1806 = vmatpush3.bf16.msra.mxu1 %v1958_v14  ;;  %v1789_v22 = vpop.f32.mrf.mxu0 }
 0x14c   :  { %1831 = vmatprep.subr.bf16.mxu1 %v1975_v9 }
 0x14d   :  { %v1148_v23 = vpop.f32.mrf.mxu0 }
 0x14e   :  { %1808 = vmatmul.mubr.msk.bf16.vlgmr.msra.gmra.mxu1 %vm1565_vm4, %v1978_v1 }
 0x14f   :  { %1847 = vmatprep.mubr.msk.bf16.mxu1 %vm1976_vm0, %v1975_v9  ;;  %v1790_v25 = vpop.f32.mrf.mxu0  ;;  %1832 = vmatpush3.bf16.msra.mxu1 %v1967_v27 }
 0x150   :  { %1833 = vmatprep.subr.bf16.mxu1 %v1975_v9 }
 0x153   :  { %1834 = vmatpush3.bf16.msra.mxu1 %v1968_v28 }
 0x154   :  { %1835 = vmatprep.subr.bf16.mxu1 %v1975_v9 }
 0x157   :  { %1836 = vmatpush3.bf16.msra.mxu1 %v1969_v29 }
 0x158   :  { %1837 = vmatprep.subr.bf16.mxu1 %v1975_v9 }
 0x15b   :  { %1838 = vmatpush3.bf16.msra.mxu1 %v1970_v30 }
 0x15c   :  { %1839 = vmatprep.subr.bf16.mxu1 %v1975_v9 }
 0x15f   :  { %1840 = vmatpush3.bf16.msra.mxu1 %v1971_v31 }
 0x160   :  { %1841 = vmatprep.subr.bf16.mxu1 %v1975_v9 }
 0x163   :  { %1842 = vmatpush3.bf16.msra.mxu1 %v1972_v32 }
 0x164   :  { %1843 = vmatprep.subr.bf16.mxu1 %v1975_v9 }
 0x167   :  { %1844 = vmatpush3.bf16.msra.mxu1 %v1973_v48 }
 0x168   :  { %1845 = vmatprep.subr.bf16.mxu1 %v1975_v9 }
 0x16b   :  { %1846 = vmatpush3.bf16.msra.mxu1 %v1974_v49 }
 0x1ee   :  { %v1052_v34 = vpop.f32.mrf.mxu1 }
 0x1ef   :  { %v1053_v35 = vadd.f32 %v1537_v33, %v1052_v34 }
 0x1f0   :  { %v1769_v36 = vpop.f32.mrf.mxu1 }
 0x1f1   :  { %vm1058_vm5 = vcmp.gt.f32.partialorder %v1053_v35, 0.2 }
 0x1f2   :  { %v1548_v37 = vsel %vm1058_vm5, 1.0, %v1975_v9  ;;  %v1055_v38 = vpop.f32.mrf.mxu1 }
 0x1f3   :  { %v1061_v39 = vpack.c.bf16 %v1548_v37, %v1548_v37 }
 0x1f4   :  { %v1770_v40 = vpop.f32.mrf.mxu1 }
 0x1f5   :  { %1062 = vst [vmem:[%s2515_s15] sm:$0xf] %v1061_v39 }
 0x20e   :  { %v1233_v42 = vpop.f32.mrf.mxu1 }
 0x20f   :  { %v1234_v43 = vadd.f32 %v1233_v42, %v1145_v21 }
 0x210   :  { %v1809_v44 = vpop.f32.mrf.mxu1 }
 0x211   :  { %v1245_v45 = vadd.f32 %v1567_v41, %v1234_v43 }
 0x212   :  { %v1236_v46 = vpop.f32.mrf.mxu1 }
 0x213   :  { %vm1246_vm6 = vcmp.gt.f32.partialorder %v1245_v45, 0.2 }
 0x214   :  { %vm1578_vm7 = vmpackc.low %vm1246_vm6, %vm1246_vm6  ;;  %v1810_v47 = vpop.f32.mrf.mxu1 }
 0x215   :  { %1828 = vmatmul.mubr.msk.bf16.vlgmr.msra.gmra.mxu0 %vm1578_vm7, %v1978_v1 }
 0x2d5   :  { %v1338_v51 = vpop.f32.mrf.mxu0 }
 0x2d6   :  { %v1339_v52 = vadd.f32 %v1569_v50, %v1338_v51 }
 0x2d7   :  { %v1829_v53 = vpop.f32.mrf.mxu0 }
 0x2d8   :  { %vm1344_vm8 = vcmp.gt.f32.partialorder %v1339_v52, 0.2 }
 0x2d9   :  { %v1580_v54 = vsel %vm1344_vm8, 1.0, %v1975_v9  ;;  %v1341_v56 = vpop.f32.mrf.mxu0 }
 0x2da   :  { %v1347_v57 = vpack.c.bf16 %v1580_v54, %v1580_v54 }
 0x2db   :  { %v1830_v58 = vpop.f32.mrf.mxu0 }
 0x2dc   :  { %1348 = vst [vmem:[%s2519_s14] sm:$0xf] %v1347_v57  ;;  %v1350_v59 = vmul.bf16 %v1349_v55, %v1347_v57 }
 0x2de   :  { %1848 = vmatmul.mubr.bf16.vlgmr.msra.gmra.mxu1 %v1350_v59 }
 0x39e   :  { %v1433_v60 = vpop.f32.mrf.mxu1 }
 0x39f   :  { %v1439_v61 = vpack.c.bf16 %v1433_v60, %v1433_v60 }
 0x3a0   :  { %v1849_v62 = vpop.f32.mrf.mxu1 }
 0x3a1   :  { %1440 = vst [vmem:[%s2520_s16] sm:$0xf] %v1439_v61 }
 0x3a2   :  { %v1436_v9 = vpop.f32.mrf.mxu1 }
 0x3a4   :  { %v1850_v63 = vpop.f32.mrf.mxu1 }

// kernel: _ee_step.18
= control target key start
LH: loop header
LB: loop body
LE: loop exit
PB: predicated region body
PF: predicated region fallthrough
CT: control target
= control target key end

     0   :  { %s1069_s1 = inlined_call_operand.vmem [shape: bf16[512,256], index: 1, kind: input, shape index: {}]   ;;  %s1070_s0 = inlined_call_operand.vmem [shape: bf16[1,32,512], index: 0, kind: input, shape index: {}]   ;;  %s1071_s2 = inlined_call_operand.vmem [shape: f32[1,256], index: 2, kind: input, shape index: {}]   ;;  %s1072_s3 = inlined_call_operand.vmem [shape: bf16[1,32,256], index: 3, kind: output, shape index: {}]  }
   0x1   :  { %v709_v0 = vld [vmem:[%s1069_s1 + $0x74] ss:$8 sps:$4 sm:$0xff]   ;;  %v713_v2 = vld [vmem:[%s1069_s1 + $0x70] ss:$8 sps:$4 sm:$0xff]   ;;  %v715_v4 = vld [vmem:[%s1069_s1 + $0x64] ss:$8 sps:$4 sm:$0xff]  }
   0x2   :  { %v711_v1 = vld [vmem:[%s1069_s1 + $0x174] ss:$8 sps:$4 sm:$0xff]   ;;  %458 = vmatprep.subr.bf16.mxu0 %v709_v0  ;;  %v714_v3 = vld [vmem:[%s1069_s1 + $0x170] ss:$8 sps:$4 sm:$0xff]   ;;  %v717_v5 = vld [vmem:[%s1069_s1 + $0x164] ss:$8 sps:$4 sm:$0xff]  }
   0x3   :  { %511 = vmatprep.subr.bf16.mxu1 %v711_v1  ;;  %459 = vmatpush1.bf16.msra.mxu0 %v713_v2  ;;  %v719_v6 = vld [vmem:[%s1069_s1 + $0x60] ss:$8 sps:$4 sm:$0xff]   ;;  %v721_v8 = vld [vmem:[%s1069_s1 + $0x54] ss:$8 sps:$4 sm:$0xff]   ;;  %v725_v10 = vld [vmem:[%s1069_s1 + $0x50] ss:$8 sps:$4 sm:$0xff]  }
   0x4   :  { %512 = vmatpush1.bf16.msra.mxu1 %v714_v3  ;;  %460 = vmatprep.subr.bf16.mxu0 %v715_v4  ;;  %v720_v7 = vld [vmem:[%s1069_s1 + $0x160] ss:$8 sps:$4 sm:$0xff]   ;;  %v723_v9 = vld [vmem:[%s1069_s1 + $0x154] ss:$8 sps:$4 sm:$0xff]   ;;  %v726_v11 = vld [vmem:[%s1069_s1 + $0x150] ss:$8 sps:$4 sm:$0xff]  }
   0x5   :  { %513 = vmatprep.subr.bf16.mxu1 %v717_v5  ;;  %v727_v12 = vld [vmem:[%s1069_s1 + $0x44] ss:$8 sps:$4 sm:$0xff]   ;;  %v731_v14 = vld [vmem:[%s1069_s1 + $0x40] ss:$8 sps:$4 sm:$0xff]   ;;  %v733_v16 = vld [vmem:[%s1069_s1 + $0x34] ss:$8 sps:$4 sm:$0xff]  }
   0x6   :  { %v729_v13 = vld [vmem:[%s1069_s1 + $0x144] ss:$8 sps:$4 sm:$0xff]   ;;  %v732_v15 = vld [vmem:[%s1069_s1 + $0x140] ss:$8 sps:$4 sm:$0xff]   ;;  %v735_v17 = vld [vmem:[%s1069_s1 + $0x134] ss:$8 sps:$4 sm:$0xff]  }
   0x7   :  { %461 = vmatpush1.bf16.msra.mxu0 %v719_v6  ;;  %v737_v18 = vld [vmem:[%s1069_s1 + $0x30] ss:$8 sps:$4 sm:$0xff]   ;;  %v739_v20 = vld [vmem:[%s1069_s1 + $0x24] ss:$8 sps:$4 sm:$0xff]   ;;  %v743_v22 = vld [vmem:[%s1069_s1 + $0x20] ss:$8 sps:$4 sm:$0xff]  }
   0x8   :  { %514 = vmatpush1.bf16.msra.mxu1 %v720_v7  ;;  %462 = vmatprep.subr.bf16.mxu0 %v721_v8  ;;  %v738_v19 = vld [vmem:[%s1069_s1 + $0x130] ss:$8 sps:$4 sm:$0xff]   ;;  %v741_v21 = vld [vmem:[%s1069_s1 + $0x124] ss:$8 sps:$4 sm:$0xff]   ;;  %v744_v23 = vld [vmem:[%s1069_s1 + $0x120] ss:$8 sps:$4 sm:$0xff]   ;;  %v88_v8 = vlaneseq }
   0x9   :  { %515 = vmatprep.subr.bf16.mxu1 %v723_v9  ;;  %v745_v24 = vld [vmem:[%s1069_s1 + $0x14] ss:$8 sps:$4 sm:$0xff]   ;;  %v749_v26 = vld [vmem:[%s1069_s1 + $0x10] ss:$8 sps:$4 sm:$0xff]   ;;  %v751_v28 = vld [vmem:[%s1069_s1 + $0x4] ss:$8 sps:$4 sm:$0xff]  }
   0xa   :  { %v747_v25 = vld [vmem:[%s1069_s1 + $0x114] ss:$8 sps:$4 sm:$0xff]   ;;  %v750_v27 = vld [vmem:[%s1069_s1 + $0x110] ss:$8 sps:$4 sm:$0xff]   ;;  %v753_v29 = vld [vmem:[%s1069_s1 + $0x104] ss:$8 sps:$4 sm:$0xff]  }
   0xb   :  { %463 = vmatpush1.bf16.msra.mxu0 %v725_v10  ;;  %v755_v30 = vld [vmem:[%s1069_s1] ss:$8 sps:$4 sm:$0xff]   ;;  %v757_v32 = vld [vmem:[%s1069_s1 + $0xf4] ss:$8 sps:$4 sm:$0xff]   ;;  %v761_v34 = vld [vmem:[%s1069_s1 + $0xf0] ss:$8 sps:$4 sm:$0xff]  }
   0xc   :  { %516 = vmatpush1.bf16.msra.mxu1 %v726_v11  ;;  %464 = vmatprep.subr.bf16.mxu0 %v727_v12  ;;  %v756_v31 = vld [vmem:[%s1069_s1 + $0x100] ss:$8 sps:$4 sm:$0xff]   ;;  %v759_v33 = vld [vmem:[%s1069_s1 + $0x1f4] ss:$8 sps:$4 sm:$0xff]   ;;  %v762_v35 = vld [vmem:[%s1069_s1 + $0x1f0] ss:$8 sps:$4 sm:$0xff]  }
   0xd   :  { %517 = vmatprep.subr.bf16.mxu1 %v729_v13  ;;  %v763_v36 = vld [vmem:[%s1069_s1 + $0xe4] ss:$8 sps:$4 sm:$0xff]   ;;  %v767_v38 = vld [vmem:[%s1069_s1 + $0xe0] ss:$8 sps:$4 sm:$0xff]   ;;  %v769_v40 = vld [vmem:[%s1069_s1 + $0xd4] ss:$8 sps:$4 sm:$0xff]  }
   0xe   :  { %v765_v37 = vld [vmem:[%s1069_s1 + $0x1e4] ss:$8 sps:$4 sm:$0xff]   ;;  %v768_v39 = vld [vmem:[%s1069_s1 + $0x1e0] ss:$8 sps:$4 sm:$0xff]   ;;  %v771_v41 = vld [vmem:[%s1069_s1 + $0x1d4] ss:$8 sps:$4 sm:$0xff]  }
   0xf   :  { %465 = vmatpush1.bf16.msra.mxu0 %v731_v14  ;;  %v773_v42 = vld [vmem:[%s1069_s1 + $0xd0] ss:$8 sps:$4 sm:$0xff]   ;;  %v775_v44 = vld [vmem:[%s1069_s1 + $0xc4] ss:$8 sps:$4 sm:$0xff]   ;;  %v779_v46 = vld [vmem:[%s1069_s1 + $0xc0] ss:$8 sps:$4 sm:$0xff]  }
  0x10   :  { %518 = vmatpush1.bf16.msra.mxu1 %v732_v15  ;;  %466 = vmatprep.subr.bf16.mxu0 %v733_v16  ;;  %v774_v43 = vld [vmem:[%s1069_s1 + $0x1d0] ss:$8 sps:$4 sm:$0xff]   ;;  %v777_v45 = vld [vmem:[%s1069_s1 + $0x1c4] ss:$8 sps:$4 sm:$0xff]   ;;  %v780_v47 = vld [vmem:[%s1069_s1 + $0x1c0] ss:$8 sps:$4 sm:$0xff]  }
  0x11   :  { %519 = vmatprep.subr.bf16.mxu1 %v735_v17  ;;  %v781_v48 = vld [vmem:[%s1069_s1 + $0xb4] ss:$8 sps:$4 sm:$0xff]   ;;  %v785_v52 = vld [vmem:[%s1069_s1 + $0xb0] ss:$8 sps:$4 sm:$0xff]   ;;  %v787_v54 = vld [vmem:[%s1069_s1 + $0xa4] ss:$8 sps:$4 sm:$0xff]  }
  0x12   :  { %v807_v49 = vld [vmem:[%s1070_s0 + $0x4] ss:$16 sps:$4 sm:$0xff]   ;;  %v810_v51 = vld [vmem:[%s1070_s0 + $0xc] ss:$16 sps:$4 sm:$0xff]   ;;  %v786_v53 = vld [vmem:[%s1069_s1 + $0x1b0] ss:$8 sps:$4 sm:$0xff]  }
  0x13   :  { %467 = vmatpush1.bf16.msra.mxu0 %v737_v18  ;;  %v783_v50 = vld [vmem:[%s1069_s1 + $0x1b4] ss:$8 sps:$4 sm:$0xff]   ;;  %490 = vmatprep.mubr.bf16.mxu0 %v807_v49  ;;  %v789_v55 = vld [vmem:[%s1069_s1 + $0x1a4] ss:$8 sps:$4 sm:$0xff]   ;;  %v791_v56 = vld [vmem:[%s1069_s1 + $0xa0] ss:$8 sps:$4 sm:$0xff]  }
  0x14   :  { %520 = vmatpush1.bf16.msra.mxu1 %v738_v19  ;;  %468 = vmatprep.subr.bf16.mxu0 %v739_v20  ;;  %v792_v57 = vld [vmem:[%s1069_s1 + $0x1a0] ss:$8 sps:$4 sm:$0xff]   ;;  %v793_v58 = vld [vmem:[%s1069_s1 + $0x94] ss:$8 sps:$4 sm:$0xff]   ;;  %v797_v60 = vld [vmem:[%s1069_s1 + $0x90] ss:$8 sps:$4 sm:$0xff]  }
  0x15   :  { %521 = vmatprep.subr.bf16.mxu1 %v741_v21  ;;  %543 = vmatprep.mubr.bf16.mxu1 %v810_v51  ;;  %v795_v59 = vld [vmem:[%s1069_s1 + $0x194] ss:$8 sps:$4 sm:$0xff]   ;;  %v798_v61 = vld [vmem:[%s1069_s1 + $0x190] ss:$8 sps:$4 sm:$0xff]   ;;  %v799_v62 = vld [vmem:[%s1069_s1 + $0x84] ss:$8 sps:$4 sm:$0xff]  }
  0x16   :  { %v801_v63 = vld [vmem:[%s1069_s1 + $0x184] ss:$8 sps:$4 sm:$0xff]   ;;  %v803_v0 = vld [vmem:[%s1069_s1 + $0x80] ss:$8 sps:$4 sm:$0xff]   ;;  %v89_v9 = vshrl.u32 %v88_v8, 7 }
  0x17   :  { %469 = vmatpush1.bf16.msra.mxu0 %v743_v22  ;;  %v804_v1 = vld [vmem:[%s1069_s1 + $0x180] ss:$8 sps:$4 sm:$0xff]   ;;  %v811_v4 = vld [vmem:[%s1070_s0 + $0x24] ss:$16 sps:$4 sm:$0xff]   ;;  %v813_v5 = vld [vmem:[%s1070_s0 + $0x2c] ss:$16 sps:$4 sm:$0xff]  }
  0x18   :  { %522 = vmatpush1.bf16.msra.mxu1 %v744_v23  ;;  %470 = vmatprep.subr.bf16.mxu0 %v745_v24  ;;  %v805_v2 = vld [vmem:[%s1070_s0] ss:$16 sps:$4 sm:$0xff]   ;;  %v808_v3 = vld [vmem:[%s1070_s0 + $0x8] ss:$16 sps:$4 sm:$0xff]   ;;  %v90_v10 = vsub.s32 0, %v89_v9  ;;  %v94_v12 = vsub.s32 1, %v89_v9 }
  0x19   :  { %523 = vmatprep.subr.bf16.mxu1 %v747_v25  ;;  %v815_v6 = vld [vmem:[%s1070_s0 + $0x20] ss:$16 sps:$4 sm:$0xff]   ;;  %v816_v7 = vld [vmem:[%s1070_s0 + $0x28] ss:$16 sps:$4 sm:$0xff]  }
  0x1a   :  { %v86_v11 = vld [vmem:[%s1071_s2] sm:$0x3] }
  0x1b   :  { %471 = vmatpush1.bf16.msra.mxu0 %v749_v26  ;;  %v91_v13 = vrot.slane %v86_v11, %v90_v10  ;;  %v95_v14 = vrot.slane %v86_v11, %v94_v12 }
  0x1c   :  { %524 = vmatpush1.bf16.msra.mxu1 %v750_v27  ;;  %472 = vmatprep.subr.bf16.mxu0 %v751_v28 }
  0x1d   :  { %525 = vmatprep.subr.bf16.mxu1 %v753_v29 }
  0x1f   :  { %473 = vmatpush1.bf16.msra.mxu0 %v755_v30  ;;  %v817_v30 = vmov 0.0  }
  0x20   :  { %526 = vmatpush1.bf16.msra.mxu1 %v756_v31  ;;  %474 = vmatprep.subr.bf16.mxu0 %v757_v32 }
  0x21   :  { %527 = vmatprep.subr.bf16.mxu1 %v759_v33 }
  0x23   :  { %475 = vmatpush2.bf16.msra.mxu0 %v761_v34 }
  0x24   :  { %528 = vmatpush2.bf16.msra.mxu1 %v762_v35  ;;  %476 = vmatprep.subr.bf16.mxu0 %v763_v36 }
  0x25   :  { %529 = vmatprep.subr.bf16.mxu1 %v765_v37 }
  0x27   :  { %477 = vmatpush2.bf16.msra.mxu0 %v767_v38 }
  0x28   :  { %530 = vmatpush2.bf16.msra.mxu1 %v768_v39  ;;  %478 = vmatprep.subr.bf16.mxu0 %v769_v40 }
  0x29   :  { %531 = vmatprep.subr.bf16.mxu1 %v771_v41 }
  0x2b   :  { %479 = vmatpush2.bf16.msra.mxu0 %v773_v42 }
  0x2c   :  { %532 = vmatpush2.bf16.msra.mxu1 %v774_v43  ;;  %480 = vmatprep.subr.bf16.mxu0 %v775_v44 }
  0x2d   :  { %533 = vmatprep.subr.bf16.mxu1 %v777_v45 }
  0x2f   :  { %481 = vmatpush2.bf16.msra.mxu0 %v779_v46 }
  0x30   :  { %534 = vmatpush2.bf16.msra.mxu1 %v780_v47  ;;  %482 = vmatprep.subr.bf16.mxu0 %v781_v48 }
  0x31   :  { %535 = vmatprep.subr.bf16.mxu1 %v783_v50 }
  0x33   :  { %483 = vmatpush2.bf16.msra.mxu0 %v785_v52 }
  0x34   :  { %536 = vmatpush2.bf16.msra.mxu1 %v786_v53  ;;  %484 = vmatprep.subr.bf16.mxu0 %v787_v54 }
  0x35   :  { %537 = vmatprep.subr.bf16.mxu1 %v789_v55 }
  0x37   :  { %485 = vmatpush2.bf16.msra.mxu0 %v791_v56 }
  0x38   :  { %538 = vmatpush2.bf16.msra.mxu1 %v792_v57  ;;  %486 = vmatprep.subr.bf16.mxu0 %v793_v58 }
  0x39   :  { %539 = vmatprep.subr.bf16.mxu1 %v795_v59 }
  0x3b   :  { %487 = vmatpush2.bf16.msra.mxu0 %v797_v60 }
  0x3c   :  { %540 = vmatpush2.bf16.msra.mxu1 %v798_v61  ;;  %488 = vmatprep.subr.bf16.mxu0 %v799_v62 }
  0x3d   :  { %541 = vmatprep.subr.bf16.mxu1 %v801_v63 }
  0x3f   :  { %489 = vmatpush2.bf16.msra.mxu0 %v803_v0 }
  0x40   :  { %542 = vmatpush2.bf16.msra.mxu1 %v804_v1 }
  0x42   :  { %491 = vmatmul.mubr.bf16.vlgmr.msra.gmra.mxu0 %v805_v2 }
  0x43   :  { %544 = vmatmul.mubr.bf16.vlgmr.msra.gmra.mxu1 %v808_v3  ;;  %500 = vmatprep.mubr.bf16.mxu0 %v811_v4 }
  0x44   :  { %553 = vmatprep.mubr.bf16.mxu1 %v813_v5 }
  0x4a   :  { %501 = vmatmul.mubr.bf16.gmra.mxu0 %v815_v6 }
  0x4b   :  { %554 = vmatmul.mubr.bf16.gmra.mxu1 %v816_v7 }
 0x102   :  { %v492_v15 = vpop.f32.mrf.mxu0 }
 0x103   :  { %v545_v16 = vpop.f32.mrf.mxu1  ;;  %v493_v17 = vadd.f32 %v492_v15, %v91_v13 }
 0x104   :  { %v494_v18 = vpop.f32.mrf.mxu0 }
 0x105   :  { %v547_v19 = vpop.f32.mrf.mxu1  ;;  %v546_v20 = vadd.f32 %v545_v16, %v493_v17  ;;  %v495_v21 = vadd.f32 %v494_v18, %v95_v14 }
 0x106   :  { %v496_v22 = vpop.f32.mrf.mxu0 }
 0x107   :  { %v549_v23 = vpop.f32.mrf.mxu1  ;;  %vm564_vm0 = vcmp.gt.f32.partialorder %v546_v20, 0.2  ;;  %v548_v24 = vadd.f32 %v547_v19, %v495_v21  ;;  %v497_v25 = vadd.f32 %v496_v22, %v91_v13 }
 0x108   :  { %v498_v26 = vpop.f32.mrf.mxu0  ;;  %v692_v31 = vsel %vm564_vm0, 1.0, %v817_v30 }
 0x109   :  { %v551_v27 = vpop.f32.mrf.mxu1  ;;  %vm565_vm1 = vcmp.gt.f32.partialorder %v548_v24, 0.2  ;;  %v550_v28 = vadd.f32 %v549_v23, %v497_v25  ;;  %v499_v29 = vadd.f32 %v498_v26, %v95_v14 }
 0x10a   :  { %v693_v32 = vsel %vm565_vm1, 1.0, %v817_v30  ;;  %v502_v33 = vpop.f32.mrf.mxu0 }
 0x10b   :  { %v555_v34 = vpop.f32.mrf.mxu1  ;;  %v704_v35 = vpack.c.bf16 %v693_v32, %v692_v31  ;;  %vm566_vm2 = vcmp.gt.f32.partialorder %v550_v28, 0.2  ;;  %v552_v36 = vadd.f32 %v551_v27, %v499_v29  ;;  %v503_v37 = vadd.f32 %v502_v33, %v91_v13 }
 0x10c   :  { %v504_v38 = vpop.f32.mrf.mxu0  ;;  %v694_v42 = vsel %vm566_vm2, 1.0, %v817_v30 }
 0x10d   :  { %v557_v39 = vpop.f32.mrf.mxu1  ;;  %612 = vst [vmem:[%s1072_s3] sm:$0xff] %v704_v35  ;;  %vm567_vm3 = vcmp.gt.f32.partialorder %v552_v36, 0.2  ;;  %v556_v40 = vadd.f32 %v555_v34, %v503_v37  ;;  %v505_v41 = vadd.f32 %v504_v38, %v95_v14 }
 0x10e   :  { %v695_v43 = vsel %vm567_vm3, 1.0, %v817_v30  ;;  %v506_v44 = vpop.f32.mrf.mxu0 }
 0x10f   :  { %v559_v45 = vpop.f32.mrf.mxu1  ;;  %v705_v46 = vpack.c.bf16 %v695_v43, %v694_v42  ;;  %vm568_vm4 = vcmp.gt.f32.partialorder %v556_v40, 0.2  ;;  %v558_v47 = vadd.f32 %v557_v39, %v505_v41  ;;  %v507_v48 = vadd.f32 %v506_v44, %v91_v13 }
 0x110   :  { %v508_v49 = vpop.f32.mrf.mxu0  ;;  %v696_v52 = vsel %vm568_vm4, 1.0, %v817_v30 }
 0x111   :  { %613 = vst [vmem:[%s1072_s3 + $0x8] sm:$0xff] %v705_v46  ;;  %vm569_vm5 = vcmp.gt.f32.partialorder %v558_v47, 0.2  ;;  %v560_v50 = vadd.f32 %v559_v45, %v507_v48  ;;  %v509_v51 = vadd.f32 %v508_v49, %v95_v14  ;;  %v561_v54 = vpop.f32.mrf.mxu1 }
 0x112   :  { %v697_v53 = vsel %vm569_vm5, 1.0, %v817_v30 }
 0x113   :  { %v706_v55 = vpack.c.bf16 %v697_v53, %v696_v52  ;;  %vm570_vm6 = vcmp.gt.f32.partialorder %v560_v50, 0.2  ;;  %v562_v56 = vadd.f32 %v561_v54, %v509_v51 }
 0x114   :  { %v698_v57 = vsel %vm570_vm6, 1.0, %v817_v30 }
 0x115   :  { %614 = vst [vmem:[%s1072_s3 + $0x10] sm:$0xff] %v706_v55  ;;  %vm571_vm7 = vcmp.gt.f32.partialorder %v562_v56, 0.2 }
 0x116   :  { %v699_v58 = vsel %vm571_vm7, 1.0, %v817_v30 }
 0x117   :  { %v707_v59 = vpack.c.bf16 %v699_v58, %v698_v57 }
 0x119   :  { %615 = vst [vmem:[%s1072_s3 + $0x18] sm:$0xff] %v707_v59 }

// kernel: _ee_step.17
= control target key start
LH: loop header
LB: loop body
LE: loop exit
PB: predicated region body
PF: predicated region fallthrough
CT: control target
= control target key end

     0   :  { %s3485_s1 = inlined_call_operand.vmem [shape: bf16[1024,512], index: 1, kind: input, shape index: {}]   ;;  %s3486_s0 = inlined_call_operand.vmem [shape: bf16[1,8,1024], index: 0, kind: input, shape index: {}]   ;;  %s3487_s2 = inlined_call_operand.vmem [shape: f32[1,512], index: 2, kind: input, shape index: {}]   ;;  %s3488_s3 = inlined_call_operand.vmem [shape: bf16[1,8,512], index: 3, kind: output, shape index: {}]  }
   0x1   :  { %v2239_v0 = vld [vmem:[%s3485_s1 + $0xe4] ss:$16 sps:$4 sm:$0xff]   ;;  %v2243_v2 = vld [vmem:[%s3485_s1 + $0xe0] ss:$16 sps:$4 sm:$0xff]   ;;  %v15_v48 = vld [vmem:[%s3486_s0 + $0x8] sm:$0xff] }
   0x2   :  { %v2241_v1 = vld [vmem:[%s3485_s1 + $0x2e4] ss:$16 sps:$4 sm:$0xff]   ;;  %1604 = vmatprep.subr.bf16.mxu0 %v2239_v0  ;;  %v2244_v3 = vld [vmem:[%s3485_s1 + $0x2e0] ss:$16 sps:$4 sm:$0xff]   ;;  %v2804_v51 = vcombine.high %v15_v48, %v15_v48 }
   0x3   :  { %1645 = vmatprep.subr.bf16.mxu1 %v2241_v1  ;;  %v2245_v4 = vld [vmem:[%s3485_s1 + $0xc4] ss:$16 sps:$4 sm:$0xff]   ;;  %1605 = vmatpush1.bf16.msra.mxu0 %v2243_v2  ;;  %v2249_v6 = vld [vmem:[%s3485_s1 + $0xc0] ss:$16 sps:$4 sm:$0xff]  }
   0x4   :  { %1646 = vmatpush1.bf16.msra.mxu1 %v2244_v3  ;;  %v2247_v5 = vld [vmem:[%s3485_s1 + $0x2c4] ss:$16 sps:$4 sm:$0xff]   ;;  %1606 = vmatprep.subr.bf16.mxu0 %v2245_v4  ;;  %v2250_v7 = vld [vmem:[%s3485_s1 + $0x2c0] ss:$16 sps:$4 sm:$0xff]  }
   0x5   :  { %1647 = vmatprep.subr.bf16.mxu1 %v2247_v5  ;;  %v2251_v8 = vld [vmem:[%s3485_s1 + $0xa4] ss:$16 sps:$4 sm:$0xff]   ;;  %v2255_v10 = vld [vmem:[%s3485_s1 + $0xa0] ss:$16 sps:$4 sm:$0xff]   ;;  %1677 = vmatprep.mubr.bf16.mxu1 %v2804_v51 }
   0x6   :  { %v2253_v9 = vld [vmem:[%s3485_s1 + $0x2a4] ss:$16 sps:$4 sm:$0xff]   ;;  %v2256_v11 = vld [vmem:[%s3485_s1 + $0x2a0] ss:$16 sps:$4 sm:$0xff]  }
   0x7   :  { %1607 = vmatpush1.bf16.msra.mxu0 %v2249_v6  ;;  %v2257_v12 = vld [vmem:[%s3485_s1 + $0x84] ss:$16 sps:$4 sm:$0xff]   ;;  %v2261_v14 = vld [vmem:[%s3485_s1 + $0x80] ss:$16 sps:$4 sm:$0xff]  }
   0x8   :  { %1648 = vmatpush1.bf16.msra.mxu1 %v2250_v7  ;;  %1608 = vmatprep.subr.bf16.mxu0 %v2251_v8  ;;  %v2259_v13 = vld [vmem:[%s3485_s1 + $0x284] ss:$16 sps:$4 sm:$0xff]   ;;  %v2262_v15 = vld [vmem:[%s3485_s1 + $0x280] ss:$16 sps:$4 sm:$0xff]   ;;  %v2864_v7 = vcombine.low %v15_v48, %v15_v48 }
   0x9   :  { %1649 = vmatprep.subr.bf16.mxu1 %v2253_v9  ;;  %v2263_v16 = vld [vmem:[%s3485_s1 + $0x64] ss:$16 sps:$4 sm:$0xff]   ;;  %v2267_v18 = vld [vmem:[%s3485_s1 + $0x60] ss:$16 sps:$4 sm:$0xff]  }
   0xa   :  { %v2265_v17 = vld [vmem:[%s3485_s1 + $0x264] ss:$16 sps:$4 sm:$0xff]   ;;  %v2268_v19 = vld [vmem:[%s3485_s1 + $0x260] ss:$16 sps:$4 sm:$0xff]  }
   0xb   :  { %1609 = vmatpush1.bf16.msra.mxu0 %v2255_v10  ;;  %v2269_v20 = vld [vmem:[%s3485_s1 + $0x44] ss:$16 sps:$4 sm:$0xff]   ;;  %v2273_v22 = vld [vmem:[%s3485_s1 + $0x40] ss:$16 sps:$4 sm:$0xff]  }
   0xc   :  { %1650 = vmatpush1.bf16.msra.mxu1 %v2256_v11  ;;  %1610 = vmatprep.subr.bf16.mxu0 %v2257_v12  ;;  %v2271_v21 = vld [vmem:[%s3485_s1 + $0x244] ss:$16 sps:$4 sm:$0xff]   ;;  %v2274_v23 = vld [vmem:[%s3485_s1 + $0x240] ss:$16 sps:$4 sm:$0xff]  }
   0xd   :  { %1651 = vmatprep.subr.bf16.mxu1 %v2259_v13  ;;  %v2275_v24 = vld [vmem:[%s3485_s1 + $0x24] ss:$16 sps:$4 sm:$0xff]   ;;  %v2279_v26 = vld [vmem:[%s3485_s1 + $0x20] ss:$16 sps:$4 sm:$0xff]  }
   0xe   :  { %v2277_v25 = vld [vmem:[%s3485_s1 + $0x224] ss:$16 sps:$4 sm:$0xff]   ;;  %v2280_v27 = vld [vmem:[%s3485_s1 + $0x220] ss:$16 sps:$4 sm:$0xff]  }
   0xf   :  { %1611 = vmatpush1.bf16.msra.mxu0 %v2261_v14  ;;  %v2281_v28 = vld [vmem:[%s3485_s1 + $0x4] ss:$16 sps:$4 sm:$0xff]   ;;  %v2285_v30 = vld [vmem:[%s3485_s1] ss:$16 sps:$4 sm:$0xff]  }
  0x10   :  { %1652 = vmatpush1.bf16.msra.mxu1 %v2262_v15  ;;  %1612 = vmatprep.subr.bf16.mxu0 %v2263_v16  ;;  %v2283_v29 = vld [vmem:[%s3485_s1 + $0x204] ss:$16 sps:$4 sm:$0xff]   ;;  %v2286_v31 = vld [vmem:[%s3485_s1 + $0x200] ss:$16 sps:$4 sm:$0xff]  }
  0x11   :  { %1653 = vmatprep.subr.bf16.mxu1 %v2265_v17  ;;  %v2287_v32 = vld [vmem:[%s3485_s1 + $0x1e4] ss:$16 sps:$4 sm:$0xff]   ;;  %v2291_v34 = vld [vmem:[%s3485_s1 + $0x1e0] ss:$16 sps:$4 sm:$0xff]  }
  0x12   :  { %v2289_v33 = vld [vmem:[%s3485_s1 + $0x3e4] ss:$16 sps:$4 sm:$0xff]   ;;  %v2292_v35 = vld [vmem:[%s3485_s1 + $0x3e0] ss:$16 sps:$4 sm:$0xff]  }
  0x13   :  { %1613 = vmatpush1.bf16.msra.mxu0 %v2267_v18  ;;  %v2293_v36 = vld [vmem:[%s3485_s1 + $0x1c4] ss:$16 sps:$4 sm:$0xff]   ;;  %v2297_v38 = vld [vmem:[%s3485_s1 + $0x1c0] ss:$16 sps:$4 sm:$0xff]  }
  0x14   :  { %1654 = vmatpush1.bf16.msra.mxu1 %v2268_v19  ;;  %1614 = vmatprep.subr.bf16.mxu0 %v2269_v20  ;;  %v2295_v37 = vld [vmem:[%s3485_s1 + $0x3c4] ss:$16 sps:$4 sm:$0xff]   ;;  %v2298_v39 = vld [vmem:[%s3485_s1 + $0x3c0] ss:$16 sps:$4 sm:$0xff]  }
  0x15   :  { %1655 = vmatprep.subr.bf16.mxu1 %v2271_v21  ;;  %v2299_v40 = vld [vmem:[%s3485_s1 + $0x1a4] ss:$16 sps:$4 sm:$0xff]   ;;  %v2303_v42 = vld [vmem:[%s3485_s1 + $0x1a0] ss:$16 sps:$4 sm:$0xff]  }
  0x16   :  { %v2301_v41 = vld [vmem:[%s3485_s1 + $0x3a4] ss:$16 sps:$4 sm:$0xff]   ;;  %v2304_v43 = vld [vmem:[%s3485_s1 + $0x3a0] ss:$16 sps:$4 sm:$0xff]  }
  0x17   :  { %1615 = vmatpush1.bf16.msra.mxu0 %v2273_v22  ;;  %v2305_v44 = vld [vmem:[%s3485_s1 + $0x184] ss:$16 sps:$4 sm:$0xff]   ;;  %v2309_v49 = vld [vmem:[%s3485_s1 + $0x180] ss:$16 sps:$4 sm:$0xff]  }
  0x18   :  { %1656 = vmatpush1.bf16.msra.mxu1 %v2274_v23  ;;  %1616 = vmatprep.subr.bf16.mxu0 %v2275_v24  ;;  %v2307_v45 = vld [vmem:[%s3485_s1 + $0x384] ss:$16 sps:$4 sm:$0xff]   ;;  %v2310_v50 = vld [vmem:[%s3485_s1 + $0x380] ss:$16 sps:$4 sm:$0xff]  }
  0x19   :  { %1657 = vmatprep.subr.bf16.mxu1 %v2277_v25  ;;  %v14_v46 = vld [vmem:[%s3486_s0] sm:$0xff] }
  0x1a   :  { %v2793_v47 = vcombine.high %v14_v46, %v14_v46  ;;  %v2311_v52 = vld [vmem:[%s3485_s1 + $0x164] ss:$16 sps:$4 sm:$0xff]   ;;  %v2315_v54 = vld [vmem:[%s3485_s1 + $0x160] ss:$16 sps:$4 sm:$0xff]   ;;  %v2862_v6 = vcombine.low %v14_v46, %v14_v46 }
  0x1b   :  { %1617 = vmatpush1.bf16.msra.mxu0 %v2279_v26  ;;  %v2313_v53 = vld [vmem:[%s3485_s1 + $0x364] ss:$16 sps:$4 sm:$0xff]   ;;  %v2316_v55 = vld [vmem:[%s3485_s1 + $0x360] ss:$16 sps:$4 sm:$0xff]  }
  0x1c   :  { %1658 = vmatpush1.bf16.msra.mxu1 %v2280_v27  ;;  %1618 = vmatprep.subr.bf16.mxu0 %v2281_v28  ;;  %v2317_v56 = vld [vmem:[%s3485_s1 + $0x144] ss:$16 sps:$4 sm:$0xff]   ;;  %v2321_v58 = vld [vmem:[%s3485_s1 + $0x140] ss:$16 sps:$4 sm:$0xff]  }
  0x1d   :  { %1659 = vmatprep.subr.bf16.mxu1 %v2283_v29  ;;  %1636 = vmatprep.mubr.bf16.mxu0 %v2793_v47  ;;  %v2319_v57 = vld [vmem:[%s3485_s1 + $0x344] ss:$16 sps:$4 sm:$0xff]   ;;  %v2322_v59 = vld [vmem:[%s3485_s1 + $0x340] ss:$16 sps:$4 sm:$0xff]  }
  0x1e   :  { %v2323_v60 = vld [vmem:[%s3485_s1 + $0x124] ss:$16 sps:$4 sm:$0xff]   ;;  %v2327_v62 = vld [vmem:[%s3485_s1 + $0x120] ss:$16 sps:$4 sm:$0xff]  }
  0x1f   :  { %1619 = vmatpush1.bf16.msra.mxu0 %v2285_v30  ;;  %v2325_v61 = vld [vmem:[%s3485_s1 + $0x324] ss:$16 sps:$4 sm:$0xff]   ;;  %v2328_v63 = vld [vmem:[%s3485_s1 + $0x320] ss:$16 sps:$4 sm:$0xff]  }
  0x20   :  { %1660 = vmatpush1.bf16.msra.mxu1 %v2286_v31  ;;  %1620 = vmatprep.subr.bf16.mxu0 %v2287_v32  ;;  %v2329_v0 = vld [vmem:[%s3485_s1 + $0x104] ss:$16 sps:$4 sm:$0xff]   ;;  %v2333_v2 = vld [vmem:[%s3485_s1 + $0x100] ss:$16 sps:$4 sm:$0xff]  }
  0x21   :  { %1661 = vmatprep.subr.bf16.mxu1 %v2289_v33  ;;  %v2331_v1 = vld [vmem:[%s3485_s1 + $0x304] ss:$16 sps:$4 sm:$0xff]   ;;  %v2334_v3 = vld [vmem:[%s3485_s1 + $0x300] ss:$16 sps:$4 sm:$0xff]   ;;  %v2948_v33 = vld [vmem:[%s3486_s0 + $0x18] sm:$0xff] }
  0x22   :  { %v2341_v4 = vld [vmem:[%s3485_s1 + $0x4e4] ss:$16 sps:$4 sm:$0xff]   ;;  %v2339_v8 = vld [vmem:[%s3485_s1 + $0x4e0] ss:$16 sps:$4 sm:$0xff]  }
  0x23   :  { %1621 = vmatpush2.bf16.msra.mxu0 %v2291_v34  ;;  %v2344_v5 = vld [vmem:[%s3485_s1 + $0x6e4] ss:$16 sps:$4 sm:$0xff]   ;;  %v2342_v9 = vld [vmem:[%s3485_s1 + $0x6e0] ss:$16 sps:$4 sm:$0xff]  }
  0x24   :  { %1662 = vmatpush2.bf16.msra.mxu1 %v2292_v35  ;;  %1622 = vmatprep.subr.bf16.mxu0 %v2293_v36  ;;  %v2347_v10 = vld [vmem:[%s3485_s1 + $0x4c4] ss:$16 sps:$4 sm:$0xff]   ;;  %v2345_v12 = vld [vmem:[%s3485_s1 + $0x4c0] ss:$16 sps:$4 sm:$0xff]  }
  0x25   :  { %1663 = vmatprep.subr.bf16.mxu1 %v2295_v37  ;;  %v2350_v11 = vld [vmem:[%s3485_s1 + $0x6c4] ss:$16 sps:$4 sm:$0xff]   ;;  %v2348_v13 = vld [vmem:[%s3485_s1 + $0x6c0] ss:$16 sps:$4 sm:$0xff]   ;;  %v2962_v37 = vcombine.high %v2948_v33, %v2948_v33 }
  0x26   :  { %v2353_v14 = vld [vmem:[%s3485_s1 + $0x4a4] ss:$16 sps:$4 sm:$0xff]   ;;  %v2351_v16 = vld [vmem:[%s3485_s1 + $0x4a0] ss:$16 sps:$4 sm:$0xff]  }
  0x27   :  { %1623 = vmatpush2.bf16.msra.mxu0 %v2297_v38  ;;  %v2356_v15 = vld [vmem:[%s3485_s1 + $0x6a4] ss:$16 sps:$4 sm:$0xff]   ;;  %v2354_v17 = vld [vmem:[%s3485_s1 + $0x6a0] ss:$16 sps:$4 sm:$0xff]  }
  0x28   :  { %1664 = vmatpush2.bf16.msra.mxu1 %v2298_v39  ;;  %1624 = vmatprep.subr.bf16.mxu0 %v2299_v40  ;;  %v2359_v18 = vld [vmem:[%s3485_s1 + $0x484] ss:$16 sps:$4 sm:$0xff]   ;;  %v2357_v20 = vld [vmem:[%s3485_s1 + $0x480] ss:$16 sps:$4 sm:$0xff]  }
  0x29   :  { %1665 = vmatprep.subr.bf16.mxu1 %v2301_v41  ;;  %v2362_v19 = vld [vmem:[%s3485_s1 + $0x684] ss:$16 sps:$4 sm:$0xff]   ;;  %v2360_v21 = vld [vmem:[%s3485_s1 + $0x680] ss:$16 sps:$4 sm:$0xff]  }
  0x2a   :  { %v2365_v22 = vld [vmem:[%s3485_s1 + $0x464] ss:$16 sps:$4 sm:$0xff]   ;;  %v2363_v24 = vld [vmem:[%s3485_s1 + $0x460] ss:$16 sps:$4 sm:$0xff]  }
  0x2b   :  { %1625 = vmatpush2.bf16.msra.mxu0 %v2303_v42  ;;  %v2368_v23 = vld [vmem:[%s3485_s1 + $0x664] ss:$16 sps:$4 sm:$0xff]   ;;  %v2366_v25 = vld [vmem:[%s3485_s1 + $0x660] ss:$16 sps:$4 sm:$0xff]  }
  0x2c   :  { %1666 = vmatpush2.bf16.msra.mxu1 %v2304_v43  ;;  %1626 = vmatprep.subr.bf16.mxu0 %v2305_v44  ;;  %v2371_v26 = vld [vmem:[%s3485_s1 + $0x444] ss:$16 sps:$4 sm:$0xff]   ;;  %v2369_v28 = vld [vmem:[%s3485_s1 + $0x440] ss:$16 sps:$4 sm:$0xff]  }
  0x2d   :  { %1667 = vmatprep.subr.bf16.mxu1 %v2307_v45  ;;  %v2374_v27 = vld [vmem:[%s3485_s1 + $0x644] ss:$16 sps:$4 sm:$0xff]   ;;  %v2372_v29 = vld [vmem:[%s3485_s1 + $0x640] ss:$16 sps:$4 sm:$0xff]  }
  0x2e   :  { %v2377_v30 = vld [vmem:[%s3485_s1 + $0x424] ss:$16 sps:$4 sm:$0xff]   ;;  %v2375_v34 = vld [vmem:[%s3485_s1 + $0x420] ss:$16 sps:$4 sm:$0xff]  }
  0x2f   :  { %1627 = vmatpush2.bf16.msra.mxu0 %v2309_v49  ;;  %v2380_v31 = vld [vmem:[%s3485_s1 + $0x624] ss:$16 sps:$4 sm:$0xff]   ;;  %v2378_v35 = vld [vmem:[%s3485_s1 + $0x620] ss:$16 sps:$4 sm:$0xff]  }
  0x30   :  { %1668 = vmatpush2.bf16.msra.mxu1 %v2310_v50  ;;  %1628 = vmatprep.subr.bf16.mxu0 %v2311_v52  ;;  %v2943_v32 = vld [vmem:[%s3486_s0 + $0x10] sm:$0xff] }
  0x31   :  { %1669 = vmatprep.subr.bf16.mxu1 %v2313_v53  ;;  %v2958_v36 = vcombine.high %v2943_v32, %v2943_v32  ;;  %v2383_v38 = vld [vmem:[%s3485_s1 + $0x404] ss:$16 sps:$4 sm:$0xff]   ;;  %v2381_v40 = vld [vmem:[%s3485_s1 + $0x400] ss:$16 sps:$4 sm:$0xff]  }
  0x32   :  { %v2386_v39 = vld [vmem:[%s3485_s1 + $0x604] ss:$16 sps:$4 sm:$0xff]   ;;  %v2384_v41 = vld [vmem:[%s3485_s1 + $0x600] ss:$16 sps:$4 sm:$0xff]  }
  0x33   :  { %1629 = vmatpush2.bf16.msra.mxu0 %v2315_v54  ;;  %v2389_v42 = vld [vmem:[%s3485_s1 + $0x5e4] ss:$16 sps:$4 sm:$0xff]   ;;  %v2387_v44 = vld [vmem:[%s3485_s1 + $0x5e0] ss:$16 sps:$4 sm:$0xff]  }
  0x34   :  { %1670 = vmatpush2.bf16.msra.mxu1 %v2316_v55  ;;  %1630 = vmatprep.subr.bf16.mxu0 %v2317_v56  ;;  %v2392_v43 = vld [vmem:[%s3485_s1 + $0x7e4] ss:$16 sps:$4 sm:$0xff]   ;;  %v2390_v45 = vld [vmem:[%s3485_s1 + $0x7e0] ss:$16 sps:$4 sm:$0xff]  }
  0x35   :  { %1671 = vmatprep.subr.bf16.mxu1 %v2319_v57  ;;  %v2395_v46 = vld [vmem:[%s3485_s1 + $0x5c4] ss:$16 sps:$4 sm:$0xff]   ;;  %v2393_v49 = vld [vmem:[%s3485_s1 + $0x5c0] ss:$16 sps:$4 sm:$0xff]  }
  0x36   :  { %v2398_v48 = vld [vmem:[%s3485_s1 + $0x7c4] ss:$16 sps:$4 sm:$0xff]   ;;  %v2396_v50 = vld [vmem:[%s3485_s1 + $0x7c0] ss:$16 sps:$4 sm:$0xff]  }
  0x37   :  { %1631 = vmatpush2.bf16.msra.mxu0 %v2321_v58  ;;  %v2401_v52 = vld [vmem:[%s3485_s1 + $0x5a4] ss:$16 sps:$4 sm:$0xff]   ;;  %v2399_v54 = vld [vmem:[%s3485_s1 + $0x5a0] ss:$16 sps:$4 sm:$0xff]  }
  0x38   :  { %1672 = vmatpush2.bf16.msra.mxu1 %v2322_v59  ;;  %1632 = vmatprep.subr.bf16.mxu0 %v2323_v60  ;;  %v2404_v53 = vld [vmem:[%s3485_s1 + $0x7a4] ss:$16 sps:$4 sm:$0xff]   ;;  %v2402_v55 = vld [vmem:[%s3485_s1 + $0x7a0] ss:$16 sps:$4 sm:$0xff]  }
  0x39   :  { %1673 = vmatprep.subr.bf16.mxu1 %v2325_v61  ;;  %v2407_v56 = vld [vmem:[%s3485_s1 + $0x584] ss:$16 sps:$4 sm:$0xff]   ;;  %v2405_v58 = vld [vmem:[%s3485_s1 + $0x580] ss:$16 sps:$4 sm:$0xff]  }
  0x3a   :  { %v2410_v57 = vld [vmem:[%s3485_s1 + $0x784] ss:$16 sps:$4 sm:$0xff]   ;;  %v2408_v59 = vld [vmem:[%s3485_s1 + $0x780] ss:$16 sps:$4 sm:$0xff]  }
  0x3b   :  { %1633 = vmatpush2.bf16.msra.mxu0 %v2327_v62  ;;  %v2413_v60 = vld [vmem:[%s3485_s1 + $0x564] ss:$16 sps:$4 sm:$0xff]   ;;  %v2411_v62 = vld [vmem:[%s3485_s1 + $0x560] ss:$16 sps:$4 sm:$0xff]  }
  0x3c   :  { %1674 = vmatpush2.bf16.msra.mxu1 %v2328_v63  ;;  %1634 = vmatprep.subr.bf16.mxu0 %v2329_v0  ;;  %v2416_v61 = vld [vmem:[%s3485_s1 + $0x764] ss:$16 sps:$4 sm:$0xff]   ;;  %v2414_v63 = vld [vmem:[%s3485_s1 + $0x760] ss:$16 sps:$4 sm:$0xff]  }
  0x3d   :  { %1675 = vmatprep.subr.bf16.mxu1 %v2331_v1  ;;  %v2419_v0 = vld [vmem:[%s3485_s1 + $0x544] ss:$16 sps:$4 sm:$0xff]  }
  0x3e   :  { %v2422_v1 = vld [vmem:[%s3485_s1 + $0x744] ss:$16 sps:$4 sm:$0xff]  }
  0x3f   :  { %1635 = vmatpush2.bf16.msra.mxu0 %v2333_v2  ;;  %v2417_v2 = vld [vmem:[%s3485_s1 + $0x540] ss:$16 sps:$4 sm:$0xff]  }
  0x40   :  { %1676 = vmatpush2.bf16.msra.mxu1 %v2334_v3  ;;  %1686 = vmatprep.subr.bf16.mxu0 %v2341_v4  ;;  %v2420_v3 = vld [vmem:[%s3485_s1 + $0x740] ss:$16 sps:$4 sm:$0xff]   ;;  %v2425_v4 = vld [vmem:[%s3485_s1 + $0x524] ss:$16 sps:$4 sm:$0xff]  }
  0x41   :  { %1727 = vmatprep.subr.bf16.mxu1 %v2344_v5  ;;  %v2428_v5 = vld [vmem:[%s3485_s1 + $0x724] ss:$16 sps:$4 sm:$0xff]  }
  0x42   :  { %1637 = vmatmul.mubr.bf16.vlgmr.msra.gmra.mxu0 %v2862_v6 }
  0x43   :  { %1678 = vmatmul.mubr.bf16.vlgmr.msra.gmra.mxu1 %v2864_v7  ;;  %1687 = vmatpush1.bf16.msra.mxu0 %v2339_v8  ;;  %v2423_v8 = vld [vmem:[%s3485_s1 + $0x520] ss:$16 sps:$4 sm:$0xff]  }
  0x44   :  { %1728 = vmatpush1.bf16.msra.mxu1 %v2342_v9  ;;  %1688 = vmatprep.subr.bf16.mxu0 %v2347_v10  ;;  %v2426_v9 = vld [vmem:[%s3485_s1 + $0x720] ss:$16 sps:$4 sm:$0xff]   ;;  %v2431_v10 = vld [vmem:[%s3485_s1 + $0x504] ss:$16 sps:$4 sm:$0xff]  }
  0x45   :  { %1729 = vmatprep.subr.bf16.mxu1 %v2350_v11  ;;  %1718 = vmatprep.mubr.bf16.mxu0 %v2958_v36  ;;  %v2434_v11 = vld [vmem:[%s3485_s1 + $0x704] ss:$16 sps:$4 sm:$0xff]  }
  0x46   :  { %1759 = vmatprep.mubr.bf16.mxu1 %v2962_v37 }
  0x47   :  { %1689 = vmatpush1.bf16.msra.mxu0 %v2345_v12  ;;  %v2429_v12 = vld [vmem:[%s3485_s1 + $0x500] ss:$16 sps:$4 sm:$0xff]  }
  0x48   :  { %1730 = vmatpush1.bf16.msra.mxu1 %v2348_v13  ;;  %1690 = vmatprep.subr.bf16.mxu0 %v2353_v14  ;;  %v2432_v13 = vld [vmem:[%s3485_s1 + $0x700] ss:$16 sps:$4 sm:$0xff]   ;;  %v2441_v14 = vld [vmem:[%s3485_s1 + $0xec] ss:$16 sps:$4 sm:$0xff]  }
  0x49   :  { %1731 = vmatprep.subr.bf16.mxu1 %v2356_v15  ;;  %v2444_v15 = vld [vmem:[%s3485_s1 + $0x2ec] ss:$16 sps:$4 sm:$0xff]  }
  0x4b   :  { %1691 = vmatpush1.bf16.msra.mxu0 %v2351_v16  ;;  %v3082_v16 = vcombine.low %v2943_v32, %v2943_v32  ;;  %v2463_v32 = vld [vmem:[%s3485_s1 + $0x68] ss:$16 sps:$4 sm:$0xff]  }
  0x4c   :  { %1732 = vmatpush1.bf16.msra.mxu1 %v2354_v17  ;;  %1692 = vmatprep.subr.bf16.mxu0 %v2359_v18  ;;  %v3086_v17 = vcombine.low %v2948_v33, %v2948_v33  ;;  %v2439_v18 = vld [vmem:[%s3485_s1 + $0xe8] ss:$16 sps:$4 sm:$0xff]  }
  0x4d   :  { %1733 = vmatprep.subr.bf16.mxu1 %v2362_v19  ;;  %v2442_v19 = vld [vmem:[%s3485_s1 + $0x2e8] ss:$16 sps:$4 sm:$0xff]  }
  0x4e   :  { %v2466_v33 = vld [vmem:[%s3485_s1 + $0x268] ss:$16 sps:$4 sm:$0xff]  }
  0x4f   :  { %1693 = vmatpush1.bf16.msra.mxu0 %v2357_v20  ;;  %v2447_v20 = vld [vmem:[%s3485_s1 + $0xcc] ss:$16 sps:$4 sm:$0xff]  }
  0x50   :  { %1734 = vmatpush1.bf16.msra.mxu1 %v2360_v21  ;;  %1694 = vmatprep.subr.bf16.mxu0 %v2365_v22  ;;  %v2450_v21 = vld [vmem:[%s3485_s1 + $0x2cc] ss:$16 sps:$4 sm:$0xff]   ;;  %v2445_v22 = vld [vmem:[%s3485_s1 + $0xc8] ss:$16 sps:$4 sm:$0xff]  }
  0x51   :  { %1735 = vmatprep.subr.bf16.mxu1 %v2368_v23  ;;  %v2448_v23 = vld [vmem:[%s3485_s1 + $0x2c8] ss:$16 sps:$4 sm:$0xff]  }
  0x53   :  { %1695 = vmatpush1.bf16.msra.mxu0 %v2363_v24  ;;  %v2453_v24 = vld [vmem:[%s3485_s1 + $0xac] ss:$16 sps:$4 sm:$0xff]  }
  0x54   :  { %1736 = vmatpush1.bf16.msra.mxu1 %v2366_v25  ;;  %1696 = vmatprep.subr.bf16.mxu0 %v2371_v26  ;;  %v2456_v25 = vld [vmem:[%s3485_s1 + $0x2ac] ss:$16 sps:$4 sm:$0xff]   ;;  %v2451_v26 = vld [vmem:[%s3485_s1 + $0xa8] ss:$16 sps:$4 sm:$0xff]  }
  0x55   :  { %1737 = vmatprep.subr.bf16.mxu1 %v2374_v27  ;;  %v2454_v27 = vld [vmem:[%s3485_s1 + $0x2a8] ss:$16 sps:$4 sm:$0xff]  }
  0x57   :  { %1697 = vmatpush1.bf16.msra.mxu0 %v2369_v28  ;;  %v2459_v28 = vld [vmem:[%s3485_s1 + $0x8c] ss:$16 sps:$4 sm:$0xff]  }
  0x58   :  { %1738 = vmatpush1.bf16.msra.mxu1 %v2372_v29  ;;  %1698 = vmatprep.subr.bf16.mxu0 %v2377_v30  ;;  %v2460_v29 = vld [vmem:[%s3485_s1 + $0x288] ss:$16 sps:$4 sm:$0xff]   ;;  %v2465_v30 = vld [vmem:[%s3485_s1 + $0x6c] ss:$16 sps:$4 sm:$0xff]  }
  0x59   :  { %1739 = vmatprep.subr.bf16.mxu1 %v2380_v31  ;;  %v2468_v31 = vld [vmem:[%s3485_s1 + $0x26c] ss:$16 sps:$4 sm:$0xff]  }
  0x5b   :  { %1699 = vmatpush1.bf16.msra.mxu0 %v2375_v34  ;;  %v2471_v34 = vld [vmem:[%s3485_s1 + $0x4c] ss:$16 sps:$4 sm:$0xff]  }
  0x5c   :  { %1740 = vmatpush1.bf16.msra.mxu1 %v2378_v35  ;;  %1700 = vmatprep.subr.bf16.mxu0 %v2383_v38  ;;  %v2474_v35 = vld [vmem:[%s3485_s1 + $0x24c] ss:$16 sps:$4 sm:$0xff]   ;;  %v2469_v38 = vld [vmem:[%s3485_s1 + $0x48] ss:$16 sps:$4 sm:$0xff]  }
  0x5d   :  { %1741 = vmatprep.subr.bf16.mxu1 %v2386_v39  ;;  %v2472_v39 = vld [vmem:[%s3485_s1 + $0x248] ss:$16 sps:$4 sm:$0xff]  }
  0x5f   :  { %1701 = vmatpush1.bf16.msra.mxu0 %v2381_v40  ;;  %v2477_v40 = vld [vmem:[%s3485_s1 + $0x2c] ss:$16 sps:$4 sm:$0xff]  }
  0x60   :  { %1742 = vmatpush1.bf16.msra.mxu1 %v2384_v41  ;;  %1702 = vmatprep.subr.bf16.mxu0 %v2389_v42  ;;  %v2480_v41 = vld [vmem:[%s3485_s1 + $0x22c] ss:$16 sps:$4 sm:$0xff]   ;;  %v2475_v42 = vld [vmem:[%s3485_s1 + $0x28] ss:$16 sps:$4 sm:$0xff]  }
  0x61   :  { %1743 = vmatprep.subr.bf16.mxu1 %v2392_v43  ;;  %v2478_v43 = vld [vmem:[%s3485_s1 + $0x228] ss:$16 sps:$4 sm:$0xff]  }
  0x63   :  { %1703 = vmatpush2.bf16.msra.mxu0 %v2387_v44  ;;  %v2483_v44 = vld [vmem:[%s3485_s1 + $0xc] ss:$16 sps:$4 sm:$0xff]  }
  0x64   :  { %1744 = vmatpush2.bf16.msra.mxu1 %v2390_v45  ;;  %1704 = vmatprep.subr.bf16.mxu0 %v2395_v46  ;;  %v2486_v45 = vld [vmem:[%s3485_s1 + $0x20c] ss:$16 sps:$4 sm:$0xff]   ;;  %v2481_v46 = vld [vmem:[%s3485_s1 + $0x8] ss:$16 sps:$4 sm:$0xff]  }
  0x65   :  { %1745 = vmatprep.subr.bf16.mxu1 %v2398_v48  ;;  %v2484_v48 = vld [vmem:[%s3485_s1 + $0x208] ss:$16 sps:$4 sm:$0xff]  }
  0x67   :  { %1705 = vmatpush2.bf16.msra.mxu0 %v2393_v49  ;;  %v2489_v49 = vld [vmem:[%s3485_s1 + $0x1ec] ss:$16 sps:$4 sm:$0xff]  }
  0x68   :  { %1746 = vmatpush2.bf16.msra.mxu1 %v2396_v50  ;;  %1706 = vmatprep.subr.bf16.mxu0 %v2401_v52  ;;  %v2492_v50 = vld [vmem:[%s3485_s1 + $0x3ec] ss:$16 sps:$4 sm:$0xff]   ;;  %v2487_v52 = vld [vmem:[%s3485_s1 + $0x1e8] ss:$16 sps:$4 sm:$0xff]  }
  0x69   :  { %1747 = vmatprep.subr.bf16.mxu1 %v2404_v53  ;;  %v2490_v53 = vld [vmem:[%s3485_s1 + $0x3e8] ss:$16 sps:$4 sm:$0xff]  }
  0x6b   :  { %1707 = vmatpush2.bf16.msra.mxu0 %v2399_v54  ;;  %v2495_v54 = vld [vmem:[%s3485_s1 + $0x1cc] ss:$16 sps:$4 sm:$0xff]  }
  0x6c   :  { %1748 = vmatpush2.bf16.msra.mxu1 %v2402_v55  ;;  %1708 = vmatprep.subr.bf16.mxu0 %v2407_v56  ;;  %v2498_v55 = vld [vmem:[%s3485_s1 + $0x3cc] ss:$16 sps:$4 sm:$0xff]   ;;  %v2493_v56 = vld [vmem:[%s3485_s1 + $0x1c8] ss:$16 sps:$4 sm:$0xff]  }
  0x6d   :  { %1749 = vmatprep.subr.bf16.mxu1 %v2410_v57  ;;  %v2496_v57 = vld [vmem:[%s3485_s1 + $0x3c8] ss:$16 sps:$4 sm:$0xff]  }
  0x6f   :  { %1709 = vmatpush2.bf16.msra.mxu0 %v2405_v58  ;;  %v2501_v58 = vld [vmem:[%s3485_s1 + $0x1ac] ss:$16 sps:$4 sm:$0xff]  }
  0x70   :  { %1750 = vmatpush2.bf16.msra.mxu1 %v2408_v59  ;;  %1710 = vmatprep.subr.bf16.mxu0 %v2413_v60  ;;  %v2504_v59 = vld [vmem:[%s3485_s1 + $0x3ac] ss:$16 sps:$4 sm:$0xff]   ;;  %v2499_v60 = vld [vmem:[%s3485_s1 + $0x1a8] ss:$16 sps:$4 sm:$0xff]  }
  0x71   :  { %1751 = vmatprep.subr.bf16.mxu1 %v2416_v61  ;;  %v2502_v61 = vld [vmem:[%s3485_s1 + $0x3a8] ss:$16 sps:$4 sm:$0xff]  }
  0x73   :  { %1711 = vmatpush2.bf16.msra.mxu0 %v2411_v62  ;;  %v2507_v62 = vld [vmem:[%s3485_s1 + $0x18c] ss:$16 sps:$4 sm:$0xff]  }
  0x74   :  { %1752 = vmatpush2.bf16.msra.mxu1 %v2414_v63  ;;  %1712 = vmatprep.subr.bf16.mxu0 %v2419_v0  ;;  %v2510_v63 = vld [vmem:[%s3485_s1 + $0x38c] ss:$16 sps:$4 sm:$0xff]   ;;  %v2505_v0 = vld [vmem:[%s3485_s1 + $0x188] ss:$16 sps:$4 sm:$0xff]  }
  0x75   :  { %1753 = vmatprep.subr.bf16.mxu1 %v2422_v1  ;;  %v2508_v1 = vld [vmem:[%s3485_s1 + $0x388] ss:$16 sps:$4 sm:$0xff]  }
  0x77   :  { %1713 = vmatpush2.bf16.msra.mxu0 %v2417_v2  ;;  %v2513_v2 = vld [vmem:[%s3485_s1 + $0x16c] ss:$16 sps:$4 sm:$0xff]  }
  0x78   :  { %1754 = vmatpush2.bf16.msra.mxu1 %v2420_v3  ;;  %1714 = vmatprep.subr.bf16.mxu0 %v2425_v4  ;;  %v2516_v3 = vld [vmem:[%s3485_s1 + $0x36c] ss:$16 sps:$4 sm:$0xff]   ;;  %v2511_v4 = vld [vmem:[%s3485_s1 + $0x168] ss:$16 sps:$4 sm:$0xff]  }
  0x79   :  { %1755 = vmatprep.subr.bf16.mxu1 %v2428_v5  ;;  %v2514_v5 = vld [vmem:[%s3485_s1 + $0x368] ss:$16 sps:$4 sm:$0xff]  }
  0x7b   :  { %1715 = vmatpush2.bf16.msra.mxu0 %v2423_v8  ;;  %v2519_v8 = vld [vmem:[%s3485_s1 + $0x14c] ss:$16 sps:$4 sm:$0xff]  }
  0x7c   :  { %1756 = vmatpush2.bf16.msra.mxu1 %v2426_v9  ;;  %1716 = vmatprep.subr.bf16.mxu0 %v2431_v10  ;;  %v2522_v9 = vld [vmem:[%s3485_s1 + $0x34c] ss:$16 sps:$4 sm:$0xff]   ;;  %v2517_v10 = vld [vmem:[%s3485_s1 + $0x148] ss:$16 sps:$4 sm:$0xff]  }
  0x7d   :  { %1757 = vmatprep.subr.bf16.mxu1 %v2434_v11  ;;  %v2520_v11 = vld [vmem:[%s3485_s1 + $0x348] ss:$16 sps:$4 sm:$0xff]  }
  0x7f   :  { %1717 = vmatpush2.bf16.msra.mxu0 %v2429_v12  ;;  %v2525_v12 = vld [vmem:[%s3485_s1 + $0x12c] ss:$16 sps:$4 sm:$0xff]  }
  0x80   :  { %1758 = vmatpush2.bf16.msra.mxu1 %v2432_v13  ;;  %1768 = vmatprep.subr.bf16.mxu0 %v2441_v14  ;;  %v2528_v13 = vld [vmem:[%s3485_s1 + $0x32c] ss:$16 sps:$4 sm:$0xff]   ;;  %v2523_v14 = vld [vmem:[%s3485_s1 + $0x128] ss:$16 sps:$4 sm:$0xff]  }
  0x81   :  { %1809 = vmatprep.subr.bf16.mxu1 %v2444_v15  ;;  %v2526_v15 = vld [vmem:[%s3485_s1 + $0x328] ss:$16 sps:$4 sm:$0xff]  }
  0x82   :  { %1719 = vmatmul.mubr.bf16.vlgmr.msra.gmra.mxu0 %v3082_v16 }
  0x83   :  { %1760 = vmatmul.mubr.bf16.vlgmr.msra.gmra.mxu1 %v3086_v17  ;;  %1769 = vmatpush1.bf16.msra.mxu0 %v2439_v18  ;;  %v2531_v18 = vld [vmem:[%s3485_s1 + $0x10c] ss:$16 sps:$4 sm:$0xff]  }
  0x84   :  { %1810 = vmatpush1.bf16.msra.mxu1 %v2442_v19  ;;  %1770 = vmatprep.subr.bf16.mxu0 %v2447_v20  ;;  %v2534_v19 = vld [vmem:[%s3485_s1 + $0x30c] ss:$16 sps:$4 sm:$0xff]   ;;  %v2529_v20 = vld [vmem:[%s3485_s1 + $0x108] ss:$16 sps:$4 sm:$0xff]  }
  0x85   :  { %1811 = vmatprep.subr.bf16.mxu1 %v2450_v21  ;;  %1800 = vmatprep.mubr.bf16.mxu0 %v2793_v47  ;;  %v2462_v47 = vld [vmem:[%s3485_s1 + $0x28c] ss:$16 sps:$4 sm:$0xff]   ;;  %v2532_v21 = vld [vmem:[%s3485_s1 + $0x308] ss:$16 sps:$4 sm:$0xff]  }
  0x86   :  { %1841 = vmatprep.mubr.bf16.mxu1 %v2804_v51  ;;  %v2457_v51 = vld [vmem:[%s3485_s1 + $0x88] ss:$16 sps:$4 sm:$0xff]  }
  0x87   :  { %1771 = vmatpush1.bf16.msra.mxu0 %v2445_v22  ;;  %v2537_v22 = vld [vmem:[%s3485_s1 + $0x4ec] ss:$16 sps:$4 sm:$0xff]  }
  0x88   :  { %1812 = vmatpush1.bf16.msra.mxu1 %v2448_v23  ;;  %1772 = vmatprep.subr.bf16.mxu0 %v2453_v24  ;;  %v2540_v23 = vld [vmem:[%s3485_s1 + $0x6ec] ss:$16 sps:$4 sm:$0xff]   ;;  %v2535_v24 = vld [vmem:[%s3485_s1 + $0x4e8] ss:$16 sps:$4 sm:$0xff]  }
  0x89   :  { %1813 = vmatprep.subr.bf16.mxu1 %v2456_v25  ;;  %v2538_v25 = vld [vmem:[%s3485_s1 + $0x6e8] ss:$16 sps:$4 sm:$0xff]  }
  0x8b   :  { %1773 = vmatpush1.bf16.msra.mxu0 %v2451_v26  ;;  %v2543_v26 = vld [vmem:[%s3485_s1 + $0x4cc] ss:$16 sps:$4 sm:$0xff]  }
  0x8c   :  { %1814 = vmatpush1.bf16.msra.mxu1 %v2454_v27  ;;  %1774 = vmatprep.subr.bf16.mxu0 %v2459_v28  ;;  %v2546_v27 = vld [vmem:[%s3485_s1 + $0x6cc] ss:$16 sps:$4 sm:$0xff]   ;;  %v2541_v28 = vld [vmem:[%s3485_s1 + $0x4c8] ss:$16 sps:$4 sm:$0xff]  }
  0x8d   :  { %1815 = vmatprep.subr.bf16.mxu1 %v2462_v47  ;;  %v2544_v47 = vld [vmem:[%s3485_s1 + $0x6c8] ss:$16 sps:$4 sm:$0xff]  }
  0x8f   :  { %1775 = vmatpush1.bf16.msra.mxu0 %v2457_v51  ;;  %v2549_v51 = vld [vmem:[%s3485_s1 + $0x4ac] ss:$16 sps:$4 sm:$0xff]  }
  0x90   :  { %1816 = vmatpush1.bf16.msra.mxu1 %v2460_v29  ;;  %1776 = vmatprep.subr.bf16.mxu0 %v2465_v30  ;;  %v2550_v29 = vld [vmem:[%s3485_s1 + $0x6a8] ss:$16 sps:$4 sm:$0xff]   ;;  %v2555_v30 = vld [vmem:[%s3485_s1 + $0x48c] ss:$16 sps:$4 sm:$0xff]  }
  0x91   :  { %1817 = vmatprep.subr.bf16.mxu1 %v2468_v31  ;;  %v2556_v31 = vld [vmem:[%s3485_s1 + $0x688] ss:$16 sps:$4 sm:$0xff]  }
  0x93   :  { %1777 = vmatpush1.bf16.msra.mxu0 %v2463_v32  ;;  %v2561_v32 = vld [vmem:[%s3485_s1 + $0x46c] ss:$16 sps:$4 sm:$0xff]  }
  0x94   :  { %1818 = vmatpush1.bf16.msra.mxu1 %v2466_v33  ;;  %1778 = vmatprep.subr.bf16.mxu0 %v2471_v34  ;;  %v2564_v33 = vld [vmem:[%s3485_s1 + $0x66c] ss:$16 sps:$4 sm:$0xff]   ;;  %v2559_v34 = vld [vmem:[%s3485_s1 + $0x468] ss:$16 sps:$4 sm:$0xff]  }
  0x95   :  { %1819 = vmatprep.subr.bf16.mxu1 %v2474_v35  ;;  %v2562_v35 = vld [vmem:[%s3485_s1 + $0x668] ss:$16 sps:$4 sm:$0xff]  }
  0x97   :  { %1779 = vmatpush1.bf16.msra.mxu0 %v2469_v38  ;;  %v2567_v38 = vld [vmem:[%s3485_s1 + $0x44c] ss:$16 sps:$4 sm:$0xff]  }
  0x98   :  { %1820 = vmatpush1.bf16.msra.mxu1 %v2472_v39  ;;  %1780 = vmatprep.subr.bf16.mxu0 %v2477_v40  ;;  %v2570_v39 = vld [vmem:[%s3485_s1 + $0x64c] ss:$16 sps:$4 sm:$0xff]   ;;  %v2565_v40 = vld [vmem:[%s3485_s1 + $0x448] ss:$16 sps:$4 sm:$0xff]  }
  0x99   :  { %1821 = vmatprep.subr.bf16.mxu1 %v2480_v41  ;;  %v2568_v41 = vld [vmem:[%s3485_s1 + $0x648] ss:$16 sps:$4 sm:$0xff]  }
  0x9b   :  { %1781 = vmatpush1.bf16.msra.mxu0 %v2475_v42  ;;  %v2573_v42 = vld [vmem:[%s3485_s1 + $0x42c] ss:$16 sps:$4 sm:$0xff]  }
  0x9c   :  { %1822 = vmatpush1.bf16.msra.mxu1 %v2478_v43  ;;  %1782 = vmatprep.subr.bf16.mxu0 %v2483_v44  ;;  %v2576_v43 = vld [vmem:[%s3485_s1 + $0x62c] ss:$16 sps:$4 sm:$0xff]   ;;  %v2571_v44 = vld [vmem:[%s3485_s1 + $0x428] ss:$16 sps:$4 sm:$0xff]  }
  0x9d   :  { %1823 = vmatprep.subr.bf16.mxu1 %v2486_v45  ;;  %v2574_v45 = vld [vmem:[%s3485_s1 + $0x628] ss:$16 sps:$4 sm:$0xff]  }
  0x9f   :  { %1783 = vmatpush1.bf16.msra.mxu0 %v2481_v46  ;;  %v2579_v46 = vld [vmem:[%s3485_s1 + $0x40c] ss:$16 sps:$4 sm:$0xff]  }
  0xa0   :  { %1824 = vmatpush1.bf16.msra.mxu1 %v2484_v48  ;;  %1784 = vmatprep.subr.bf16.mxu0 %v2489_v49  ;;  %v2582_v48 = vld [vmem:[%s3485_s1 + $0x60c] ss:$16 sps:$4 sm:$0xff]   ;;  %v2577_v49 = vld [vmem:[%s3485_s1 + $0x408] ss:$16 sps:$4 sm:$0xff]  }
  0xa1   :  { %1825 = vmatprep.subr.bf16.mxu1 %v2492_v50  ;;  %v2580_v50 = vld [vmem:[%s3485_s1 + $0x608] ss:$16 sps:$4 sm:$0xff]  }
  0xa3   :  { %1785 = vmatpush2.bf16.msra.mxu0 %v2487_v52  ;;  %v2585_v52 = vld [vmem:[%s3485_s1 + $0x5ec] ss:$16 sps:$4 sm:$0xff]  }
  0xa4   :  { %1826 = vmatpush2.bf16.msra.mxu1 %v2490_v53  ;;  %1786 = vmatprep.subr.bf16.mxu0 %v2495_v54  ;;  %v2588_v53 = vld [vmem:[%s3485_s1 + $0x7ec] ss:$16 sps:$4 sm:$0xff]   ;;  %v2583_v54 = vld [vmem:[%s3485_s1 + $0x5e8] ss:$16 sps:$4 sm:$0xff]  }
  0xa5   :  { %1827 = vmatprep.subr.bf16.mxu1 %v2498_v55  ;;  %v2586_v55 = vld [vmem:[%s3485_s1 + $0x7e8] ss:$16 sps:$4 sm:$0xff]  }
  0xa7   :  { %1787 = vmatpush2.bf16.msra.mxu0 %v2493_v56  ;;  %v2591_v56 = vld [vmem:[%s3485_s1 + $0x5cc] ss:$16 sps:$4 sm:$0xff]  }
  0xa8   :  { %1828 = vmatpush2.bf16.msra.mxu1 %v2496_v57  ;;  %1788 = vmatprep.subr.bf16.mxu0 %v2501_v58  ;;  %v2594_v57 = vld [vmem:[%s3485_s1 + $0x7cc] ss:$16 sps:$4 sm:$0xff]   ;;  %v2589_v58 = vld [vmem:[%s3485_s1 + $0x5c8] ss:$16 sps:$4 sm:$0xff]  }
  0xa9   :  { %1829 = vmatprep.subr.bf16.mxu1 %v2504_v59  ;;  %v2592_v59 = vld [vmem:[%s3485_s1 + $0x7c8] ss:$16 sps:$4 sm:$0xff]  }
  0xab   :  { %1789 = vmatpush2.bf16.msra.mxu0 %v2499_v60  ;;  %v2597_v60 = vld [vmem:[%s3485_s1 + $0x5ac] ss:$16 sps:$4 sm:$0xff]  }
  0xac   :  { %1830 = vmatpush2.bf16.msra.mxu1 %v2502_v61  ;;  %1790 = vmatprep.subr.bf16.mxu0 %v2507_v62  ;;  %v2600_v61 = vld [vmem:[%s3485_s1 + $0x7ac] ss:$16 sps:$4 sm:$0xff]   ;;  %v2595_v62 = vld [vmem:[%s3485_s1 + $0x5a8] ss:$16 sps:$4 sm:$0xff]  }
  0xad   :  { %1831 = vmatprep.subr.bf16.mxu1 %v2510_v63  ;;  %v2598_v63 = vld [vmem:[%s3485_s1 + $0x7a8] ss:$16 sps:$4 sm:$0xff]  }
  0xaf   :  { %1791 = vmatpush2.bf16.msra.mxu0 %v2505_v0  ;;  %v2603_v0 = vld [vmem:[%s3485_s1 + $0x58c] ss:$16 sps:$4 sm:$0xff]  }
  0xb0   :  { %1832 = vmatpush2.bf16.msra.mxu1 %v2508_v1  ;;  %1792 = vmatprep.subr.bf16.mxu0 %v2513_v2  ;;  %v2606_v1 = vld [vmem:[%s3485_s1 + $0x78c] ss:$16 sps:$4 sm:$0xff]   ;;  %v2601_v2 = vld [vmem:[%s3485_s1 + $0x588] ss:$16 sps:$4 sm:$0xff]  }
  0xb1   :  { %1833 = vmatprep.subr.bf16.mxu1 %v2516_v3  ;;  %v2604_v3 = vld [vmem:[%s3485_s1 + $0x788] ss:$16 sps:$4 sm:$0xff]  }
  0xb3   :  { %1793 = vmatpush2.bf16.msra.mxu0 %v2511_v4  ;;  %v2609_v4 = vld [vmem:[%s3485_s1 + $0x56c] ss:$16 sps:$4 sm:$0xff]  }
  0xb4   :  { %1834 = vmatpush2.bf16.msra.mxu1 %v2514_v5  ;;  %1794 = vmatprep.subr.bf16.mxu0 %v2519_v8  ;;  %v2612_v5 = vld [vmem:[%s3485_s1 + $0x76c] ss:$16 sps:$4 sm:$0xff]   ;;  %v2607_v8 = vld [vmem:[%s3485_s1 + $0x568] ss:$16 sps:$4 sm:$0xff]  }
  0xb5   :  { %1835 = vmatprep.subr.bf16.mxu1 %v2522_v9  ;;  %v2610_v9 = vld [vmem:[%s3485_s1 + $0x768] ss:$16 sps:$4 sm:$0xff]  }
  0xb7   :  { %1795 = vmatpush2.bf16.msra.mxu0 %v2517_v10  ;;  %v2615_v10 = vld [vmem:[%s3485_s1 + $0x54c] ss:$16 sps:$4 sm:$0xff]  }
  0xb8   :  { %1836 = vmatpush2.bf16.msra.mxu1 %v2520_v11  ;;  %1796 = vmatprep.subr.bf16.mxu0 %v2525_v12  ;;  %v2618_v11 = vld [vmem:[%s3485_s1 + $0x74c] ss:$16 sps:$4 sm:$0xff]   ;;  %v2613_v12 = vld [vmem:[%s3485_s1 + $0x548] ss:$16 sps:$4 sm:$0xff]  }
  0xb9   :  { %1837 = vmatprep.subr.bf16.mxu1 %v2528_v13  ;;  %v2616_v13 = vld [vmem:[%s3485_s1 + $0x748] ss:$16 sps:$4 sm:$0xff]  }
  0xbb   :  { %1797 = vmatpush2.bf16.msra.mxu0 %v2523_v14  ;;  %v2621_v14 = vld [vmem:[%s3485_s1 + $0x52c] ss:$16 sps:$4 sm:$0xff]  }
  0xbc   :  { %1838 = vmatpush2.bf16.msra.mxu1 %v2526_v15  ;;  %1798 = vmatprep.subr.bf16.mxu0 %v2531_v18  ;;  %v2624_v15 = vld [vmem:[%s3485_s1 + $0x72c] ss:$16 sps:$4 sm:$0xff]   ;;  %v2619_v18 = vld [vmem:[%s3485_s1 + $0x528] ss:$16 sps:$4 sm:$0xff]  }
  0xbd   :  { %1839 = vmatprep.subr.bf16.mxu1 %v2534_v19  ;;  %v2622_v19 = vld [vmem:[%s3485_s1 + $0x728] ss:$16 sps:$4 sm:$0xff]  }
  0xbf   :  { %1799 = vmatpush2.bf16.msra.mxu0 %v2529_v20  ;;  %v2627_v20 = vld [vmem:[%s3485_s1 + $0x50c] ss:$16 sps:$4 sm:$0xff]  }
  0xc0   :  { %1840 = vmatpush2.bf16.msra.mxu1 %v2532_v21  ;;  %1850 = vmatprep.subr.bf16.mxu0 %v2537_v22  ;;  %v2630_v21 = vld [vmem:[%s3485_s1 + $0x70c] ss:$16 sps:$4 sm:$0xff]   ;;  %v2625_v22 = vld [vmem:[%s3485_s1 + $0x508] ss:$16 sps:$4 sm:$0xff]  }
  0xc1   :  { %1891 = vmatprep.subr.bf16.mxu1 %v2540_v23  ;;  %v2628_v23 = vld [vmem:[%s3485_s1 + $0x708] ss:$16 sps:$4 sm:$0xff]  }
  0xc2   :  { %1801 = vmatmul.mubr.bf16.vlgmr.msra.gmra.mxu0 %v2862_v6  ;;  %v2552_v6 = vld [vmem:[%s3485_s1 + $0x6ac] ss:$16 sps:$4 sm:$0xff]  }
  0xc3   :  { %1842 = vmatmul.mubr.bf16.vlgmr.msra.gmra.mxu1 %v2864_v7  ;;  %1851 = vmatpush1.bf16.msra.mxu0 %v2535_v24  ;;  %v2547_v7 = vld [vmem:[%s3485_s1 + $0x4a8] ss:$16 sps:$4 sm:$0xff]  }
  0xc4   :  { %1892 = vmatpush1.bf16.msra.mxu1 %v2538_v25  ;;  %1852 = vmatprep.subr.bf16.mxu0 %v2543_v26 }
  0xc5   :  { %1893 = vmatprep.subr.bf16.mxu1 %v2546_v27  ;;  %1882 = vmatprep.mubr.bf16.mxu0 %v2958_v36  ;;  %v2558_v36 = vld [vmem:[%s3485_s1 + $0x68c] ss:$16 sps:$4 sm:$0xff]  }
  0xc6   :  { %1923 = vmatprep.mubr.bf16.mxu1 %v2962_v37  ;;  %v2553_v37 = vld [vmem:[%s3485_s1 + $0x488] ss:$16 sps:$4 sm:$0xff]  }
  0xc7   :  { %1853 = vmatpush1.bf16.msra.mxu0 %v2541_v28 }
  0xc8   :  { %1894 = vmatpush1.bf16.msra.mxu1 %v2544_v47  ;;  %1854 = vmatprep.subr.bf16.mxu0 %v2549_v51 }
  0xc9   :  { %1895 = vmatprep.subr.bf16.mxu1 %v2552_v6 }
  0xcb   :  { %1855 = vmatpush1.bf16.msra.mxu0 %v2547_v7  ;;  %v276_v7 = vlaneseq }
  0xcc   :  { %1896 = vmatpush1.bf16.msra.mxu1 %v2550_v29  ;;  %1856 = vmatprep.subr.bf16.mxu0 %v2555_v30 }
  0xcd   :  { %1897 = vmatprep.subr.bf16.mxu1 %v2558_v36  ;;  %v277_v29 = vshrl.u32 %v276_v7, 7  ;;  %v274_v36 = vld [vmem:[%s3487_s2] sm:$0xf] }
  0xcf   :  { %1857 = vmatpush1.bf16.msra.mxu0 %v2553_v37  ;;  %v278_v30 = vsub.s32 0, %v277_v29  ;;  %v282_v37 = vsub.s32 1, %v277_v29 }
  0xd0   :  { %1898 = vmatpush1.bf16.msra.mxu1 %v2556_v31  ;;  %1858 = vmatprep.subr.bf16.mxu0 %v2561_v32 }
  0xd1   :  { %1899 = vmatprep.subr.bf16.mxu1 %v2564_v33  ;;  %v279_v31 = vrot.slane %v274_v36, %v278_v30  ;;  %v283_v32 = vrot.slane %v274_v36, %v282_v37 }
  0xd3   :  { %1859 = vmatpush1.bf16.msra.mxu0 %v2559_v34 }
  0xd4   :  { %1900 = vmatpush1.bf16.msra.mxu1 %v2562_v35  ;;  %1860 = vmatprep.subr.bf16.mxu0 %v2567_v38 }
  0xd5   :  { %1901 = vmatprep.subr.bf16.mxu1 %v2570_v39 }
  0xd7   :  { %1861 = vmatpush1.bf16.msra.mxu0 %v2565_v40 }
  0xd8   :  { %1902 = vmatpush1.bf16.msra.mxu1 %v2568_v41  ;;  %1862 = vmatprep.subr.bf16.mxu0 %v2573_v42 }
  0xd9   :  { %1903 = vmatprep.subr.bf16.mxu1 %v2576_v43 }
  0xdb   :  { %1863 = vmatpush1.bf16.msra.mxu0 %v2571_v44 }
  0xdc   :  { %1904 = vmatpush1.bf16.msra.mxu1 %v2574_v45  ;;  %1864 = vmatprep.subr.bf16.mxu0 %v2579_v46 }
  0xdd   :  { %1905 = vmatprep.subr.bf16.mxu1 %v2582_v48 }
  0xdf   :  { %1865 = vmatpush1.bf16.msra.mxu0 %v2577_v49 }
  0xe0   :  { %1906 = vmatpush1.bf16.msra.mxu1 %v2580_v50  ;;  %1866 = vmatprep.subr.bf16.mxu0 %v2585_v52  ;;  %v2631_v50 = vmov 0.0  }
  0xe1   :  { %1907 = vmatprep.subr.bf16.mxu1 %v2588_v53 }
  0xe3   :  { %1867 = vmatpush2.bf16.msra.mxu0 %v2583_v54 }
  0xe4   :  { %1908 = vmatpush2.bf16.msra.mxu1 %v2586_v55  ;;  %1868 = vmatprep.subr.bf16.mxu0 %v2591_v56 }
  0xe5   :  { %1909 = vmatprep.subr.bf16.mxu1 %v2594_v57 }
  0xe7   :  { %1869 = vmatpush2.bf16.msra.mxu0 %v2589_v58 }
  0xe8   :  { %1910 = vmatpush2.bf16.msra.mxu1 %v2592_v59  ;;  %1870 = vmatprep.subr.bf16.mxu0 %v2597_v60 }
  0xe9   :  { %1911 = vmatprep.subr.bf16.mxu1 %v2600_v61 }
  0xeb   :  { %1871 = vmatpush2.bf16.msra.mxu0 %v2595_v62 }
  0xec   :  { %1912 = vmatpush2.bf16.msra.mxu1 %v2598_v63  ;;  %1872 = vmatprep.subr.bf16.mxu0 %v2603_v0  ;;  %v286_v63 = vsub.s32 2, %v277_v29  ;;  %v290_v0 = vsub.s32 3, %v277_v29 }
  0xed   :  { %1913 = vmatprep.subr.bf16.mxu1 %v2606_v1 }
  0xee   :  { %v287_v1 = vrot.slane %v274_v36, %v286_v63 }
  0xef   :  { %1873 = vmatpush2.bf16.msra.mxu0 %v2601_v2  ;;  %v291_v2 = vrot.slane %v274_v36, %v290_v0 }
  0xf0   :  { %1914 = vmatpush2.bf16.msra.mxu1 %v2604_v3  ;;  %1874 = vmatprep.subr.bf16.mxu0 %v2609_v4 }
  0xf1   :  { %1915 = vmatprep.subr.bf16.mxu1 %v2612_v5 }
  0xf3   :  { %1875 = vmatpush2.bf16.msra.mxu0 %v2607_v8 }
  0xf4   :  { %1916 = vmatpush2.bf16.msra.mxu1 %v2610_v9  ;;  %1876 = vmatprep.subr.bf16.mxu0 %v2615_v10 }
  0xf5   :  { %1917 = vmatprep.subr.bf16.mxu1 %v2618_v11 }
  0xf7   :  { %1877 = vmatpush2.bf16.msra.mxu0 %v2613_v12 }
  0xf8   :  { %1918 = vmatpush2.bf16.msra.mxu1 %v2616_v13  ;;  %1878 = vmatprep.subr.bf16.mxu0 %v2621_v14 }
  0xf9   :  { %1919 = vmatprep.subr.bf16.mxu1 %v2624_v15 }
  0xfb   :  { %1879 = vmatpush2.bf16.msra.mxu0 %v2619_v18 }
  0xfc   :  { %1920 = vmatpush2.bf16.msra.mxu1 %v2622_v19  ;;  %1880 = vmatprep.subr.bf16.mxu0 %v2627_v20 }
  0xfd   :  { %1921 = vmatprep.subr.bf16.mxu1 %v2630_v21 }
  0xff   :  { %1881 = vmatpush2.bf16.msra.mxu0 %v2625_v22 }
 0x100   :  { %1922 = vmatpush2.bf16.msra.mxu1 %v2628_v23 }
 0x102   :  { %v1638_v24 = vpop.f32.mrf.mxu0  ;;  %1883 = vmatmul.mubr.bf16.vlgmr.msra.gmra.mxu0 %v3082_v16 }
 0x103   :  { %v1679_v25 = vpop.f32.mrf.mxu1  ;;  %1924 = vmatmul.mubr.bf16.vlgmr.msra.gmra.mxu1 %v3086_v17  ;;  %v1639_v33 = vadd.f32 %v1638_v24, %v279_v31 }
 0x104   :  { %v1640_v26 = vpop.f32.mrf.mxu0 }
 0x105   :  { %v1681_v27 = vpop.f32.mrf.mxu1  ;;  %v1641_v16 = vadd.f32 %v1640_v26, %v283_v32  ;;  %v1680_v34 = vadd.f32 %v1679_v25, %v1639_v33 }
 0x106   :  { %v1642_v28 = vpop.f32.mrf.mxu0 }
 0x107   :  { %v1683_v47 = vpop.f32.mrf.mxu1  ;;  %v1682_v38 = vadd.f32 %v1681_v27, %v1641_v16 }
 0x108   :  { %v1643_v51 = vpop.f32.mrf.mxu0 }
 0x109   :  { %v1684_v6 = vpop.f32.mrf.mxu1 }
 0x142   :  { %v1720_v17 = vpop.f32.mrf.mxu0 }
 0x143   :  { %v1761_v35 = vpop.f32.mrf.mxu1  ;;  %v1721_v39 = vadd.f32 %v1720_v17, %v1680_v34 }
 0x144   :  { %v1722_v40 = vpop.f32.mrf.mxu0 }
 0x145   :  { %v1763_v41 = vpop.f32.mrf.mxu1  ;;  %v1762_v42 = vadd.f32 %v1761_v35, %v1721_v39  ;;  %v1723_v43 = vadd.f32 %v1722_v40, %v1682_v38 }
 0x146   :  { %v1724_v44 = vpop.f32.mrf.mxu0 }
 0x147   :  { %v1765_v45 = vpop.f32.mrf.mxu1  ;;  %vm1932_vm0 = vcmp.gt.f32.partialorder %v1762_v42, 0.2  ;;  %v1764_v46 = vadd.f32 %v1763_v41, %v1723_v43 }
 0x148   :  { %v1725_v48 = vpop.f32.mrf.mxu0  ;;  %v2230_v52 = vsel %vm1932_vm0, 1.0, %v2631_v50 }
 0x149   :  { %v1766_v49 = vpop.f32.mrf.mxu1  ;;  %vm1933_vm1 = vcmp.gt.f32.partialorder %v1764_v46, 0.2 }
 0x14a   :  { %v2231_v53 = vsel %vm1933_vm1, 1.0, %v2631_v50 }
 0x14b   :  { %v2236_v54 = vpack.c.bf16 %v2231_v53, %v2230_v52 }
 0x14d   :  { %1960 = vst [vmem:[%s3488_s3] sm:$0xff] %v2236_v54 }
 0x182   :  { %v1802_v55 = vpop.f32.mrf.mxu0 }
 0x183   :  { %v1843_v56 = vpop.f32.mrf.mxu1  ;;  %v1803_v3 = vadd.f32 %v1802_v55, %v287_v1 }
 0x184   :  { %v1804_v57 = vpop.f32.mrf.mxu0 }
 0x185   :  { %v1845_v58 = vpop.f32.mrf.mxu1  ;;  %v1805_v4 = vadd.f32 %v1804_v57, %v291_v2  ;;  %v1844_v5 = vadd.f32 %v1843_v56, %v1803_v3 }
 0x186   :  { %v1806_v59 = vpop.f32.mrf.mxu0 }
 0x187   :  { %v1847_v60 = vpop.f32.mrf.mxu1  ;;  %v1846_v10 = vadd.f32 %v1845_v58, %v1805_v4 }
 0x188   :  { %v1807_v61 = vpop.f32.mrf.mxu0 }
 0x189   :  { %v1848_v62 = vpop.f32.mrf.mxu1 }
 0x1c2   :  { %v1884_v8 = vpop.f32.mrf.mxu0 }
 0x1c3   :  { %v1925_v9 = vpop.f32.mrf.mxu1  ;;  %v1885_v11 = vadd.f32 %v1884_v8, %v1844_v5 }
 0x1c4   :  { %v1886_v12 = vpop.f32.mrf.mxu0 }
 0x1c5   :  { %v1927_v13 = vpop.f32.mrf.mxu1  ;;  %v1926_v14 = vadd.f32 %v1925_v9, %v1885_v11  ;;  %v1887_v15 = vadd.f32 %v1886_v12, %v1846_v10 }
 0x1c6   :  { %v1888_v18 = vpop.f32.mrf.mxu0 }
 0x1c7   :  { %v1929_v19 = vpop.f32.mrf.mxu1  ;;  %vm1934_vm2 = vcmp.gt.f32.partialorder %v1926_v14, 0.2  ;;  %v1928_v20 = vadd.f32 %v1927_v13, %v1887_v15 }
 0x1c8   :  { %v1889_v21 = vpop.f32.mrf.mxu0  ;;  %v2232_v23 = vsel %vm1934_vm2, 1.0, %v2631_v50 }
 0x1c9   :  { %v1930_v22 = vpop.f32.mrf.mxu1  ;;  %vm1935_vm3 = vcmp.gt.f32.partialorder %v1928_v20, 0.2 }
 0x1ca   :  { %v2233_v24 = vsel %vm1935_vm3, 1.0, %v2631_v50 }
 0x1cb   :  { %v2237_v25 = vpack.c.bf16 %v2233_v24, %v2232_v23 }
 0x1cd   :  { %1961 = vst [vmem:[%s3488_s3 + $0x8] sm:$0xff] %v2237_v25 }

// kernel: _ee_step.19
= control target key start
LH: loop header
LB: loop body
LE: loop exit
PB: predicated region body
PF: predicated region fallthrough
CT: control target
= control target key end

     0   :  { %v708_v55 = vmov 0.0   ;;  %s886_s1 = inlined_call_operand.vmem [shape: bf16[256,128], index: 1, kind: input, shape index: {}]   ;;  %s887_s0 = inlined_call_operand.vmem [shape: bf16[1,128,256], index: 0, kind: input, shape index: {}]   ;;  %s888_s2 = inlined_call_operand.vmem [shape: f32[1,128], index: 2, kind: input, shape index: {}]   ;;  %s889_s3 = inlined_call_operand.vmem [shape: bf16[1,128,128], index: 3, kind: output, shape index: {}]  }
   0x1   :  { %v668_v0 = vld [vmem:[%s886_s1 + $0x78] sm:$0xff]   ;;  %v670_v2 = vld [vmem:[%s886_s1 + $0x70] sm:$0xff]   ;;  %v672_v4 = vld [vmem:[%s886_s1 + $0x68] sm:$0xff]  }
   0x2   :  { %v669_v1 = vld [vmem:[%s886_s1 + $0x38] sm:$0xff]   ;;  %587 = vmatprep.subr.bf16.mxu0 %v668_v0  ;;  %651 = vmatprep.subr.bf16.mxu1 %v668_v0  ;;  %v671_v3 = vld [vmem:[%s886_s1 + $0x30] sm:$0xff]   ;;  %v673_v5 = vld [vmem:[%s886_s1 + $0x28] sm:$0xff]  }
   0x3   :  { %588 = vmatpush3.bf16.msra.mxu0 %v669_v1  ;;  %659 = vmatpush3.bf16.msra.mxu1 %v669_v1  ;;  %v674_v6 = vld [vmem:[%s886_s1 + $0x60] sm:$0xff]   ;;  %v676_v8 = vld [vmem:[%s886_s1 + $0x58] sm:$0xff]   ;;  %v678_v10 = vld [vmem:[%s886_s1 + $0x50] sm:$0xff]  }
   0x4   :  { %589 = vmatprep.subr.bf16.mxu0 %v670_v2  ;;  %652 = vmatprep.subr.bf16.mxu1 %v670_v2  ;;  %v675_v7 = vld [vmem:[%s886_s1 + $0x20] sm:$0xff]   ;;  %v677_v9 = vld [vmem:[%s886_s1 + $0x18] sm:$0xff]   ;;  %v679_v13 = vld [vmem:[%s886_s1 + $0x10] sm:$0xff]  }
   0x5   :  { %v686_v11 = vld [vmem:[%s887_s0 + $0x4] ss:$8 sps:$4 sm:$0xff]   ;;  %v684_v18 = vld [vmem:[%s887_s0] ss:$8 sps:$4 sm:$0xff]   ;;  %v690_v20 = vld [vmem:[%s887_s0 + $0x14] ss:$8 sps:$4 sm:$0xff]  }
   0x6   :  { %v689_v12 = vld [vmem:[%s887_s0 + $0x44] ss:$8 sps:$4 sm:$0xff]   ;;  %278 = vmatprep.mubr.bf16.mxu0 %v686_v11  ;;  %v687_v19 = vld [vmem:[%s887_s0 + $0x40] ss:$8 sps:$4 sm:$0xff]   ;;  %v692_v21 = vld [vmem:[%s887_s0 + $0x54] ss:$8 sps:$4 sm:$0xff]  }
   0x7   :  { %590 = vmatpush3.bf16.msra.mxu0 %v671_v3  ;;  %660 = vmatpush3.bf16.msra.mxu1 %v671_v3  ;;  %v680_v14 = vld [vmem:[%s886_s1 + $0x48] sm:$0xff]   ;;  %v682_v16 = vld [vmem:[%s886_s1 + $0x40] sm:$0xff]   ;;  %v694_v22 = vld [vmem:[%s887_s0 + $0x10] ss:$8 sps:$4 sm:$0xff]  }
   0x8   :  { %591 = vmatprep.subr.bf16.mxu0 %v672_v4  ;;  %653 = vmatprep.subr.bf16.mxu1 %v672_v4  ;;  %v681_v15 = vld [vmem:[%s886_s1 + $0x8] sm:$0xff]   ;;  %v683_v17 = vld [vmem:[%s886_s1] sm:$0xff]   ;;  %v695_v23 = vld [vmem:[%s887_s0 + $0x50] ss:$8 sps:$4 sm:$0xff]  }
   0x9   :  { %310 = vmatprep.mubr.bf16.mxu1 %v689_v12  ;;  %v696_v24 = vld [vmem:[%s887_s0 + $0x24] ss:$8 sps:$4 sm:$0xff]   ;;  %v700_v26 = vld [vmem:[%s887_s0 + $0x20] ss:$8 sps:$4 sm:$0xff]   ;;  %v702_v28 = vld [vmem:[%s887_s0 + $0x34] ss:$8 sps:$4 sm:$0xff]  }
   0xa   :  { %v698_v25 = vld [vmem:[%s887_s0 + $0x64] ss:$8 sps:$4 sm:$0xff]   ;;  %v701_v27 = vld [vmem:[%s887_s0 + $0x60] ss:$8 sps:$4 sm:$0xff]   ;;  %v704_v29 = vld [vmem:[%s887_s0 + $0x74] ss:$8 sps:$4 sm:$0xff]  }
   0xb   :  { %592 = vmatpush3.bf16.msra.mxu0 %v673_v5  ;;  %661 = vmatpush3.bf16.msra.mxu1 %v673_v5  ;;  %v706_v30 = vld [vmem:[%s887_s0 + $0x30] ss:$8 sps:$4 sm:$0xff]   ;;  %v828_v34 = vld [vmem:[%s888_s2] ss:$0 sm:$0xff] }
   0xc   :  { %593 = vmatprep.subr.bf16.mxu0 %v674_v6  ;;  %654 = vmatprep.subr.bf16.mxu1 %v674_v6  ;;  %v707_v31 = vld [vmem:[%s887_s0 + $0x70] ss:$8 sps:$4 sm:$0xff]  }
   0xf   :  { %594 = vmatpush3.bf16.msra.mxu0 %v675_v7  ;;  %662 = vmatpush3.bf16.msra.mxu1 %v675_v7 }
  0x10   :  { %595 = vmatprep.subr.bf16.mxu0 %v676_v8  ;;  %655 = vmatprep.subr.bf16.mxu1 %v676_v8 }
  0x13   :  { %596 = vmatpush3.bf16.msra.mxu0 %v677_v9  ;;  %663 = vmatpush3.bf16.msra.mxu1 %v677_v9 }
  0x14   :  { %597 = vmatprep.subr.bf16.mxu0 %v678_v10  ;;  %656 = vmatprep.subr.bf16.mxu1 %v678_v10 }
  0x17   :  { %598 = vmatpush3.bf16.msra.mxu0 %v679_v13  ;;  %664 = vmatpush3.bf16.msra.mxu1 %v679_v13 }
  0x18   :  { %599 = vmatprep.subr.bf16.mxu0 %v680_v14  ;;  %657 = vmatprep.subr.bf16.mxu1 %v680_v14 }
  0x1b   :  { %600 = vmatpush3.bf16.msra.mxu0 %v681_v15  ;;  %665 = vmatpush3.bf16.msra.mxu1 %v681_v15 }
  0x1c   :  { %601 = vmatprep.subr.bf16.mxu0 %v682_v16  ;;  %658 = vmatprep.subr.bf16.mxu1 %v682_v16 }
  0x1f   :  { %602 = vmatpush3.bf16.msra.mxu0 %v683_v17  ;;  %666 = vmatpush3.bf16.msra.mxu1 %v683_v17 }
  0x22   :  { %279 = vmatmul.mubr.bf16.vlgmr.msra.gmra.mxu0 %v684_v18  ;;  %311 = vmatmul.mubr.bf16.vlgmr.msra.gmra.mxu1 %v687_v19 }
  0x23   :  { %286 = vmatprep.mubr.bf16.mxu0 %v690_v20  ;;  %318 = vmatprep.mubr.bf16.mxu1 %v692_v21 }
  0x2a   :  { %287 = vmatmul.mubr.bf16.gmra.mxu0 %v694_v22  ;;  %319 = vmatmul.mubr.bf16.gmra.mxu1 %v695_v23 }
  0x2b   :  { %294 = vmatprep.mubr.bf16.mxu0 %v696_v24  ;;  %326 = vmatprep.mubr.bf16.mxu1 %v698_v25 }
  0x32   :  { %295 = vmatmul.mubr.bf16.gmra.mxu0 %v700_v26  ;;  %327 = vmatmul.mubr.bf16.gmra.mxu1 %v701_v27 }
  0x33   :  { %302 = vmatprep.mubr.bf16.mxu0 %v702_v28  ;;  %334 = vmatprep.mubr.bf16.mxu1 %v704_v29 }
  0x3a   :  { %303 = vmatmul.mubr.bf16.gmra.mxu0 %v706_v30  ;;  %335 = vmatmul.mubr.bf16.gmra.mxu1 %v707_v31 }
  0xe2   :  { %v603_v32 = vpop.f32.mrf.mxu0  ;;  %v627_v33 = vpop.f32.mrf.mxu1 }
  0xe4   :  { %v604_v35 = vpop.f32.mrf.mxu0  ;;  %v628_v36 = vpop.f32.mrf.mxu1 }
  0xe5   :  { %v605_v37 = vadd.f32 %v604_v35, %v603_v32  ;;  %v629_v38 = vadd.f32 %v628_v36, %v627_v33 }
  0xe6   :  { %v606_v39 = vpop.f32.mrf.mxu0  ;;  %v630_v40 = vpop.f32.mrf.mxu1 }
  0xe7   :  { %v281_v41 = vadd.f32 %v605_v37, %v828_v34  ;;  %v313_v42 = vadd.f32 %v629_v38, %v828_v34 }
  0xe8   :  { %v607_v43 = vpop.f32.mrf.mxu0  ;;  %v631_v44 = vpop.f32.mrf.mxu1 }
  0xe9   :  { %v608_v45 = vadd.f32 %v607_v43, %v606_v39  ;;  %v632_v46 = vadd.f32 %v631_v44, %v630_v40  ;;  %vm343_vm0 = vcmp.gt.f32.partialorder %v281_v41, 0.2  ;;  %vm351_vm1 = vcmp.gt.f32.partialorder %v313_v42, 0.2 }
  0xea   :  { %v609_v47 = vpop.f32.mrf.mxu0  ;;  %v633_v48 = vpop.f32.mrf.mxu1  ;;  %v508_v56 = vsel %vm343_vm0, 1.0, %v708_v55  ;;  %v516_v57 = vsel %vm351_vm1, 1.0, %v708_v55 }
  0xeb   :  { %v284_v49 = vadd.f32 %v608_v45, %v828_v34  ;;  %v316_v50 = vadd.f32 %v632_v46, %v828_v34 }
  0xec   :  { %v610_v51 = vpop.f32.mrf.mxu0  ;;  %v634_v52 = vpop.f32.mrf.mxu1 }
  0xed   :  { %vm344_vm2 = vcmp.gt.f32.partialorder %v284_v49, 0.2  ;;  %vm352_vm3 = vcmp.gt.f32.partialorder %v316_v50, 0.2  ;;  %v611_v53 = vadd.f32 %v610_v51, %v609_v47  ;;  %v635_v54 = vadd.f32 %v634_v52, %v633_v48 }
  0xee   :  { %v509_v58 = vsel %vm344_vm2, 1.0, %v708_v55  ;;  %v517_v59 = vsel %vm352_vm3, 1.0, %v708_v55  ;;  %v612_v60 = vpop.f32.mrf.mxu0  ;;  %v636_v61 = vpop.f32.mrf.mxu1 }
  0xef   :  { %v557_v62 = vpack.c.bf16 %v509_v58, %v508_v56  ;;  %v569_v63 = vpack.c.bf16 %v517_v59, %v516_v57  ;;  %v289_v0 = vadd.f32 %v611_v53, %v828_v34  ;;  %v321_v1 = vadd.f32 %v635_v54, %v828_v34 }
  0xf0   :  { %v613_v2 = vpop.f32.mrf.mxu0  ;;  %v637_v3 = vpop.f32.mrf.mxu1 }
  0xf1   :  { %558 = vst [vmem:[%s889_s3] sm:$0xff] %v557_v62   ;;  %583 = vst [vmem:[%s889_s3 + $0x20] sm:$0xff] %v569_v63   ;;  %v614_v4 = vadd.f32 %v613_v2, %v612_v60  ;;  %v638_v5 = vadd.f32 %v637_v3, %v636_v61  ;;  %vm345_vm4 = vcmp.gt.f32.partialorder %v289_v0, 0.2  ;;  %vm353_vm5 = vcmp.gt.f32.partialorder %v321_v1, 0.2 }
  0xf2   :  { %v615_v6 = vpop.f32.mrf.mxu0  ;;  %v639_v7 = vpop.f32.mrf.mxu1  ;;  %v510_v14 = vsel %vm345_vm4, 1.0, %v708_v55  ;;  %v518_v15 = vsel %vm353_vm5, 1.0, %v708_v55 }
  0xf3   :  { %v292_v8 = vadd.f32 %v614_v4, %v828_v34  ;;  %v324_v9 = vadd.f32 %v638_v5, %v828_v34 }
  0xf4   :  { %v616_v10 = vpop.f32.mrf.mxu0  ;;  %v640_v11 = vpop.f32.mrf.mxu1 }
  0xf5   :  { %vm346_vm6 = vcmp.gt.f32.partialorder %v292_v8, 0.2  ;;  %vm354_vm7 = vcmp.gt.f32.partialorder %v324_v9, 0.2  ;;  %v617_v12 = vadd.f32 %v616_v10, %v615_v6  ;;  %v641_v13 = vadd.f32 %v640_v11, %v639_v7 }
  0xf6   :  { %v511_v16 = vsel %vm346_vm6, 1.0, %v708_v55  ;;  %v519_v17 = vsel %vm354_vm7, 1.0, %v708_v55  ;;  %v618_v18 = vpop.f32.mrf.mxu0  ;;  %v642_v19 = vpop.f32.mrf.mxu1 }
  0xf7   :  { %v560_v20 = vpack.c.bf16 %v511_v16, %v510_v14  ;;  %v572_v21 = vpack.c.bf16 %v519_v17, %v518_v15  ;;  %v297_v22 = vadd.f32 %v617_v12, %v828_v34  ;;  %v329_v23 = vadd.f32 %v641_v13, %v828_v34 }
  0xf8   :  { %v619_v24 = vpop.f32.mrf.mxu0  ;;  %v643_v25 = vpop.f32.mrf.mxu1 }
  0xf9   :  { %580 = vst [vmem:[%s889_s3 + $0x8] sm:$0xff] %v560_v20   ;;  %584 = vst [vmem:[%s889_s3 + $0x28] sm:$0xff] %v572_v21   ;;  %v620_v26 = vadd.f32 %v619_v24, %v618_v18  ;;  %v644_v27 = vadd.f32 %v643_v25, %v642_v19  ;;  %vm347_vm8 = vcmp.gt.f32.partialorder %v297_v22, 0.2  ;;  %vm355_vm9 = vcmp.gt.f32.partialorder %v329_v23, 0.2 }
  0xfa   :  { %v621_v28 = vpop.f32.mrf.mxu0  ;;  %v645_v29 = vpop.f32.mrf.mxu1  ;;  %v512_v37 = vsel %vm347_vm8, 1.0, %v708_v55  ;;  %v520_v38 = vsel %vm355_vm9, 1.0, %v708_v55 }
  0xfb   :  { %v300_v30 = vadd.f32 %v620_v26, %v828_v34  ;;  %v332_v31 = vadd.f32 %v644_v27, %v828_v34 }
  0xfc   :  { %v622_v32 = vpop.f32.mrf.mxu0  ;;  %v646_v33 = vpop.f32.mrf.mxu1 }
  0xfd   :  { %vm348_vm10 = vcmp.gt.f32.partialorder %v300_v30, 0.2  ;;  %vm356_vm11 = vcmp.gt.f32.partialorder %v332_v31, 0.2  ;;  %v623_v35 = vadd.f32 %v622_v32, %v621_v28  ;;  %v647_v36 = vadd.f32 %v646_v33, %v645_v29 }
  0xfe   :  { %v513_v39 = vsel %vm348_vm10, 1.0, %v708_v55  ;;  %v521_v40 = vsel %vm356_vm11, 1.0, %v708_v55  ;;  %v624_v41 = vpop.f32.mrf.mxu0  ;;  %v648_v42 = vpop.f32.mrf.mxu1 }
  0xff   :  { %v563_v43 = vpack.c.bf16 %v513_v39, %v512_v37  ;;  %v575_v44 = vpack.c.bf16 %v521_v40, %v520_v38  ;;  %v305_v45 = vadd.f32 %v623_v35, %v828_v34  ;;  %v337_v46 = vadd.f32 %v647_v36, %v828_v34 }
 0x100   :  { %v625_v47 = vpop.f32.mrf.mxu0  ;;  %v649_v48 = vpop.f32.mrf.mxu1 }
 0x101   :  { %581 = vst [vmem:[%s889_s3 + $0x10] sm:$0xff] %v563_v43   ;;  %585 = vst [vmem:[%s889_s3 + $0x30] sm:$0xff] %v575_v44   ;;  %v626_v49 = vadd.f32 %v625_v47, %v624_v41  ;;  %v650_v50 = vadd.f32 %v649_v48, %v648_v42  ;;  %vm349_vm12 = vcmp.gt.f32.partialorder %v305_v45, 0.2  ;;  %vm357_vm13 = vcmp.gt.f32.partialorder %v337_v46, 0.2 }
 0x102   :  { %v514_v53 = vsel %vm349_vm12, 1.0, %v708_v55  ;;  %v522_v54 = vsel %vm357_vm13, 1.0, %v708_v55 }
 0x103   :  { %v308_v51 = vadd.f32 %v626_v49, %v828_v34  ;;  %v340_v52 = vadd.f32 %v650_v50, %v828_v34 }
 0x105   :  { %vm350_vm14 = vcmp.gt.f32.partialorder %v308_v51, 0.2  ;;  %vm358_vm15 = vcmp.gt.f32.partialorder %v340_v52, 0.2 }
 0x106   :  { %v515_v56 = vsel %vm350_vm14, 1.0, %v708_v55  ;;  %v523_v57 = vsel %vm358_vm15, 1.0, %v708_v55 }
 0x107   :  { %v566_v58 = vpack.c.bf16 %v515_v56, %v514_v53  ;;  %v578_v59 = vpack.c.bf16 %v523_v57, %v522_v54 }
 0x109   :  { %582 = vst [vmem:[%s889_s3 + $0x18] sm:$0xff] %v566_v58   ;;  %586 = vst [vmem:[%s889_s3 + $0x38] sm:$0xff] %v578_v59  }

// kernel: _ee_step.20
= control target key start
LH: loop header
LB: loop body
LE: loop exit
PB: predicated region body
PF: predicated region fallthrough
CT: control target
= control target key end

     0   :  { %s1192_s12 = smov 0   ;;  %s1347_s0 = inlined_call_operand.vmem [shape: bf16[1,512,128], index: 0, kind: input, shape index: {}]   ;;  %s1348_s1 = inlined_call_operand.vmem [shape: bf16[128,128], index: 1, kind: input, shape index: {}]   ;;  %s1349_s2 = inlined_call_operand.vmem [shape: f32[1,128], index: 2, kind: input, shape index: {}]   ;;  %s1350_s3 = inlined_call_operand.vmem [shape: bf16[1,512,128], index: 3, kind: output, shape index: {}]  }
   0x1 LB: > { %s847_s13 = sadd.s32 4294967295, %s1169_s12   ;;  %p851_p0 = scmp.ge.s32.totalorder %s1169_s12, 1  ;;  %s1169_s12 = sphi %s1192_s12, %s13_s12  }
   0x2   : > { %p138_p1 = scmp.lt.s32.totalorder %s1169_s12, 3 }
   0x4   : > { %p139_p2 = pnand %p851_p0, %p138_p1 }
   0x5   : > { %s852_s16 = sshll.u32 (!%p139_p2), %s847_s13, 5 }
   0x6   : > { %142 = sbr.rel (%p139_p2) target bundleno = 274 (0x112), region = 32  ;;  %p163_p3 = scmp.lt.s32.totalorder (!%p139_p2), %s852_s16, 63 }
   0xb   : > { %v1139_v0 = vld [vmem:[%s1348_s1 + $0x38] sm:$0xff]   ;;  %v1140_v1 = vld [vmem:[%s1348_s1 + $0x30] sm:$0xff]   ;;  %s1352_s16 = smov (!%p163_p3, %s852_s16), 63  ;;  %v1141_v2 = vld [vmem:[%s1348_s1 + $0x28] sm:$0xff]   ;;  %v1171_v37 = vmov 0.0  }
   0xc   : > { %1066 = vmatprep.subr.bf16.mxu0 %v1139_v0  ;;  %1114 = vmatprep.subr.bf16.mxu1 %v1139_v0  ;;  %s853_s21 = sshll.u32 %s1352_s16, 2  ;;  %v1142_v3 = vld [vmem:[%s1348_s1 + $0x20] sm:$0xff]   ;;  %v1143_v6 = vld [vmem:[%s1348_s1 + $0x18] sm:$0xff]   ;;  %v1144_v7 = vld [vmem:[%s1348_s1 + $0x10] sm:$0xff]  }
   0xd   : > { %1067 = vmatpush3.bf16.msra.mxu0 %v1139_v0  ;;  %1122 = vmatpush3.bf16.msra.mxu1 %v1139_v0  ;;  %s1217_s24 = scalar_lea.vmem %s1347_s0, %s853_s21  ;;  %v1145_v8 = vld [vmem:[%s1348_s1 + $0x8] sm:$0xff]   ;;  %v1146_v9 = vld [vmem:[%s1348_s1] sm:$0xff]   ;;  %s1272_s13 = scalar_lea.vmem %s1350_s3, %s853_s21 }
   0xe   : > { %1068 = vmatprep.subr.bf16.mxu0 %v1140_v1  ;;  %1115 = vmatprep.subr.bf16.mxu1 %v1140_v1  ;;  %v1147_v4 = vld [vmem:[%s1217_s24] sm:$0xff]   ;;  %v1149_v10 = vld [vmem:[%s1217_s24 + $0x8] sm:$0xff]   ;;  %v1151_v12 = vld [vmem:[%s1217_s24 + $0x10] sm:$0xff]  }
   0xf   : > { %v1148_v5 = vld [vmem:[%s1217_s24 + $0x40] sm:$0xff]   ;;  %1082 = vmatprep.mubr.bf16.mxu0 %v1147_v4  ;;  %v1150_v11 = vld [vmem:[%s1217_s24 + $0x48] sm:$0xff]   ;;  %v1152_v13 = vld [vmem:[%s1217_s24 + $0x50] sm:$0xff]  }
  0x10   : > { %1098 = vmatprep.mubr.bf16.mxu1 %v1148_v5  ;;  %v1153_v14 = vld [vmem:[%s1217_s24 + $0x18] sm:$0xff]   ;;  %v1155_v16 = vld [vmem:[%s1217_s24 + $0x20] sm:$0xff]   ;;  %v1157_v18 = vld [vmem:[%s1217_s24 + $0x28] sm:$0xff]  }
  0x11   : > { %1069 = vmatpush3.bf16.msra.mxu0 %v1140_v1  ;;  %1123 = vmatpush3.bf16.msra.mxu1 %v1140_v1  ;;  %v1154_v15 = vld [vmem:[%s1217_s24 + $0x58] sm:$0xff]   ;;  %v1156_v17 = vld [vmem:[%s1217_s24 + $0x60] sm:$0xff]   ;;  %v1158_v19 = vld [vmem:[%s1217_s24 + $0x68] sm:$0xff]  }
  0x12   : > { %1070 = vmatprep.subr.bf16.mxu0 %v1141_v2  ;;  %1116 = vmatprep.subr.bf16.mxu1 %v1141_v2  ;;  %v1159_v20 = vld [vmem:[%s1217_s24 + $0x30] sm:$0xff]   ;;  %v1161_v22 = vld [vmem:[%s1217_s24 + $0x38] sm:$0xff]   ;;  %v1253_v24 = vld [vmem:[%s1349_s2] ss:$0 sm:$0xff] }
  0x13   : > { %v1160_v21 = vld [vmem:[%s1217_s24 + $0x70] sm:$0xff]   ;;  %v1162_v23 = vld [vmem:[%s1217_s24 + $0x78] sm:$0xff]  }
  0x15   : > { %1071 = vmatpush3.bf16.msra.mxu0 %v1141_v2  ;;  %1124 = vmatpush3.bf16.msra.mxu1 %v1141_v2 }
  0x16   : > { %1072 = vmatprep.subr.bf16.mxu0 %v1142_v3  ;;  %1117 = vmatprep.subr.bf16.mxu1 %v1142_v3 }
  0x19   : > { %1073 = vmatpush3.bf16.msra.mxu0 %v1142_v3  ;;  %1125 = vmatpush3.bf16.msra.mxu1 %v1142_v3 }
  0x1a   : > { %1074 = vmatprep.subr.bf16.mxu0 %v1143_v6  ;;  %1118 = vmatprep.subr.bf16.mxu1 %v1143_v6 }
  0x1d   : > { %1075 = vmatpush3.bf16.msra.mxu0 %v1143_v6  ;;  %1126 = vmatpush3.bf16.msra.mxu1 %v1143_v6 }
  0x1e   : > { %1076 = vmatprep.subr.bf16.mxu0 %v1144_v7  ;;  %1119 = vmatprep.subr.bf16.mxu1 %v1144_v7 }
  0x21   : > { %1077 = vmatpush3.bf16.msra.mxu0 %v1144_v7  ;;  %1127 = vmatpush3.bf16.msra.mxu1 %v1144_v7 }
  0x22   : > { %1078 = vmatprep.subr.bf16.mxu0 %v1145_v8  ;;  %1120 = vmatprep.subr.bf16.mxu1 %v1145_v8 }
  0x25   : > { %1079 = vmatpush3.bf16.msra.mxu0 %v1145_v8  ;;  %1128 = vmatpush3.bf16.msra.mxu1 %v1145_v8 }
  0x26   : > { %1080 = vmatprep.subr.bf16.mxu0 %v1146_v9  ;;  %1121 = vmatprep.subr.bf16.mxu1 %v1146_v9 }
  0x29   : > { %1081 = vmatpush3.bf16.msra.mxu0 %v1146_v9  ;;  %1129 = vmatpush3.bf16.msra.mxu1 %v1146_v9 }
  0x2c   : > { %1083 = vmatmul.mubr.bf16.vlgmr.msra.gmra.mxu0 %v1149_v10  ;;  %1099 = vmatmul.mubr.bf16.vlgmr.msra.gmra.mxu1 %v1150_v11 }
  0x2d   : > { %1086 = vmatprep.mubr.bf16.mxu0 %v1151_v12  ;;  %1102 = vmatprep.mubr.bf16.mxu1 %v1152_v13 }
  0x34   : > { %1087 = vmatmul.mubr.bf16.gmra.mxu0 %v1153_v14  ;;  %1103 = vmatmul.mubr.bf16.gmra.mxu1 %v1154_v15 }
  0x35   : > { %1090 = vmatprep.mubr.bf16.mxu0 %v1155_v16  ;;  %1106 = vmatprep.mubr.bf16.mxu1 %v1156_v17 }
  0x3c   : > { %1091 = vmatmul.mubr.bf16.gmra.mxu0 %v1157_v18  ;;  %1107 = vmatmul.mubr.bf16.gmra.mxu1 %v1158_v19 }
  0x3d   : > { %1094 = vmatprep.mubr.bf16.mxu0 %v1159_v20  ;;  %1110 = vmatprep.mubr.bf16.mxu1 %v1160_v21 }
  0x44   : > { %1095 = vmatmul.mubr.bf16.gmra.mxu0 %v1161_v22  ;;  %1111 = vmatmul.mubr.bf16.gmra.mxu1 %v1162_v23 }
  0xec   : > { %v1084_v25 = vpop.f32.mrf.mxu0  ;;  %v1100_v26 = vpop.f32.mrf.mxu1 }
  0xed   : > { %v417_v27 = vadd.f32 %v1084_v25, %v1253_v24  ;;  %v481_v28 = vadd.f32 %v1100_v26, %v1253_v24 }
  0xee   : > { %v408_v29 = vpop.f32.mrf.mxu0  ;;  %v472_v30 = vpop.f32.mrf.mxu1 }
  0xef   : > { %vm537_vm0 = vcmp.gt.f32.partialorder %v417_v27, 0.2  ;;  %vm553_vm1 = vcmp.gt.f32.partialorder %v481_v28, 0.2  ;;  %v409_v31 = vadd.f32 %v1253_v24, %v408_v29  ;;  %v473_v32 = vadd.f32 %v1253_v24, %v472_v30 }
  0xf0   : > { %v1085_v33 = vpop.f32.mrf.mxu0  ;;  %v1101_v34 = vpop.f32.mrf.mxu1  ;;  %v883_v38 = vsel %vm537_vm0, 1.0, %v1171_v37  ;;  %v899_v39 = vsel %vm553_vm1, 1.0, %v1171_v37 }
  0xf1   : > { %vm535_vm2 = vcmp.gt.f32.partialorder %v409_v31, 0.2  ;;  %vm551_vm3 = vcmp.gt.f32.partialorder %v473_v32, 0.2  ;;  %v420_v35 = vadd.f32 %v1085_v33, %v1253_v24  ;;  %v484_v36 = vadd.f32 %v1101_v34, %v1253_v24 }
  0xf2   : > { %v411_v40 = vpop.f32.mrf.mxu0  ;;  %v475_v41 = vpop.f32.mrf.mxu1  ;;  %v881_v44 = vsel %vm535_vm2, 1.0, %v1171_v37  ;;  %v897_v45 = vsel %vm551_vm3, 1.0, %v1171_v37 }
  0xf3   : > { %vm538_vm4 = vcmp.gt.f32.partialorder %v420_v35, 0.2  ;;  %vm554_vm5 = vcmp.gt.f32.partialorder %v484_v36, 0.2  ;;  %v412_v42 = vadd.f32 %v1253_v24, %v411_v40  ;;  %v476_v43 = vadd.f32 %v1253_v24, %v475_v41 }
  0xf4   : > { %v884_v46 = vsel %vm538_vm4, 1.0, %v1171_v37  ;;  %v900_v47 = vsel %vm554_vm5, 1.0, %v1171_v37  ;;  %v1088_v48 = vpop.f32.mrf.mxu0  ;;  %v1104_v49 = vpop.f32.mrf.mxu1 }
  0xf5   : > { %v983_v50 = vpack.c.bf16 %v884_v46, %v883_v38  ;;  %v1007_v51 = vpack.c.bf16 %v900_v47, %v899_v39  ;;  %vm536_vm6 = vcmp.gt.f32.partialorder %v412_v42, 0.2  ;;  %vm552_vm7 = vcmp.gt.f32.partialorder %v476_v43, 0.2 }
  0xf6   : > { %v882_v52 = vsel %vm536_vm6, 1.0, %v1171_v37  ;;  %v898_v53 = vsel %vm552_vm7, 1.0, %v1171_v37  ;;  %v433_v54 = vadd.f32 %v1088_v48, %v1253_v24  ;;  %v497_v55 = vadd.f32 %v1104_v49, %v1253_v24  ;;  %v424_v56 = vpop.f32.mrf.mxu0  ;;  %v488_v57 = vpop.f32.mrf.mxu1 }
  0xf7   : > { %1027 = vst [vmem:[%s1272_s13 + $0x8] sm:$0xff] %v983_v50   ;;  %1035 = vst [vmem:[%s1272_s13 + $0x48] sm:$0xff] %v1007_v51   ;;  %v980_v58 = vpack.c.bf16 %v882_v52, %v881_v44  ;;  %v1004_v59 = vpack.c.bf16 %v898_v53, %v897_v45  ;;  %v425_v60 = vadd.f32 %v1253_v24, %v424_v56 }
  0xf8   : > { %v489_v61 = vadd.f32 %v1253_v24, %v488_v57  ;;  %vm541_vm8 = vcmp.gt.f32.partialorder %v433_v54, 0.2  ;;  %vm557_vm9 = vcmp.gt.f32.partialorder %v497_v55, 0.2  ;;  %v1089_v62 = vpop.f32.mrf.mxu0  ;;  %v1105_v63 = vpop.f32.mrf.mxu1 }
  0xf9   : > { %981 = vst [vmem:[%s1272_s13] sm:$0xff] %v980_v58   ;;  %1034 = vst [vmem:[%s1272_s13 + $0x40] sm:$0xff] %v1004_v59   ;;  %vm539_vm10 = vcmp.gt.f32.partialorder %v425_v60, 0.2  ;;  %v436_v0 = vadd.f32 %v1089_v62, %v1253_v24  ;;  %v500_v1 = vadd.f32 %v1105_v63, %v1253_v24  ;;  %v887_v4 = vsel %vm541_vm8, 1.0, %v1171_v37 }
  0xfa   : > { %vm555_vm11 = vcmp.gt.f32.partialorder %v489_v61, 0.2  ;;  %v427_v2 = vpop.f32.mrf.mxu0  ;;  %v491_v3 = vpop.f32.mrf.mxu1  ;;  %v903_v5 = vsel %vm557_vm9, 1.0, %v1171_v37  ;;  %v885_v8 = vsel %vm539_vm10, 1.0, %v1171_v37 }
  0xfb   : > { %v428_v6 = vadd.f32 %v1253_v24, %v427_v2  ;;  %v492_v7 = vadd.f32 %v1253_v24, %v491_v3  ;;  %v901_v9 = vsel %vm555_vm11, 1.0, %v1171_v37  ;;  %vm542_vm12 = vcmp.gt.f32.partialorder %v436_v0, 0.2 }
  0xfc   : > { %vm558_vm13 = vcmp.gt.f32.partialorder %v500_v1, 0.2  ;;  %v1092_v10 = vpop.f32.mrf.mxu0  ;;  %v1108_v11 = vpop.f32.mrf.mxu1  ;;  %v888_v12 = vsel %vm542_vm12, 1.0, %v1171_v37 }
  0xfd   : > { %v904_v13 = vsel %vm558_vm13, 1.0, %v1171_v37  ;;  %vm540_vm14 = vcmp.gt.f32.partialorder %v428_v6, 0.2  ;;  %vm556_vm15 = vcmp.gt.f32.partialorder %v492_v7, 0.2  ;;  %v989_v14 = vpack.c.bf16 %v888_v12, %v887_v4 }
  0xfe   : > { %v1013_v15 = vpack.c.bf16 %v904_v13, %v903_v5  ;;  %v886_v16 = vsel %vm540_vm14, 1.0, %v1171_v37  ;;  %v902_v17 = vsel %vm556_vm15, 1.0, %v1171_v37  ;;  %v440_v18 = vpop.f32.mrf.mxu0  ;;  %v504_v19 = vpop.f32.mrf.mxu1  ;;  %v449_v22 = vadd.f32 %v1092_v10, %v1253_v24 }
  0xff   : > { %v986_v20 = vpack.c.bf16 %v886_v16, %v885_v8  ;;  %v1010_v21 = vpack.c.bf16 %v902_v17, %v901_v9  ;;  %v513_v23 = vadd.f32 %v1108_v11, %v1253_v24  ;;  %1029 = vst [vmem:[%s1272_s13 + $0x18] sm:$0xff] %v989_v14   ;;  %v441_v25 = vadd.f32 %v1253_v24, %v440_v18 }
 0x100   : > { %1037 = vst [vmem:[%s1272_s13 + $0x58] sm:$0xff] %v1013_v15   ;;  %v505_v26 = vadd.f32 %v1253_v24, %v504_v19  ;;  %v1093_v27 = vpop.f32.mrf.mxu0  ;;  %v1109_v28 = vpop.f32.mrf.mxu1  ;;  %vm545_vm0 = vcmp.gt.f32.partialorder %v449_v22, 0.2 }
 0x101   : > { %1028 = vst [vmem:[%s1272_s13 + $0x10] sm:$0xff] %v986_v20   ;;  %1036 = vst [vmem:[%s1272_s13 + $0x50] sm:$0xff] %v1010_v21   ;;  %vm561_vm1 = vcmp.gt.f32.partialorder %v513_v23, 0.2  ;;  %v452_v29 = vadd.f32 %v1093_v27, %v1253_v24  ;;  %v516_v30 = vadd.f32 %v1109_v28, %v1253_v24  ;;  %v891_v31 = vsel %vm545_vm0, 1.0, %v1171_v37 }
 0x102   : > { %v907_v32 = vsel %vm561_vm1, 1.0, %v1171_v37  ;;  %vm543_vm2 = vcmp.gt.f32.partialorder %v441_v25, 0.2  ;;  %v443_v33 = vpop.f32.mrf.mxu0  ;;  %v507_v34 = vpop.f32.mrf.mxu1  ;;  %vm559_vm3 = vcmp.gt.f32.partialorder %v505_v26, 0.2 }
 0x103   : > { %vm546_vm4 = vcmp.gt.f32.partialorder %v452_v29, 0.2  ;;  %vm562_vm5 = vcmp.gt.f32.partialorder %v516_v30, 0.2  ;;  %v444_v38 = vadd.f32 %v1253_v24, %v443_v33  ;;  %v508_v39 = vadd.f32 %v1253_v24, %v507_v34 }
 0x104   : > { %v892_v35 = vsel %vm546_vm4, 1.0, %v1171_v37  ;;  %v908_v36 = vsel %vm562_vm5, 1.0, %v1171_v37  ;;  %v1096_v40 = vpop.f32.mrf.mxu0  ;;  %v1112_v41 = vpop.f32.mrf.mxu1  ;;  %v889_v48 = vsel %vm543_vm2, 1.0, %v1171_v37  ;;  %v905_v49 = vsel %vm559_vm3, 1.0, %v1171_v37 }
 0x105   : > { %v995_v42 = vpack.c.bf16 %v892_v35, %v891_v31  ;;  %v1019_v43 = vpack.c.bf16 %v908_v36, %v907_v32  ;;  %v465_v44 = vadd.f32 %v1096_v40, %v1253_v24  ;;  %v529_v45 = vadd.f32 %v1112_v41, %v1253_v24 }
 0x106   : > { %vm544_vm6 = vcmp.gt.f32.partialorder %v444_v38, 0.2  ;;  %vm560_vm7 = vcmp.gt.f32.partialorder %v508_v39, 0.2  ;;  %v456_v46 = vpop.f32.mrf.mxu0  ;;  %v520_v47 = vpop.f32.mrf.mxu1 }
 0x107   : > { %1031 = vst [vmem:[%s1272_s13 + $0x28] sm:$0xff] %v995_v42   ;;  %1039 = vst [vmem:[%s1272_s13 + $0x68] sm:$0xff] %v1019_v43   ;;  %v890_v50 = vsel %vm544_vm6, 1.0, %v1171_v37  ;;  %v906_v51 = vsel %vm560_vm7, 1.0, %v1171_v37  ;;  %vm549_vm8 = vcmp.gt.f32.partialorder %v465_v44, 0.2  ;;  %v457_v56 = vadd.f32 %v1253_v24, %v456_v46 }
 0x108   : > { %v992_v52 = vpack.c.bf16 %v890_v50, %v889_v48  ;;  %v1016_v53 = vpack.c.bf16 %v906_v51, %v905_v49  ;;  %vm565_vm9 = vcmp.gt.f32.partialorder %v529_v45, 0.2  ;;  %v1097_v54 = vpop.f32.mrf.mxu0  ;;  %v1113_v55 = vpop.f32.mrf.mxu1  ;;  %v521_v57 = vadd.f32 %v1253_v24, %v520_v47 }
 0x109   : > { %v468_v58 = vadd.f32 %v1097_v54, %v1253_v24  ;;  %v532_v59 = vadd.f32 %v1113_v55, %v1253_v24  ;;  %v895_v62 = vsel %vm549_vm8, 1.0, %v1171_v37  ;;  %vm547_vm10 = vcmp.gt.f32.partialorder %v457_v56, 0.2 }
 0x10a   : > { %1030 = vst [vmem:[%s1272_s13 + $0x20] sm:$0xff] %v992_v52   ;;  %1038 = vst [vmem:[%s1272_s13 + $0x60] sm:$0xff] %v1016_v53   ;;  %v459_v60 = vpop.f32.mrf.mxu0  ;;  %v523_v61 = vpop.f32.mrf.mxu1  ;;  %v911_v0 = vsel %vm565_vm9, 1.0, %v1171_v37  ;;  %vm563_vm12 = vcmp.gt.f32.partialorder %v521_v57, 0.2  ;;  %v893_v5 = vsel %vm547_vm10, 1.0, %v1171_v37 }
 0x10b   : > { %vm550_vm11 = vcmp.gt.f32.partialorder %v468_v58, 0.2  ;;  %v460_v63 = vadd.f32 %v1253_v24, %v459_v60  ;;  %vm566_vm13 = vcmp.gt.f32.partialorder %v532_v59, 0.2  ;;  %v524_v4 = vadd.f32 %v1253_v24, %v523_v61 }
 0x10c   : > { %v896_v1 = vsel %vm550_vm11, 1.0, %v1171_v37  ;;  %v912_v3 = vsel %vm566_vm13, 1.0, %v1171_v37  ;;  %v909_v9 = vsel %vm563_vm12, 1.0, %v1171_v37 }
 0x10d   : > { %v1001_v2 = vpack.c.bf16 %v896_v1, %v895_v62  ;;  %vm548_vm14 = vcmp.gt.f32.partialorder %v460_v63, 0.2  ;;  %v1025_v6 = vpack.c.bf16 %v912_v3, %v911_v0  ;;  %vm564_vm15 = vcmp.gt.f32.partialorder %v524_v4, 0.2 }
 0x10e   : > { %v894_v7 = vsel %vm548_vm14, 1.0, %v1171_v37  ;;  %v910_v10 = vsel %vm564_vm15, 1.0, %v1171_v37 }
 0x10f   : > { %1033 = vst [vmem:[%s1272_s13 + $0x38] sm:$0xff] %v1001_v2   ;;  %v998_v8 = vpack.c.bf16 %v894_v7, %v893_v5  ;;  %1041 = vst [vmem:[%s1272_s13 + $0x78] sm:$0xff] %v1025_v6   ;;  %v1022_v11 = vpack.c.bf16 %v910_v10, %v909_v9 }
 0x111   : > { %1032 = vst [vmem:[%s1272_s13 + $0x30] sm:$0xff] %v998_v8   ;;  %1040 = vst [vmem:[%s1272_s13 + $0x70] sm:$0xff] %v1022_v11  }
 0x112 PF: > { %s13_s12 = sadd.s32 1, %s1169_s12  }
 0x113   : > { %p10_p4 = scmp.ge.s32.totalorder %s13_s12, 4  }
 0x115   :  { %12 = sbr.rel (!%p10_p4) target bundleno = 1 (0x1), region = 62 }

// kernel: _ee_step.21
= control target key start
LH: loop header
LB: loop body
LE: loop exit
PB: predicated region body
PF: predicated region fallthrough
CT: control target
= control target key end

     0   :  { %s2382_s12 = smov 0   ;;  %s2863_s0 = inlined_call_operand.vmem [shape: bf16[1,2048,384], index: 0, kind: input, shape index: {}]   ;;  %s2864_s1 = inlined_call_operand.vmem [shape: bf16[384,128], index: 1, kind: input, shape index: {}]   ;;  %s2865_s2 = inlined_call_operand.vmem [shape: f32[1,128], index: 2, kind: input, shape index: {}]   ;;  %s2866_s3 = inlined_call_operand.vmem [shape: f32[2048,128], index: 3, kind: output, shape index: {}]  }
   0x1 LB: > { %s1779_s13 = sadd.s32 4294967295, %s2359_s12   ;;  %p1783_p0 = scmp.ge.s32.totalorder %s2359_s12, 1  ;;  %s2359_s12 = sphi %s2382_s12, %s13_s12  }
   0x2   : > { %p139_p1 = scmp.lt.s32.totalorder %s2359_s12, 5 }
   0x4   : > { %p140_p2 = pnand %p1783_p0, %p139_p1 }
   0x5   : > { %s1784_s16 = sshll.u32 (!%p140_p2), %s1779_s13, 6 }
   0x6   : > { %143 = sbr.rel (%p140_p2) target bundleno = 477 (0x1dd), region = 32  ;;  %p165_p3 = scmp.lt.s32.totalorder (!%p140_p2), %s1784_s16, 255 }
   0xb   : > { %v2073_v0 = vld [vmem:[%s2864_s1 + $0x38] sm:$0xff]   ;;  %v2361_v1 = vmov 0   ;;  %v2074_v2 = vld [vmem:[%s2864_s1 + $0x30] sm:$0xff]   ;;  %v2075_v3 = vld [vmem:[%s2864_s1 + $0x28] sm:$0xff]   ;;  %s2868_s16 = smov (!%p165_p3, %s1784_s16), 255 }
   0xc   : > { %1017 = vmatprep.subr.bf16.mxu0 %v2361_v1  ;;  %2031 = vmatprep.subr.bf16.mxu1 %v2361_v1  ;;  %v2076_v4 = vld [vmem:[%s2864_s1 + $0x20] sm:$0xff]   ;;  %s2063_s23 = smul.u32 12, %s2868_s16  ;;  %v2077_v5 = vld [vmem:[%s2864_s1 + $0x18] sm:$0xff]   ;;  %v2078_v7 = vld [vmem:[%s2864_s1 + $0x10] sm:$0xff]   ;;  %s1787_s19 = sshll.u32 %s2868_s16, 3 }
   0xd   : > { %1018 = vmatpush1.bf16.msra.mxu0 %v2073_v0  ;;  %2047 = vmatpush1.bf16.msra.mxu1 %v2073_v0  ;;  %v2079_v9 = vld [vmem:[%s2864_s1 + $0x8] sm:$0xff]   ;;  %v2080_v10 = vld [vmem:[%s2864_s1] sm:$0xff]   ;;  %v2081_v11 = vld [vmem:[%s2864_s1 + $0x78] sm:$0xff]   ;;  %s2686_s22 = scalar_lea.vmem %s2866_s3, %s1787_s19 }
   0xe   : > { %1019 = vmatprep.subr.bf16.mxu0 %v2361_v1  ;;  %2032 = vmatprep.subr.bf16.mxu1 %v2361_v1  ;;  %s2419_s28 = scalar_lea.vmem %s2863_s0, %s2063_s23  ;;  %v2082_v12 = vld [vmem:[%s2864_s1 + $0x70] sm:$0xff]   ;;  %v2083_v13 = vld [vmem:[%s2864_s1 + $0x68] sm:$0xff]   ;;  %v2084_v14 = vld [vmem:[%s2864_s1 + $0x60] sm:$0xff]  }
   0xf   : > { %v2091_v6 = vld [vmem:[%s2419_s28 + $0x4] ss:$12 sps:$4 sm:$0xff]   ;;  %v2085_v15 = vld [vmem:[%s2864_s1 + $0x58] sm:$0xff]   ;;  %v2087_v17 = vld [vmem:[%s2864_s1 + $0x48] sm:$0xff]  }
  0x10   : > { %v2094_v8 = vld [vmem:[%s2419_s28 + $0x244] ss:$12 sps:$4 sm:$0xff]   ;;  %1049 = vmatprep.mubr.bf16.mxu0 %v2091_v6  ;;  %v2095_v19 = vld [vmem:[%s2864_s1 + $0xb8] sm:$0xff]   ;;  %v2089_v20 = vld [vmem:[%s2419_s28] ss:$12 sps:$4 sm:$0xff]  }
  0x11   : > { %1020 = vmatpush1.bf16.msra.mxu0 %v2074_v2  ;;  %2048 = vmatpush1.bf16.msra.mxu1 %v2074_v2  ;;  %v2086_v16 = vld [vmem:[%s2864_s1 + $0x50] sm:$0xff]   ;;  %v2088_v18 = vld [vmem:[%s2864_s1 + $0x40] sm:$0xff]   ;;  %v2096_v22 = vld [vmem:[%s2419_s28 + $0x1c] ss:$12 sps:$4 sm:$0xff]  }
  0x12   : > { %1021 = vmatprep.subr.bf16.mxu0 %v2361_v1  ;;  %2033 = vmatprep.subr.bf16.mxu1 %v2361_v1  ;;  %v2092_v21 = vld [vmem:[%s2419_s28 + $0x240] ss:$12 sps:$4 sm:$0xff]   ;;  %v2098_v23 = vld [vmem:[%s2419_s28 + $0x25c] ss:$12 sps:$4 sm:$0xff]   ;;  %v2102_v24 = vld [vmem:[%s2864_s1 + $0xb0] sm:$0xff]  }
  0x13   : > { %1241 = vmatprep.mubr.bf16.mxu1 %v2094_v8  ;;  %v2109_v25 = vld [vmem:[%s2864_s1 + $0xa8] sm:$0xff]   ;;  %v2100_v26 = vld [vmem:[%s2419_s28 + $0x18] ss:$12 sps:$4 sm:$0xff]   ;;  %v2103_v28 = vld [vmem:[%s2419_s28 + $0x34] ss:$12 sps:$4 sm:$0xff]  }
  0x14   : > { %v2101_v27 = vld [vmem:[%s2419_s28 + $0x258] ss:$12 sps:$4 sm:$0xff]   ;;  %v2105_v29 = vld [vmem:[%s2419_s28 + $0x274] ss:$12 sps:$4 sm:$0xff]   ;;  %v2107_v31 = vld [vmem:[%s2419_s28 + $0x30] ss:$12 sps:$4 sm:$0xff]  }
  0x15   : > { %1022 = vmatpush1.bf16.msra.mxu0 %v2075_v3  ;;  %2049 = vmatpush1.bf16.msra.mxu1 %v2075_v3  ;;  %v2116_v30 = vld [vmem:[%s2864_s1 + $0xa0] sm:$0xff]   ;;  %v2123_v32 = vld [vmem:[%s2864_s1 + $0x98] sm:$0xff]   ;;  %v2130_v36 = vld [vmem:[%s2864_s1 + $0x90] sm:$0xff]  }
  0x16   : > { %1023 = vmatprep.subr.bf16.mxu0 %v2361_v1  ;;  %2034 = vmatprep.subr.bf16.mxu1 %v2361_v1  ;;  %v2108_v33 = vld [vmem:[%s2419_s28 + $0x270] ss:$12 sps:$4 sm:$0xff]   ;;  %v2110_v34 = vld [vmem:[%s2419_s28 + $0x4c] ss:$12 sps:$4 sm:$0xff]   ;;  %v2114_v37 = vld [vmem:[%s2419_s28 + $0x48] ss:$12 sps:$4 sm:$0xff]  }
  0x17   : > { %v2112_v35 = vld [vmem:[%s2419_s28 + $0x28c] ss:$12 sps:$4 sm:$0xff]   ;;  %v2115_v38 = vld [vmem:[%s2419_s28 + $0x288] ss:$12 sps:$4 sm:$0xff]   ;;  %v2117_v39 = vld [vmem:[%s2419_s28 + $0x64] ss:$12 sps:$4 sm:$0xff]  }
  0x18   : > { %v2119_v40 = vld [vmem:[%s2419_s28 + $0x2a4] ss:$12 sps:$4 sm:$0xff]   ;;  %v2137_v41 = vld [vmem:[%s2864_s1 + $0x88] sm:$0xff]   ;;  %v2131_v49 = vld [vmem:[%s2419_s28 + $0x94] ss:$12 sps:$4 sm:$0xff]  }
  0x19   : > { %1024 = vmatpush1.bf16.msra.mxu0 %v2076_v4  ;;  %2050 = vmatpush1.bf16.msra.mxu1 %v2076_v4  ;;  %v2144_v42 = vld [vmem:[%s2864_s1 + $0x80] sm:$0xff]   ;;  %v2124_v45 = vld [vmem:[%s2419_s28 + $0x7c] ss:$12 sps:$4 sm:$0xff]   ;;  %v2138_v53 = vld [vmem:[%s2419_s28 + $0xac] ss:$12 sps:$4 sm:$0xff]  }
  0x1a   : > { %1025 = vmatprep.subr.bf16.mxu0 %v2361_v1  ;;  %2035 = vmatprep.subr.bf16.mxu1 %v2361_v1  ;;  %v2121_v43 = vld [vmem:[%s2419_s28 + $0x60] ss:$12 sps:$4 sm:$0xff]   ;;  %v2126_v46 = vld [vmem:[%s2419_s28 + $0x2bc] ss:$12 sps:$4 sm:$0xff]   ;;  %v2128_v47 = vld [vmem:[%s2419_s28 + $0x78] ss:$12 sps:$4 sm:$0xff]  }
  0x1b   : > { %v2122_v44 = vld [vmem:[%s2419_s28 + $0x2a0] ss:$12 sps:$4 sm:$0xff]   ;;  %v2129_v48 = vld [vmem:[%s2419_s28 + $0x2b8] ss:$12 sps:$4 sm:$0xff]   ;;  %v2135_v51 = vld [vmem:[%s2419_s28 + $0x90] ss:$12 sps:$4 sm:$0xff]  }
  0x1c   : > { %v2133_v50 = vld [vmem:[%s2419_s28 + $0x2d4] ss:$12 sps:$4 sm:$0xff]   ;;  %v2136_v52 = vld [vmem:[%s2419_s28 + $0x2d0] ss:$12 sps:$4 sm:$0xff]   ;;  %v2140_v54 = vld [vmem:[%s2419_s28 + $0x2ec] ss:$12 sps:$4 sm:$0xff]  }
  0x1d   : > { %1026 = vmatpush1.bf16.msra.mxu0 %v2077_v5  ;;  %2051 = vmatpush1.bf16.msra.mxu1 %v2077_v5  ;;  %v2142_v55 = vld [vmem:[%s2419_s28 + $0xa8] ss:$12 sps:$4 sm:$0xff]   ;;  %v2145_v57 = vld [vmem:[%s2419_s28 + $0xc4] ss:$12 sps:$4 sm:$0xff]   ;;  %v2148_v59 = vld [vmem:[%s2419_s28 + $0xc0] ss:$12 sps:$4 sm:$0xff]  }
  0x1e   : > { %1027 = vmatprep.subr.bf16.mxu0 %v2361_v1  ;;  %2036 = vmatprep.subr.bf16.mxu1 %v2361_v1  ;;  %v2143_v56 = vld [vmem:[%s2419_s28 + $0x2e8] ss:$12 sps:$4 sm:$0xff]   ;;  %v2149_v60 = vld [vmem:[%s2419_s28 + $0x20] ss:$12 sps:$4 sm:$0xff]   ;;  %v2152_v62 = vld [vmem:[%s2419_s28 + $0x38] ss:$12 sps:$4 sm:$0xff]  }
  0x1f   : > { %v2147_v58 = vld [vmem:[%s2419_s28 + $0x8] ss:$12 sps:$4 sm:$0xff]   ;;  %v2153_v63 = vld [vmem:[%s2419_s28 + $0xd8] ss:$12 sps:$4 sm:$0xff]   ;;  %v2154_v0 = vld [vmem:[%s2419_s28 + $0x50] ss:$12 sps:$4 sm:$0xff]  }
  0x20   : > { %v2150_v61 = vld [vmem:[%s2419_s28 + $0xdc] ss:$12 sps:$4 sm:$0xff]   ;;  %v2159_v4 = vld [vmem:[%s2419_s28 + $0x80] ss:$12 sps:$4 sm:$0xff]   ;;  %v2162_v6 = vld [vmem:[%s2419_s28 + $0x98] ss:$12 sps:$4 sm:$0xff]  }
  0x21   : > { %1028 = vmatpush1.bf16.msra.mxu0 %v2078_v7  ;;  %2052 = vmatpush1.bf16.msra.mxu1 %v2078_v7  ;;  %v2157_v2 = vld [vmem:[%s2419_s28 + $0x68] ss:$12 sps:$4 sm:$0xff]   ;;  %v2158_v3 = vld [vmem:[%s2419_s28 + $0xf0] ss:$12 sps:$4 sm:$0xff]   ;;  %v2160_v5 = vld [vmem:[%s2419_s28 + $0x10c] ss:$12 sps:$4 sm:$0xff]  }
  0x22   : > { %1029 = vmatprep.subr.bf16.mxu0 %v2361_v1  ;;  %2037 = vmatprep.subr.bf16.mxu1 %v2361_v1  ;;  %v2163_v7 = vld [vmem:[%s2419_s28 + $0x108] ss:$12 sps:$4 sm:$0xff]   ;;  %v2164_v8 = vld [vmem:[%s2419_s28 + $0xb0] ss:$12 sps:$4 sm:$0xff]  }
  0x25   : > { %1030 = vmatpush1.bf16.msra.mxu0 %v2079_v9  ;;  %2053 = vmatpush1.bf16.msra.mxu1 %v2079_v9  ;;  %v2165_v9 = vld [vmem:[%s2419_s28 + $0x124] ss:$12 sps:$4 sm:$0xff]  }
  0x26   : > { %1031 = vmatprep.subr.bf16.mxu0 %v2361_v1  ;;  %2038 = vmatprep.subr.bf16.mxu1 %v2361_v1 }
  0x29   : > { %1032 = vmatpush1.bf16.msra.mxu0 %v2080_v10  ;;  %2054 = vmatpush1.bf16.msra.mxu1 %v2080_v10  ;;  %v2167_v10 = vld [vmem:[%s2419_s28 + $0xc8] ss:$12 sps:$4 sm:$0xff]  }
  0x2a   : > { %1033 = vmatprep.subr.bf16.mxu0 %v2361_v1  ;;  %2039 = vmatprep.subr.bf16.mxu1 %v2361_v1 }
  0x2d   : > { %1034 = vmatpush2.bf16.msra.mxu0 %v2081_v11  ;;  %2055 = vmatpush2.bf16.msra.mxu1 %v2081_v11  ;;  %v2168_v11 = vld [vmem:[%s2419_s28 + $0x120] ss:$12 sps:$4 sm:$0xff]  }
  0x2e   : > { %1035 = vmatprep.subr.bf16.mxu0 %v2361_v1  ;;  %2040 = vmatprep.subr.bf16.mxu1 %v2361_v1 }
  0x31   : > { %1036 = vmatpush2.bf16.msra.mxu0 %v2082_v12  ;;  %2056 = vmatpush2.bf16.msra.mxu1 %v2082_v12  ;;  %v2169_v12 = vld [vmem:[%s2419_s28 + $0xe0] ss:$12 sps:$4 sm:$0xff]  }
  0x32   : > { %1037 = vmatprep.subr.bf16.mxu0 %v2361_v1  ;;  %2041 = vmatprep.subr.bf16.mxu1 %v2361_v1 }
  0x35   : > { %1038 = vmatpush2.bf16.msra.mxu0 %v2083_v13  ;;  %2057 = vmatpush2.bf16.msra.mxu1 %v2083_v13  ;;  %v2170_v13 = vld [vmem:[%s2419_s28 + $0x13c] ss:$12 sps:$4 sm:$0xff]  }
  0x36   : > { %1039 = vmatprep.subr.bf16.mxu0 %v2361_v1  ;;  %2042 = vmatprep.subr.bf16.mxu1 %v2361_v1 }
  0x39   : > { %1040 = vmatpush2.bf16.msra.mxu0 %v2084_v14  ;;  %2058 = vmatpush2.bf16.msra.mxu1 %v2084_v14  ;;  %v2172_v14 = vld [vmem:[%s2419_s28 + $0xf8] ss:$12 sps:$4 sm:$0xff]  }
  0x3a   : > { %1041 = vmatprep.subr.bf16.mxu0 %v2361_v1  ;;  %2043 = vmatprep.subr.bf16.mxu1 %v2361_v1 }
  0x3d   : > { %1042 = vmatpush2.bf16.msra.mxu0 %v2085_v15  ;;  %2059 = vmatpush2.bf16.msra.mxu1 %v2085_v15  ;;  %v2173_v15 = vld [vmem:[%s2419_s28 + $0x138] ss:$12 sps:$4 sm:$0xff]  }
  0x3e   : > { %1043 = vmatprep.subr.bf16.mxu0 %v2361_v1  ;;  %2044 = vmatprep.subr.bf16.mxu1 %v2361_v1 }
  0x41   : > { %1044 = vmatpush2.bf16.msra.mxu0 %v2086_v16  ;;  %2060 = vmatpush2.bf16.msra.mxu1 %v2086_v16  ;;  %v2174_v16 = vld [vmem:[%s2419_s28 + $0x110] ss:$12 sps:$4 sm:$0xff]  }
  0x42   : > { %1045 = vmatprep.subr.bf16.mxu0 %v2361_v1  ;;  %2045 = vmatprep.subr.bf16.mxu1 %v2361_v1 }
  0x45   : > { %1046 = vmatpush2.bf16.msra.mxu0 %v2087_v17  ;;  %2061 = vmatpush2.bf16.msra.mxu1 %v2087_v17  ;;  %v2175_v17 = vld [vmem:[%s2419_s28 + $0x154] ss:$12 sps:$4 sm:$0xff]  }
  0x46   : > { %1047 = vmatprep.subr.bf16.mxu0 %v2361_v1  ;;  %2046 = vmatprep.subr.bf16.mxu1 %v2361_v1  ;;  %v2155_v1 = vld [vmem:[%s2419_s28 + $0xf4] ss:$12 sps:$4 sm:$0xff]  }
  0x49   : > { %1048 = vmatpush2.bf16.msra.mxu0 %v2088_v18  ;;  %2062 = vmatpush2.bf16.msra.mxu1 %v2088_v18  ;;  %v2177_v18 = vld [vmem:[%s2419_s28 + $0x128] ss:$12 sps:$4 sm:$0xff]  }
  0x4a   : > { %1951 = vmatprep.subr.bf16.mxu1 %v2095_v19 }
  0x4c   : > { %1050 = vmatmul.mubr.bf16.vlgmr.msra.gmra.mxu0 %v2089_v20  ;;  %1242 = vmatmul.mubr.bf16.vlgmr.msra.gmra.mxu1 %v2092_v21  ;;  %v2179_v20 = vld [vmem:[%s2419_s28 + $0x140] ss:$12 sps:$4 sm:$0xff]  }
  0x4d   : > { %1952 = vmatpush3.bf16.msra.mxu1 %v2095_v19  ;;  %1057 = vmatprep.mubr.bf16.mxu0 %v2096_v22  ;;  %v2178_v19 = vld [vmem:[%s2419_s28 + $0x150] ss:$12 sps:$4 sm:$0xff]   ;;  %v2180_v21 = vld [vmem:[%s2419_s28 + $0x16c] ss:$12 sps:$4 sm:$0xff]  }
  0x4e   : > { %1249 = vmatprep.mubr.bf16.mxu1 %v2098_v23  ;;  %1953 = vmatprep.subr.bf16.mxu1 %v2102_v24  ;;  %v2182_v22 = vld [vmem:[%s2419_s28 + $0x158] ss:$12 sps:$4 sm:$0xff]   ;;  %v2183_v23 = vld [vmem:[%s2419_s28 + $0x168] ss:$12 sps:$4 sm:$0xff]  }
  0x51   : > { %1954 = vmatpush3.bf16.msra.mxu1 %v2102_v24  ;;  %v2184_v24 = vld [vmem:[%s2419_s28 + $0x170] ss:$12 sps:$4 sm:$0xff]  }
  0x52   : > { %1955 = vmatprep.subr.bf16.mxu1 %v2109_v25 }
  0x54   : > { %1058 = vmatmul.mubr.bf16.gmra.mxu0 %v2100_v26  ;;  %1250 = vmatmul.mubr.bf16.gmra.mxu1 %v2101_v27  ;;  %v2187_v26 = vld [vmem:[%s2419_s28 + $0x188] ss:$12 sps:$4 sm:$0xff]   ;;  %v2188_v27 = vld [vmem:[%s2419_s28 + $0x180] ss:$12 sps:$4 sm:$0xff]  }
  0x55   : > { %1065 = vmatprep.mubr.bf16.mxu0 %v2103_v28  ;;  %1257 = vmatprep.mubr.bf16.mxu1 %v2105_v29  ;;  %v2189_v28 = vld [vmem:[%s2419_s28 + $0x1a0] ss:$12 sps:$4 sm:$0xff]   ;;  %v2190_v29 = vld [vmem:[%s2419_s28 + $0x19c] ss:$12 sps:$4 sm:$0xff]  }
  0x56   : > { %1956 = vmatpush3.bf16.msra.mxu1 %v2109_v25  ;;  %v2185_v25 = vld [vmem:[%s2419_s28 + $0x184] ss:$12 sps:$4 sm:$0xff]  }
  0x57   : > { %1957 = vmatprep.subr.bf16.mxu1 %v2116_v30 }
  0x5a   : > { %1958 = vmatpush3.bf16.msra.mxu1 %v2116_v30  ;;  %v2192_v30 = vld [vmem:[%s2419_s28 + $0x1b8] ss:$12 sps:$4 sm:$0xff]  }
  0x5b   : > { %1959 = vmatprep.subr.bf16.mxu1 %v2123_v32 }
  0x5c   : > { %1066 = vmatmul.mubr.bf16.gmra.mxu0 %v2107_v31  ;;  %1258 = vmatmul.mubr.bf16.gmra.mxu1 %v2108_v33  ;;  %v2193_v31 = vld [vmem:[%s2419_s28 + $0x198] ss:$12 sps:$4 sm:$0xff]   ;;  %v2195_v33 = vld [vmem:[%s2419_s28 + $0x1b4] ss:$12 sps:$4 sm:$0xff]  }
  0x5d   : > { %1073 = vmatprep.mubr.bf16.mxu0 %v2110_v34  ;;  %1265 = vmatprep.mubr.bf16.mxu1 %v2112_v35  ;;  %v2197_v34 = vld [vmem:[%s2419_s28 + $0x1e8] ss:$12 sps:$4 sm:$0xff]   ;;  %v2198_v35 = vld [vmem:[%s2419_s28 + $0x1b0] ss:$12 sps:$4 sm:$0xff]  }
  0x5e   : > { %1960 = vmatpush3.bf16.msra.mxu1 %v2123_v32  ;;  %v2194_v32 = vld [vmem:[%s2419_s28 + $0x1d0] ss:$12 sps:$4 sm:$0xff]  }
  0x5f   : > { %1961 = vmatprep.subr.bf16.mxu1 %v2130_v36 }
  0x62   : > { %1962 = vmatpush3.bf16.msra.mxu1 %v2130_v36  ;;  %v2199_v36 = vld [vmem:[%s2419_s28 + $0x200] ss:$12 sps:$4 sm:$0xff]  }
  0x63   : > { %1963 = vmatprep.subr.bf16.mxu1 %v2137_v41 }
  0x64   : > { %1074 = vmatmul.mubr.bf16.gmra.mxu0 %v2114_v37  ;;  %1266 = vmatmul.mubr.bf16.gmra.mxu1 %v2115_v38  ;;  %v2200_v37 = vld [vmem:[%s2419_s28 + $0x1cc] ss:$12 sps:$4 sm:$0xff]  }
  0x65   : > { %1081 = vmatprep.mubr.bf16.mxu0 %v2117_v39  ;;  %1273 = vmatprep.mubr.bf16.mxu1 %v2119_v40  ;;  %v2202_v38 = vld [vmem:[%s2419_s28 + $0x218] ss:$12 sps:$4 sm:$0xff]   ;;  %v2203_v39 = vld [vmem:[%s2419_s28 + $0x1c8] ss:$12 sps:$4 sm:$0xff]   ;;  %v2204_v40 = vld [vmem:[%s2419_s28 + $0x230] ss:$12 sps:$4 sm:$0xff]  }
  0x66   : > { %1964 = vmatpush3.bf16.msra.mxu1 %v2137_v41  ;;  %v2205_v41 = vld [vmem:[%s2419_s28 + $0x1e4] ss:$12 sps:$4 sm:$0xff]  }
  0x67   : > { %1965 = vmatprep.subr.bf16.mxu1 %v2144_v42 }
  0x6a   : > { %1966 = vmatpush3.bf16.msra.mxu1 %v2144_v42  ;;  %v2207_v42 = vld [vmem:[%s2419_s28 + $0x248] ss:$12 sps:$4 sm:$0xff]  }
  0x6c   : > { %1082 = vmatmul.mubr.bf16.gmra.mxu0 %v2121_v43  ;;  %1274 = vmatmul.mubr.bf16.gmra.mxu1 %v2122_v44  ;;  %v2208_v43 = vld [vmem:[%s2419_s28 + $0x1e0] ss:$12 sps:$4 sm:$0xff]  }
  0x6d   : > { %1089 = vmatprep.mubr.bf16.mxu0 %v2124_v45  ;;  %1281 = vmatprep.mubr.bf16.mxu1 %v2126_v46  ;;  %v2209_v44 = vld [vmem:[%s2419_s28 + $0x260] ss:$12 sps:$4 sm:$0xff]   ;;  %v2210_v45 = vld [vmem:[%s2419_s28 + $0x1fc] ss:$12 sps:$4 sm:$0xff]   ;;  %v2212_v46 = vld [vmem:[%s2419_s28 + $0x278] ss:$12 sps:$4 sm:$0xff]  }
  0x74   : > { %1090 = vmatmul.mubr.bf16.gmra.mxu0 %v2128_v47  ;;  %1282 = vmatmul.mubr.bf16.gmra.mxu1 %v2129_v48  ;;  %v2213_v47 = vld [vmem:[%s2419_s28 + $0x1f8] ss:$12 sps:$4 sm:$0xff]   ;;  %v2214_v48 = vld [vmem:[%s2419_s28 + $0x290] ss:$12 sps:$4 sm:$0xff]  }
  0x75   : > { %1097 = vmatprep.mubr.bf16.mxu0 %v2131_v49  ;;  %1289 = vmatprep.mubr.bf16.mxu1 %v2133_v50  ;;  %v2215_v49 = vld [vmem:[%s2419_s28 + $0x214] ss:$12 sps:$4 sm:$0xff]  }
  0x76   : > { %v2217_v50 = vld [vmem:[%s2419_s28 + $0x2a8] ss:$12 sps:$4 sm:$0xff]  }
  0x7c   : > { %1098 = vmatmul.mubr.bf16.gmra.mxu0 %v2135_v51  ;;  %1290 = vmatmul.mubr.bf16.gmra.mxu1 %v2136_v52  ;;  %v2218_v51 = vld [vmem:[%s2419_s28 + $0x210] ss:$12 sps:$4 sm:$0xff]   ;;  %v2219_v52 = vld [vmem:[%s2419_s28 + $0x2c0] ss:$12 sps:$4 sm:$0xff]  }
  0x7d   : > { %1105 = vmatprep.mubr.bf16.mxu0 %v2138_v53  ;;  %1297 = vmatprep.mubr.bf16.mxu1 %v2140_v54  ;;  %v2220_v53 = vld [vmem:[%s2419_s28 + $0x22c] ss:$12 sps:$4 sm:$0xff]  }
  0x7e   : > { %v2222_v54 = vld [vmem:[%s2419_s28 + $0x2d8] ss:$12 sps:$4 sm:$0xff]  }
  0x84   : > { %1106 = vmatmul.mubr.bf16.gmra.mxu0 %v2142_v55  ;;  %1298 = vmatmul.mubr.bf16.gmra.mxu1 %v2143_v56  ;;  %v2223_v55 = vld [vmem:[%s2419_s28 + $0x228] ss:$12 sps:$4 sm:$0xff]   ;;  %v2224_v56 = vld [vmem:[%s2419_s28 + $0x2f0] ss:$12 sps:$4 sm:$0xff]  }
  0x85   : > { %1113 = vmatprep.mubr.bf16.mxu0 %v2145_v57  ;;  %1967 = vmatprep.mubr.bf16.mxu1 %v2147_v58 }
  0x8c   : > { %1114 = vmatmul.mubr.bf16.gmra.mxu0 %v2148_v59  ;;  %1968 = vmatmul.mubr.bf16.vlgmr.msra.gmra.mxu1 %v2149_v60 }
  0x8d   : > { %1121 = vmatprep.mubr.bf16.mxu0 %v2150_v61  ;;  %1971 = vmatprep.mubr.bf16.mxu1 %v2152_v62 }
  0x94   : > { %1122 = vmatmul.mubr.bf16.gmra.mxu0 %v2153_v63  ;;  %1972 = vmatmul.mubr.bf16.gmra.mxu1 %v2154_v0 }
  0x95   : > { %1129 = vmatprep.mubr.bf16.mxu0 %v2155_v1  ;;  %1975 = vmatprep.mubr.bf16.mxu1 %v2157_v2 }
  0x9c   : > { %1130 = vmatmul.mubr.bf16.gmra.mxu0 %v2158_v3  ;;  %1976 = vmatmul.mubr.bf16.gmra.mxu1 %v2159_v4 }
  0x9d   : > { %1137 = vmatprep.mubr.bf16.mxu0 %v2160_v5  ;;  %1979 = vmatprep.mubr.bf16.mxu1 %v2162_v6 }
  0xa4   : > { %1138 = vmatmul.mubr.bf16.gmra.mxu0 %v2163_v7  ;;  %1980 = vmatmul.mubr.bf16.gmra.mxu1 %v2164_v8 }
  0xa5   : > { %1145 = vmatprep.mubr.bf16.mxu0 %v2165_v9  ;;  %1983 = vmatprep.mubr.bf16.mxu1 %v2167_v10 }
  0xac   : > { %1146 = vmatmul.mubr.bf16.gmra.mxu0 %v2168_v11  ;;  %1984 = vmatmul.mubr.bf16.gmra.mxu1 %v2169_v12 }
  0xad   : > { %1153 = vmatprep.mubr.bf16.mxu0 %v2170_v13  ;;  %1987 = vmatprep.mubr.bf16.mxu1 %v2172_v14 }
  0xb4   : > { %1154 = vmatmul.mubr.bf16.gmra.mxu0 %v2173_v15  ;;  %1988 = vmatmul.mubr.bf16.gmra.mxu1 %v2174_v16 }
  0xb5   : > { %1161 = vmatprep.mubr.bf16.mxu0 %v2175_v17  ;;  %1991 = vmatprep.mubr.bf16.mxu1 %v2177_v18 }
  0xbc   : > { %1162 = vmatmul.mubr.bf16.gmra.mxu0 %v2178_v19  ;;  %1992 = vmatmul.mubr.bf16.gmra.mxu1 %v2179_v20 }
  0xbd   : > { %1169 = vmatprep.mubr.bf16.mxu0 %v2180_v21  ;;  %1995 = vmatprep.mubr.bf16.mxu1 %v2182_v22 }
  0xc4   : > { %1170 = vmatmul.mubr.bf16.gmra.mxu0 %v2183_v23  ;;  %1996 = vmatmul.mubr.bf16.gmra.mxu1 %v2184_v24 }
  0xc5   : > { %1177 = vmatprep.mubr.bf16.mxu0 %v2185_v25  ;;  %1999 = vmatprep.mubr.bf16.mxu1 %v2187_v26 }
  0xcc   : > { %1178 = vmatmul.mubr.bf16.gmra.mxu0 %v2188_v27  ;;  %2000 = vmatmul.mubr.bf16.gmra.mxu1 %v2189_v28 }
  0xcd   : > { %1185 = vmatprep.mubr.bf16.mxu0 %v2190_v29  ;;  %2003 = vmatprep.mubr.bf16.mxu1 %v2192_v30 }
  0xd4   : > { %1186 = vmatmul.mubr.bf16.gmra.mxu0 %v2193_v31  ;;  %2004 = vmatmul.mubr.bf16.gmra.mxu1 %v2194_v32 }
  0xd5   : > { %1193 = vmatprep.mubr.bf16.mxu0 %v2195_v33  ;;  %2007 = vmatprep.mubr.bf16.mxu1 %v2197_v34 }
  0xdc   : > { %1194 = vmatmul.mubr.bf16.gmra.mxu0 %v2198_v35  ;;  %2008 = vmatmul.mubr.bf16.gmra.mxu1 %v2199_v36 }
  0xdd   : > { %1201 = vmatprep.mubr.bf16.mxu0 %v2200_v37  ;;  %2011 = vmatprep.mubr.bf16.mxu1 %v2202_v38 }
  0xe4   : > { %1202 = vmatmul.mubr.bf16.gmra.mxu0 %v2203_v39  ;;  %2012 = vmatmul.mubr.bf16.gmra.mxu1 %v2204_v40 }
  0xe5   : > { %1209 = vmatprep.mubr.bf16.mxu0 %v2205_v41  ;;  %2015 = vmatprep.mubr.bf16.mxu1 %v2207_v42 }
  0xec   : > { %1210 = vmatmul.mubr.bf16.gmra.mxu0 %v2208_v43  ;;  %2016 = vmatmul.mubr.bf16.gmra.mxu1 %v2209_v44 }
  0xed   : > { %1217 = vmatprep.mubr.bf16.mxu0 %v2210_v45  ;;  %2019 = vmatprep.mubr.bf16.mxu1 %v2212_v46 }
  0xf4   : > { %1218 = vmatmul.mubr.bf16.gmra.mxu0 %v2213_v47  ;;  %2020 = vmatmul.mubr.bf16.gmra.mxu1 %v2214_v48 }
  0xf5   : > { %1225 = vmatprep.mubr.bf16.mxu0 %v2215_v49  ;;  %2023 = vmatprep.mubr.bf16.mxu1 %v2217_v50 }
  0xfc   : > { %1226 = vmatmul.mubr.bf16.gmra.mxu0 %v2218_v51  ;;  %2024 = vmatmul.mubr.bf16.gmra.mxu1 %v2219_v52 }
  0xfd   : > { %1233 = vmatprep.mubr.bf16.mxu0 %v2220_v53  ;;  %2027 = vmatprep.mubr.bf16.mxu1 %v2222_v54 }
 0x104   : > { %1234 = vmatmul.mubr.bf16.gmra.mxu0 %v2223_v55  ;;  %2028 = vmatmul.mubr.bf16.gmra.mxu1 %v2224_v56  ;;  %v2659_v55 = vld [vmem:[%s2865_s2] ss:$0 sm:$0xff] }
 0x10c   : > { %v2598_v57 = vpop.f32.mrf.mxu0  ;;  %v2600_v58 = vpop.f32.mrf.mxu1 }
 0x10e   : > { %v1053_v59 = vpop.f32.mrf.mxu0  ;;  %v1245_v60 = vpop.f32.mrf.mxu1 }
 0x110   : > { %v2602_v61 = vpop.f32.mrf.mxu0  ;;  %v2604_v62 = vpop.f32.mrf.mxu1 }
 0x112   : > { %v1056_v63 = vpop.f32.mrf.mxu0  ;;  %v1248_v0 = vpop.f32.mrf.mxu1 }
 0x114   : > { %v1059_v1 = vpop.f32.mrf.mxu0  ;;  %v2606_v2 = vpop.f32.mrf.mxu1 }
 0x115   : > { %v1060_v60 = vadd.f32 %v2659_v55, %v1059_v1 }
 0x116   : > { %v1061_v3 = vpop.f32.mrf.mxu0  ;;  %v1253_v4 = vpop.f32.mrf.mxu1 }
 0x117   : > { %v1052_v3 = vadd.f32 %v2659_v55, %v2598_v57 }
 0x118   : > { %v1062_v5 = vpop.f32.mrf.mxu0  ;;  %v2608_v6 = vpop.f32.mrf.mxu1 }
 0x11a   : > { %v1064_v7 = vpop.f32.mrf.mxu0  ;;  %v1256_v8 = vpop.f32.mrf.mxu1 }
 0x11c   : > { %v2610_v9 = vpop.f32.mrf.mxu0  ;;  %v2612_v10 = vpop.f32.mrf.mxu1 }
 0x11e   : > { %v1069_v11 = vpop.f32.mrf.mxu0  ;;  %v1261_v12 = vpop.f32.mrf.mxu1 }
 0x11f   : > { %v1063_v11 = vadd.f32 %v2659_v55, %v1062_v5 }
 0x120   : > { %v2614_v13 = vpop.f32.mrf.mxu0  ;;  %v2616_v14 = vpop.f32.mrf.mxu1 }
 0x122   : > { %v1072_v15 = vpop.f32.mrf.mxu0  ;;  %v1264_v16 = vpop.f32.mrf.mxu1 }
 0x124   : > { %v1075_v17 = vpop.f32.mrf.mxu0  ;;  %v2618_v18 = vpop.f32.mrf.mxu1 }
 0x125   : > { %v1076_v57 = vadd.f32 %v2659_v55, %v1075_v17 }
 0x126   : > { %v1077_v19 = vpop.f32.mrf.mxu0  ;;  %v1269_v20 = vpop.f32.mrf.mxu1 }
 0x127   : > { %v1055_v19 = vadd.f32 %v2659_v55, %v2602_v61 }
 0x128   : > { %v2620_v21 = vpop.f32.mrf.mxu0  ;;  %v2622_v22 = vpop.f32.mrf.mxu1 }
 0x129   : > { %v1079_v61 = vadd.f32 %v2659_v55, %v2620_v21 }
 0x12a   : > { %v1080_v23 = vpop.f32.mrf.mxu0  ;;  %v1272_v24 = vpop.f32.mrf.mxu1 }
 0x12c   : > { %v2624_v25 = vpop.f32.mrf.mxu0  ;;  %v2626_v26 = vpop.f32.mrf.mxu1 }
 0x12e   : > { %v1085_v27 = vpop.f32.mrf.mxu0  ;;  %v1277_v28 = vpop.f32.mrf.mxu1 }
 0x12f   : > { %v1068_v28 = vadd.f32 %v2659_v55, %v2610_v9 }
 0x130   : > { %v2628_v29 = vpop.f32.mrf.mxu0  ;;  %v2630_v30 = vpop.f32.mrf.mxu1 }
 0x132   : > { %v1088_v31 = vpop.f32.mrf.mxu0  ;;  %v1280_v32 = vpop.f32.mrf.mxu1 }
 0x134   : > { %v2632_v33 = vpop.f32.mrf.mxu0  ;;  %v2634_v34 = vpop.f32.mrf.mxu1 }
 0x136   : > { %v1093_v35 = vpop.f32.mrf.mxu0  ;;  %v1285_v36 = vpop.f32.mrf.mxu1 }
 0x138   : > { %v2636_v37 = vpop.f32.mrf.mxu0  ;;  %v2638_v38 = vpop.f32.mrf.mxu1 }
 0x13a   : > { %v1096_v39 = vpop.f32.mrf.mxu0  ;;  %v1288_v40 = vpop.f32.mrf.mxu1 }
 0x13b   : > { %v1071_v40 = vadd.f32 %v2659_v55, %v2614_v13 }
 0x13c   : > { %v2640_v41 = vpop.f32.mrf.mxu0  ;;  %v2642_v42 = vpop.f32.mrf.mxu1 }
 0x13e   : > { %v1101_v43 = vpop.f32.mrf.mxu0  ;;  %v1293_v44 = vpop.f32.mrf.mxu1 }
 0x13f   : > { %v1092_v44 = vadd.f32 %v2659_v55, %v2632_v33  ;;  %v1095_v33 = vadd.f32 %v2659_v55, %v2636_v37 }
 0x140   : > { %v2644_v45 = vpop.f32.mrf.mxu0  ;;  %v2646_v46 = vpop.f32.mrf.mxu1 }
 0x142   : > { %v1104_v47 = vpop.f32.mrf.mxu0  ;;  %v1296_v48 = vpop.f32.mrf.mxu1 }
 0x144   : > { %v2648_v49 = vpop.f32.mrf.mxu0  ;;  %v2650_v50 = vpop.f32.mrf.mxu1 }
 0x145   : > { %v1108_v37 = vadd.f32 %v2659_v55, %v2648_v49 }
 0x146   : > { %v1109_v51 = vpop.f32.mrf.mxu0  ;;  %v1301_v52 = vpop.f32.mrf.mxu1 }
 0x147   : > { %v1084_v52 = vadd.f32 %v2659_v55, %v2624_v25  ;;  %v1087_v25 = vadd.f32 %v2659_v55, %v2628_v29  ;;  %v1100_v29 = vadd.f32 %v2659_v55, %v2640_v41  ;;  %v1103_v41 = vadd.f32 %v2659_v55, %v2644_v45 }
 0x148   : > { %v2652_v53 = vpop.f32.mrf.mxu0  ;;  %v2654_v54 = vpop.f32.mrf.mxu1 }
 0x149   : > { %v1111_v49 = vadd.f32 %v2659_v55, %v2652_v53 }
 0x14a   : > { %v1112_v56 = vpop.f32.mrf.mxu0  ;;  %v1304_v59 = vpop.f32.mrf.mxu1 }
 0x14c   : > { %v2662_v63 = vpop.f32.mrf.mxu0  ;;  %v1969_v0 = vpop.f32.mrf.mxu1 }
 0x14d   : > { %v1349_v4 = vadd.f32 %v1969_v0, %v1060_v60  ;;  %v1116_v45 = vadd.f32 %v2659_v55, %v2662_v63 }
 0x14e   : > { %v1117_v7 = vpop.f32.mrf.mxu0  ;;  %v1340_v8 = vpop.f32.mrf.mxu1 }
 0x14f   : > { %2225 = vtanh.f32 %v1349_v4  ;;  %v1341_v12 = vadd.f32 %v1340_v8, %v1052_v3 }
 0x150   : > { %v2667_v15 = vpop.f32.mrf.mxu0  ;;  %v1970_v16 = vpop.f32.mrf.mxu1 }
 0x151   : > { %2227 = vtanh.f32 %v1341_v12  ;;  %v1352_v1 = vadd.f32 %v1970_v16, %v1063_v11  ;;  %v1119_v63 = vadd.f32 %v2659_v55, %v2667_v15 }
 0x152   : > { %v1120_v20 = vpop.f32.mrf.mxu0  ;;  %v1343_v23 = vpop.f32.mrf.mxu1 }
 0x153   : > { %2229 = vtanh.f32 %v1352_v1  ;;  %v1344_v24 = vadd.f32 %v1343_v23, %v1055_v19 }
 0x154   : > { %v2672_v27 = vpop.f32.mrf.mxu0  ;;  %v1973_v5 = vpop.f32.mrf.mxu1 }
 0x155   : > { %2231 = vtanh.f32 %v1344_v24  ;;  %v1365_v31 = vadd.f32 %v1973_v5, %v1076_v57  ;;  %v1124_v53 = vadd.f32 %v2659_v55, %v2672_v27 }
 0x156   : > { %v1125_v32 = vpop.f32.mrf.mxu0  ;;  %v1356_v35 = vpop.f32.mrf.mxu1 }
 0x157   : > { %2233 = vtanh.f32 %v1365_v31  ;;  %v1357_v36 = vadd.f32 %v1356_v35, %v1068_v28 }
 0x158   : > { %v2679_v39 = vpop.f32.mrf.mxu0  ;;  %v1974_v17 = vpop.f32.mrf.mxu1 }
 0x159   : > { %2235 = vtanh.f32 %v1357_v36  ;;  %v1368_v43 = vadd.f32 %v1974_v17, %v1079_v61  ;;  %v1127_v27 = vadd.f32 %v2659_v55, %v2679_v39 }
 0x15a   : > { %v1128_v9 = vpop.f32.mrf.mxu0  ;;  %v1359_v21 = vpop.f32.mrf.mxu1 }
 0x15b   : > { %2237 = vtanh.f32 %v1368_v43  ;;  %v1360_v47 = vadd.f32 %v1359_v21, %v1071_v40 }
 0x15c   : > { %v2226_v48 = vpop.eup %2225  ;;  %v2690_v51 = vpop.f32.mrf.mxu0 }
 0x15d   : > { %v1977_v13 = vpop.f32.mrf.mxu1  ;;  %1661 = vst [vmem:[%s2686_s22 + $0x10] sm:$0xff] %v2226_v48  ;;  %2239 = vtanh.f32 %v1360_v47 }
 0x15e   : > { %v1381_v56 = vadd.f32 %v1977_v13, %v1092_v44  ;;  %v2228_v59 = vpop.eup %2227  ;;  %v1133_v60 = vpop.f32.mrf.mxu0 }
 0x15f   : > { %v1372_v0 = vpop.f32.mrf.mxu1  ;;  %1659 = vst [vmem:[%s2686_s22] sm:$0xff] %v2228_v59 }
 0x160   : > { %2241 = vtanh.f32 %v1381_v56  ;;  %v1373_v3 = vadd.f32 %v1372_v0, %v1084_v52  ;;  %v2230_v4 = vpop.eup %2229  ;;  %v2698_v7 = vpop.f32.mrf.mxu0 }
 0x161   : > { %v1978_v8 = vpop.f32.mrf.mxu1  ;;  %1662 = vst [vmem:[%s2686_s22 + $0x18] sm:$0xff] %v2230_v4 }
 0x162   : > { %2243 = vtanh.f32 %v1373_v3  ;;  %v1384_v11 = vadd.f32 %v1978_v8, %v1095_v33  ;;  %v2232_v12 = vpop.eup %2231  ;;  %v1136_v16 = vpop.f32.mrf.mxu0 }
 0x163   : > { %v1375_v19 = vpop.f32.mrf.mxu1  ;;  %1660 = vst [vmem:[%s2686_s22 + $0x8] sm:$0xff] %v2232_v12 }
 0x164   : > { %2245 = vtanh.f32 %v1384_v11  ;;  %v1376_v1 = vadd.f32 %v1375_v19, %v1087_v25  ;;  %v2234_v20 = vpop.eup %2233  ;;  %v1139_v23 = vpop.f32.mrf.mxu0 }
 0x165   : > { %v1981_v57 = vpop.f32.mrf.mxu1  ;;  %1665 = vst [vmem:[%s2686_s22 + $0x30] sm:$0xff] %v2234_v20  ;;  %v1140_v39 = vadd.f32 %v2659_v55, %v1139_v23 }
 0x166   : > { %2247 = vtanh.f32 %v1376_v1  ;;  %v1397_v24 = vadd.f32 %v1981_v57, %v1108_v37  ;;  %v2236_v5 = vpop.eup %2235  ;;  %v1141_v28 = vpop.f32.mrf.mxu0  ;;  %v1132_v1 = vadd.f32 %v2659_v55, %v2690_v51 }
 0x167   : > { %v1388_v31 = vpop.f32.mrf.mxu1  ;;  %1663 = vst [vmem:[%s2686_s22 + $0x20] sm:$0xff] %v2236_v5 }
 0x168   : > { %2249 = vtanh.f32 %v1397_v24  ;;  %v1389_v32 = vadd.f32 %v1388_v31, %v1100_v29  ;;  %v2238_v35 = vpop.eup %2237  ;;  %v1142_v61 = vpop.f32.mrf.mxu0 }
 0x169   : > { %v1982_v36 = vpop.f32.mrf.mxu1  ;;  %1666 = vst [vmem:[%s2686_s22 + $0x38] sm:$0xff] %v2238_v35  ;;  %v1143_v24 = vadd.f32 %v2659_v55, %v1142_v61 }
 0x16a   : > { %2251 = vtanh.f32 %v1389_v32  ;;  %v1400_v17 = vadd.f32 %v1982_v36, %v1111_v49  ;;  %v2240_v40 = vpop.eup %2239  ;;  %v1144_v43 = vpop.f32.mrf.mxu0  ;;  %v1135_v49 = vadd.f32 %v2659_v55, %v2698_v7 }
 0x16b   : > { %v1391_v9 = vpop.f32.mrf.mxu1  ;;  %1664 = vst [vmem:[%s2686_s22 + $0x28] sm:$0xff] %v2240_v40 }
 0x16c   : > { %2253 = vtanh.f32 %v1400_v17  ;;  %v1392_v21 = vadd.f32 %v1391_v9, %v1103_v41  ;;  %v1147_v47 = vpop.f32.mrf.mxu0 }
 0x16d   : > { %v2242_v44 = vpop.eup %2241  ;;  %v1985_v48 = vpop.f32.mrf.mxu1  ;;  %v1148_v9 = vadd.f32 %v2659_v55, %v1147_v47 }
 0x16e   : > { %1669 = vst [vmem:[%s2686_s22 + $0x50] sm:$0xff] %v2242_v44  ;;  %2255 = vtanh.f32 %v1392_v21  ;;  %v1413_v13 = vadd.f32 %v1985_v48, %v1124_v53  ;;  %v1149_v56 = vpop.f32.mrf.mxu0 }
 0x16f   : > { %v2244_v52 = vpop.eup %2243  ;;  %v1404_v59 = vpop.f32.mrf.mxu1 }
 0x170   : > { %1667 = vst [vmem:[%s2686_s22 + $0x40] sm:$0xff] %v2244_v52  ;;  %2257 = vtanh.f32 %v1413_v13  ;;  %v1405_v60 = vadd.f32 %v1404_v59, %v1116_v45  ;;  %v1150_v33 = vpop.f32.mrf.mxu0 }
 0x171   : > { %v2246_v0 = vpop.eup %2245  ;;  %v1986_v3 = vpop.f32.mrf.mxu1  ;;  %v1151_v59 = vadd.f32 %v2659_v55, %v1150_v33 }
 0x172   : > { %1670 = vst [vmem:[%s2686_s22 + $0x58] sm:$0xff] %v2246_v0  ;;  %2259 = vtanh.f32 %v1405_v60  ;;  %v1416_v4 = vadd.f32 %v1986_v3, %v1127_v27  ;;  %v1152_v25 = vpop.f32.mrf.mxu0 }
 0x173   : > { %v2248_v8 = vpop.eup %2247  ;;  %v1407_v11 = vpop.f32.mrf.mxu1 }
 0x174   : > { %1668 = vst [vmem:[%s2686_s22 + $0x48] sm:$0xff] %v2248_v8  ;;  %2261 = vtanh.f32 %v1416_v4  ;;  %v1408_v12 = vadd.f32 %v1407_v11, %v1119_v63  ;;  %v1155_v19 = vpop.f32.mrf.mxu0 }
 0x175   : > { %v2250_v16 = vpop.eup %2249  ;;  %v1989_v37 = vpop.f32.mrf.mxu1  ;;  %v1156_v41 = vadd.f32 %v2659_v55, %v1155_v19 }
 0x176   : > { %1673 = vst [vmem:[%s2686_s22 + $0x70] sm:$0xff] %v2250_v16  ;;  %2263 = vtanh.f32 %v1408_v12  ;;  %v1429_v15 = vadd.f32 %v1989_v37, %v1140_v39  ;;  %v1157_v57 = vpop.f32.mrf.mxu0 }
 0x177   : > { %v2252_v20 = vpop.eup %2251  ;;  %v1420_v29 = vpop.f32.mrf.mxu1 }
 0x178   : > { %1671 = vst [vmem:[%s2686_s22 + $0x60] sm:$0xff] %v2252_v20  ;;  %2265 = vtanh.f32 %v1429_v15  ;;  %v1421_v23 = vadd.f32 %v1420_v29, %v1132_v1  ;;  %v1158_v28 = vpop.f32.mrf.mxu0 }
 0x179   : > { %v2254_v5 = vpop.eup %2253  ;;  %v1990_v31 = vpop.f32.mrf.mxu1  ;;  %v1159_v48 = vadd.f32 %v2659_v55, %v1158_v28 }
 0x17a   : > { %1674 = vst [vmem:[%s2686_s22 + $0x78] sm:$0xff] %v2254_v5  ;;  %2267 = vtanh.f32 %v1421_v23  ;;  %v1432_v51 = vadd.f32 %v1990_v31, %v1143_v24  ;;  %v1160_v35 = vpop.f32.mrf.mxu0 }
 0x17b   : > { %v2256_v32 = vpop.eup %2255  ;;  %v1423_v36 = vpop.f32.mrf.mxu1 }
 0x17c   : > { %1672 = vst [vmem:[%s2686_s22 + $0x68] sm:$0xff] %v2256_v32  ;;  %2269 = vtanh.f32 %v1432_v51  ;;  %v1424_v61 = vadd.f32 %v1423_v36, %v1135_v49  ;;  %v1163_v40 = vpop.f32.mrf.mxu0 }
 0x17d   : > { %v2258_v17 = vpop.eup %2257  ;;  %v1993_v43 = vpop.f32.mrf.mxu1  ;;  %v1164_v25 = vadd.f32 %v2659_v55, %v1163_v40 }
 0x17e   : > { %1677 = vst [vmem:[%s2686_s22 + $0x90] sm:$0xff] %v2258_v17  ;;  %2271 = vtanh.f32 %v1424_v61  ;;  %v1445_v7 = vadd.f32 %v1993_v43, %v1156_v41  ;;  %v1165_v21 = vpop.f32.mrf.mxu0 }
 0x17f   : > { %v2260_v53 = vpop.eup %2259  ;;  %v1436_v44 = vpop.f32.mrf.mxu1 }
 0x180   : > { %1675 = vst [vmem:[%s2686_s22 + $0x80] sm:$0xff] %v2260_v53  ;;  %2273 = vtanh.f32 %v1445_v7  ;;  %v1437_v45 = vadd.f32 %v1436_v44, %v1148_v9  ;;  %v1166_v52 = vpop.f32.mrf.mxu0 }
 0x181   : > { %v2262_v13 = vpop.eup %2261  ;;  %v1994_v56 = vpop.f32.mrf.mxu1  ;;  %v1167_v20 = vadd.f32 %v2659_v55, %v1166_v52 }
 0x182   : > { %1678 = vst [vmem:[%s2686_s22 + $0x98] sm:$0xff] %v2262_v13  ;;  %2275 = vtanh.f32 %v1437_v45  ;;  %v1448_v47 = vadd.f32 %v1994_v56, %v1159_v48  ;;  %v1168_v60 = vpop.f32.mrf.mxu0 }
 0x183   : > { %v2264_v27 = vpop.eup %2263  ;;  %v1439_v0 = vpop.f32.mrf.mxu1 }
 0x184   : > { %1676 = vst [vmem:[%s2686_s22 + $0x88] sm:$0xff] %v2264_v27  ;;  %2277 = vtanh.f32 %v1448_v47  ;;  %v1440_v3 = vadd.f32 %v1439_v0, %v1151_v59  ;;  %v1171_v4 = vpop.f32.mrf.mxu0 }
 0x185   : > { %v2266_v63 = vpop.eup %2265  ;;  %v1997_v8 = vpop.f32.mrf.mxu1  ;;  %v1172_v33 = vadd.f32 %v2659_v55, %v1171_v4 }
 0x186   : > { %1681 = vst [vmem:[%s2686_s22 + $0xb0] sm:$0xff] %v2266_v63  ;;  %2279 = vtanh.f32 %v1440_v3  ;;  %v1173_v39 = vpop.f32.mrf.mxu0 }
 0x187   : > { %v2268_v11 = vpop.eup %2267  ;;  %v1452_v12 = vpop.f32.mrf.mxu1  ;;  %v1461_v16 = vadd.f32 %v1997_v8, %v1172_v33 }
 0x188   : > { %1679 = vst [vmem:[%s2686_s22 + $0xa0] sm:$0xff] %v2268_v11  ;;  %v1453_v19 = vadd.f32 %v1452_v12, %v1164_v25  ;;  %v1174_v1 = vpop.f32.mrf.mxu0 }
 0x189   : > { %v2270_v37 = vpop.eup %2269  ;;  %v1998_v15 = vpop.f32.mrf.mxu1  ;;  %2281 = vtanh.f32 %v1461_v16  ;;  %v1175_v57 = vadd.f32 %v2659_v55, %v1174_v1 }
 0x18a   : > { %1682 = vst [vmem:[%s2686_s22 + $0xb8] sm:$0xff] %v2270_v37  ;;  %2283 = vtanh.f32 %v1453_v19  ;;  %v1176_v24 = vpop.f32.mrf.mxu0 }
 0x18b   : > { %v2272_v29 = vpop.eup %2271  ;;  %v1455_v23 = vpop.f32.mrf.mxu1  ;;  %v1464_v5 = vadd.f32 %v1998_v15, %v1175_v57 }
 0x18c   : > { %1680 = vst [vmem:[%s2686_s22 + $0xa8] sm:$0xff] %v2272_v29  ;;  %v1456_v28 = vadd.f32 %v1455_v23, %v1167_v20  ;;  %v1179_v49 = vpop.f32.mrf.mxu0 }
 0x18d   : > { %v2274_v31 = vpop.eup %2273  ;;  %v2001_v51 = vpop.f32.mrf.mxu1  ;;  %2285 = vtanh.f32 %v1464_v5  ;;  %v1180_v32 = vadd.f32 %v2659_v55, %v1179_v49 }
 0x18e   : > { %1685 = vst [vmem:[%s2686_s22 + $0xd0] sm:$0xff] %v2274_v31  ;;  %2287 = vtanh.f32 %v1456_v28  ;;  %v1181_v36 = vpop.f32.mrf.mxu0 }
 0x18f   : > { %v2276_v35 = vpop.eup %2275  ;;  %v1468_v41 = vpop.f32.mrf.mxu1 }
 0x190   : > { %1683 = vst [vmem:[%s2686_s22 + $0xc0] sm:$0xff] %v2276_v35  ;;  %v1469_v61 = vadd.f32 %v1468_v41, %v1180_v32  ;;  %v1182_v40 = vpop.f32.mrf.mxu0 }
 0x191   : > { %v2278_v17 = vpop.eup %2277  ;;  %v2002_v43 = vpop.f32.mrf.mxu1  ;;  %v1183_v9 = vadd.f32 %v2659_v55, %v1182_v40 }
 0x192   : > { %1686 = vst [vmem:[%s2686_s22 + $0xd8] sm:$0xff] %v2278_v17  ;;  %2289 = vtanh.f32 %v1469_v61  ;;  %v1184_v53 = vpop.f32.mrf.mxu0 }
 0x193   : > { %v2280_v7 = vpop.eup %2279  ;;  %v1471_v21 = vpop.f32.mrf.mxu1 }
 0x194   : > { %1684 = vst [vmem:[%s2686_s22 + $0xc8] sm:$0xff] %v2280_v7  ;;  %v1472_v44 = vadd.f32 %v1471_v21, %v1183_v9  ;;  %v1187_v48 = vpop.f32.mrf.mxu0  ;;  %v1252_v7 = vadd.f32 %v2659_v55, %v2606_v2 }
 0x195   : > { %v2005_v45 = vpop.f32.mrf.mxu1  ;;  %v1188_v13 = vadd.f32 %v2659_v55, %v1187_v48  ;;  %v1244_v48 = vadd.f32 %v2659_v55, %v2600_v58  ;;  %v1247_v58 = vadd.f32 %v2659_v55, %v2604_v62  ;;  %v1260_v62 = vadd.f32 %v2659_v55, %v2612_v10 }
 0x196   : > { %2291 = vtanh.f32 %v1472_v44  ;;  %v2282_v52 = vpop.eup %2281  ;;  %v1189_v56 = vpop.f32.mrf.mxu0  ;;  %v1263_v10 = vadd.f32 %v2659_v55, %v2616_v14 }
 0x197   : > { %v1484_v59 = vpop.f32.mrf.mxu1  ;;  %v2284_v47 = vpop.eup %2283  ;;  %1689 = vst [vmem:[%s2686_s22 + $0xf0] sm:$0xff] %v2282_v52  ;;  %v1477_v27 = vadd.f32 %v2001_v51, %v1188_v13 }
 0x198   : > { %1687 = vst [vmem:[%s2686_s22 + $0xe0] sm:$0xff] %v2284_v47  ;;  %v1190_v60 = vpop.f32.mrf.mxu0  ;;  %v1255_v47 = vadd.f32 %v2659_v55, %v2608_v6  ;;  %v1268_v6 = vadd.f32 %v2659_v55, %v2618_v18  ;;  %v1271_v18 = vadd.f32 %v2659_v55, %v2622_v22 }
 0x199   : > { %v2006_v0 = vpop.f32.mrf.mxu1  ;;  %2293 = vtanh.f32 %v1477_v27  ;;  %v1191_v3 = vadd.f32 %v2659_v55, %v1190_v60 }
 0x19a   : > { %v2286_v63 = vpop.eup %2285  ;;  %v1192_v4 = vpop.f32.mrf.mxu0 }
 0x19b   : > { %v1487_v8 = vpop.f32.mrf.mxu1  ;;  %v2288_v25 = vpop.eup %2287  ;;  %1690 = vst [vmem:[%s2686_s22 + $0xf8] sm:$0xff] %v2286_v63  ;;  %v1480_v33 = vadd.f32 %v2002_v43, %v1191_v3 }
 0x19c   : > { %1688 = vst [vmem:[%s2686_s22 + $0xe8] sm:$0xff] %v2288_v25  ;;  %v1195_v11 = vpop.f32.mrf.mxu0 }
 0x19d   : > { %v2766_v39 = vpop.f32.mrf.mxu1  ;;  %2295 = vtanh.f32 %v1480_v33  ;;  %v1196_v12 = vadd.f32 %v2659_v55, %v1195_v11 }
 0x19e   : > { %v1197_v19 = vpop.f32.mrf.mxu0 }
 0x19f   : > { %v2290_v16 = vpop.eup %2289  ;;  %v1500_v37 = vpop.f32.mrf.mxu1  ;;  %v1485_v1 = vadd.f32 %v1484_v59, %v1196_v12 }
 0x1a0   : > { %1691 = vst [vmem:[%s2686_s22 + $0x100] sm:$0xff] %v2290_v16  ;;  %v1198_v15 = vpop.f32.mrf.mxu0 }
 0x1a1   : > { %v2770_v20 = vpop.f32.mrf.mxu1  ;;  %2297 = vtanh.f32 %v1485_v1  ;;  %v1199_v57 = vadd.f32 %v2659_v55, %v1198_v15 }
 0x1a2   : > { %v1200_v24 = vpop.f32.mrf.mxu0 }
 0x1a3   : > { %v2292_v29 = vpop.eup %2291  ;;  %v1503_v23 = vpop.f32.mrf.mxu1  ;;  %v1488_v5 = vadd.f32 %v1487_v8, %v1199_v57 }
 0x1a4   : > { %1692 = vst [vmem:[%s2686_s22 + $0x108] sm:$0xff] %v2292_v29  ;;  %v1203_v28 = vpop.f32.mrf.mxu0 }
 0x1a5   : > { %v2774_v31 = vpop.f32.mrf.mxu1  ;;  %2299 = vtanh.f32 %v1488_v5  ;;  %v1204_v49 = vadd.f32 %v2659_v55, %v1203_v28 }
 0x1a6   : > { %v2294_v51 = vpop.eup %2293  ;;  %v1205_v32 = vpop.f32.mrf.mxu0 }
 0x1a7   : > { %v2777_v35 = vpop.f32.mrf.mxu1  ;;  %1693 = vst [vmem:[%s2686_s22 + $0x110] sm:$0xff] %v2294_v51  ;;  %v1493_v36 = vadd.f32 %v2005_v45, %v1204_v49 }
 0x1a8   : > { %v1206_v41 = vpop.f32.mrf.mxu0 }
 0x1a9   : > { %v2780_v61 = vpop.f32.mrf.mxu1  ;;  %2301 = vtanh.f32 %v1493_v36  ;;  %v1207_v17 = vadd.f32 %v2659_v55, %v1206_v41  ;;  %v1284_v36 = vadd.f32 %v2659_v55, %v2634_v34 }
 0x1aa   : > { %v2296_v40 = vpop.eup %2295  ;;  %v1208_v43 = vpop.f32.mrf.mxu0 }
 0x1ab   : > { %v2783_v9 = vpop.f32.mrf.mxu1  ;;  %1694 = vst [vmem:[%s2686_s22 + $0x118] sm:$0xff] %v2296_v40  ;;  %v1496_v53 = vadd.f32 %v2006_v0, %v1207_v17  ;;  %v1276_v43 = vadd.f32 %v2659_v55, %v2626_v26 }
 0x1ac   : > { %v1211_v21 = vpop.f32.mrf.mxu0 }
 0x1ad   : > { %v2017_v44 = vpop.f32.mrf.mxu1  ;;  %2303 = vtanh.f32 %v1496_v53  ;;  %v1212_v45 = vadd.f32 %v2659_v55, %v1211_v21 }
 0x1ae   : > { %v1541_v13 = vadd.f32 %v2017_v44, %v1252_v7  ;;  %v2298_v52 = vpop.eup %2297  ;;  %v1213_v56 = vpop.f32.mrf.mxu0 }
 0x1af   : > { %v1532_v59 = vpop.f32.mrf.mxu1  ;;  %1695 = vst [vmem:[%s2686_s22 + $0x120] sm:$0xff] %v2298_v52  ;;  %v1501_v2 = vadd.f32 %v1500_v37, %v1212_v45 }
 0x1b0   : > { %2305 = vtanh.f32 %v1541_v13  ;;  %v1533_v27 = vadd.f32 %v1532_v59, %v1244_v48  ;;  %v1214_v60 = vpop.f32.mrf.mxu0  ;;  %v1287_v48 = vadd.f32 %v2659_v55, %v2638_v38  ;;  %v1279_v59 = vadd.f32 %v2659_v55, %v2630_v30 }
 0x1b1   : > { %v2018_v0 = vpop.f32.mrf.mxu1  ;;  %2307 = vtanh.f32 %v1501_v2  ;;  %v1215_v3 = vadd.f32 %v2659_v55, %v1214_v60 }
 0x1b2   : > { %v1544_v63 = vadd.f32 %v2018_v0, %v1255_v47  ;;  %v2300_v4 = vpop.eup %2299  ;;  %2309 = vtanh.f32 %v1533_v27  ;;  %v1216_v8 = vpop.f32.mrf.mxu0  ;;  %v1300_v0 = vadd.f32 %v2659_v55, %v2650_v50 }
 0x1b3   : > { %v1535_v25 = vpop.f32.mrf.mxu1  ;;  %1696 = vst [vmem:[%s2686_s22 + $0x128] sm:$0xff] %v2300_v4  ;;  %v1504_v33 = vadd.f32 %v1503_v23, %v1215_v3  ;;  %v1292_v8 = vadd.f32 %v2659_v55, %v2642_v42 }
 0x1b4   : > { %2311 = vtanh.f32 %v1544_v63  ;;  %v1536_v11 = vadd.f32 %v1535_v25, %v1247_v58  ;;  %v1219_v12 = vpop.f32.mrf.mxu0 }
 0x1b5   : > { %v2021_v16 = vpop.f32.mrf.mxu1  ;;  %2313 = vtanh.f32 %v1504_v33  ;;  %v1220_v19 = vadd.f32 %v2659_v55, %v1219_v12  ;;  %v1303_v12 = vadd.f32 %v2659_v55, %v2654_v54 }
 0x1b6   : > { %v1557_v37 = vadd.f32 %v2021_v16, %v1268_v6  ;;  %v2302_v1 = vpop.eup %2301  ;;  %2315 = vtanh.f32 %v1536_v11  ;;  %v1221_v15 = vpop.f32.mrf.mxu0 }
 0x1b7   : > { %v1548_v57 = vpop.f32.mrf.mxu1  ;;  %1697 = vst [vmem:[%s2686_s22 + $0x130] sm:$0xff] %v2302_v1  ;;  %v1509_v29 = vadd.f32 %v2766_v39, %v1220_v19  ;;  %v1295_v1 = vadd.f32 %v2659_v55, %v2646_v46 }
 0x1b8   : > { %2317 = vtanh.f32 %v1557_v37  ;;  %v1549_v24 = vadd.f32 %v1548_v57, %v1260_v62  ;;  %v1222_v23 = vpop.f32.mrf.mxu0 }
 0x1b9   : > { %v2022_v5 = vpop.f32.mrf.mxu1  ;;  %2319 = vtanh.f32 %v1509_v29  ;;  %v1223_v28 = vadd.f32 %v2659_v55, %v1222_v23 }
 0x1ba   : > { %v1560_v49 = vadd.f32 %v2022_v5, %v1271_v18  ;;  %v2304_v51 = vpop.eup %2303  ;;  %2321 = vtanh.f32 %v1549_v24  ;;  %v1224_v32 = vpop.f32.mrf.mxu0 }
 0x1bb   : > { %v1551_v22 = vpop.f32.mrf.mxu1  ;;  %1698 = vst [vmem:[%s2686_s22 + $0x138] sm:$0xff] %v2304_v51  ;;  %v1512_v39 = vadd.f32 %v2770_v20, %v1223_v28 }
 0x1bc   : > { %2323 = vtanh.f32 %v1560_v49  ;;  %v1552_v41 = vadd.f32 %v1551_v22, %v1263_v10  ;;  %v1227_v14 = vpop.f32.mrf.mxu0 }
 0x1bd   : > { %v2306_v17 = vpop.eup %2305  ;;  %v2025_v40 = vpop.f32.mrf.mxu1  ;;  %2325 = vtanh.f32 %v1512_v39  ;;  %v1228_v7 = vadd.f32 %v2659_v55, %v1227_v14 }
 0x1be   : > { %1709 = vst [vmem:[%s2686_s22 + $0x190] sm:$0xff] %v2306_v17  ;;  %v1573_v53 = vadd.f32 %v2025_v40, %v1284_v36  ;;  %v2308_v34 = vpop.eup %2307  ;;  %2327 = vtanh.f32 %v1552_v41  ;;  %v1229_v21 = vpop.f32.mrf.mxu0 }
 0x1bf   : > { %v1564_v20 = vpop.f32.mrf.mxu1  ;;  %v2310_v44 = vpop.eup %2309  ;;  %1699 = vst [vmem:[%s2686_s22 + $0x140] sm:$0xff] %v2308_v34  ;;  %v1517_v45 = vadd.f32 %v2777_v35, %v1228_v7 }
 0x1c0   : > { %2329 = vtanh.f32 %v1573_v53  ;;  %v1565_v26 = vadd.f32 %v1564_v20, %v1276_v43  ;;  %1707 = vst [vmem:[%s2686_s22 + $0x180] sm:$0xff] %v2310_v44  ;;  %v1230_v52 = vpop.f32.mrf.mxu0 }
 0x1c1   : > { %v2312_v13 = vpop.eup %2311  ;;  %v2026_v56 = vpop.f32.mrf.mxu1  ;;  %2331 = vtanh.f32 %v1517_v45  ;;  %v1231_v47 = vadd.f32 %v2659_v55, %v1230_v52 }
 0x1c2   : > { %1710 = vst [vmem:[%s2686_s22 + $0x198] sm:$0xff] %v2312_v13  ;;  %v1576_v2 = vadd.f32 %v2026_v56, %v1287_v48  ;;  %v2314_v38 = vpop.eup %2313  ;;  %2333 = vtanh.f32 %v1565_v26  ;;  %v1232_v35 = vpop.f32.mrf.mxu0 }
 0x1c3   : > { %v1567_v27 = vpop.f32.mrf.mxu1  ;;  %v2316_v60 = vpop.eup %2315  ;;  %1700 = vst [vmem:[%s2686_s22 + $0x148] sm:$0xff] %v2314_v38  ;;  %v1520_v58 = vadd.f32 %v2783_v9, %v1231_v47 }
 0x1c4   : > { %2335 = vtanh.f32 %v1576_v2  ;;  %v1568_v30 = vadd.f32 %v1567_v27, %v1279_v59  ;;  %1708 = vst [vmem:[%s2686_s22 + $0x188] sm:$0xff] %v2316_v60  ;;  %v1235_v63 = vpop.f32.mrf.mxu0 }
 0x1c5   : > { %v2318_v3 = vpop.eup %2317  ;;  %v2029_v4 = vpop.f32.mrf.mxu1  ;;  %2337 = vtanh.f32 %v1520_v58  ;;  %v1236_v25 = vadd.f32 %v2659_v55, %v1235_v63 }
 0x1c6   : > { %1713 = vst [vmem:[%s2686_s22 + $0x1b0] sm:$0xff] %v2318_v3  ;;  %v1589_v6 = vadd.f32 %v2029_v4, %v1300_v0  ;;  %v2320_v50 = vpop.eup %2319  ;;  %2339 = vtanh.f32 %v1568_v30  ;;  %v1237_v9 = vpop.f32.mrf.mxu0 }
 0x1c7   : > { %v1580_v33 = vpop.f32.mrf.mxu1  ;;  %v2322_v11 = vpop.eup %2321  ;;  %1701 = vst [vmem:[%s2686_s22 + $0x150] sm:$0xff] %v2320_v50  ;;  %v1525_v16 = vadd.f32 %v2774_v31, %v1236_v25 }
 0x1c8   : > { %2341 = vtanh.f32 %v1589_v6  ;;  %v1581_v42 = vadd.f32 %v1580_v33, %v1292_v8  ;;  %1711 = vst [vmem:[%s2686_s22 + $0x1a0] sm:$0xff] %v2322_v11  ;;  %v1238_v19 = vpop.f32.mrf.mxu0 }
 0x1c9   : > { %v2324_v62 = vpop.eup %2323  ;;  %v2030_v37 = vpop.f32.mrf.mxu1  ;;  %2343 = vtanh.f32 %v1525_v16  ;;  %v1239_v15 = vadd.f32 %v2659_v55, %v1238_v19 }
 0x1ca   : > { %1714 = vst [vmem:[%s2686_s22 + $0x1b8] sm:$0xff] %v2324_v62  ;;  %v1592_v54 = vadd.f32 %v2030_v37, %v1303_v12  ;;  %v2326_v57 = vpop.eup %2325  ;;  %2345 = vtanh.f32 %v1581_v42  ;;  %v1240_v31 = vpop.f32.mrf.mxu0 }
 0x1cb   : > { %v1583_v18 = vpop.f32.mrf.mxu1  ;;  %v2328_v29 = vpop.eup %2327  ;;  %1702 = vst [vmem:[%s2686_s22 + $0x158] sm:$0xff] %v2326_v57  ;;  %v1528_v24 = vadd.f32 %v2780_v61, %v1239_v15 }
 0x1cc   : > { %2347 = vtanh.f32 %v1592_v54  ;;  %v1584_v46 = vadd.f32 %v1583_v18, %v1295_v1  ;;  %1712 = vst [vmem:[%s2686_s22 + $0x1a8] sm:$0xff] %v2328_v29 }
 0x1cd   : > { %v2330_v23 = vpop.eup %2329  ;;  %2349 = vtanh.f32 %v1528_v24 }
 0x1ce   : > { %1717 = vst [vmem:[%s2686_s22 + $0x1d0] sm:$0xff] %v2330_v23  ;;  %v2332_v55 = vpop.eup %2331  ;;  %2351 = vtanh.f32 %v1584_v46 }
 0x1cf   : > { %v2334_v5 = vpop.eup %2333  ;;  %1703 = vst [vmem:[%s2686_s22 + $0x160] sm:$0xff] %v2332_v55 }
 0x1d0   : > { %1715 = vst [vmem:[%s2686_s22 + $0x1c0] sm:$0xff] %v2334_v5 }
 0x1d1   : > { %v2336_v10 = vpop.eup %2335 }
 0x1d2   : > { %1718 = vst [vmem:[%s2686_s22 + $0x1d8] sm:$0xff] %v2336_v10  ;;  %v2338_v61 = vpop.eup %2337 }
 0x1d3   : > { %v2340_v28 = vpop.eup %2339  ;;  %1704 = vst [vmem:[%s2686_s22 + $0x168] sm:$0xff] %v2338_v61 }
 0x1d4   : > { %1716 = vst [vmem:[%s2686_s22 + $0x1c8] sm:$0xff] %v2340_v28 }
 0x1d5   : > { %v2342_v49 = vpop.eup %2341 }
 0x1d6   : > { %1721 = vst [vmem:[%s2686_s22 + $0x1f0] sm:$0xff] %v2342_v49  ;;  %v2344_v51 = vpop.eup %2343 }
 0x1d7   : > { %v2346_v32 = vpop.eup %2345  ;;  %1705 = vst [vmem:[%s2686_s22 + $0x170] sm:$0xff] %v2344_v51 }
 0x1d8   : > { %1719 = vst [vmem:[%s2686_s22 + $0x1e0] sm:$0xff] %v2346_v32 }
 0x1d9   : > { %v2348_v22 = vpop.eup %2347 }
 0x1da   : > { %1722 = vst [vmem:[%s2686_s22 + $0x1f8] sm:$0xff] %v2348_v22  ;;  %v2350_v36 = vpop.eup %2349 }
 0x1db   : > { %v2352_v39 = vpop.eup %2351  ;;  %1706 = vst [vmem:[%s2686_s22 + $0x178] sm:$0xff] %v2350_v36 }
 0x1dc   : > { %1720 = vst [vmem:[%s2686_s22 + $0x1e8] sm:$0xff] %v2352_v39 }
 0x1dd PF: > { %s13_s12 = sadd.s32 1, %s2359_s12  }
 0x1de   : > { %p10_p4 = scmp.ge.s32.totalorder %s13_s12, 6  }
 0x1e0   :  { %12 = sbr.rel (!%p10_p4) target bundleno = 1 (0x1), region = 62 }

</bundles_post_ra>
